<compile_context>
chip_gen: v7x
topology: tpu7x:2x2x1
jax: 0.10.0
libtpu: 0.0.40
codegen_flags: <defaults>
</compile_context>

<pallas_src>
import functools

import jax
import jax.numpy as jnp
from jax.experimental import pallas as pl
from jax.experimental.pallas import tpu as pltpu

BN_EPS = 1e-5
TM_MAX = 512          # patch-matrix rows per grid step
LANE = 128

# (Cin, Cout, stride) for conv1..conv6 of LowLevelFeatNet
LAYERS = [
    (1,   64,  2),
    (64,  128, 1),
    (128, 128, 2),
    (128, 256, 1),
    (256, 256, 2),
    (256, 512, 1),
]


def _round_up(x, m):
    return (x + m - 1) // m * m


# ---------------------------------------------------------------------------
# Pallas kernel: fused matmul (BN scale pre-folded into W) + bias + ReLU
# ---------------------------------------------------------------------------
def _matmul_bias_relu_kernel(a_ref, w_ref, b_ref, o_ref):
    # a_ref: [TM, K]  bf16 patches    (streams along the M grid axis)
    # w_ref: [K, TN]  bf16 folded W   (resident across the M grid axis)
    # b_ref: [1, TN]  f32 folded bias (resident)
    acc = jnp.dot(a_ref[...], w_ref[...], preferred_element_type=jnp.float32)
    o_ref[...] = jnp.maximum(acc + b_ref[...], 0.0).astype(o_ref.dtype)


def _matmul_bias_relu(a, w, bias):
    m_pad, k_pad = a.shape
    n_pad = w.shape[1]
    tm = m_pad if m_pad <= TM_MAX else TM_MAX
    tn = n_pad  # Cout <= 512 -> a single lane-dense N tile; weights stay resident
    grid = (m_pad // tm, n_pad // tn)
    return pl.pallas_call(
        _matmul_bias_relu_kernel,
        out_shape=jax.ShapeDtypeStruct((m_pad, n_pad), jnp.bfloat16),
        grid=grid,
        in_specs=[
            pl.BlockSpec((tm, k_pad), lambda i, j: (i, 0)),   # patches: stream over M
            pl.BlockSpec((k_pad, tn), lambda i, j: (0, j)),   # weights: resident
            pl.BlockSpec((1, tn),     lambda i, j: (0, j)),   # bias: resident
        ],
        out_specs=pl.BlockSpec((tm, tn), lambda i, j: (i, j)),
        compiler_params=pltpu.CompilerParams(
            dimension_semantics=("parallel", "parallel"),
            vmem_limit_bytes=32 * 1024 * 1024,
        ),
    )(a, w, bias)


# ---------------------------------------------------------------------------
# One Conv(3x3, pad=1) + BN(eval) + ReLU layer
# ---------------------------------------------------------------------------
def conv3x3_bn_relu(x_nhwc, params, stride):
    w, b, gamma, beta, mean, var = params            # w: [Cout, Cin, 3, 3] (PyTorch layout)
    N, H, W, Cin = x_nhwc.shape
    Cout = w.shape[0]
    Ho = (H + 2 - 3) // stride + 1
    Wo = (W + 2 - 3) // stride + 1
    M = N * Ho * Wo
    K = 9 * Cin

    # im2col at bf16 (pure data-movement glue in plain JAX)
    xp = jnp.pad(x_nhwc.astype(jnp.bfloat16), ((0, 0), (1, 1), (1, 1), (0, 0)))
    patches = []
    for kh in range(3):
        for kw in range(3):
            patches.append(
                xp[:,
                   kh:kh + stride * (Ho - 1) + 1:stride,
                   kw:kw + stride * (Wo - 1) + 1:stride,
                   :])
    a = jnp.concatenate(patches, axis=-1).reshape(M, K)

    # fold BatchNorm (eval / running stats): scale -> weights, shift -> bias
    scale = gamma / jnp.sqrt(var + BN_EPS)                        # [Cout]
    bias = (beta + (b - mean) * scale).astype(jnp.float32)        # [Cout]
    w2 = jnp.transpose(w, (2, 3, 1, 0)).reshape(K, Cout)          # (kh, kw, cin) ordering
    w2 = (w2 * scale[None, :]).astype(jnp.bfloat16)

    # zero-pad to lane-/tile-dense shapes
    k_pad = _round_up(K, LANE)
    n_pad = _round_up(Cout, LANE)
    m_pad = _round_up(M, 8) if M <= TM_MAX else _round_up(M, TM_MAX)

    a = jnp.pad(a, ((0, m_pad - M), (0, k_pad - K)))
    w2 = jnp.pad(w2, ((0, k_pad - K), (0, n_pad - Cout)))
    bias = jnp.pad(bias, (0, n_pad - Cout)).reshape(1, n_pad)

    out = _matmul_bias_relu(a, w2, bias)                          # [m_pad, n_pad] bf16
    return out[:M, :Cout].reshape(N, Ho, Wo, Cout)


# ---------------------------------------------------------------------------
# Deterministic parameter initialization (synthetic; shapes from __init__)
# ---------------------------------------------------------------------------
def init_params(key):
    params = []
    for (cin, cout, _) in LAYERS:
        key, k1, k2, k3, k4, k5, k6 = jax.random.split(key, 7)
        fan_in = cin * 9
        w = jax.random.normal(k1, (cout, cin, 3, 3), jnp.float32) / jnp.sqrt(float(fan_in))
        b = 0.05 * jax.random.normal(k2, (cout,), jnp.float32)
        gamma = 1.0 + 0.1 * jax.random.normal(k3, (cout,), jnp.float32)
        beta = 0.1 * jax.random.normal(k4, (cout,), jnp.float32)
        mean = 0.05 * jax.random.normal(k5, (cout,), jnp.float32)
        var = 1.0 + 0.1 * jax.random.uniform(k6, (cout,), jnp.float32)
        params.append((w, b, gamma, beta, mean, var))
    return params


# ---------------------------------------------------------------------------
# Full LowLevelFeatNet forward
# ---------------------------------------------------------------------------
def _run_stack(params, x_nchw):
    x = jnp.transpose(x_nchw, (0, 2, 3, 1))                  # NCHW -> NHWC
    for p, (_, _, stride) in zip(params, LAYERS):
        x = conv3x3_bn_relu(x, p, stride)
    return jnp.transpose(x, (0, 3, 1, 2)).astype(jnp.float32)  # NHWC -> NCHW


def low_level_feat_net(params, x1_nchw, x2_nchw, training=False):
    if training:
        y1 = _run_stack(params, x1_nchw)                     # x2 = x1.clone()
        return y1, y1
    # eval: batch-concat x1/x2 and run the shared layer stack once
    n = x1_nchw.shape[0]
    y = _run_stack(params, jnp.concatenate([x1_nchw, x2_nchw], axis=0))
    return y[:n], y[n:]


if __name__ == "__main__":
    key = jax.random.PRNGKey(0)
    kp, kx1, kx2 = jax.random.split(key, 3)

    params = init_params(kp)

    # small, shape-consistent example inputs: batch=2, 1 channel, 16x16 spatial
    x1 = jax.random.normal(kx1, (2, 1, 16, 16), jnp.float32)
    x2 = jax.random.normal(kx2, (2, 1, 16, 16), jnp.float32)

    fwd = jax.jit(functools.partial(low_level_feat_net, training=False))
    y1, y2 = fwd(params, x1, x2)
    y1 = jax.block_until_ready(y1)
    y2 = jax.block_until_ready(y2)

    assert y1.shape == (2, 512, 2, 2), y1.shape
    assert y2.shape == (2, 512, 2, 2), y2.shape
    assert bool(jnp.all(y1 >= 0)) and bool(jnp.all(y2 >= 0))  # ReLU output

    print("KERNEL_OK")
</pallas_src>

<mosaic_0001>
module attributes {stable_mosaic.version = 11 : i64} {
  func.func @_matmul_bias_relu_kernel(%arg0: i32, %arg1: i32, %arg2: memref<256x128xbf16, #tpu.memory_space<vmem>>, %arg3: memref<128x128xbf16, #tpu.memory_space<vmem>>, %arg4: memref<1x128xf32, #tpu.memory_space<vmem>>, %arg5: memref<256x128xbf16, #tpu.memory_space<vmem>>) attributes {dimension_semantics = [#tpu.dimension_semantics<parallel>, #tpu.dimension_semantics<parallel>], iteration_bounds = array<i64: 1, 1>, scalar_prefetch = 0 : i64, scratch_operands = 0 : i64, tpu.core_type = #tpu.core_type<tc>, window_params = [{transform_indices = @transform_0, window_bounds = array<i64: 256, 128>}, {transform_indices = @transform_1, window_bounds = array<i64: 128, 128>}, {transform_indices = @transform_2, window_bounds = array<i64: 1, 128>}, {transform_indices = @transform_3, window_bounds = array<i64: 256, 128>}]} {
    %c0 = arith.constant 0 : index
    %c0_0 = arith.constant 0 : index
    %0 = vector.load %arg2[%c0, %c0_0] : memref<256x128xbf16, #tpu.memory_space<vmem>>, vector<256x128xbf16>
    %c0_1 = arith.constant 0 : index
    %c0_2 = arith.constant 0 : index
    %1 = vector.load %arg3[%c0_1, %c0_2] : memref<128x128xbf16, #tpu.memory_space<vmem>>, vector<128x128xbf16>
    %cst = arith.constant dense<0.000000e+00> : vector<256x128xf32>
    %2 = tpu.matmul %0, %1, %cst {dimension_numbers = #tpu.dot_dimension_numbers<[1], [0], [0], [1], [0, 0, 1, 1], [], []>} : vector<256x128xbf16>, vector<128x128xbf16>, vector<256x128xf32> -> vector<256x128xf32>
    %c0_3 = arith.constant 0 : index
    %c0_4 = arith.constant 0 : index
    %3 = vector.load %arg4[%c0_3, %c0_4] : memref<1x128xf32, #tpu.memory_space<vmem>>, vector<1x128xf32>
    %4 = vector.broadcast %3 : vector<1x128xf32> to vector<256x128xf32>
    %5 = arith.addf %2, %4 : vector<256x128xf32>
    %cst_5 = arith.constant 0.000000e+00 : f32
    %6 = vector.broadcast %cst_5 : f32 to vector<256x128xf32>
    %7 = arith.maximumf %5, %6 : vector<256x128xf32>
    %8 = arith.truncf %7 : vector<256x128xf32> to vector<256x128xbf16>
    %c0_6 = arith.constant 0 : index
    %c0_7 = arith.constant 0 : index
    %9 = vector.load %arg5[%c0_6, %c0_7] : memref<256x128xbf16, #tpu.memory_space<vmem>>, vector<256x128xbf16>
    tpu.vector_store %arg5[%c0_6, %c0_7], %8 {strides = array<i32>} : memref<256x128xbf16, #tpu.memory_space<vmem>>, vector<256x128xbf16>,
    return
  }
  func.func @transform_0(%arg0: i32, %arg1: i32) -> (i32, i32) {
    %c0_i32 = arith.constant 0 : i32
    %c0_i32_0 = arith.constant 0 : i32
    return %arg0, %c0_i32 : i32, i32
  }
  func.func @transform_1(%arg0: i32, %arg1: i32) -> (i32, i32) {
    %c0_i32 = arith.constant 0 : i32
    %c0_i32_0 = arith.constant 0 : i32
    return %c0_i32, %arg1 : i32, i32
  }
  func.func @transform_2(%arg0: i32, %arg1: i32) -> (i32, i32) {
    %c0_i32 = arith.constant 0 : i32
    %c0_i32_0 = arith.constant 0 : i32
    return %c0_i32, %arg1 : i32, i32
  }
  func.func @transform_3(%arg0: i32, %arg1: i32) -> (i32, i32) {
    %c0_i32 = arith.constant 0 : i32
    return %arg0, %arg1 : i32, i32
  }
}

module attributes {stable_mosaic.version = 11 : i64} {
  func.func @_matmul_bias_relu_kernel(%arg0: i32, %arg1: i32, %arg2: memref<256x640xbf16, #tpu.memory_space<vmem>>, %arg3: memref<640x128xbf16, #tpu.memory_space<vmem>>, %arg4: memref<1x128xf32, #tpu.memory_space<vmem>>, %arg5: memref<256x128xbf16, #tpu.memory_space<vmem>>) attributes {dimension_semantics = [#tpu.dimension_semantics<parallel>, #tpu.dimension_semantics<parallel>], iteration_bounds = array<i64: 1, 1>, scalar_prefetch = 0 : i64, scratch_operands = 0 : i64, tpu.core_type = #tpu.core_type<tc>, window_params = [{transform_indices = @transform_0, window_bounds = array<i64: 256, 640>}, {transform_indices = @transform_1, window_bounds = array<i64: 640, 128>}, {transform_indices = @transform_2, window_bounds = array<i64: 1, 128>}, {transform_indices = @transform_3, window_bounds = array<i64: 256, 128>}]} {
    %c0 = arith.constant 0 : index
    %c0_0 = arith.constant 0 : index
    %0 = vector.load %arg2[%c0, %c0_0] : memref<256x640xbf16, #tpu.memory_space<vmem>>, vector<256x640xbf16>
    %c0_1 = arith.constant 0 : index
    %c0_2 = arith.constant 0 : index
    %1 = vector.load %arg3[%c0_1, %c0_2] : memref<640x128xbf16, #tpu.memory_space<vmem>>, vector<640x128xbf16>
    %cst = arith.constant dense<0.000000e+00> : vector<256x128xf32>
    %2 = tpu.matmul %0, %1, %cst {dimension_numbers = #tpu.dot_dimension_numbers<[1], [0], [0], [1], [0, 0, 1, 1], [], []>} : vector<256x640xbf16>, vector<640x128xbf16>, vector<256x128xf32> -> vector<256x128xf32>
    %c0_3 = arith.constant 0 : index
    %c0_4 = arith.constant 0 : index
    %3 = vector.load %arg4[%c0_3, %c0_4] : memref<1x128xf32, #tpu.memory_space<vmem>>, vector<1x128xf32>
    %4 = vector.broadcast %3 : vector<1x128xf32> to vector<256x128xf32>
    %5 = arith.addf %2, %4 : vector<256x128xf32>
    %cst_5 = arith.constant 0.000000e+00 : f32
    %6 = vector.broadcast %cst_5 : f32 to vector<256x128xf32>
    %7 = arith.maximumf %5, %6 : vector<256x128xf32>
    %8 = arith.truncf %7 : vector<256x128xf32> to vector<256x128xbf16>
    %c0_6 = arith.constant 0 : index
    %c0_7 = arith.constant 0 : index
    %9 = vector.load %arg5[%c0_6, %c0_7] : memref<256x128xbf16, #tpu.memory_space<vmem>>, vector<256x128xbf16>
    tpu.vector_store %arg5[%c0_6, %c0_7], %8 {strides = array<i32>} : memref<256x128xbf16, #tpu.memory_space<vmem>>, vector<256x128xbf16>,
    return
  }
  func.func @transform_0(%arg0: i32, %arg1: i32) -> (i32, i32) {
    %c0_i32 = arith.constant 0 : i32
    %c0_i32_0 = arith.constant 0 : i32
    return %arg0, %c0_i32 : i32, i32
  }
  func.func @transform_1(%arg0: i32, %arg1: i32) -> (i32, i32) {
    %c0_i32 = arith.constant 0 : i32
    %c0_i32_0 = arith.constant 0 : i32
    return %c0_i32, %arg1 : i32, i32
  }
  func.func @transform_2(%arg0: i32, %arg1: i32) -> (i32, i32) {
    %c0_i32 = arith.constant 0 : i32
    %c0_i32_0 = arith.constant 0 : i32
    return %c0_i32, %arg1 : i32, i32
  }
  func.func @transform_3(%arg0: i32, %arg1: i32) -> (i32, i32) {
    %c0_i32 = arith.constant 0 : i32
    return %arg0, %arg1 : i32, i32
  }
}

module attributes {stable_mosaic.version = 11 : i64} {
  func.func @_matmul_bias_relu_kernel(%arg0: i32, %arg1: i32, %arg2: memref<64x1152xbf16, #tpu.memory_space<vmem>>, %arg3: memref<1152x128xbf16, #tpu.memory_space<vmem>>, %arg4: memref<1x128xf32, #tpu.memory_space<vmem>>, %arg5: memref<64x128xbf16, #tpu.memory_space<vmem>>) attributes {dimension_semantics = [#tpu.dimension_semantics<parallel>, #tpu.dimension_semantics<parallel>], iteration_bounds = array<i64: 1, 1>, scalar_prefetch = 0 : i64, scratch_operands = 0 : i64, tpu.core_type = #tpu.core_type<tc>, window_params = [{transform_indices = @transform_0, window_bounds = array<i64: 64, 1152>}, {transform_indices = @transform_1, window_bounds = array<i64: 1152, 128>}, {transform_indices = @transform_2, window_bounds = array<i64: 1, 128>}, {transform_indices = @transform_3, window_bounds = array<i64: 64, 128>}]} {
    %c0 = arith.constant 0 : index
    %c0_0 = arith.constant 0 : index
    %0 = vector.load %arg2[%c0, %c0_0] : memref<64x1152xbf16, #tpu.memory_space<vmem>>, vector<64x1152xbf16>
    %c0_1 = arith.constant 0 : index
    %c0_2 = arith.constant 0 : index
    %1 = vector.load %arg3[%c0_1, %c0_2] : memref<1152x128xbf16, #tpu.memory_space<vmem>>, vector<1152x128xbf16>
    %cst = arith.constant dense<0.000000e+00> : vector<64x128xf32>
    %2 = tpu.matmul %0, %1, %cst {dimension_numbers = #tpu.dot_dimension_numbers<[1], [0], [0], [1], [0, 0, 1, 1], [], []>} : vector<64x1152xbf16>, vector<1152x128xbf16>, vector<64x128xf32> -> vector<64x128xf32>
    %c0_3 = arith.constant 0 : index
    %c0_4 = arith.constant 0 : index
    %3 = vector.load %arg4[%c0_3, %c0_4] : memref<1x128xf32, #tpu.memory_space<vmem>>, vector<1x128xf32>
    %4 = vector.broadcast %3 : vector<1x128xf32> to vector<64x128xf32>
    %5 = arith.addf %2, %4 : vector<64x128xf32>
    %cst_5 = arith.constant 0.000000e+00 : f32
    %6 = vector.broadcast %cst_5 : f32 to vector<64x128xf32>
    %7 = arith.maximumf %5, %6 : vector<64x128xf32>
    %8 = arith.truncf %7 : vector<64x128xf32> to vector<64x128xbf16>
    %c0_6 = arith.constant 0 : index
    %c0_7 = arith.constant 0 : index
    %9 = vector.load %arg5[%c0_6, %c0_7] : memref<64x128xbf16, #tpu.memory_space<vmem>>, vector<64x128xbf16>
    tpu.vector_store %arg5[%c0_6, %c0_7], %8 {strides = array<i32>} : memref<64x128xbf16, #tpu.memory_space<vmem>>, vector<64x128xbf16>,
    return
  }
  func.func @transform_0(%arg0: i32, %arg1: i32) -> (i32, i32) {
    %c0_i32 = arith.constant 0 : i32
    %c0_i32_0 = arith.constant 0 : i32
    return %arg0, %c0_i32 : i32, i32
  }
  func.func @transform_1(%arg0: i32, %arg1: i32) -> (i32, i32) {
    %c0_i32 = arith.constant 0 : i32
    %c0_i32_0 = arith.constant 0 : i32
    return %c0_i32, %arg1 : i32, i32
  }
  func.func @transform_2(%arg0: i32, %arg1: i32) -> (i32, i32) {
    %c0_i32 = arith.constant 0 : i32
    %c0_i32_0 = arith.constant 0 : i32
    return %c0_i32, %arg1 : i32, i32
  }
  func.func @transform_3(%arg0: i32, %arg1: i32) -> (i32, i32) {
    %c0_i32 = arith.constant 0 : i32
    return %arg0, %arg1 : i32, i32
  }
}

module attributes {stable_mosaic.version = 11 : i64} {
  func.func @_matmul_bias_relu_kernel(%arg0: i32, %arg1: i32, %arg2: memref<64x1152xbf16, #tpu.memory_space<vmem>>, %arg3: memref<1152x256xbf16, #tpu.memory_space<vmem>>, %arg4: memref<1x256xf32, #tpu.memory_space<vmem>>, %arg5: memref<64x256xbf16, #tpu.memory_space<vmem>>) attributes {dimension_semantics = [#tpu.dimension_semantics<parallel>, #tpu.dimension_semantics<parallel>], iteration_bounds = array<i64: 1, 1>, scalar_prefetch = 0 : i64, scratch_operands = 0 : i64, tpu.core_type = #tpu.core_type<tc>, window_params = [{transform_indices = @transform_0, window_bounds = array<i64: 64, 1152>}, {transform_indices = @transform_1, window_bounds = array<i64: 1152, 256>}, {transform_indices = @transform_2, window_bounds = array<i64: 1, 256>}, {transform_indices = @transform_3, window_bounds = array<i64: 64, 256>}]} {
    %c0 = arith.constant 0 : index
    %c0_0 = arith.constant 0 : index
    %0 = vector.load %arg2[%c0, %c0_0] : memref<64x1152xbf16, #tpu.memory_space<vmem>>, vector<64x1152xbf16>
    %c0_1 = arith.constant 0 : index
    %c0_2 = arith.constant 0 : index
    %1 = vector.load %arg3[%c0_1, %c0_2] : memref<1152x256xbf16, #tpu.memory_space<vmem>>, vector<1152x256xbf16>
    %cst = arith.constant dense<0.000000e+00> : vector<64x256xf32>
    %2 = tpu.matmul %0, %1, %cst {dimension_numbers = #tpu.dot_dimension_numbers<[1], [0], [0], [1], [0, 0, 1, 1], [], []>} : vector<64x1152xbf16>, vector<1152x256xbf16>, vector<64x256xf32> -> vector<64x256xf32>
    %c0_3 = arith.constant 0 : index
    %c0_4 = arith.constant 0 : index
    %3 = vector.load %arg4[%c0_3, %c0_4] : memref<1x256xf32, #tpu.memory_space<vmem>>, vector<1x256xf32>
    %4 = vector.broadcast %3 : vector<1x256xf32> to vector<64x256xf32>
    %5 = arith.addf %2, %4 : vector<64x256xf32>
    %cst_5 = arith.constant 0.000000e+00 : f32
    %6 = vector.broadcast %cst_5 : f32 to vector<64x256xf32>
    %7 = arith.maximumf %5, %6 : vector<64x256xf32>
    %8 = arith.truncf %7 : vector<64x256xf32> to vector<64x256xbf16>
    %c0_6 = arith.constant 0 : index
    %c0_7 = arith.constant 0 : index
    %9 = vector.load %arg5[%c0_6, %c0_7] : memref<64x256xbf16, #tpu.memory_space<vmem>>, vector<64x256xbf16>
    tpu.vector_store %arg5[%c0_6, %c0_7], %8 {strides = array<i32>} : memref<64x256xbf16, #tpu.memory_space<vmem>>, vector<64x256xbf16>,
    return
  }
  func.func @transform_0(%arg0: i32, %arg1: i32) -> (i32, i32) {
    %c0_i32 = arith.constant 0 : i32
    %c0_i32_0 = arith.constant 0 : i32
    return %arg0, %c0_i32 : i32, i32
  }
  func.func @transform_1(%arg0: i32, %arg1: i32) -> (i32, i32) {
    %c0_i32 = arith.constant 0 : i32
    %c0_i32_0 = arith.constant 0 : i32
    return %c0_i32, %arg1 : i32, i32
  }
  func.func @transform_2(%arg0: i32, %arg1: i32) -> (i32, i32) {
    %c0_i32 = arith.constant 0 : i32
    %c0_i32_0 = arith.constant 0 : i32
    return %c0_i32, %arg1 : i32, i32
  }
  func.func @transform_3(%arg0: i32, %arg1: i32) -> (i32, i32) {
    %c0_i32 = arith.constant 0 : i32
    return %arg0, %arg1 : i32, i32
  }
}

module attributes {stable_mosaic.version = 11 : i64} {
  func.func @_matmul_bias_relu_kernel(%arg0: i32, %arg1: i32, %arg2: memref<16x2304xbf16, #tpu.memory_space<vmem>>, %arg3: memref<2304x256xbf16, #tpu.memory_space<vmem>>, %arg4: memref<1x256xf32, #tpu.memory_space<vmem>>, %arg5: memref<16x256xbf16, #tpu.memory_space<vmem>>) attributes {dimension_semantics = [#tpu.dimension_semantics<parallel>, #tpu.dimension_semantics<parallel>], iteration_bounds = array<i64: 1, 1>, scalar_prefetch = 0 : i64, scratch_operands = 0 : i64, tpu.core_type = #tpu.core_type<tc>, window_params = [{transform_indices = @transform_0, window_bounds = array<i64: 16, 2304>}, {transform_indices = @transform_1, window_bounds = array<i64: 2304, 256>}, {transform_indices = @transform_2, window_bounds = array<i64: 1, 256>}, {transform_indices = @transform_3, window_bounds = array<i64: 16, 256>}]} {
    %c0 = arith.constant 0 : index
    %c0_0 = arith.constant 0 : index
    %0 = vector.load %arg2[%c0, %c0_0] : memref<16x2304xbf16, #tpu.memory_space<vmem>>, vector<16x2304xbf16>
    %c0_1 = arith.constant 0 : index
    %c0_2 = arith.constant 0 : index
    %1 = vector.load %arg3[%c0_1, %c0_2] : memref<2304x256xbf16, #tpu.memory_space<vmem>>, vector<2304x256xbf16>
    %cst = arith.constant dense<0.000000e+00> : vector<16x256xf32>
    %2 = tpu.matmul %0, %1, %cst {dimension_numbers = #tpu.dot_dimension_numbers<[1], [0], [0], [1], [0, 0, 1, 1], [], []>} : vector<16x2304xbf16>, vector<2304x256xbf16>, vector<16x256xf32> -> vector<16x256xf32>
    %c0_3 = arith.constant 0 : index
    %c0_4 = arith.constant 0 : index
    %3 = vector.load %arg4[%c0_3, %c0_4] : memref<1x256xf32, #tpu.memory_space<vmem>>, vector<1x256xf32>
    %4 = vector.broadcast %3 : vector<1x256xf32> to vector<16x256xf32>
    %5 = arith.addf %2, %4 : vector<16x256xf32>
    %cst_5 = arith.constant 0.000000e+00 : f32
    %6 = vector.broadcast %cst_5 : f32 to vector<16x256xf32>
    %7 = arith.maximumf %5, %6 : vector<16x256xf32>
    %8 = arith.truncf %7 : vector<16x256xf32> to vector<16x256xbf16>
    %c0_6 = arith.constant 0 : index
    %c0_7 = arith.constant 0 : index
    %9 = vector.load %arg5[%c0_6, %c0_7] : memref<16x256xbf16, #tpu.memory_space<vmem>>, vector<16x256xbf16>
    tpu.vector_store %arg5[%c0_6, %c0_7], %8 {strides = array<i32>} : memref<16x256xbf16, #tpu.memory_space<vmem>>, vector<16x256xbf16>,
    return
  }
  func.func @transform_0(%arg0: i32, %arg1: i32) -> (i32, i32) {
    %c0_i32 = arith.constant 0 : i32
    %c0_i32_0 = arith.constant 0 : i32
    return %arg0, %c0_i32 : i32, i32
  }
  func.func @transform_1(%arg0: i32, %arg1: i32) -> (i32, i32) {
    %c0_i32 = arith.constant 0 : i32
    %c0_i32_0 = arith.constant 0 : i32
    return %c0_i32, %arg1 : i32, i32
  }
  func.func @transform_2(%arg0: i32, %arg1: i32) -> (i32, i32) {
    %c0_i32 = arith.constant 0 : i32
    %c0_i32_0 = arith.constant 0 : i32
    return %c0_i32, %arg1 : i32, i32
  }
  func.func @transform_3(%arg0: i32, %arg1: i32) -> (i32, i32) {
    %c0_i32 = arith.constant 0 : i32
    return %arg0, %arg1 : i32, i32
  }
}

module attributes {stable_mosaic.version = 11 : i64} {
  func.func @_matmul_bias_relu_kernel(%arg0: i32, %arg1: i32, %arg2: memref<16x2304xbf16, #tpu.memory_space<vmem>>, %arg3: memref<2304x512xbf16, #tpu.memory_space<vmem>>, %arg4: memref<1x512xf32, #tpu.memory_space<vmem>>, %arg5: memref<16x512xbf16, #tpu.memory_space<vmem>>) attributes {dimension_semantics = [#tpu.dimension_semantics<parallel>, #tpu.dimension_semantics<parallel>], iteration_bounds = array<i64: 1, 1>, scalar_prefetch = 0 : i64, scratch_operands = 0 : i64, tpu.core_type = #tpu.core_type<tc>, window_params = [{transform_indices = @transform_0, window_bounds = array<i64: 16, 2304>}, {transform_indices = @transform_1, window_bounds = array<i64: 2304, 512>}, {transform_indices = @transform_2, window_bounds = array<i64: 1, 512>}, {transform_indices = @transform_3, window_bounds = array<i64: 16, 512>}]} {
    %c0 = arith.constant 0 : index
    %c0_0 = arith.constant 0 : index
    %0 = vector.load %arg2[%c0, %c0_0] : memref<16x2304xbf16, #tpu.memory_space<vmem>>, vector<16x2304xbf16>
    %c0_1 = arith.constant 0 : index
    %c0_2 = arith.constant 0 : index
    %1 = vector.load %arg3[%c0_1, %c0_2] : memref<2304x512xbf16, #tpu.memory_space<vmem>>, vector<2304x512xbf16>
    %cst = arith.constant dense<0.000000e+00> : vector<16x512xf32>
    %2 = tpu.matmul %0, %1, %cst {dimension_numbers = #tpu.dot_dimension_numbers<[1], [0], [0], [1], [0, 0, 1, 1], [], []>} : vector<16x2304xbf16>, vector<2304x512xbf16>, vector<16x512xf32> -> vector<16x512xf32>
    %c0_3 = arith.constant 0 : index
    %c0_4 = arith.constant 0 : index
    %3 = vector.load %arg4[%c0_3, %c0_4] : memref<1x512xf32, #tpu.memory_space<vmem>>, vector<1x512xf32>
    %4 = vector.broadcast %3 : vector<1x512xf32> to vector<16x512xf32>
    %5 = arith.addf %2, %4 : vector<16x512xf32>
    %cst_5 = arith.constant 0.000000e+00 : f32
    %6 = vector.broadcast %cst_5 : f32 to vector<16x512xf32>
    %7 = arith.maximumf %5, %6 : vector<16x512xf32>
    %8 = arith.truncf %7 : vector<16x512xf32> to vector<16x512xbf16>
    %c0_6 = arith.constant 0 : index
    %c0_7 = arith.constant 0 : index
    %9 = vector.load %arg5[%c0_6, %c0_7] : memref<16x512xbf16, #tpu.memory_space<vmem>>, vector<16x512xbf16>
    tpu.vector_store %arg5[%c0_6, %c0_7], %8 {strides = array<i32>} : memref<16x512xbf16, #tpu.memory_space<vmem>>, vector<16x512xbf16>,
    return
  }
  func.func @transform_0(%arg0: i32, %arg1: i32) -> (i32, i32) {
    %c0_i32 = arith.constant 0 : i32
    %c0_i32_0 = arith.constant 0 : i32
    return %arg0, %c0_i32 : i32, i32
  }
  func.func @transform_1(%arg0: i32, %arg1: i32) -> (i32, i32) {
    %c0_i32 = arith.constant 0 : i32
    %c0_i32_0 = arith.constant 0 : i32
    return %c0_i32, %arg1 : i32, i32
  }
  func.func @transform_2(%arg0: i32, %arg1: i32) -> (i32, i32) {
    %c0_i32 = arith.constant 0 : i32
    %c0_i32_0 = arith.constant 0 : i32
    return %c0_i32, %arg1 : i32, i32
  }
  func.func @transform_3(%arg0: i32, %arg1: i32) -> (i32, i32) {
    %c0_i32 = arith.constant 0 : i32
    return %arg0, %arg1 : i32, i32
  }
}

</mosaic_0001>

<bundles_post_ra>
// kernel: low_level_feat_net.6
= control target key start
LH: loop header
LB: loop body
LE: loop exit
PB: predicated region body
PF: predicated region fallthrough
CT: control target
= control target key end

     0   :  { %s1044_s1 = inlined_call_operand.vmem [shape: bf16[128,128], index: 1, kind: input, shape index: {}]   ;;  %s1045_s0 = inlined_call_operand.vmem [shape: bf16[256,128], index: 0, kind: input, shape index: {}]   ;;  %s1046_s2 = inlined_call_operand.vmem [shape: f32[1,128], index: 2, kind: input, shape index: {}]   ;;  %s1047_s3 = inlined_call_operand.vmem [shape: bf16[256,128], index: 3, kind: output, shape index: {}]  }
   0x1   :  { %v843_v0 = vld [vmem:[%s1044_s1] sm:$0xff]   ;;  %v844_v1 = vld [vmem:[%s1044_s1 + $0x8] sm:$0xff]   ;;  %v845_v2 = vld [vmem:[%s1044_s1 + $0x10] sm:$0xff]  }
   0x2   :  { %779 = vmatprep.subr.bf16.mxu0 %v843_v0  ;;  %827 = vmatprep.subr.bf16.mxu1 %v843_v0  ;;  %v846_v3 = vld [vmem:[%s1044_s1 + $0x18] sm:$0xff]   ;;  %v851_v4 = vld [vmem:[%s1045_s0] sm:$0xff]   ;;  %v848_v7 = vld [vmem:[%s1044_s1 + $0x28] sm:$0xff]  }
   0x3   :  { %780 = vmatpush3.bf16.msra.mxu0 %v843_v0  ;;  %835 = vmatpush3.bf16.msra.mxu1 %v843_v0  ;;  %v852_v5 = vld [vmem:[%s1045_s0 + $0x40] sm:$0xff]   ;;  %v849_v8 = vld [vmem:[%s1044_s1 + $0x30] sm:$0xff]   ;;  %v850_v9 = vld [vmem:[%s1044_s1 + $0x38] sm:$0xff]  }
   0x4   :  { %781 = vmatprep.subr.bf16.mxu0 %v844_v1  ;;  %828 = vmatprep.subr.bf16.mxu1 %v844_v1  ;;  %v847_v6 = vld [vmem:[%s1044_s1 + $0x20] sm:$0xff]   ;;  %v853_v10 = vld [vmem:[%s1045_s0 + $0x8] sm:$0xff]   ;;  %v855_v12 = vld [vmem:[%s1045_s0 + $0x10] sm:$0xff]  }
   0x5   :  { %795 = vmatprep.mubr.bf16.mxu0 %v851_v4  ;;  %811 = vmatprep.mubr.bf16.mxu1 %v852_v5  ;;  %v854_v11 = vld [vmem:[%s1045_s0 + $0x48] sm:$0xff]   ;;  %v856_v13 = vld [vmem:[%s1045_s0 + $0x50] sm:$0xff]   ;;  %v857_v14 = vld [vmem:[%s1045_s0 + $0x18] sm:$0xff]  }
   0x6   :  { %v858_v15 = vld [vmem:[%s1045_s0 + $0x58] sm:$0xff]   ;;  %v859_v16 = vld [vmem:[%s1045_s0 + $0x20] sm:$0xff]   ;;  %v861_v18 = vld [vmem:[%s1045_s0 + $0x28] sm:$0xff]  }
   0x7   :  { %782 = vmatpush3.bf16.msra.mxu0 %v844_v1  ;;  %836 = vmatpush3.bf16.msra.mxu1 %v844_v1  ;;  %v860_v17 = vld [vmem:[%s1045_s0 + $0x60] sm:$0xff]   ;;  %v862_v19 = vld [vmem:[%s1045_s0 + $0x68] sm:$0xff]   ;;  %v863_v20 = vld [vmem:[%s1045_s0 + $0x30] sm:$0xff]  }
   0x8   :  { %783 = vmatprep.subr.bf16.mxu0 %v845_v2  ;;  %829 = vmatprep.subr.bf16.mxu1 %v845_v2  ;;  %v864_v21 = vld [vmem:[%s1045_s0 + $0x70] sm:$0xff]   ;;  %v865_v22 = vld [vmem:[%s1045_s0 + $0x38] sm:$0xff]   ;;  %v962_v24 = vld [vmem:[%s1046_s2] ss:$0 sm:$0xff] }
   0x9   :  { %v866_v23 = vld [vmem:[%s1045_s0 + $0x78] sm:$0xff]  }
   0xb   :  { %784 = vmatpush3.bf16.msra.mxu0 %v845_v2  ;;  %837 = vmatpush3.bf16.msra.mxu1 %v845_v2 }
   0xc   :  { %785 = vmatprep.subr.bf16.mxu0 %v846_v3  ;;  %830 = vmatprep.subr.bf16.mxu1 %v846_v3 }
   0xf   :  { %786 = vmatpush3.bf16.msra.mxu0 %v846_v3  ;;  %838 = vmatpush3.bf16.msra.mxu1 %v846_v3 }
  0x10   :  { %787 = vmatprep.subr.bf16.mxu0 %v847_v6  ;;  %831 = vmatprep.subr.bf16.mxu1 %v847_v6 }
  0x13   :  { %788 = vmatpush3.bf16.msra.mxu0 %v847_v6  ;;  %839 = vmatpush3.bf16.msra.mxu1 %v847_v6 }
  0x14   :  { %789 = vmatprep.subr.bf16.mxu0 %v848_v7  ;;  %832 = vmatprep.subr.bf16.mxu1 %v848_v7 }
  0x17   :  { %790 = vmatpush3.bf16.msra.mxu0 %v848_v7  ;;  %840 = vmatpush3.bf16.msra.mxu1 %v848_v7 }
  0x18   :  { %791 = vmatprep.subr.bf16.mxu0 %v849_v8  ;;  %833 = vmatprep.subr.bf16.mxu1 %v849_v8 }
  0x1b   :  { %792 = vmatpush3.bf16.msra.mxu0 %v849_v8  ;;  %841 = vmatpush3.bf16.msra.mxu1 %v849_v8 }
  0x1c   :  { %793 = vmatprep.subr.bf16.mxu0 %v850_v9  ;;  %834 = vmatprep.subr.bf16.mxu1 %v850_v9 }
  0x1f   :  { %794 = vmatpush3.bf16.msra.mxu0 %v850_v9  ;;  %842 = vmatpush3.bf16.msra.mxu1 %v850_v9 }
  0x22   :  { %796 = vmatmul.mubr.bf16.vlgmr.msra.gmra.mrb[0].mxu0 %v853_v10  ;;  %812 = vmatmul.mubr.bf16.vlgmr.msra.gmra.mrb[0].mxu1 %v854_v11 }
  0x23   :  { %799 = vmatprep.mubr.bf16.mxu0 %v855_v12  ;;  %815 = vmatprep.mubr.bf16.mxu1 %v856_v13 }
  0x2a   :  { %800 = vmatmul.mubr.bf16.gmra.mrb[4].mxu0 %v857_v14  ;;  %816 = vmatmul.mubr.bf16.gmra.mrb[4].mxu1 %v858_v15 }
  0x2b   :  { %803 = vmatprep.mubr.bf16.mxu0 %v859_v16  ;;  %819 = vmatprep.mubr.bf16.mxu1 %v860_v17 }
  0x32   :  { %804 = vmatmul.mubr.bf16.gmra.mrb[8].mxu0 %v861_v18  ;;  %820 = vmatmul.mubr.bf16.gmra.mrb[8].mxu1 %v862_v19 }
  0x33   :  { %807 = vmatprep.mubr.bf16.mxu0 %v863_v20  ;;  %823 = vmatprep.mubr.bf16.mxu1 %v864_v21 }
  0x3a   :  { %808 = vmatmul.mubr.bf16.gmra.mrb[12].mxu0 %v865_v22  ;;  %824 = vmatmul.mubr.bf16.gmra.mrb[12].mxu1 %v866_v23 }
  0xf5   :  { %v797_v25 = vpop.f32.mrb[0].mxu0  ;;  %v813_v26 = vpop.f32.mrb[0].mxu1 }
  0xf6   :  { %v257_v27 = vadd.f32 %v797_v25, %v962_v24  ;;  %v321_v28 = vadd.f32 %v813_v26, %v962_v24  ;;  %v248_v29 = vpop.f32.mrb[1].mxu0  ;;  %v312_v30 = vpop.f32.mrb[1].mxu1 }
  0xf7   :  { %v249_v31 = vadd.f32 %v962_v24, %v248_v29  ;;  %v313_v32 = vadd.f32 %v962_v24, %v312_v30  ;;  %v798_v33 = vpop.f32.mrb[2].mxu0  ;;  %v814_v34 = vpop.f32.mrb[2].mxu1 }
  0xf8   :  { %v260_v35 = vadd.f32 %v798_v33, %v962_v24  ;;  %v324_v36 = vadd.f32 %v814_v34, %v962_v24  ;;  %v251_v37 = vpop.f32.mrb[3].mxu0  ;;  %v315_v38 = vpop.f32.mrb[3].mxu1  ;;  %v377_v41 = vmax.f32 %v257_v27, 0.0  ;;  %v393_v42 = vmax.f32 %v321_v28, 0.0 }
  0xf9   :  { %v252_v39 = vadd.f32 %v962_v24, %v251_v37  ;;  %v316_v40 = vadd.f32 %v962_v24, %v315_v38  ;;  %v375_v45 = vmax.f32 %v249_v31, 0.0  ;;  %v391_v46 = vmax.f32 %v313_v32, 0.0 }
  0xfa   :  { %v378_v43 = vmax.f32 %v260_v35, 0.0  ;;  %v394_v44 = vmax.f32 %v324_v36, 0.0 }
  0xfb   :  { %v376_v47 = vmax.f32 %v252_v39, 0.0  ;;  %v392_v48 = vmax.f32 %v316_v40, 0.0 }
  0xfc   :  { %v668_v49 = vpack.c.bf16 %v378_v43, %v377_v41  ;;  %v708_v50 = vpack.c.bf16 %v394_v44, %v393_v42 }
  0xfd   :  { %v663_v51 = vpack.c.bf16 %v376_v47, %v375_v45  ;;  %v703_v52 = vpack.c.bf16 %v392_v48, %v391_v46  ;;  %v801_v53 = vpop.f32.mrb[4].mxu0  ;;  %v817_v54 = vpop.f32.mrb[4].mxu1 }
  0xfe   :  { %740 = vst [vmem:[%s1047_s3 + $0x8] sm:$0xff] %v668_v49   ;;  %748 = vst [vmem:[%s1047_s3 + $0x48] sm:$0xff] %v708_v50   ;;  %v273_v55 = vadd.f32 %v801_v53, %v962_v24  ;;  %v337_v56 = vadd.f32 %v817_v54, %v962_v24  ;;  %v264_v57 = vpop.f32.mrb[5].mxu0  ;;  %v328_v58 = vpop.f32.mrb[5].mxu1 }
  0xff   :  { %664 = vst [vmem:[%s1047_s3] sm:$0xff] %v663_v51   ;;  %747 = vst [vmem:[%s1047_s3 + $0x40] sm:$0xff] %v703_v52   ;;  %v265_v59 = vadd.f32 %v962_v24, %v264_v57  ;;  %v329_v60 = vadd.f32 %v962_v24, %v328_v58  ;;  %v802_v61 = vpop.f32.mrb[6].mxu0  ;;  %v818_v62 = vpop.f32.mrb[6].mxu1 }
 0x100   :  { %v276_v63 = vadd.f32 %v802_v61, %v962_v24  ;;  %v340_v0 = vadd.f32 %v818_v62, %v962_v24  ;;  %v267_v1 = vpop.f32.mrb[7].mxu0  ;;  %v331_v2 = vpop.f32.mrb[7].mxu1  ;;  %v381_v5 = vmax.f32 %v273_v55, 0.0  ;;  %v397_v6 = vmax.f32 %v337_v56, 0.0 }
 0x101   :  { %v268_v3 = vadd.f32 %v962_v24, %v267_v1  ;;  %v332_v4 = vadd.f32 %v962_v24, %v331_v2  ;;  %v379_v9 = vmax.f32 %v265_v59, 0.0  ;;  %v395_v10 = vmax.f32 %v329_v60, 0.0 }
 0x102   :  { %v382_v7 = vmax.f32 %v276_v63, 0.0  ;;  %v398_v8 = vmax.f32 %v340_v0, 0.0 }
 0x103   :  { %v380_v11 = vmax.f32 %v268_v3, 0.0  ;;  %v396_v12 = vmax.f32 %v332_v4, 0.0 }
 0x104   :  { %v678_v13 = vpack.c.bf16 %v382_v7, %v381_v5  ;;  %v718_v14 = vpack.c.bf16 %v398_v8, %v397_v6 }
 0x105   :  { %v673_v15 = vpack.c.bf16 %v380_v11, %v379_v9  ;;  %v713_v16 = vpack.c.bf16 %v396_v12, %v395_v10  ;;  %v805_v17 = vpop.f32.mrb[8].mxu0  ;;  %v821_v18 = vpop.f32.mrb[8].mxu1 }
 0x106   :  { %742 = vst [vmem:[%s1047_s3 + $0x18] sm:$0xff] %v678_v13   ;;  %750 = vst [vmem:[%s1047_s3 + $0x58] sm:$0xff] %v718_v14   ;;  %v289_v19 = vadd.f32 %v805_v17, %v962_v24  ;;  %v353_v20 = vadd.f32 %v821_v18, %v962_v24  ;;  %v280_v21 = vpop.f32.mrb[9].mxu0  ;;  %v344_v22 = vpop.f32.mrb[9].mxu1 }
 0x107   :  { %741 = vst [vmem:[%s1047_s3 + $0x10] sm:$0xff] %v673_v15   ;;  %749 = vst [vmem:[%s1047_s3 + $0x50] sm:$0xff] %v713_v16   ;;  %v281_v23 = vadd.f32 %v962_v24, %v280_v21  ;;  %v345_v25 = vadd.f32 %v962_v24, %v344_v22  ;;  %v806_v26 = vpop.f32.mrb[10].mxu0  ;;  %v822_v27 = vpop.f32.mrb[10].mxu1 }
 0x108   :  { %v292_v28 = vadd.f32 %v806_v26, %v962_v24  ;;  %v356_v29 = vadd.f32 %v822_v27, %v962_v24  ;;  %v283_v30 = vpop.f32.mrb[11].mxu0  ;;  %v347_v31 = vpop.f32.mrb[11].mxu1  ;;  %v385_v34 = vmax.f32 %v289_v19, 0.0  ;;  %v401_v35 = vmax.f32 %v353_v20, 0.0 }
 0x109   :  { %v284_v32 = vadd.f32 %v962_v24, %v283_v30  ;;  %v348_v33 = vadd.f32 %v962_v24, %v347_v31  ;;  %v383_v38 = vmax.f32 %v281_v23, 0.0  ;;  %v399_v39 = vmax.f32 %v345_v25, 0.0 }
 0x10a   :  { %v386_v36 = vmax.f32 %v292_v28, 0.0  ;;  %v402_v37 = vmax.f32 %v356_v29, 0.0 }
 0x10b   :  { %v384_v40 = vmax.f32 %v284_v32, 0.0  ;;  %v400_v41 = vmax.f32 %v348_v33, 0.0 }
 0x10c   :  { %v688_v42 = vpack.c.bf16 %v386_v36, %v385_v34  ;;  %v728_v43 = vpack.c.bf16 %v402_v37, %v401_v35 }
 0x10d   :  { %v683_v44 = vpack.c.bf16 %v384_v40, %v383_v38  ;;  %v723_v45 = vpack.c.bf16 %v400_v41, %v399_v39  ;;  %v809_v46 = vpop.f32.mrb[12].mxu0  ;;  %v825_v47 = vpop.f32.mrb[12].mxu1 }
 0x10e   :  { %744 = vst [vmem:[%s1047_s3 + $0x28] sm:$0xff] %v688_v42   ;;  %752 = vst [vmem:[%s1047_s3 + $0x68] sm:$0xff] %v728_v43   ;;  %v305_v48 = vadd.f32 %v809_v46, %v962_v24  ;;  %v369_v49 = vadd.f32 %v825_v47, %v962_v24  ;;  %v296_v50 = vpop.f32.mrb[13].mxu0  ;;  %v360_v51 = vpop.f32.mrb[13].mxu1 }
 0x10f   :  { %743 = vst [vmem:[%s1047_s3 + $0x20] sm:$0xff] %v683_v44   ;;  %751 = vst [vmem:[%s1047_s3 + $0x60] sm:$0xff] %v723_v45   ;;  %v297_v52 = vadd.f32 %v962_v24, %v296_v50  ;;  %v361_v53 = vadd.f32 %v962_v24, %v360_v51  ;;  %v810_v54 = vpop.f32.mrb[14].mxu0  ;;  %v826_v55 = vpop.f32.mrb[14].mxu1 }
 0x110   :  { %v308_v56 = vadd.f32 %v810_v54, %v962_v24  ;;  %v372_v57 = vadd.f32 %v826_v55, %v962_v24  ;;  %v299_v58 = vpop.f32.mrb[15].mxu0  ;;  %v363_v59 = vpop.f32.mrb[15].mxu1  ;;  %v389_v62 = vmax.f32 %v305_v48, 0.0  ;;  %v405_v63 = vmax.f32 %v369_v49, 0.0 }
 0x111   :  { %v300_v60 = vadd.f32 %v962_v24, %v299_v58  ;;  %v364_v61 = vadd.f32 %v962_v24, %v363_v59  ;;  %v387_v2 = vmax.f32 %v297_v52, 0.0  ;;  %v403_v3 = vmax.f32 %v361_v53, 0.0 }
 0x112   :  { %v390_v0 = vmax.f32 %v308_v56, 0.0  ;;  %v406_v1 = vmax.f32 %v372_v57, 0.0 }
 0x113   :  { %v388_v4 = vmax.f32 %v300_v60, 0.0  ;;  %v404_v5 = vmax.f32 %v364_v61, 0.0 }
 0x114   :  { %v698_v6 = vpack.c.bf16 %v390_v0, %v389_v62  ;;  %v738_v7 = vpack.c.bf16 %v406_v1, %v405_v63 }
 0x115   :  { %v693_v8 = vpack.c.bf16 %v388_v4, %v387_v2  ;;  %v733_v9 = vpack.c.bf16 %v404_v5, %v403_v3 }
 0x116   :  { %746 = vst [vmem:[%s1047_s3 + $0x38] sm:$0xff] %v698_v6   ;;  %754 = vst [vmem:[%s1047_s3 + $0x78] sm:$0xff] %v738_v7  }
 0x117   :  { %745 = vst [vmem:[%s1047_s3 + $0x30] sm:$0xff] %v693_v8   ;;  %753 = vst [vmem:[%s1047_s3 + $0x70] sm:$0xff] %v733_v9  }

// kernel: low_level_feat_net.7
= control target key start
LH: loop header
LB: loop body
LE: loop exit
PB: predicated region body
PF: predicated region fallthrough
CT: control target
= control target key end

     0   :  { %s2853_s1 = inlined_call_operand.vmem [shape: bf16[640,128], index: 1, kind: input, shape index: {}]   ;;  %s2854_s0 = inlined_call_operand.vmem [shape: bf16[256,640], index: 0, kind: input, shape index: {}]   ;;  %s2855_s2 = inlined_call_operand.vmem [shape: f32[1,128], index: 2, kind: input, shape index: {}]   ;;  %s2856_s3 = inlined_call_operand.vmem [shape: bf16[256,128], index: 3, kind: output, shape index: {}]  }
   0x1   :  { %v2125_v0 = vld [vmem:[%s2853_s1 + $0x40] sm:$0xff]   ;;  %v2127_v2 = vld [vmem:[%s2853_s1 + $0x48] sm:$0xff]   ;;  %v2129_v4 = vld [vmem:[%s2853_s1 + $0x50] sm:$0xff]  }
   0x2   :  { %v2126_v1 = vld [vmem:[%s2853_s1] sm:$0xff]   ;;  %1813 = vmatprep.subr.bf16.mxu0 %v2125_v0  ;;  %2109 = vmatprep.subr.bf16.mxu1 %v2125_v0  ;;  %v2128_v3 = vld [vmem:[%s2853_s1 + $0x8] sm:$0xff]   ;;  %v2130_v5 = vld [vmem:[%s2853_s1 + $0x10] sm:$0xff]  }
   0x3   :  { %1814 = vmatpush3.bf16.msra.mxu0 %v2126_v1  ;;  %2117 = vmatpush3.bf16.msra.mxu1 %v2126_v1  ;;  %v2131_v6 = vld [vmem:[%s2853_s1 + $0x58] sm:$0xff]   ;;  %v2133_v8 = vld [vmem:[%s2853_s1 + $0x60] sm:$0xff]   ;;  %v2135_v10 = vld [vmem:[%s2853_s1 + $0x68] sm:$0xff]  }
   0x4   :  { %1815 = vmatprep.subr.bf16.mxu0 %v2127_v2  ;;  %2110 = vmatprep.subr.bf16.mxu1 %v2127_v2  ;;  %v2132_v7 = vld [vmem:[%s2853_s1 + $0x18] sm:$0xff]   ;;  %v2134_v9 = vld [vmem:[%s2853_s1 + $0x20] sm:$0xff]   ;;  %v2136_v13 = vld [vmem:[%s2853_s1 + $0x28] sm:$0xff]  }
   0x5   :  { %v2143_v11 = vld [vmem:[%s2854_s0 + $0x4] ss:$20 sps:$4 sm:$0xff]   ;;  %v2137_v14 = vld [vmem:[%s2853_s1 + $0x70] sm:$0xff]   ;;  %v2149_v23 = vld [vmem:[%s2853_s1 + $0xc8] sm:$0xff]  }
   0x6   :  { %v2146_v12 = vld [vmem:[%s2854_s0 + $0x1e4] ss:$20 sps:$4 sm:$0xff]   ;;  %886 = vmatprep.mubr.bf16.mxu0 %v2143_v11  ;;  %v2138_v15 = vld [vmem:[%s2853_s1 + $0x30] sm:$0xff]   ;;  %v2152_v24 = vld [vmem:[%s2854_s0 + $0x2c] ss:$20 sps:$4 sm:$0xff]  }
   0x7   :  { %1816 = vmatpush3.bf16.msra.mxu0 %v2128_v3  ;;  %2118 = vmatpush3.bf16.msra.mxu1 %v2128_v3  ;;  %v2139_v16 = vld [vmem:[%s2853_s1 + $0x78] sm:$0xff]   ;;  %v2147_v18 = vld [vmem:[%s2853_s1 + $0xc0] sm:$0xff]   ;;  %v2169_v26 = vld [vmem:[%s2853_s1 + $0x108] sm:$0xff]  }
   0x8   :  { %1817 = vmatprep.subr.bf16.mxu0 %v2129_v4  ;;  %2111 = vmatprep.subr.bf16.mxu1 %v2129_v4  ;;  %v2140_v17 = vld [vmem:[%s2853_s1 + $0x38] sm:$0xff]   ;;  %v2150_v19 = vld [vmem:[%s2853_s1 + $0x100] sm:$0xff]   ;;  %v2151_v27 = vld [vmem:[%s2853_s1 + $0x88] sm:$0xff]  }
   0x9   :  { %982 = vmatprep.mubr.bf16.mxu1 %v2146_v12  ;;  %v2141_v20 = vld [vmem:[%s2854_s0] ss:$20 sps:$4 sm:$0xff]   ;;  %v2156_v28 = vld [vmem:[%s2854_s0 + $0x28] ss:$20 sps:$4 sm:$0xff]   ;;  %v2166_v37 = vld [vmem:[%s2854_s0 + $0x50] ss:$20 sps:$4 sm:$0xff]  }
   0xa   :  { %v2144_v21 = vld [vmem:[%s2854_s0 + $0x1e0] ss:$20 sps:$4 sm:$0xff]   ;;  %v2157_v30 = vld [vmem:[%s2854_s0 + $0x208] ss:$20 sps:$4 sm:$0xff]   ;;  %v2167_v39 = vld [vmem:[%s2854_s0 + $0x230] ss:$20 sps:$4 sm:$0xff]  }
   0xb   :  { %1818 = vmatpush3.bf16.msra.mxu0 %v2130_v5  ;;  %2119 = vmatpush3.bf16.msra.mxu1 %v2130_v5  ;;  %v2148_v22 = vld [vmem:[%s2853_s1 + $0x80] sm:$0xff]   ;;  %v2158_v29 = vld [vmem:[%s2853_s1 + $0xd0] sm:$0xff]   ;;  %v2160_v33 = vld [vmem:[%s2853_s1 + $0xd8] sm:$0xff]  }
   0xc   :  { %1819 = vmatprep.subr.bf16.mxu0 %v2131_v6  ;;  %2112 = vmatprep.subr.bf16.mxu1 %v2131_v6  ;;  %v2154_v25 = vld [vmem:[%s2854_s0 + $0x20c] ss:$20 sps:$4 sm:$0xff]   ;;  %v2159_v31 = vld [vmem:[%s2853_s1 + $0x90] sm:$0xff]   ;;  %v2161_v35 = vld [vmem:[%s2853_s1 + $0x98] sm:$0xff]  }
   0xd   :  { %v2162_v32 = vld [vmem:[%s2854_s0 + $0x54] ss:$20 sps:$4 sm:$0xff]   ;;  %v2168_v36 = vld [vmem:[%s2853_s1 + $0xe0] sm:$0xff]   ;;  %v2173_v42 = vld [vmem:[%s2854_s0 + $0x7c] ss:$20 sps:$4 sm:$0xff]  }
   0xe   :  { %v2164_v34 = vld [vmem:[%s2854_s0 + $0x234] ss:$20 sps:$4 sm:$0xff]   ;;  %v2170_v40 = vld [vmem:[%s2853_s1 + $0xa0] sm:$0xff]   ;;  %v2175_v43 = vld [vmem:[%s2854_s0 + $0x25c] ss:$20 sps:$4 sm:$0xff]  }
   0xf   :  { %1820 = vmatpush3.bf16.msra.mxu0 %v2132_v7  ;;  %2120 = vmatpush3.bf16.msra.mxu1 %v2132_v7  ;;  %v2182_v38 = vld [vmem:[%s2853_s1 + $0x110] sm:$0xff]   ;;  %v2171_v41 = vld [vmem:[%s2853_s1 + $0xe8] sm:$0xff]   ;;  %v2196_v45 = vld [vmem:[%s2853_s1 + $0x118] sm:$0xff]  }
  0x10   :  { %1821 = vmatprep.subr.bf16.mxu0 %v2133_v8  ;;  %2113 = vmatprep.subr.bf16.mxu1 %v2133_v8  ;;  %v2172_v44 = vld [vmem:[%s2853_s1 + $0xa8] sm:$0xff]   ;;  %v2179_v48 = vld [vmem:[%s2853_s1 + $0xf0] sm:$0xff]   ;;  %v2181_v50 = vld [vmem:[%s2853_s1 + $0xf8] sm:$0xff]  }
  0x11   :  { %v2177_v46 = vld [vmem:[%s2854_s0 + $0x78] ss:$20 sps:$4 sm:$0xff]   ;;  %v2180_v49 = vld [vmem:[%s2853_s1 + $0xb0] sm:$0xff]   ;;  %v2203_v52 = vld [vmem:[%s2853_s1 + $0x120] sm:$0xff]  }
  0x12   :  { %v2178_v47 = vld [vmem:[%s2854_s0 + $0x258] ss:$20 sps:$4 sm:$0xff]   ;;  %v2186_v55 = vld [vmem:[%s2854_s0 + $0x8] ss:$20 sps:$4 sm:$0xff]   ;;  %v2189_v56 = vld [vmem:[%s2854_s0 + $0xa0] ss:$20 sps:$4 sm:$0xff]  }
  0x13   :  { %1822 = vmatpush3.bf16.msra.mxu0 %v2134_v9  ;;  %2121 = vmatpush3.bf16.msra.mxu1 %v2134_v9  ;;  %v2184_v51 = vld [vmem:[%s2854_s0 + $0xa4] ss:$20 sps:$4 sm:$0xff]   ;;  %v2188_v53 = vld [vmem:[%s2854_s0 + $0xc] ss:$20 sps:$4 sm:$0xff]   ;;  %v2192_v59 = vld [vmem:[%s2854_s0 + $0x34] ss:$20 sps:$4 sm:$0xff]  }
  0x14   :  { %1823 = vmatprep.subr.bf16.mxu0 %v2135_v10  ;;  %2114 = vmatprep.subr.bf16.mxu1 %v2135_v10  ;;  %v2183_v54 = vld [vmem:[%s2853_s1 + $0xb8] sm:$0xff]   ;;  %v2216_v57 = vld [vmem:[%s2853_s1 + $0x128] sm:$0xff]   ;;  %v2223_v60 = vld [vmem:[%s2853_s1 + $0x130] sm:$0xff]  }
  0x15   :  { %v2190_v58 = vld [vmem:[%s2854_s0 + $0xcc] ss:$20 sps:$4 sm:$0xff]   ;;  %v2194_v61 = vld [vmem:[%s2854_s0 + $0xc8] ss:$20 sps:$4 sm:$0xff]   ;;  %v2195_v62 = vld [vmem:[%s2854_s0 + $0x30] ss:$20 sps:$4 sm:$0xff]  }
  0x16   :  { %v2197_v63 = vld [vmem:[%s2854_s0 + $0xf4] ss:$20 sps:$4 sm:$0xff]   ;;  %v2199_v0 = vld [vmem:[%s2854_s0 + $0x5c] ss:$20 sps:$4 sm:$0xff]   ;;  %v2202_v3 = vld [vmem:[%s2854_s0 + $0x58] ss:$20 sps:$4 sm:$0xff]  }
  0x17   :  { %1824 = vmatpush3.bf16.msra.mxu0 %v2136_v13  ;;  %2122 = vmatpush3.bf16.msra.mxu1 %v2136_v13  ;;  %v2236_v1 = vld [vmem:[%s2853_s1 + $0x138] sm:$0xff]   ;;  %v2201_v2 = vld [vmem:[%s2854_s0 + $0xf0] ss:$20 sps:$4 sm:$0xff]   ;;  %v2209_v7 = vld [vmem:[%s2854_s0 + $0x80] ss:$20 sps:$4 sm:$0xff]  }
  0x18   :  { %1825 = vmatprep.subr.bf16.mxu0 %v2137_v14  ;;  %2115 = vmatprep.subr.bf16.mxu1 %v2137_v14  ;;  %v2204_v4 = vld [vmem:[%s2854_s0 + $0x11c] ss:$20 sps:$4 sm:$0xff]   ;;  %v2206_v5 = vld [vmem:[%s2854_s0 + $0x84] ss:$20 sps:$4 sm:$0xff]   ;;  %v2212_v9 = vld [vmem:[%s2854_s0 + $0xac] ss:$20 sps:$4 sm:$0xff]  }
  0x19   :  { %v2208_v6 = vld [vmem:[%s2854_s0 + $0x118] ss:$20 sps:$4 sm:$0xff]   ;;  %v2214_v10 = vld [vmem:[%s2854_s0 + $0x140] ss:$20 sps:$4 sm:$0xff]   ;;  %v2215_v11 = vld [vmem:[%s2854_s0 + $0xa8] ss:$20 sps:$4 sm:$0xff]  }
  0x1a   :  { %v2210_v8 = vld [vmem:[%s2854_s0 + $0x144] ss:$20 sps:$4 sm:$0xff]   ;;  %v2217_v12 = vld [vmem:[%s2854_s0 + $0x16c] ss:$20 sps:$4 sm:$0xff]   ;;  %v2219_v13 = vld [vmem:[%s2854_s0 + $0xd4] ss:$20 sps:$4 sm:$0xff]  }
  0x1b   :  { %1826 = vmatpush3.bf16.msra.mxu0 %v2138_v15  ;;  %2123 = vmatpush3.bf16.msra.mxu1 %v2138_v15  ;;  %v2221_v14 = vld [vmem:[%s2854_s0 + $0x168] ss:$20 sps:$4 sm:$0xff]   ;;  %v2222_v15 = vld [vmem:[%s2854_s0 + $0xd0] ss:$20 sps:$4 sm:$0xff]  }
  0x1c   :  { %1827 = vmatprep.subr.bf16.mxu0 %v2139_v16  ;;  %2116 = vmatprep.subr.bf16.mxu1 %v2139_v16  ;;  %v2224_v16 = vld [vmem:[%s2854_s0 + $0x194] ss:$20 sps:$4 sm:$0xff]  }
  0x1f   :  { %1828 = vmatpush3.bf16.msra.mxu0 %v2140_v17  ;;  %2124 = vmatpush3.bf16.msra.mxu1 %v2140_v17  ;;  %v2226_v17 = vld [vmem:[%s2854_s0 + $0xfc] ss:$20 sps:$4 sm:$0xff]  }
  0x20   :  { %1925 = vmatprep.subr.bf16.mxu1 %v2147_v18  ;;  %2061 = vmatprep.subr.bf16.mxu0 %v2150_v19  ;;  %v2228_v18 = vld [vmem:[%s2854_s0 + $0x190] ss:$20 sps:$4 sm:$0xff]  }
  0x22   :  { %887 = vmatmul.mubr.bf16.vlgmr.msra.gmra.mrb[0].mxu0 %v2141_v20  ;;  %983 = vmatmul.mubr.bf16.vlgmr.msra.gmra.mrb[0].mxu1 %v2144_v21  ;;  %v2230_v20 = vld [vmem:[%s2854_s0 + $0x1bc] ss:$20 sps:$4 sm:$0xff]   ;;  %v2232_v21 = vld [vmem:[%s2854_s0 + $0x124] ss:$20 sps:$4 sm:$0xff]  }
  0x23   :  { %1926 = vmatpush3.bf16.msra.mxu1 %v2148_v22  ;;  %2062 = vmatpush3.bf16.msra.mxu0 %v2150_v19  ;;  %v2229_v19 = vld [vmem:[%s2854_s0 + $0xf8] ss:$20 sps:$4 sm:$0xff]  }
  0x24   :  { %1927 = vmatprep.subr.bf16.mxu1 %v2149_v23  ;;  %894 = vmatprep.mubr.bf16.mxu0 %v2152_v24  ;;  %v2234_v22 = vld [vmem:[%s2854_s0 + $0x1b8] ss:$20 sps:$4 sm:$0xff]   ;;  %v2235_v23 = vld [vmem:[%s2854_s0 + $0x120] ss:$20 sps:$4 sm:$0xff]  }
  0x25   :  { %990 = vmatprep.mubr.bf16.mxu1 %v2154_v25  ;;  %2063 = vmatprep.subr.bf16.mxu0 %v2169_v26  ;;  %v2237_v24 = vld [vmem:[%s2854_s0 + $0x14c] ss:$20 sps:$4 sm:$0xff]   ;;  %v2239_v25 = vld [vmem:[%s2854_s0 + $0x10] ss:$20 sps:$4 sm:$0xff]  }
  0x27   :  { %1928 = vmatpush3.bf16.msra.mxu1 %v2151_v27  ;;  %2064 = vmatpush3.bf16.msra.mxu0 %v2169_v26  ;;  %v2240_v26 = vld [vmem:[%s2854_s0 + $0x148] ss:$20 sps:$4 sm:$0xff]   ;;  %v2241_v27 = vld [vmem:[%s2854_s0 + $0x38] ss:$20 sps:$4 sm:$0xff]  }
  0x28   :  { %1929 = vmatprep.subr.bf16.mxu1 %v2158_v29  ;;  %2065 = vmatprep.subr.bf16.mxu0 %v2182_v38  ;;  %v2244_v29 = vld [vmem:[%s2854_s0 + $0x60] ss:$20 sps:$4 sm:$0xff]  }
  0x2a   :  { %895 = vmatmul.mubr.bf16.gmra.mrb[4].mxu0 %v2156_v28  ;;  %991 = vmatmul.mubr.bf16.gmra.mrb[4].mxu1 %v2157_v30  ;;  %v2242_v28 = vld [vmem:[%s2854_s0 + $0x174] ss:$20 sps:$4 sm:$0xff]   ;;  %v2245_v30 = vld [vmem:[%s2854_s0 + $0x170] ss:$20 sps:$4 sm:$0xff]  }
  0x2b   :  { %1930 = vmatpush3.bf16.msra.mxu1 %v2159_v31  ;;  %902 = vmatprep.mubr.bf16.mxu0 %v2162_v32  ;;  %v2246_v31 = vld [vmem:[%s2854_s0 + $0x88] ss:$20 sps:$4 sm:$0xff]  }
  0x2c   :  { %1931 = vmatprep.subr.bf16.mxu1 %v2160_v33  ;;  %998 = vmatprep.mubr.bf16.mxu1 %v2164_v34  ;;  %v2247_v32 = vld [vmem:[%s2854_s0 + $0x19c] ss:$20 sps:$4 sm:$0xff]   ;;  %v2250_v34 = vld [vmem:[%s2854_s0 + $0x198] ss:$20 sps:$4 sm:$0xff]  }
  0x2d   :  { %2066 = vmatpush3.bf16.msra.mxu0 %v2182_v38  ;;  %v2249_v33 = vld [vmem:[%s2854_s0 + $0xb0] ss:$20 sps:$4 sm:$0xff]   ;;  %v2255_v38 = vld [vmem:[%s2854_s0 + $0x1c0] ss:$20 sps:$4 sm:$0xff]  }
  0x2e   :  { %2067 = vmatprep.subr.bf16.mxu0 %v2196_v45 }
  0x2f   :  { %1932 = vmatpush3.bf16.msra.mxu1 %v2161_v35  ;;  %v2251_v35 = vld [vmem:[%s2854_s0 + $0xd8] ss:$20 sps:$4 sm:$0xff]  }
  0x30   :  { %1933 = vmatprep.subr.bf16.mxu1 %v2168_v36  ;;  %v2252_v36 = vld [vmem:[%s2854_s0 + $0x1c4] ss:$20 sps:$4 sm:$0xff]  }
  0x31   :  { %2068 = vmatpush3.bf16.msra.mxu0 %v2196_v45  ;;  %v2264_v45 = vld [vmem:[%s2854_s0 + $0x1a0] ss:$20 sps:$4 sm:$0xff]  }
  0x32   :  { %903 = vmatmul.mubr.bf16.gmra.mrb[8].mxu0 %v2166_v37  ;;  %999 = vmatmul.mubr.bf16.gmra.mrb[8].mxu1 %v2167_v39  ;;  %v2254_v37 = vld [vmem:[%s2854_s0 + $0x100] ss:$20 sps:$4 sm:$0xff]   ;;  %v2256_v39 = vld [vmem:[%s2854_s0 + $0x128] ss:$20 sps:$4 sm:$0xff]  }
  0x33   :  { %1934 = vmatpush3.bf16.msra.mxu1 %v2170_v40  ;;  %910 = vmatprep.mubr.bf16.mxu0 %v2173_v42  ;;  %v2257_v40 = vld [vmem:[%s2854_s0 + $0x1ec] ss:$20 sps:$4 sm:$0xff]   ;;  %v2260_v42 = vld [vmem:[%s2854_s0 + $0x1e8] ss:$20 sps:$4 sm:$0xff]  }
  0x34   :  { %1935 = vmatprep.subr.bf16.mxu1 %v2171_v41  ;;  %1006 = vmatprep.mubr.bf16.mxu1 %v2175_v43  ;;  %v2259_v41 = vld [vmem:[%s2854_s0 + $0x150] ss:$20 sps:$4 sm:$0xff]   ;;  %v2261_v43 = vld [vmem:[%s2854_s0 + $0x178] ss:$20 sps:$4 sm:$0xff]  }
  0x35   :  { %2069 = vmatprep.subr.bf16.mxu0 %v2203_v52 }
  0x36   :  { %2070 = vmatpush3.bf16.msra.mxu0 %v2203_v52  ;;  %v2272_v52 = vld [vmem:[%s2854_s0 + $0x264] ss:$20 sps:$4 sm:$0xff]  }
  0x37   :  { %1936 = vmatpush3.bf16.msra.mxu1 %v2172_v44  ;;  %2071 = vmatprep.subr.bf16.mxu0 %v2216_v57  ;;  %v2262_v44 = vld [vmem:[%s2854_s0 + $0x214] ss:$20 sps:$4 sm:$0xff]  }
  0x38   :  { %1937 = vmatprep.subr.bf16.mxu1 %v2179_v48  ;;  %v2267_v48 = vld [vmem:[%s2854_s0 + $0x23c] ss:$20 sps:$4 sm:$0xff]  }
  0x3a   :  { %911 = vmatmul.mubr.bf16.gmra.mrb[12].mxu0 %v2177_v46  ;;  %1007 = vmatmul.mubr.bf16.gmra.mrb[12].mxu1 %v2178_v47  ;;  %v2265_v46 = vld [vmem:[%s2854_s0 + $0x210] ss:$20 sps:$4 sm:$0xff]   ;;  %v2266_v47 = vld [vmem:[%s2854_s0 + $0x1c8] ss:$20 sps:$4 sm:$0xff]  }
  0x3b   :  { %1938 = vmatpush3.bf16.msra.mxu1 %v2180_v49  ;;  %918 = vmatprep.mubr.bf16.mxu0 %v2184_v51  ;;  %v2269_v49 = vld [vmem:[%s2854_s0 + $0x1f0] ss:$20 sps:$4 sm:$0xff]   ;;  %v2271_v51 = vld [vmem:[%s2854_s0 + $0x218] ss:$20 sps:$4 sm:$0xff]  }
  0x3c   :  { %1939 = vmatprep.subr.bf16.mxu1 %v2181_v50  ;;  %1047 = vmatprep.mubr.bf16.mxu1 %v2188_v53  ;;  %v2270_v50 = vld [vmem:[%s2854_s0 + $0x238] ss:$20 sps:$4 sm:$0xff]   ;;  %v2274_v53 = vld [vmem:[%s2854_s0 + $0x240] ss:$20 sps:$4 sm:$0xff]  }
  0x3d   :  { %2072 = vmatpush3.bf16.msra.mxu0 %v2216_v57 }
  0x3e   :  { %2073 = vmatprep.subr.bf16.mxu0 %v2223_v60 }
  0x3f   :  { %1940 = vmatpush3.bf16.msra.mxu1 %v2183_v54  ;;  %v2275_v54 = vld [vmem:[%s2854_s0 + $0x260] ss:$20 sps:$4 sm:$0xff]  }
  0x41   :  { %2074 = vmatpush3.bf16.msra.mxu0 %v2223_v60 }
  0x42   :  { %919 = vmatmul.mubr.bf16.gmra.mrb[16].mxu0 %v2189_v56  ;;  %1048 = vmatmul.mubr.bf16.vlgmr.msra.gmra.mrb[16].mxu1 %v2186_v55  ;;  %v2276_v55 = vld [vmem:[%s2854_s0 + $0x268] ss:$20 sps:$4 sm:$0xff]  }
  0x43   :  { %926 = vmatprep.mubr.bf16.mxu0 %v2190_v58  ;;  %1055 = vmatprep.mubr.bf16.mxu1 %v2192_v59 }
  0x44   :  { %2075 = vmatprep.subr.bf16.mxu0 %v2236_v1 }
  0x45   :  { %2076 = vmatpush3.bf16.msra.mxu0 %v2236_v1 }
  0x4a   :  { %927 = vmatmul.mubr.bf16.gmra.mrb[20].mxu0 %v2194_v61  ;;  %1056 = vmatmul.mubr.bf16.gmra.mrb[20].mxu1 %v2195_v62 }
  0x4b   :  { %934 = vmatprep.mubr.bf16.mxu0 %v2197_v63  ;;  %1063 = vmatprep.mubr.bf16.mxu1 %v2199_v0 }
  0x52   :  { %935 = vmatmul.mubr.bf16.gmra.mrb[24].mxu0 %v2201_v2  ;;  %1064 = vmatmul.mubr.bf16.gmra.mrb[24].mxu1 %v2202_v3 }
  0x53   :  { %942 = vmatprep.mubr.bf16.mxu0 %v2204_v4  ;;  %1071 = vmatprep.mubr.bf16.mxu1 %v2206_v5 }
  0x5a   :  { %943 = vmatmul.mubr.bf16.gmra.mrb[28].mxu0 %v2208_v6  ;;  %1072 = vmatmul.mubr.bf16.gmra.mrb[28].mxu1 %v2209_v7 }
  0x5b   :  { %950 = vmatprep.mubr.bf16.mxu0 %v2210_v8  ;;  %1079 = vmatprep.mubr.bf16.mxu1 %v2212_v9 }
  0x62   :  { %951 = vmatmul.mubr.bf16.gmra.mrb[32].mxu0 %v2214_v10  ;;  %1080 = vmatmul.mubr.bf16.gmra.mrb[32].mxu1 %v2215_v11 }
  0x63   :  { %958 = vmatprep.mubr.bf16.mxu0 %v2217_v12  ;;  %1087 = vmatprep.mubr.bf16.mxu1 %v2219_v13 }
  0x6a   :  { %959 = vmatmul.mubr.bf16.gmra.mrb[36].mxu0 %v2221_v14  ;;  %1088 = vmatmul.mubr.bf16.gmra.mrb[36].mxu1 %v2222_v15 }
  0x6b   :  { %966 = vmatprep.mubr.bf16.mxu0 %v2224_v16  ;;  %1095 = vmatprep.mubr.bf16.mxu1 %v2226_v17 }
  0x72   :  { %967 = vmatmul.mubr.bf16.gmra.mrb[40].mxu0 %v2228_v18  ;;  %1096 = vmatmul.mubr.bf16.gmra.mrb[40].mxu1 %v2229_v19 }
  0x73   :  { %974 = vmatprep.mubr.bf16.mxu0 %v2230_v20  ;;  %1103 = vmatprep.mubr.bf16.mxu1 %v2232_v21 }
  0x7a   :  { %975 = vmatmul.mubr.bf16.gmra.mrb[44].mxu0 %v2234_v22  ;;  %1104 = vmatmul.mubr.bf16.gmra.mrb[44].mxu1 %v2235_v23 }
  0x7b   :  { %1111 = vmatprep.mubr.bf16.mxu1 %v2237_v24  ;;  %2077 = vmatprep.mubr.bf16.mxu0 %v2239_v25 }
  0x82   :  { %1112 = vmatmul.mubr.bf16.gmra.mrb[48].mxu1 %v2240_v26  ;;  %2078 = vmatmul.mubr.bf16.vlgmr.msra.gmra.mrb[48].mxu0 %v2241_v27 }
  0x83   :  { %1119 = vmatprep.mubr.bf16.mxu1 %v2242_v28  ;;  %2081 = vmatprep.mubr.bf16.mxu0 %v2244_v29 }
  0x8a   :  { %1120 = vmatmul.mubr.bf16.gmra.mrb[52].mxu1 %v2245_v30  ;;  %2082 = vmatmul.mubr.bf16.gmra.mrb[52].mxu0 %v2246_v31 }
  0x8b   :  { %1127 = vmatprep.mubr.bf16.mxu1 %v2247_v32  ;;  %2085 = vmatprep.mubr.bf16.mxu0 %v2249_v33 }
  0x92   :  { %1128 = vmatmul.mubr.bf16.gmra.mrb[56].mxu1 %v2250_v34  ;;  %2086 = vmatmul.mubr.bf16.gmra.mrb[56].mxu0 %v2251_v35 }
  0x93   :  { %1135 = vmatprep.mubr.bf16.mxu1 %v2252_v36  ;;  %2089 = vmatprep.mubr.bf16.mxu0 %v2254_v37 }
  0x9a   :  { %1136 = vmatmul.mubr.bf16.gmra.mrb[60].mxu1 %v2255_v38  ;;  %2090 = vmatmul.mubr.bf16.gmra.mrb[60].mxu0 %v2256_v39 }
  0x9b   :  { %1143 = vmatprep.mubr.bf16.mxu1 %v2257_v40  ;;  %2093 = vmatprep.mubr.bf16.mxu0 %v2259_v41 }
  0xa2   :  { %1144 = vmatmul.mubr.bf16.gmra.mrb[64].mxu1 %v2260_v42  ;;  %2094 = vmatmul.mubr.bf16.gmra.mrb[64].mxu0 %v2261_v43  ;;  %v2676_v42 = vld [vmem:[%s2855_s2] ss:$0 sm:$0xff] }
  0xa3   :  { %1151 = vmatprep.mubr.bf16.mxu1 %v2262_v44  ;;  %2097 = vmatprep.mubr.bf16.mxu0 %v2264_v45 }
  0xaa   :  { %1152 = vmatmul.mubr.bf16.gmra.mrb[68].mxu1 %v2265_v46  ;;  %2098 = vmatmul.mubr.bf16.gmra.mrb[68].mxu0 %v2266_v47 }
  0xab   :  { %1159 = vmatprep.mubr.bf16.mxu1 %v2267_v48  ;;  %2101 = vmatprep.mubr.bf16.mxu0 %v2269_v49 }
  0xb2   :  { %1160 = vmatmul.mubr.bf16.gmra.mrb[72].mxu1 %v2270_v50  ;;  %2102 = vmatmul.mubr.bf16.gmra.mrb[72].mxu0 %v2271_v51 }
  0xb3   :  { %1167 = vmatprep.mubr.bf16.mxu1 %v2272_v52  ;;  %2105 = vmatprep.mubr.bf16.mxu0 %v2274_v53 }
  0xba   :  { %1168 = vmatmul.mubr.bf16.gmra.mrb[76].mxu1 %v2275_v54  ;;  %2106 = vmatmul.mubr.bf16.gmra.mrb[76].mxu0 %v2276_v55 }
  0xf5   :  { %v1901_v56 = vpop.f32.mrb[0].mxu1  ;;  %v1829_v57 = vpop.f32.mrb[0].mxu0 }
  0xf6   :  { %v1902_v58 = vpop.f32.mrb[1].mxu1  ;;  %v1830_v59 = vpop.f32.mrb[1].mxu0 }
  0xf7   :  { %v2657_v60 = vadd.f32 %v1902_v58, %v1901_v56  ;;  %v1904_v61 = vpop.f32.mrb[2].mxu1  ;;  %v1831_v62 = vadd.f32 %v1830_v59, %v1829_v57  ;;  %v1832_v63 = vpop.f32.mrb[2].mxu0 }
  0xf8   :  { %v1905_v0 = vpop.f32.mrb[3].mxu1  ;;  %v1833_v1 = vpop.f32.mrb[3].mxu0 }
  0xf9   :  { %v2659_v2 = vadd.f32 %v1905_v0, %v1904_v61  ;;  %v1834_v3 = vadd.f32 %v1833_v1, %v1832_v63  ;;  %v889_v45 = vadd.f32 %v1831_v62, %v2676_v42 }
  0xfb   :  { %v892_v52 = vadd.f32 %v1834_v3, %v2676_v42 }
  0xfd   :  { %v1907_v4 = vpop.f32.mrb[4].mxu1  ;;  %v1835_v5 = vpop.f32.mrb[4].mxu0 }
  0xfe   :  { %v1908_v6 = vpop.f32.mrb[5].mxu1  ;;  %v1836_v7 = vpop.f32.mrb[5].mxu0 }
  0xff   :  { %v2661_v8 = vadd.f32 %v1908_v6, %v1907_v4  ;;  %v1910_v9 = vpop.f32.mrb[6].mxu1  ;;  %v1837_v10 = vadd.f32 %v1836_v7, %v1835_v5  ;;  %v1838_v11 = vpop.f32.mrb[6].mxu0 }
 0x100   :  { %v1911_v12 = vpop.f32.mrb[7].mxu1  ;;  %v1839_v13 = vpop.f32.mrb[7].mxu0 }
 0x101   :  { %v2663_v14 = vadd.f32 %v1911_v12, %v1910_v9  ;;  %v1840_v15 = vadd.f32 %v1839_v13, %v1838_v11  ;;  %v897_v62 = vadd.f32 %v1837_v10, %v2676_v42 }
 0x103   :  { %v900_v3 = vadd.f32 %v1840_v15, %v2676_v42 }
 0x105   :  { %v1913_v16 = vpop.f32.mrb[8].mxu1  ;;  %v1841_v17 = vpop.f32.mrb[8].mxu0 }
 0x106   :  { %v1914_v18 = vpop.f32.mrb[9].mxu1  ;;  %v1842_v19 = vpop.f32.mrb[9].mxu0 }
 0x107   :  { %v2665_v20 = vadd.f32 %v1914_v18, %v1913_v16  ;;  %v1916_v21 = vpop.f32.mrb[10].mxu1  ;;  %v1843_v22 = vadd.f32 %v1842_v19, %v1841_v17  ;;  %v1844_v23 = vpop.f32.mrb[10].mxu0 }
 0x108   :  { %v1917_v24 = vpop.f32.mrb[11].mxu1  ;;  %v1845_v25 = vpop.f32.mrb[11].mxu0 }
 0x109   :  { %v2667_v26 = vadd.f32 %v1917_v24, %v1916_v21  ;;  %v1846_v27 = vadd.f32 %v1845_v25, %v1844_v23  ;;  %v905_v10 = vadd.f32 %v1843_v22, %v2676_v42 }
 0x10b   :  { %v908_v15 = vadd.f32 %v1846_v27, %v2676_v42 }
 0x10d   :  { %v1919_v28 = vpop.f32.mrb[12].mxu1  ;;  %v1847_v29 = vpop.f32.mrb[12].mxu0 }
 0x10e   :  { %v1920_v30 = vpop.f32.mrb[13].mxu1  ;;  %v1848_v31 = vpop.f32.mrb[13].mxu0 }
 0x10f   :  { %v2669_v32 = vadd.f32 %v1920_v30, %v1919_v28  ;;  %v1922_v33 = vpop.f32.mrb[14].mxu1  ;;  %v1849_v34 = vadd.f32 %v1848_v31, %v1847_v29  ;;  %v1850_v35 = vpop.f32.mrb[14].mxu0 }
 0x110   :  { %v1923_v36 = vpop.f32.mrb[15].mxu1  ;;  %v1851_v37 = vpop.f32.mrb[15].mxu0 }
 0x111   :  { %v2671_v38 = vadd.f32 %v1923_v36, %v1922_v33  ;;  %v1852_v39 = vadd.f32 %v1851_v37, %v1850_v35  ;;  %v913_v22 = vadd.f32 %v1849_v34, %v2676_v42 }
 0x113   :  { %v916_v27 = vadd.f32 %v1852_v39, %v2676_v42 }
 0x115   :  { %v1941_v40 = vpop.f32.mrb[16].mxu1  ;;  %v1853_v41 = vpop.f32.mrb[16].mxu0 }
 0x116   :  { %v1942_v43 = vpop.f32.mrb[17].mxu1  ;;  %v1854_v44 = vpop.f32.mrb[17].mxu0 }
 0x117   :  { %v1943_v46 = vadd.f32 %v1942_v43, %v1941_v40  ;;  %v1944_v47 = vpop.f32.mrb[18].mxu1  ;;  %v1855_v48 = vadd.f32 %v1854_v44, %v1853_v41  ;;  %v1856_v49 = vpop.f32.mrb[18].mxu0 }
 0x118   :  { %v1945_v50 = vpop.f32.mrb[19].mxu1  ;;  %v1857_v51 = vpop.f32.mrb[19].mxu0 }
 0x119   :  { %v1946_v53 = vadd.f32 %v1945_v50, %v1944_v47  ;;  %v1858_v54 = vadd.f32 %v1857_v51, %v1856_v49  ;;  %v2680_v55 = vadd.f32 %v1943_v46, %v889_v45  ;;  %v921_v34 = vadd.f32 %v1855_v48, %v2676_v42 }
 0x11b   :  { %v2682_v56 = vadd.f32 %v1946_v53, %v892_v52  ;;  %v924_v39 = vadd.f32 %v1858_v54, %v2676_v42 }
 0x11d   :  { %v1947_v57 = vpop.f32.mrb[20].mxu1  ;;  %v1859_v58 = vpop.f32.mrb[20].mxu0 }
 0x11e   :  { %v1948_v59 = vpop.f32.mrb[21].mxu1  ;;  %v1860_v61 = vpop.f32.mrb[21].mxu0 }
 0x11f   :  { %v1949_v63 = vadd.f32 %v1948_v59, %v1947_v57  ;;  %v1950_v0 = vpop.f32.mrb[22].mxu1  ;;  %v1861_v1 = vadd.f32 %v1860_v61, %v1859_v58  ;;  %v1862_v4 = vpop.f32.mrb[22].mxu0 }
 0x120   :  { %v1951_v5 = vpop.f32.mrb[23].mxu1  ;;  %v1863_v6 = vpop.f32.mrb[23].mxu0 }
 0x121   :  { %v1952_v7 = vadd.f32 %v1951_v5, %v1950_v0  ;;  %v1864_v9 = vadd.f32 %v1863_v6, %v1862_v4  ;;  %v2686_v11 = vadd.f32 %v1949_v63, %v897_v62  ;;  %v929_v48 = vadd.f32 %v1861_v1, %v2676_v42 }
 0x123   :  { %v2688_v12 = vadd.f32 %v1952_v7, %v900_v3 }
 0x125   :  { %v1953_v13 = vpop.f32.mrb[24].mxu1  ;;  %v1865_v16 = vpop.f32.mrb[24].mxu0 }
 0x126   :  { %v1954_v17 = vpop.f32.mrb[25].mxu1  ;;  %v1866_v18 = vpop.f32.mrb[25].mxu0 }
 0x127   :  { %v1955_v19 = vadd.f32 %v1954_v17, %v1953_v13  ;;  %v1956_v21 = vpop.f32.mrb[26].mxu1  ;;  %v1867_v23 = vadd.f32 %v1866_v18, %v1865_v16  ;;  %v1868_v24 = vpop.f32.mrb[26].mxu0 }
 0x128   :  { %v1957_v25 = vpop.f32.mrb[27].mxu1  ;;  %v1869_v28 = vpop.f32.mrb[27].mxu0 }
 0x129   :  { %v1958_v29 = vadd.f32 %v1957_v25, %v1956_v21  ;;  %v1870_v30 = vadd.f32 %v1869_v28, %v1868_v24  ;;  %v2692_v31 = vadd.f32 %v1955_v19, %v905_v10 }
 0x12b   :  { %v2694_v33 = vadd.f32 %v1958_v29, %v908_v15  ;;  %v932_v15 = vadd.f32 %v1864_v9, %v2676_v42 }
 0x12d   :  { %v1959_v35 = vpop.f32.mrb[28].mxu1  ;;  %v1871_v36 = vpop.f32.mrb[28].mxu0 }
 0x12e   :  { %v1960_v37 = vpop.f32.mrb[29].mxu1  ;;  %v1872_v40 = vpop.f32.mrb[29].mxu0 }
 0x12f   :  { %v1961_v41 = vadd.f32 %v1960_v37, %v1959_v35  ;;  %v1962_v43 = vpop.f32.mrb[30].mxu1  ;;  %v1873_v44 = vadd.f32 %v1872_v40, %v1871_v36  ;;  %v1874_v45 = vpop.f32.mrb[30].mxu0 }
 0x130   :  { %v1963_v46 = vpop.f32.mrb[31].mxu1  ;;  %v1875_v47 = vpop.f32.mrb[31].mxu0 }
 0x131   :  { %v1964_v49 = vadd.f32 %v1963_v46, %v1962_v43  ;;  %v1876_v50 = vadd.f32 %v1875_v47, %v1874_v45  ;;  %v2698_v51 = vadd.f32 %v1961_v41, %v913_v22  ;;  %v937_v43 = vadd.f32 %v1867_v23, %v2676_v42 }
 0x133   :  { %v2700_v52 = vadd.f32 %v1964_v49, %v916_v27 }
 0x135   :  { %v1965_v53 = vpop.f32.mrb[32].mxu1  ;;  %v1877_v57 = vpop.f32.mrb[32].mxu0 }
 0x136   :  { %v1966_v58 = vpop.f32.mrb[33].mxu1  ;;  %v1878_v59 = vpop.f32.mrb[33].mxu0 }
 0x137   :  { %v1967_v61 = vadd.f32 %v1966_v58, %v1965_v53  ;;  %v1968_v62 = vpop.f32.mrb[34].mxu1  ;;  %v1879_v63 = vadd.f32 %v1878_v59, %v1877_v57  ;;  %v1880_v0 = vpop.f32.mrb[34].mxu0  ;;  %v940_v53 = vadd.f32 %v1870_v30, %v2676_v42 }
 0x138   :  { %v1969_v4 = vpop.f32.mrb[35].mxu1  ;;  %v1881_v5 = vpop.f32.mrb[35].mxu0 }
 0x139   :  { %v1970_v6 = vadd.f32 %v1969_v4, %v1968_v62  ;;  %v2704_v3 = vadd.f32 %v1881_v5, %v1880_v0  ;;  %v2706_v7 = vadd.f32 %v1967_v61, %v921_v34  ;;  %v945_v4 = vadd.f32 %v1873_v44, %v2676_v42 }
 0x13b   :  { %v2708_v13 = vadd.f32 %v1970_v6, %v924_v39 }
 0x13d   :  { %v1971_v16 = vpop.f32.mrb[36].mxu1  ;;  %v1883_v17 = vpop.f32.mrb[36].mxu0 }
 0x13e   :  { %v1972_v18 = vpop.f32.mrb[37].mxu1  ;;  %v1884_v10 = vpop.f32.mrb[37].mxu0 }
 0x13f   :  { %v1973_v19 = vadd.f32 %v1972_v18, %v1971_v16  ;;  %v1974_v21 = vpop.f32.mrb[38].mxu1  ;;  %v2711_v24 = vadd.f32 %v1884_v10, %v1883_v17  ;;  %v1886_v25 = vpop.f32.mrb[38].mxu0  ;;  %v948_v18 = vadd.f32 %v1876_v50, %v2676_v42 }
 0x140   :  { %v1975_v28 = vpop.f32.mrb[39].mxu1  ;;  %v1887_v54 = vpop.f32.mrb[39].mxu0 }
 0x141   :  { %v1976_v29 = vadd.f32 %v1975_v28, %v1974_v21  ;;  %v2714_v35 = vadd.f32 %v1887_v54, %v1886_v25  ;;  %v2716_v36 = vadd.f32 %v1973_v19, %v929_v48 }
 0x143   :  { %v2718_v37 = vadd.f32 %v1976_v29, %v932_v15  ;;  %v953_v29 = vadd.f32 %v1879_v63, %v2676_v42 }
 0x145   :  { %v1977_v40 = vpop.f32.mrb[40].mxu1  ;;  %v1889_v22 = vpop.f32.mrb[40].mxu0 }
 0x146   :  { %v1978_v41 = vpop.f32.mrb[41].mxu1  ;;  %v1890_v1 = vpop.f32.mrb[41].mxu0 }
 0x147   :  { %v1979_v45 = vadd.f32 %v1978_v41, %v1977_v40  ;;  %v1980_v46 = vpop.f32.mrb[42].mxu1  ;;  %v2721_v47 = vadd.f32 %v1890_v1, %v1889_v22  ;;  %v1892_v27 = vpop.f32.mrb[42].mxu0 }
 0x148   :  { %v1981_v49 = vpop.f32.mrb[43].mxu1  ;;  %v1893_v9 = vpop.f32.mrb[43].mxu0 }
 0x149   :  { %v1982_v57 = vadd.f32 %v1981_v49, %v1980_v46  ;;  %v2724_v58 = vadd.f32 %v1893_v9, %v1892_v27  ;;  %v2726_v59 = vadd.f32 %v1979_v45, %v937_v43  ;;  %v956_v46 = vadd.f32 %v2704_v3, %v2676_v42 }
 0x14b   :  { %v2728_v34 = vadd.f32 %v1982_v57, %v940_v53 }
 0x14d   :  { %v1983_v61 = vpop.f32.mrb[44].mxu1  ;;  %v1895_v62 = vpop.f32.mrb[44].mxu0 }
 0x14e   :  { %v1984_v0 = vpop.f32.mrb[45].mxu1  ;;  %v1896_v23 = vpop.f32.mrb[45].mxu0 }
 0x14f   :  { %v1985_v5 = vadd.f32 %v1984_v0, %v1983_v61  ;;  %v1986_v39 = vpop.f32.mrb[46].mxu1  ;;  %v2731_v6 = vadd.f32 %v1896_v23, %v1895_v62  ;;  %v1898_v16 = vpop.f32.mrb[46].mxu0 }
 0x150   :  { %v1987_v17 = vpop.f32.mrb[47].mxu1  ;;  %v1899_v30 = vpop.f32.mrb[47].mxu0 }
 0x151   :  { %v1988_v10 = vadd.f32 %v1987_v17, %v1986_v39  ;;  %v2734_v48 = vadd.f32 %v1899_v30, %v1898_v16  ;;  %v2736_v19 = vadd.f32 %v1985_v5, %v945_v4  ;;  %v961_v4 = vadd.f32 %v2711_v24, %v2676_v42 }
 0x153   :  { %v2738_v21 = vadd.f32 %v1988_v10, %v948_v18 }
 0x155   :  { %v1989_v25 = vpop.f32.mrb[48].mxu1  ;;  %v2079_v28 = vpop.f32.mrb[48].mxu0 }
 0x156   :  { %v1219_v44 = vadd.f32 %v2079_v28, %v2686_v11  ;;  %v1990_v54 = vpop.f32.mrb[49].mxu1  ;;  %v1210_v15 = vpop.f32.mrb[49].mxu0 }
 0x157   :  { %v1991_v40 = vadd.f32 %v1990_v54, %v1989_v25  ;;  %v1211_v22 = vadd.f32 %v1210_v15, %v2680_v55  ;;  %v1992_v41 = vpop.f32.mrb[50].mxu1  ;;  %v2080_v50 = vpop.f32.mrb[50].mxu0 }
 0x158   :  { %v1222_v1 = vadd.f32 %v2080_v50, %v2688_v12  ;;  %v1993_v43 = vpop.f32.mrb[51].mxu1  ;;  %v1213_v45 = vpop.f32.mrb[51].mxu0  ;;  %v1339_v9 = vmax.f32 %v1219_v44, 0.0 }
 0x159   :  { %v1994_v27 = vadd.f32 %v1993_v43, %v1992_v41  ;;  %v1214_v49 = vadd.f32 %v1213_v45, %v2682_v56  ;;  %v2747_v11 = vadd.f32 %v1991_v40, %v953_v29  ;;  %v1337_v63 = vmax.f32 %v1211_v22, 0.0 }
 0x15a   :  { %v1340_v53 = vmax.f32 %v1222_v1, 0.0  ;;  %v969_v1 = vadd.f32 %v2721_v47, %v2676_v42 }
 0x15b   :  { %v1338_v57 = vmax.f32 %v1214_v49, 0.0  ;;  %v2749_v61 = vadd.f32 %v1994_v27, %v956_v46 }
 0x15c   :  { %v1726_v55 = vpack.c.bf16 %v1340_v53, %v1339_v9 }
 0x15d   :  { %v1721_v62 = vpack.c.bf16 %v1338_v57, %v1337_v63  ;;  %v1995_v0 = vpop.f32.mrb[52].mxu1  ;;  %v2083_v12 = vpop.f32.mrb[52].mxu0 }
 0x15e   :  { %1798 = vst [vmem:[%s2856_s3 + $0x8] sm:$0xff] %v1726_v55   ;;  %v1235_v3 = vadd.f32 %v2083_v12, %v2698_v51  ;;  %v1996_v23 = vpop.f32.mrb[53].mxu1  ;;  %v1226_v56 = vpop.f32.mrb[53].mxu0  ;;  %v964_v51 = vadd.f32 %v2714_v35, %v2676_v42 }
 0x15f   :  { %1722 = vst [vmem:[%s2856_s3] sm:$0xff] %v1721_v62   ;;  %v1997_v5 = vadd.f32 %v1996_v23, %v1995_v0  ;;  %v1227_v39 = vadd.f32 %v1226_v56, %v2692_v31  ;;  %v1998_v16 = vpop.f32.mrb[54].mxu1  ;;  %v2084_v17 = vpop.f32.mrb[54].mxu0 }
 0x160   :  { %v1238_v30 = vadd.f32 %v2084_v17, %v2700_v52  ;;  %v1999_v18 = vpop.f32.mrb[55].mxu1  ;;  %v1229_v10 = vpop.f32.mrb[55].mxu0  ;;  %v1343_v44 = vmax.f32 %v1235_v3, 0.0 }
 0x161   :  { %v2000_v25 = vadd.f32 %v1999_v18, %v1998_v16  ;;  %v1230_v28 = vadd.f32 %v1229_v10, %v2694_v33  ;;  %v2765_v24 = vadd.f32 %v1997_v5, %v961_v4  ;;  %v1341_v15 = vmax.f32 %v1227_v39, 0.0 }
 0x162   :  { %v1344_v54 = vmax.f32 %v1238_v30, 0.0  ;;  %v977_v5 = vadd.f32 %v2731_v6, %v2676_v42 }
 0x163   :  { %v1342_v29 = vmax.f32 %v1230_v28, 0.0  ;;  %v2767_v40 = vadd.f32 %v2000_v25, %v964_v51 }
 0x164   :  { %v1736_v31 = vpack.c.bf16 %v1344_v54, %v1343_v44 }
 0x165   :  { %v1731_v22 = vpack.c.bf16 %v1342_v29, %v1341_v15  ;;  %v2001_v41 = vpop.f32.mrb[56].mxu1  ;;  %v2087_v52 = vpop.f32.mrb[56].mxu0 }
 0x166   :  { %1800 = vst [vmem:[%s2856_s3 + $0x18] sm:$0xff] %v1736_v31   ;;  %v1251_v35 = vadd.f32 %v2087_v52, %v2716_v36  ;;  %v2002_v50 = vpop.f32.mrb[57].mxu1  ;;  %v1242_v33 = vpop.f32.mrb[57].mxu0  ;;  %v972_v36 = vadd.f32 %v2724_v58, %v2676_v42 }
 0x167   :  { %1799 = vst [vmem:[%s2856_s3 + $0x10] sm:$0xff] %v1731_v22   ;;  %v2003_v43 = vadd.f32 %v2002_v50, %v2001_v41  ;;  %v1243_v45 = vadd.f32 %v1242_v33, %v2706_v7  ;;  %v2004_v46 = vpop.f32.mrb[58].mxu1  ;;  %v2088_v27 = vpop.f32.mrb[58].mxu0 }
 0x168   :  { %v1254_v49 = vadd.f32 %v2088_v27, %v2718_v37  ;;  %v2005_v9 = vpop.f32.mrb[59].mxu1  ;;  %v1245_v53 = vpop.f32.mrb[59].mxu0  ;;  %v1347_v55 = vmax.f32 %v1251_v35, 0.0 }
 0x169   :  { %v2006_v63 = vadd.f32 %v2005_v9, %v2004_v46  ;;  %v1246_v57 = vadd.f32 %v1245_v53, %v2708_v13  ;;  %v2783_v47 = vadd.f32 %v2003_v43, %v969_v1  ;;  %v1345_v0 = vmax.f32 %v1243_v45, 0.0 }
 0x16a   :  { %v1348_v62 = vmax.f32 %v1254_v49, 0.0 }
 0x16b   :  { %v1346_v12 = vmax.f32 %v1246_v57, 0.0  ;;  %v2785_v3 = vadd.f32 %v2006_v63, %v972_v36 }
 0x16c   :  { %v1746_v7 = vpack.c.bf16 %v1348_v62, %v1347_v55 }
 0x16d   :  { %v1741_v23 = vpack.c.bf16 %v1346_v12, %v1345_v0  ;;  %v2007_v56 = vpop.f32.mrb[60].mxu1  ;;  %v2091_v37 = vpop.f32.mrb[60].mxu0 }
 0x16e   :  { %1802 = vst [vmem:[%s2856_s3 + $0x28] sm:$0xff] %v1746_v7   ;;  %v1267_v58 = vadd.f32 %v2091_v37, %v2736_v19  ;;  %v2008_v4 = vpop.f32.mrb[61].mxu1  ;;  %v1258_v13 = vpop.f32.mrb[61].mxu0  ;;  %v980_v19 = vadd.f32 %v2734_v48, %v2676_v42 }
 0x16f   :  { %1801 = vst [vmem:[%s2856_s3 + $0x20] sm:$0xff] %v1741_v23   ;;  %v2009_v39 = vadd.f32 %v2008_v4, %v2007_v56  ;;  %v1259_v16 = vadd.f32 %v1258_v13, %v2726_v59  ;;  %v2010_v17 = vpop.f32.mrb[62].mxu1  ;;  %v2092_v30 = vpop.f32.mrb[62].mxu0 }
 0x170   :  { %v1270_v18 = vadd.f32 %v2092_v30, %v2738_v21  ;;  %v2011_v10 = vpop.f32.mrb[63].mxu1  ;;  %v1261_v51 = vpop.f32.mrb[63].mxu0  ;;  %v1351_v44 = vmax.f32 %v1267_v58, 0.0 }
 0x171   :  { %v2012_v25 = vadd.f32 %v2011_v10, %v2010_v17  ;;  %v1262_v28 = vadd.f32 %v1261_v51, %v2728_v34  ;;  %v1138_v6 = vadd.f32 %v2009_v39, %v977_v5  ;;  %v1349_v15 = vmax.f32 %v1259_v16, 0.0 }
 0x172   :  { %v1352_v54 = vmax.f32 %v1270_v18, 0.0  ;;  %v985_v34 = vadd.f32 %v2657_v60, %v2676_v42  ;;  %v996_v39 = vadd.f32 %v2663_v14, %v2676_v42 }
 0x173   :  { %v1350_v29 = vmax.f32 %v1262_v28, 0.0  ;;  %v1141_v31 = vadd.f32 %v2012_v25, %v980_v19 }
 0x174   :  { %v1756_v22 = vpack.c.bf16 %v1352_v54, %v1351_v44 }
 0x175   :  { %v1751_v59 = vpack.c.bf16 %v1350_v29, %v1349_v15  ;;  %v2013_v41 = vpop.f32.mrb[64].mxu1  ;;  %v2095_v52 = vpop.f32.mrb[64].mxu0 }
 0x176   :  { %1804 = vst [vmem:[%s2856_s3 + $0x38] sm:$0xff] %v1756_v22   ;;  %v1283_v21 = vadd.f32 %v2095_v52, %v2765_v24  ;;  %v2014_v48 = vpop.f32.mrb[65].mxu1  ;;  %v1274_v35 = vpop.f32.mrb[65].mxu0  ;;  %v988_v24 = vadd.f32 %v2659_v2, %v2676_v42 }
 0x177   :  { %1803 = vst [vmem:[%s2856_s3 + $0x30] sm:$0xff] %v1751_v59   ;;  %v2015_v50 = vadd.f32 %v2014_v48, %v2013_v41  ;;  %v1275_v33 = vadd.f32 %v1274_v35, %v2747_v11  ;;  %v2016_v1 = vpop.f32.mrb[66].mxu1  ;;  %v2096_v43 = vpop.f32.mrb[66].mxu0 }
 0x178   :  { %v1286_v45 = vadd.f32 %v2096_v43, %v2767_v40  ;;  %v2017_v46 = vpop.f32.mrb[67].mxu1  ;;  %v1277_v27 = vpop.f32.mrb[67].mxu0  ;;  %v1355_v53 = vmax.f32 %v1283_v21, 0.0  ;;  %v1004_v21 = vadd.f32 %v2667_v26, %v2676_v42  ;;  %v1009_v26 = vadd.f32 %v2669_v32, %v2676_v42 }
 0x179   :  { %v2018_v49 = vadd.f32 %v2017_v46, %v2016_v1  ;;  %v1278_v9 = vadd.f32 %v1277_v27, %v2749_v61  ;;  %v1146_v60 = vadd.f32 %v2015_v50, %v985_v34  ;;  %v1353_v63 = vmax.f32 %v1275_v33, 0.0 }
 0x17a   :  { %v1356_v36 = vmax.f32 %v1286_v45, 0.0  ;;  %v993_v61 = vadd.f32 %v2661_v8, %v2676_v42 }
 0x17b   :  { %v1354_v57 = vmax.f32 %v1278_v9, 0.0  ;;  %v1149_v55 = vadd.f32 %v2018_v49, %v988_v24 }
 0x17c   :  { %v1766_v62 = vpack.c.bf16 %v1356_v36, %v1355_v53 }
 0x17d   :  { %v1761_v11 = vpack.c.bf16 %v1354_v57, %v1353_v63  ;;  %v2019_v0 = vpop.f32.mrb[68].mxu1  ;;  %v2099_v12 = vpop.f32.mrb[68].mxu0 }
 0x17e   :  { %1806 = vst [vmem:[%s2856_s3 + $0x48] sm:$0xff] %v1766_v62   ;;  %v1299_v40 = vadd.f32 %v2099_v12, %v1138_v6  ;;  %v2020_v7 = vpop.f32.mrb[69].mxu1  ;;  %v1290_v2 = vpop.f32.mrb[69].mxu0  ;;  %v1012_v62 = vadd.f32 %v2671_v38, %v2676_v42 }
 0x17f   :  { %1805 = vst [vmem:[%s2856_s3 + $0x40] sm:$0xff] %v1761_v11   ;;  %v2021_v23 = vadd.f32 %v2020_v7, %v2019_v0  ;;  %v1291_v56 = vadd.f32 %v1290_v2, %v2783_v47  ;;  %v2022_v37 = vpop.f32.mrb[70].mxu1  ;;  %v2100_v58 = vpop.f32.mrb[70].mxu0 }
 0x180   :  { %v1302_v4 = vadd.f32 %v2100_v58, %v1141_v31  ;;  %v2023_v13 = vpop.f32.mrb[71].mxu1  ;;  %v1293_v5 = vpop.f32.mrb[71].mxu0  ;;  %v1359_v8 = vmax.f32 %v1299_v40, 0.0 }
 0x181   :  { %v2024_v16 = vadd.f32 %v2023_v13, %v2022_v37  ;;  %v1294_v17 = vadd.f32 %v1293_v5, %v2785_v3  ;;  %v1154_v30 = vadd.f32 %v2021_v23, %v993_v61  ;;  %v1357_v10 = vmax.f32 %v1291_v56, 0.0 }
 0x182   :  { %v1360_v18 = vmax.f32 %v1302_v4, 0.0  ;;  %v1001_v3 = vadd.f32 %v2665_v20, %v2676_v42 }
 0x183   :  { %v1358_v51 = vmax.f32 %v1294_v17, 0.0  ;;  %v1157_v19 = vadd.f32 %v2024_v16, %v996_v39 }
 0x184   :  { %v1776_v25 = vpack.c.bf16 %v1360_v18, %v1359_v8 }
 0x185   :  { %v1771_v28 = vpack.c.bf16 %v1358_v51, %v1357_v10  ;;  %v2025_v47 = vpop.f32.mrb[72].mxu1  ;;  %v2103_v6 = vpop.f32.mrb[72].mxu0 }
 0x186   :  { %1808 = vst [vmem:[%s2856_s3 + $0x58] sm:$0xff] %v1776_v25   ;;  %v1315_v44 = vadd.f32 %v2103_v6, %v1154_v30  ;;  %v2026_v54 = vpop.f32.mrb[73].mxu1  ;;  %v1306_v14 = vpop.f32.mrb[73].mxu0 }
 0x187   :  { %1807 = vst [vmem:[%s2856_s3 + $0x50] sm:$0xff] %v1771_v28   ;;  %v2027_v15 = vadd.f32 %v2026_v54, %v2025_v47  ;;  %v1307_v29 = vadd.f32 %v1306_v14, %v1146_v60  ;;  %v2028_v31 = vpop.f32.mrb[74].mxu1  ;;  %v2104_v22 = vpop.f32.mrb[74].mxu0 }
 0x188   :  { %v1318_v59 = vadd.f32 %v2104_v22, %v1157_v19  ;;  %v2029_v41 = vpop.f32.mrb[75].mxu1  ;;  %v1309_v52 = vpop.f32.mrb[75].mxu0  ;;  %v1363_v50 = vmax.f32 %v1315_v44, 0.0 }
 0x189   :  { %v2030_v48 = vadd.f32 %v2029_v41, %v2028_v31  ;;  %v1310_v35 = vadd.f32 %v1309_v52, %v1149_v55  ;;  %v1162_v34 = vadd.f32 %v2027_v15, %v1001_v3  ;;  %v1361_v20 = vmax.f32 %v1307_v29, 0.0 }
 0x18a   :  { %v1364_v33 = vmax.f32 %v1318_v59, 0.0 }
 0x18b   :  { %v1362_v1 = vmax.f32 %v1310_v35, 0.0  ;;  %v1165_v43 = vadd.f32 %v2030_v48, %v1004_v21 }
 0x18c   :  { %v1786_v45 = vpack.c.bf16 %v1364_v33, %v1363_v50 }
 0x18d   :  { %v1781_v46 = vpack.c.bf16 %v1362_v1, %v1361_v20  ;;  %v2031_v27 = vpop.f32.mrb[76].mxu1  ;;  %v2107_v24 = vpop.f32.mrb[76].mxu0 }
 0x18e   :  { %1810 = vst [vmem:[%s2856_s3 + $0x68] sm:$0xff] %v1786_v45   ;;  %v2032_v49 = vpop.f32.mrb[77].mxu1  ;;  %v1322_v9 = vpop.f32.mrb[77].mxu0 }
 0x18f   :  { %1809 = vst [vmem:[%s2856_s3 + $0x60] sm:$0xff] %v1781_v46   ;;  %v2033_v60 = vadd.f32 %v2032_v49, %v2031_v27  ;;  %v1323_v53 = vadd.f32 %v1322_v9, %v1162_v34  ;;  %v2034_v36 = vpop.f32.mrb[78].mxu1  ;;  %v2108_v63 = vpop.f32.mrb[78].mxu0 }
 0x190   :  { %v2035_v57 = vpop.f32.mrb[79].mxu1  ;;  %v1325_v55 = vpop.f32.mrb[79].mxu0 }
 0x191   :  { %v1170_v11 = vadd.f32 %v2033_v60, %v1009_v26  ;;  %v2036_v0 = vadd.f32 %v2035_v57, %v2034_v36  ;;  %v1326_v12 = vadd.f32 %v1325_v55, %v1165_v43  ;;  %v1365_v7 = vmax.f32 %v1323_v53, 0.0 }
 0x193   :  { %v1331_v40 = vadd.f32 %v2107_v24, %v1170_v11  ;;  %v1173_v2 = vadd.f32 %v2036_v0, %v1012_v62  ;;  %v1366_v32 = vmax.f32 %v1326_v12, 0.0 }
 0x195   :  { %v1334_v61 = vadd.f32 %v2108_v63, %v1173_v2  ;;  %v1791_v23 = vpack.c.bf16 %v1366_v32, %v1365_v7  ;;  %v1367_v56 = vmax.f32 %v1331_v40, 0.0 }
 0x197   :  { %v1368_v37 = vmax.f32 %v1334_v61, 0.0  ;;  %1811 = vst [vmem:[%s2856_s3 + $0x70] sm:$0xff] %v1791_v23  }
 0x199   :  { %v1796_v58 = vpack.c.bf16 %v1368_v37, %v1367_v56 }
 0x19b   :  { %1812 = vst [vmem:[%s2856_s3 + $0x78] sm:$0xff] %v1796_v58  }

// kernel: low_level_feat_net.8
= control target key start
LH: loop header
LB: loop body
LE: loop exit
PB: predicated region body
PF: predicated region fallthrough
CT: control target
= control target key end

     0   :  { %s2042_s1 = inlined_call_operand.vmem [shape: bf16[1152,128], index: 1, kind: input, shape index: {}]   ;;  %s2043_s0 = inlined_call_operand.vmem [shape: bf16[64,1152], index: 0, kind: input, shape index: {}]   ;;  %s2044_s2 = inlined_call_operand.vmem [shape: f32[1,128], index: 2, kind: input, shape index: {}]   ;;  %s2045_s3 = inlined_call_operand.vmem [shape: bf16[64,128], index: 3, kind: output, shape index: {}]  }
   0x1   :  { %v1559_v0 = vld [vmem:[%s2042_s1 + $0x40] sm:$0xff]   ;;  %v1563_v4 = vld [vmem:[%s2042_s1 + $0x48] sm:$0xff]   ;;  %v1567_v8 = vld [vmem:[%s2042_s1 + $0x50] sm:$0xff]  }
   0x2   :  { %v1560_v1 = vld [vmem:[%s2042_s1 + $0xc0] sm:$0xff]   ;;  %1347 = vmatprep.subr.bf16.mxu0 %v1559_v0  ;;  %v1564_v5 = vld [vmem:[%s2042_s1 + $0xc8] sm:$0xff]   ;;  %v1568_v9 = vld [vmem:[%s2042_s1 + $0xd0] sm:$0xff]  }
   0x3   :  { %v1561_v2 = vld [vmem:[%s2042_s1] sm:$0xff]   ;;  %1387 = vmatprep.subr.bf16.mxu1 %v1560_v1  ;;  %v1565_v6 = vld [vmem:[%s2042_s1 + $0x8] sm:$0xff]   ;;  %v1569_v10 = vld [vmem:[%s2042_s1 + $0x10] sm:$0xff]  }
   0x4   :  { %v1562_v3 = vld [vmem:[%s2042_s1 + $0x80] sm:$0xff]   ;;  %1348 = vmatpush3.bf16.msra.mxu0 %v1561_v2  ;;  %v1566_v7 = vld [vmem:[%s2042_s1 + $0x88] sm:$0xff]   ;;  %v1570_v11 = vld [vmem:[%s2042_s1 + $0x90] sm:$0xff]  }
   0x5   :  { %1388 = vmatpush3.bf16.msra.mxu1 %v1562_v3  ;;  %1349 = vmatprep.subr.bf16.mxu0 %v1563_v4  ;;  %v1571_v12 = vld [vmem:[%s2042_s1 + $0x58] sm:$0xff]   ;;  %v1575_v16 = vld [vmem:[%s2042_s1 + $0x60] sm:$0xff]   ;;  %v1579_v20 = vld [vmem:[%s2042_s1 + $0x68] sm:$0xff]  }
   0x6   :  { %1389 = vmatprep.subr.bf16.mxu1 %v1564_v5  ;;  %v1572_v13 = vld [vmem:[%s2042_s1 + $0xd8] sm:$0xff]   ;;  %v1576_v17 = vld [vmem:[%s2042_s1 + $0xe0] sm:$0xff]   ;;  %v1580_v21 = vld [vmem:[%s2042_s1 + $0xe8] sm:$0xff]  }
   0x7   :  { %v1573_v14 = vld [vmem:[%s2042_s1 + $0x18] sm:$0xff]   ;;  %v1577_v18 = vld [vmem:[%s2042_s1 + $0x20] sm:$0xff]   ;;  %v1581_v22 = vld [vmem:[%s2042_s1 + $0x28] sm:$0xff]  }
   0x8   :  { %1350 = vmatpush3.bf16.msra.mxu0 %v1565_v6  ;;  %v1574_v15 = vld [vmem:[%s2042_s1 + $0x98] sm:$0xff]   ;;  %v1578_v19 = vld [vmem:[%s2042_s1 + $0xa0] sm:$0xff]   ;;  %v1582_v23 = vld [vmem:[%s2042_s1 + $0xa8] sm:$0xff]  }
   0x9   :  { %1390 = vmatpush3.bf16.msra.mxu1 %v1566_v7  ;;  %1351 = vmatprep.subr.bf16.mxu0 %v1567_v8  ;;  %v1583_v24 = vld [vmem:[%s2042_s1 + $0x70] sm:$0xff]   ;;  %v1587_v28 = vld [vmem:[%s2042_s1 + $0x78] sm:$0xff]   ;;  %v1591_v32 = vld [vmem:[%s2043_s0] ss:$36 sps:$4 sm:$0xff]  }
   0xa   :  { %1391 = vmatprep.subr.bf16.mxu1 %v1568_v9  ;;  %v1584_v25 = vld [vmem:[%s2042_s1 + $0xf0] sm:$0xff]   ;;  %v1588_v29 = vld [vmem:[%s2042_s1 + $0xf8] sm:$0xff]   ;;  %v1593_v33 = vld [vmem:[%s2043_s0 + $0x4] ss:$36 sps:$4 sm:$0xff]  }
   0xb   :  { %v1585_v26 = vld [vmem:[%s2042_s1 + $0x30] sm:$0xff]   ;;  %v1589_v30 = vld [vmem:[%s2042_s1 + $0x38] sm:$0xff]   ;;  %v1594_v34 = vld [vmem:[%s2043_s0 + $0x8] ss:$36 sps:$4 sm:$0xff]   ;;  %854 = vmatprep.mubr.bf16.mxu0 %v1593_v33 }
   0xc   :  { %1352 = vmatpush3.bf16.msra.mxu0 %v1569_v10  ;;  %v1586_v27 = vld [vmem:[%s2042_s1 + $0xb0] sm:$0xff]   ;;  %v1590_v31 = vld [vmem:[%s2042_s1 + $0xb8] sm:$0xff]   ;;  %v1597_v36 = vld [vmem:[%s2042_s1 + $0x140] sm:$0xff]  }
   0xd   :  { %1392 = vmatpush3.bf16.msra.mxu1 %v1570_v11  ;;  %1353 = vmatprep.subr.bf16.mxu0 %v1571_v12  ;;  %v1596_v35 = vld [vmem:[%s2043_s0 + $0xc] ss:$36 sps:$4 sm:$0xff]   ;;  %v1598_v37 = vld [vmem:[%s2042_s1 + $0x1c0] sm:$0xff]   ;;  %v1607_v45 = vld [vmem:[%s2043_s0 + $0x54] ss:$36 sps:$4 sm:$0xff]  }
   0xe   :  { %1393 = vmatprep.subr.bf16.mxu1 %v1572_v13  ;;  %919 = vmatprep.mubr.bf16.mxu1 %v1596_v35  ;;  %v1599_v38 = vld [vmem:[%s2042_s1 + $0x100] sm:$0xff]   ;;  %v1601_v40 = vld [vmem:[%s2042_s1 + $0x148] sm:$0xff]   ;;  %v1610_v47 = vld [vmem:[%s2043_s0 + $0x50] ss:$36 sps:$4 sm:$0xff]  }
   0xf   :  { %v1600_v39 = vld [vmem:[%s2042_s1 + $0x180] sm:$0xff]   ;;  %v1602_v41 = vld [vmem:[%s2042_s1 + $0x1c8] sm:$0xff]   ;;  %v1611_v48 = vld [vmem:[%s2042_s1 + $0x150] sm:$0xff]  }
  0x10   :  { %1354 = vmatpush3.bf16.msra.mxu0 %v1573_v14  ;;  %v1603_v42 = vld [vmem:[%s2042_s1 + $0x108] sm:$0xff]   ;;  %v1612_v49 = vld [vmem:[%s2042_s1 + $0x1d0] sm:$0xff]   ;;  %v1615_v52 = vld [vmem:[%s2042_s1 + $0x158] sm:$0xff]  }
  0x11   :  { %1394 = vmatpush3.bf16.msra.mxu1 %v1574_v15  ;;  %1355 = vmatprep.subr.bf16.mxu0 %v1575_v16  ;;  %v1604_v43 = vld [vmem:[%s2042_s1 + $0x188] sm:$0xff]   ;;  %v1613_v50 = vld [vmem:[%s2042_s1 + $0x110] sm:$0xff]   ;;  %v1616_v53 = vld [vmem:[%s2042_s1 + $0x1d8] sm:$0xff]  }
  0x12   :  { %1395 = vmatprep.subr.bf16.mxu1 %v1576_v17  ;;  %v1605_v44 = vld [vmem:[%s2043_s0 + $0x4c] ss:$36 sps:$4 sm:$0xff]   ;;  %v1617_v54 = vld [vmem:[%s2042_s1 + $0x118] sm:$0xff]   ;;  %v1625_v60 = vld [vmem:[%s2042_s1 + $0x160] sm:$0xff]  }
  0x13   :  { %v1609_v46 = vld [vmem:[%s2043_s0 + $0x48] ss:$36 sps:$4 sm:$0xff]   ;;  %v1614_v51 = vld [vmem:[%s2042_s1 + $0x190] sm:$0xff]   ;;  %v1618_v55 = vld [vmem:[%s2042_s1 + $0x198] sm:$0xff]  }
  0x14   :  { %1356 = vmatpush3.bf16.msra.mxu0 %v1577_v18  ;;  %v1619_v56 = vld [vmem:[%s2043_s0 + $0x94] ss:$36 sps:$4 sm:$0xff]   ;;  %v1621_v57 = vld [vmem:[%s2043_s0 + $0x9c] ss:$36 sps:$4 sm:$0xff]   ;;  %v1629_v0 = vld [vmem:[%s2042_s1 + $0x168] sm:$0xff]  }
  0x15   :  { %1396 = vmatpush3.bf16.msra.mxu1 %v1578_v19  ;;  %1357 = vmatprep.subr.bf16.mxu0 %v1579_v20  ;;  %v1623_v58 = vld [vmem:[%s2043_s0 + $0x90] ss:$36 sps:$4 sm:$0xff]   ;;  %v1624_v59 = vld [vmem:[%s2043_s0 + $0x98] ss:$36 sps:$4 sm:$0xff]   ;;  %v1626_v61 = vld [vmem:[%s2042_s1 + $0x1e0] sm:$0xff]  }
  0x16   :  { %1397 = vmatprep.subr.bf16.mxu1 %v1580_v21  ;;  %v1627_v62 = vld [vmem:[%s2042_s1 + $0x120] sm:$0xff]   ;;  %v1630_v1 = vld [vmem:[%s2042_s1 + $0x1e8] sm:$0xff]   ;;  %v1637_v6 = vld [vmem:[%s2043_s0 + $0xd8] ss:$36 sps:$4 sm:$0xff]  }
  0x17   :  { %v1628_v63 = vld [vmem:[%s2042_s1 + $0x1a0] sm:$0xff]   ;;  %v1631_v2 = vld [vmem:[%s2042_s1 + $0x128] sm:$0xff]   ;;  %v1639_v8 = vld [vmem:[%s2042_s1 + $0x170] sm:$0xff]  }
  0x18   :  { %1358 = vmatpush3.bf16.msra.mxu0 %v1581_v22  ;;  %v1632_v3 = vld [vmem:[%s2042_s1 + $0x1a8] sm:$0xff]   ;;  %v1633_v4 = vld [vmem:[%s2043_s0 + $0xdc] ss:$36 sps:$4 sm:$0xff]   ;;  %v1640_v9 = vld [vmem:[%s2042_s1 + $0x1f0] sm:$0xff]  }
  0x19   :  { %1398 = vmatpush3.bf16.msra.mxu1 %v1582_v23  ;;  %1359 = vmatprep.subr.bf16.mxu0 %v1583_v24  ;;  %v1635_v5 = vld [vmem:[%s2043_s0 + $0xe4] ss:$36 sps:$4 sm:$0xff]   ;;  %v1641_v10 = vld [vmem:[%s2042_s1 + $0x130] sm:$0xff]   ;;  %v1643_v12 = vld [vmem:[%s2042_s1 + $0x178] sm:$0xff]  }
  0x1a   :  { %1399 = vmatprep.subr.bf16.mxu1 %v1584_v25  ;;  %v1638_v7 = vld [vmem:[%s2043_s0 + $0xe0] ss:$36 sps:$4 sm:$0xff]   ;;  %v1642_v11 = vld [vmem:[%s2042_s1 + $0x1b0] sm:$0xff]   ;;  %v1644_v13 = vld [vmem:[%s2042_s1 + $0x1f8] sm:$0xff]  }
  0x1b   :  { %v1645_v14 = vld [vmem:[%s2042_s1 + $0x138] sm:$0xff]   ;;  %v1647_v16 = vld [vmem:[%s2043_s0 + $0x10] ss:$36 sps:$4 sm:$0xff]   ;;  %v1653_v20 = vld [vmem:[%s2042_s1 + $0x200] sm:$0xff]  }
  0x1c   :  { %1360 = vmatpush3.bf16.msra.mxu0 %v1585_v26  ;;  %v1646_v15 = vld [vmem:[%s2042_s1 + $0x1b8] sm:$0xff]   ;;  %v1654_v21 = vld [vmem:[%s2042_s1 + $0x208] sm:$0xff]   ;;  %v1660_v25 = vld [vmem:[%s2043_s0 + $0x60] ss:$36 sps:$4 sm:$0xff]  }
  0x1d   :  { %1400 = vmatpush3.bf16.msra.mxu1 %v1586_v27  ;;  %1361 = vmatprep.subr.bf16.mxu0 %v1587_v28  ;;  %v1649_v17 = vld [vmem:[%s2043_s0 + $0x14] ss:$36 sps:$4 sm:$0xff]   ;;  %v1652_v19 = vld [vmem:[%s2043_s0 + $0x1c] ss:$36 sps:$4 sm:$0xff]   ;;  %v1657_v23 = vld [vmem:[%s2043_s0 + $0x64] ss:$36 sps:$4 sm:$0xff]  }
  0x1e   :  { %1401 = vmatprep.subr.bf16.mxu1 %v1588_v29  ;;  %v1650_v18 = vld [vmem:[%s2043_s0 + $0x18] ss:$36 sps:$4 sm:$0xff]   ;;  %v1661_v26 = vld [vmem:[%s2042_s1 + $0x210] sm:$0xff]   ;;  %v1663_v27 = vld [vmem:[%s2043_s0 + $0xa4] ss:$36 sps:$4 sm:$0xff]  }
  0x1f   :  { %v1655_v22 = vld [vmem:[%s2043_s0 + $0x5c] ss:$36 sps:$4 sm:$0xff]   ;;  %v1665_v28 = vld [vmem:[%s2043_s0 + $0xac] ss:$36 sps:$4 sm:$0xff]  }
  0x20   :  { %1362 = vmatpush3.bf16.msra.mxu0 %v1589_v30  ;;  %v1659_v24 = vld [vmem:[%s2043_s0 + $0x58] ss:$36 sps:$4 sm:$0xff]   ;;  %v1667_v30 = vld [vmem:[%s2043_s0 + $0xa0] ss:$36 sps:$4 sm:$0xff]   ;;  %v1671_v33 = vld [vmem:[%s2043_s0 + $0xec] ss:$36 sps:$4 sm:$0xff]  }
  0x21   :  { %1402 = vmatpush3.bf16.msra.mxu1 %v1590_v31  ;;  %1427 = vmatprep.subr.bf16.mxu0 %v1597_v36  ;;  %v1662_v29 = vld [vmem:[%s2042_s1 + $0x218] sm:$0xff]   ;;  %v1668_v31 = vld [vmem:[%s2043_s0 + $0xa8] ss:$36 sps:$4 sm:$0xff]  }
  0x22   :  { %1467 = vmatprep.subr.bf16.mxu1 %v1598_v37  ;;  %v1670_v35 = vld [vmem:[%s2042_s1 + $0x228] sm:$0xff]   ;;  %v1677_v37 = vld [vmem:[%s2042_s1 + $0x230] sm:$0xff]  }
  0x23   :  { %855 = vmatmul.mubr.bf16.vlgmr.msra.gmra.mrb[0].mxu0 %v1591_v32  ;;  %v1669_v32 = vld [vmem:[%s2042_s1 + $0x220] sm:$0xff]   ;;  %v1675_v36 = vld [vmem:[%s2043_s0 + $0xe8] ss:$36 sps:$4 sm:$0xff]  }
  0x24   :  { %920 = vmatmul.mubr.bf16.vlgmr.msra.gmra.mrb[0].mxu1 %v1594_v34  ;;  %1428 = vmatpush3.bf16.msra.mxu0 %v1599_v38  ;;  %v1673_v34 = vld [vmem:[%s2043_s0 + $0xf4] ss:$36 sps:$4 sm:$0xff]  }
  0x25   :  { %1468 = vmatpush3.bf16.msra.mxu1 %v1600_v39  ;;  %1429 = vmatprep.subr.bf16.mxu0 %v1601_v40  ;;  %v1676_v38 = vld [vmem:[%s2043_s0 + $0xf0] ss:$36 sps:$4 sm:$0xff]   ;;  %v1679_v39 = vld [vmem:[%s2043_s0 + $0x20] ss:$36 sps:$4 sm:$0xff]  }
  0x26   :  { %1469 = vmatprep.subr.bf16.mxu1 %v1602_v41  ;;  %862 = vmatprep.mubr.bf16.mxu0 %v1605_v44  ;;  %v1680_v40 = vld [vmem:[%s2043_s0 + $0xb0] ss:$36 sps:$4 sm:$0xff]   ;;  %v1678_v41 = vld [vmem:[%s2042_s1 + $0x238] sm:$0xff]  }
  0x27   :  { %927 = vmatprep.mubr.bf16.mxu1 %v1607_v45 }
  0x28   :  { %1430 = vmatpush3.bf16.msra.mxu0 %v1603_v42  ;;  %v1681_v42 = vld [vmem:[%s2043_s0 + $0x68] ss:$36 sps:$4 sm:$0xff]  }
  0x29   :  { %1470 = vmatpush3.bf16.msra.mxu1 %v1604_v43  ;;  %1431 = vmatprep.subr.bf16.mxu0 %v1611_v48  ;;  %v1682_v43 = vld [vmem:[%s2043_s0 + $0xf8] ss:$36 sps:$4 sm:$0xff]  }
  0x2a   :  { %1471 = vmatprep.subr.bf16.mxu1 %v1612_v49 }
  0x2b   :  { %863 = vmatmul.mubr.bf16.gmra.mrb[4].mxu0 %v1609_v46  ;;  %v1199_v46 = vld [vmem:[%s2044_s2] ss:$0 sm:$0xff] }
  0x2c   :  { %928 = vmatmul.mubr.bf16.gmra.mrb[4].mxu1 %v1610_v47  ;;  %1432 = vmatpush3.bf16.msra.mxu0 %v1613_v50 }
  0x2d   :  { %1472 = vmatpush3.bf16.msra.mxu1 %v1614_v51  ;;  %1433 = vmatprep.subr.bf16.mxu0 %v1615_v52 }
  0x2e   :  { %1473 = vmatprep.subr.bf16.mxu1 %v1616_v53  ;;  %870 = vmatprep.mubr.bf16.mxu0 %v1619_v56 }
  0x2f   :  { %935 = vmatprep.mubr.bf16.mxu1 %v1621_v57 }
  0x30   :  { %1434 = vmatpush3.bf16.msra.mxu0 %v1617_v54 }
  0x31   :  { %1474 = vmatpush3.bf16.msra.mxu1 %v1618_v55  ;;  %1435 = vmatprep.subr.bf16.mxu0 %v1625_v60 }
  0x32   :  { %1475 = vmatprep.subr.bf16.mxu1 %v1626_v61 }
  0x33   :  { %871 = vmatmul.mubr.bf16.gmra.mrb[8].mxu0 %v1623_v58 }
  0x34   :  { %936 = vmatmul.mubr.bf16.gmra.mrb[8].mxu1 %v1624_v59  ;;  %1436 = vmatpush3.bf16.msra.mxu0 %v1627_v62 }
  0x35   :  { %1476 = vmatpush3.bf16.msra.mxu1 %v1628_v63  ;;  %1437 = vmatprep.subr.bf16.mxu0 %v1629_v0 }
  0x36   :  { %1477 = vmatprep.subr.bf16.mxu1 %v1630_v1  ;;  %878 = vmatprep.mubr.bf16.mxu0 %v1633_v4 }
  0x37   :  { %943 = vmatprep.mubr.bf16.mxu1 %v1635_v5 }
  0x38   :  { %1438 = vmatpush3.bf16.msra.mxu0 %v1631_v2 }
  0x39   :  { %1478 = vmatpush3.bf16.msra.mxu1 %v1632_v3  ;;  %1439 = vmatprep.subr.bf16.mxu0 %v1639_v8 }
  0x3a   :  { %1479 = vmatprep.subr.bf16.mxu1 %v1640_v9 }
  0x3b   :  { %879 = vmatmul.mubr.bf16.gmra.mrb[12].mxu0 %v1637_v6 }
  0x3c   :  { %944 = vmatmul.mubr.bf16.gmra.mrb[12].mxu1 %v1638_v7  ;;  %1440 = vmatpush3.bf16.msra.mxu0 %v1641_v10 }
  0x3d   :  { %1480 = vmatpush3.bf16.msra.mxu1 %v1642_v11  ;;  %1441 = vmatprep.subr.bf16.mxu0 %v1643_v12 }
  0x3e   :  { %1481 = vmatprep.subr.bf16.mxu1 %v1644_v13  ;;  %984 = vmatprep.mubr.bf16.mxu0 %v1649_v17 }
  0x3f   :  { %1049 = vmatprep.mubr.bf16.mxu1 %v1652_v19 }
  0x40   :  { %1442 = vmatpush3.bf16.msra.mxu0 %v1645_v14 }
  0x41   :  { %1482 = vmatpush3.bf16.msra.mxu1 %v1646_v15  ;;  %1519 = vmatprep.subr.bf16.mxu0 %v1653_v20 }
  0x42   :  { %1543 = vmatprep.subr.bf16.mxu1 %v1653_v20 }
  0x43   :  { %985 = vmatmul.mubr.bf16.vlgmr.msra.gmra.mrb[16].mxu0 %v1647_v16 }
  0x44   :  { %1050 = vmatmul.mubr.bf16.vlgmr.msra.gmra.mrb[16].mxu1 %v1650_v18  ;;  %1520 = vmatpush3.bf16.msra.mxu0 %v1653_v20 }
  0x45   :  { %1551 = vmatpush3.bf16.msra.mxu1 %v1653_v20  ;;  %1521 = vmatprep.subr.bf16.mxu0 %v1654_v21 }
  0x46   :  { %1544 = vmatprep.subr.bf16.mxu1 %v1654_v21  ;;  %992 = vmatprep.mubr.bf16.mxu0 %v1655_v22 }
  0x47   :  { %1057 = vmatprep.mubr.bf16.mxu1 %v1657_v23 }
  0x48   :  { %1522 = vmatpush3.bf16.msra.mxu0 %v1654_v21 }
  0x49   :  { %1552 = vmatpush3.bf16.msra.mxu1 %v1654_v21  ;;  %1523 = vmatprep.subr.bf16.mxu0 %v1661_v26 }
  0x4a   :  { %1545 = vmatprep.subr.bf16.mxu1 %v1661_v26 }
  0x4b   :  { %993 = vmatmul.mubr.bf16.gmra.mrb[20].mxu0 %v1659_v24 }
  0x4c   :  { %1058 = vmatmul.mubr.bf16.gmra.mrb[20].mxu1 %v1660_v25  ;;  %1000 = vmatprep.mubr.bf16.mxu0 %v1663_v27 }
  0x4d   :  { %1524 = vmatpush3.bf16.msra.mxu0 %v1661_v26  ;;  %1065 = vmatprep.mubr.bf16.mxu1 %v1665_v28 }
  0x4e   :  { %1553 = vmatpush3.bf16.msra.mxu1 %v1661_v26  ;;  %1525 = vmatprep.subr.bf16.mxu0 %v1662_v29 }
  0x4f   :  { %1546 = vmatprep.subr.bf16.mxu1 %v1662_v29 }
  0x51   :  { %1526 = vmatpush3.bf16.msra.mxu0 %v1662_v29 }
  0x52   :  { %1554 = vmatpush3.bf16.msra.mxu1 %v1662_v29  ;;  %1527 = vmatprep.subr.bf16.mxu0 %v1669_v32 }
  0x53   :  { %1001 = vmatmul.mubr.bf16.gmra.mrb[24].mxu0 %v1667_v30  ;;  %1547 = vmatprep.subr.bf16.mxu1 %v1669_v32 }
  0x54   :  { %1066 = vmatmul.mubr.bf16.gmra.mrb[24].mxu1 %v1668_v31  ;;  %1008 = vmatprep.mubr.bf16.mxu0 %v1671_v33 }
  0x55   :  { %1528 = vmatpush3.bf16.msra.mxu0 %v1669_v32  ;;  %1073 = vmatprep.mubr.bf16.mxu1 %v1673_v34 }
  0x56   :  { %1555 = vmatpush3.bf16.msra.mxu1 %v1669_v32  ;;  %1529 = vmatprep.subr.bf16.mxu0 %v1670_v35 }
  0x57   :  { %1548 = vmatprep.subr.bf16.mxu1 %v1670_v35 }
  0x59   :  { %1530 = vmatpush3.bf16.msra.mxu0 %v1670_v35 }
  0x5a   :  { %1556 = vmatpush3.bf16.msra.mxu1 %v1670_v35  ;;  %1531 = vmatprep.subr.bf16.mxu0 %v1677_v37 }
  0x5b   :  { %1009 = vmatmul.mubr.bf16.gmra.mrb[28].mxu0 %v1675_v36  ;;  %1549 = vmatprep.subr.bf16.mxu1 %v1677_v37 }
  0x5c   :  { %1074 = vmatmul.mubr.bf16.gmra.mrb[28].mxu1 %v1676_v38  ;;  %1535 = vmatprep.mubr.bf16.mxu0 %v1679_v39 }
  0x5d   :  { %1532 = vmatpush3.bf16.msra.mxu0 %v1677_v37  ;;  %1539 = vmatprep.mubr.bf16.mxu1 %v1680_v40 }
  0x5e   :  { %1557 = vmatpush3.bf16.msra.mxu1 %v1677_v37  ;;  %1533 = vmatprep.subr.bf16.mxu0 %v1678_v41 }
  0x5f   :  { %1550 = vmatprep.subr.bf16.mxu1 %v1678_v41 }
  0x61   :  { %1534 = vmatpush3.bf16.msra.mxu0 %v1678_v41 }
  0x62   :  { %1558 = vmatpush3.bf16.msra.mxu1 %v1678_v41 }
  0x64   :  { %1536 = vmatmul.mubr.bf16.vlgmr.msra.gmra.mrb[32].mxu0 %v1681_v42 }
  0x65   :  { %1540 = vmatmul.mubr.bf16.vlgmr.msra.gmra.mrb[32].mxu1 %v1682_v43 }
  0xf6   :  { %v1363_v44 = vpop.f32.mrb[0].mxu0 }
  0xf7   :  { %v1403_v45 = vpop.f32.mrb[0].mxu1  ;;  %v1364_v47 = vpop.f32.mrb[1].mxu0 }
  0xf8   :  { %v1365_v48 = vadd.f32 %v1364_v47, %v1363_v44  ;;  %v1404_v49 = vpop.f32.mrb[1].mxu1  ;;  %v1366_v50 = vpop.f32.mrb[2].mxu0 }
  0xf9   :  { %v1405_v51 = vadd.f32 %v1404_v49, %v1403_v45  ;;  %v1406_v52 = vpop.f32.mrb[2].mxu1  ;;  %v1367_v53 = vpop.f32.mrb[3].mxu0 }
  0xfa   :  { %v857_v54 = vadd.f32 %v1365_v48, %v1199_v46  ;;  %v1368_v55 = vadd.f32 %v1367_v53, %v1366_v50  ;;  %v1407_v56 = vpop.f32.mrb[3].mxu1 }
  0xfb   :  { %v1408_v57 = vadd.f32 %v1407_v56, %v1406_v52 }
  0xfc   :  { %v922_v58 = vadd.f32 %v1405_v51, %v857_v54  ;;  %v860_v59 = vadd.f32 %v1368_v55, %v1199_v46 }
  0xfe   :  { %v925_v60 = vadd.f32 %v1408_v57, %v860_v59  ;;  %v1369_v61 = vpop.f32.mrb[4].mxu0 }
  0xff   :  { %v1409_v62 = vpop.f32.mrb[4].mxu1  ;;  %v1370_v63 = vpop.f32.mrb[5].mxu0 }
 0x100   :  { %v1371_v0 = vadd.f32 %v1370_v63, %v1369_v61  ;;  %v1410_v1 = vpop.f32.mrb[5].mxu1  ;;  %v1372_v2 = vpop.f32.mrb[6].mxu0 }
 0x101   :  { %v1411_v3 = vadd.f32 %v1410_v1, %v1409_v62  ;;  %v1412_v4 = vpop.f32.mrb[6].mxu1  ;;  %v1373_v5 = vpop.f32.mrb[7].mxu0 }
 0x102   :  { %v865_v6 = vadd.f32 %v1371_v0, %v1199_v46  ;;  %v1374_v7 = vadd.f32 %v1373_v5, %v1372_v2  ;;  %v1413_v8 = vpop.f32.mrb[7].mxu1 }
 0x103   :  { %v1414_v9 = vadd.f32 %v1413_v8, %v1412_v4 }
 0x104   :  { %v930_v10 = vadd.f32 %v1411_v3, %v865_v6  ;;  %v868_v11 = vadd.f32 %v1374_v7, %v1199_v46 }
 0x106   :  { %v933_v12 = vadd.f32 %v1414_v9, %v868_v11  ;;  %v1375_v13 = vpop.f32.mrb[8].mxu0 }
 0x107   :  { %v1415_v14 = vpop.f32.mrb[8].mxu1  ;;  %v1376_v15 = vpop.f32.mrb[9].mxu0 }
 0x108   :  { %v1377_v16 = vadd.f32 %v1376_v15, %v1375_v13  ;;  %v1416_v17 = vpop.f32.mrb[9].mxu1  ;;  %v1378_v18 = vpop.f32.mrb[10].mxu0 }
 0x109   :  { %v1417_v19 = vadd.f32 %v1416_v17, %v1415_v14  ;;  %v1418_v20 = vpop.f32.mrb[10].mxu1  ;;  %v1379_v21 = vpop.f32.mrb[11].mxu0 }
 0x10a   :  { %v873_v22 = vadd.f32 %v1377_v16, %v1199_v46  ;;  %v1380_v23 = vadd.f32 %v1379_v21, %v1378_v18  ;;  %v1419_v24 = vpop.f32.mrb[11].mxu1 }
 0x10b   :  { %v1420_v25 = vadd.f32 %v1419_v24, %v1418_v20 }
 0x10c   :  { %v938_v26 = vadd.f32 %v1417_v19, %v873_v22  ;;  %v876_v27 = vadd.f32 %v1380_v23, %v1199_v46 }
 0x10e   :  { %v941_v28 = vadd.f32 %v1420_v25, %v876_v27  ;;  %v1381_v29 = vpop.f32.mrb[12].mxu0 }
 0x10f   :  { %v1421_v30 = vpop.f32.mrb[12].mxu1  ;;  %v1382_v31 = vpop.f32.mrb[13].mxu0 }
 0x110   :  { %v1422_v32 = vpop.f32.mrb[13].mxu1  ;;  %v1383_v33 = vadd.f32 %v1382_v31, %v1381_v29  ;;  %v1384_v35 = vpop.f32.mrb[14].mxu0 }
 0x111   :  { %v1423_v34 = vadd.f32 %v1422_v32, %v1421_v30  ;;  %v1424_v36 = vpop.f32.mrb[14].mxu1  ;;  %v1385_v37 = vpop.f32.mrb[15].mxu0 }
 0x112   :  { %v1425_v38 = vpop.f32.mrb[15].mxu1  ;;  %v881_v39 = vadd.f32 %v1383_v33, %v1199_v46  ;;  %v1386_v40 = vadd.f32 %v1385_v37, %v1384_v35 }
 0x113   :  { %v1426_v41 = vadd.f32 %v1425_v38, %v1424_v36 }
 0x114   :  { %v946_v42 = vadd.f32 %v1423_v34, %v881_v39  ;;  %v884_v43 = vadd.f32 %v1386_v40, %v1199_v46 }
 0x116   :  { %v949_v44 = vadd.f32 %v1426_v41, %v884_v43  ;;  %v1443_v45 = vpop.f32.mrb[16].mxu0 }
 0x117   :  { %v1444_v47 = vpop.f32.mrb[17].mxu0  ;;  %v1483_v48 = vpop.f32.mrb[16].mxu1 }
 0x118   :  { %v1445_v49 = vadd.f32 %v1444_v47, %v1443_v45  ;;  %v1446_v50 = vpop.f32.mrb[18].mxu0  ;;  %v1484_v51 = vpop.f32.mrb[17].mxu1 }
 0x119   :  { %v1447_v52 = vpop.f32.mrb[19].mxu0  ;;  %v1485_v54 = vadd.f32 %v1484_v51, %v1483_v48  ;;  %v1486_v55 = vpop.f32.mrb[18].mxu1 }
 0x11a   :  { %v987_v53 = vadd.f32 %v1445_v49, %v922_v58  ;;  %v1448_v56 = vadd.f32 %v1447_v52, %v1446_v50  ;;  %v1487_v57 = vpop.f32.mrb[19].mxu1 }
 0x11b   :  { %v1488_v61 = vadd.f32 %v1487_v57, %v1486_v55 }
 0x11c   :  { %v990_v59 = vadd.f32 %v1448_v56, %v925_v60  ;;  %v1052_v62 = vadd.f32 %v1485_v54, %v987_v53 }
 0x11e   :  { %v1449_v63 = vpop.f32.mrb[20].mxu0  ;;  %v1055_v0 = vadd.f32 %v1488_v61, %v990_v59 }
 0x11f   :  { %v1450_v1 = vpop.f32.mrb[21].mxu0  ;;  %v1489_v46 = vpop.f32.mrb[20].mxu1 }
 0x120   :  { %v1451_v2 = vadd.f32 %v1450_v1, %v1449_v63  ;;  %v1452_v3 = vpop.f32.mrb[22].mxu0  ;;  %v1490_v4 = vpop.f32.mrb[21].mxu1 }
 0x121   :  { %v1453_v5 = vpop.f32.mrb[23].mxu0  ;;  %v1491_v7 = vadd.f32 %v1490_v4, %v1489_v46  ;;  %v1492_v8 = vpop.f32.mrb[22].mxu1 }
 0x122   :  { %v995_v6 = vadd.f32 %v1451_v2, %v930_v10  ;;  %v1454_v9 = vadd.f32 %v1453_v5, %v1452_v3  ;;  %v1493_v58 = vpop.f32.mrb[23].mxu1 }
 0x123   :  { %v1494_v13 = vadd.f32 %v1493_v58, %v1492_v8 }
 0x124   :  { %v998_v11 = vadd.f32 %v1454_v9, %v933_v12  ;;  %v1060_v14 = vadd.f32 %v1491_v7, %v995_v6 }
 0x126   :  { %v1455_v15 = vpop.f32.mrb[24].mxu0  ;;  %v1063_v60 = vadd.f32 %v1494_v13, %v998_v11 }
 0x127   :  { %v1456_v16 = vpop.f32.mrb[25].mxu0  ;;  %v1495_v17 = vpop.f32.mrb[24].mxu1 }
 0x128   :  { %v1457_v18 = vadd.f32 %v1456_v16, %v1455_v15  ;;  %v1458_v19 = vpop.f32.mrb[26].mxu0  ;;  %v1496_v20 = vpop.f32.mrb[25].mxu1 }
 0x129   :  { %v1459_v21 = vpop.f32.mrb[27].mxu0  ;;  %v1497_v23 = vadd.f32 %v1496_v20, %v1495_v17  ;;  %v1498_v24 = vpop.f32.mrb[26].mxu1 }
 0x12a   :  { %v1003_v22 = vadd.f32 %v1457_v18, %v938_v26  ;;  %v1460_v25 = vadd.f32 %v1459_v21, %v1458_v19  ;;  %v1499_v10 = vpop.f32.mrb[27].mxu1 }
 0x12b   :  { %v1500_v29 = vadd.f32 %v1499_v10, %v1498_v24 }
 0x12c   :  { %v1006_v27 = vadd.f32 %v1460_v25, %v941_v28  ;;  %v1068_v30 = vadd.f32 %v1497_v23, %v1003_v22 }
 0x12e   :  { %v1461_v31 = vpop.f32.mrb[28].mxu0  ;;  %v1071_v12 = vadd.f32 %v1500_v29, %v1006_v27 }
 0x12f   :  { %v1462_v32 = vpop.f32.mrb[29].mxu0  ;;  %v1501_v33 = vpop.f32.mrb[28].mxu1 }
 0x130   :  { %v1463_v34 = vadd.f32 %v1462_v32, %v1461_v31  ;;  %v1464_v35 = vpop.f32.mrb[30].mxu0  ;;  %v1502_v36 = vpop.f32.mrb[29].mxu1 }
 0x131   :  { %v1465_v37 = vpop.f32.mrb[31].mxu0  ;;  %v1503_v39 = vadd.f32 %v1502_v36, %v1501_v33  ;;  %v1504_v40 = vpop.f32.mrb[30].mxu1 }
 0x132   :  { %v1011_v38 = vadd.f32 %v1463_v34, %v946_v42  ;;  %v1466_v41 = vadd.f32 %v1465_v37, %v1464_v35  ;;  %v1505_v26 = vpop.f32.mrb[31].mxu1 }
 0x133   :  { %v1506_v45 = vadd.f32 %v1505_v26, %v1504_v40 }
 0x134   :  { %v1014_v43 = vadd.f32 %v1466_v41, %v949_v44  ;;  %v1076_v47 = vadd.f32 %v1503_v39, %v1011_v38 }
 0x136   :  { %v1079_v48 = vadd.f32 %v1506_v45, %v1014_v43 }
 0x137   :  { %v1537_v28 = vpop.f32.mrb[32].mxu0 }
 0x138   :  { %v1125_v49 = vadd.f32 %v1537_v28, %v1060_v14  ;;  %v1541_v50 = vpop.f32.mrb[32].mxu1  ;;  %v1116_v51 = vpop.f32.mrb[33].mxu0 }
 0x139   :  { %v1141_v52 = vadd.f32 %v1541_v50, %v1076_v47  ;;  %v1117_v53 = vadd.f32 %v1116_v51, %v1052_v62  ;;  %v1132_v54 = vpop.f32.mrb[33].mxu1  ;;  %v1538_v55 = vpop.f32.mrb[34].mxu0 }
 0x13a   :  { %v1133_v56 = vadd.f32 %v1132_v54, %v1068_v30  ;;  %v1128_v57 = vadd.f32 %v1538_v55, %v1063_v60  ;;  %v1542_v59 = vpop.f32.mrb[34].mxu1  ;;  %v1119_v42 = vpop.f32.mrb[35].mxu0  ;;  %v1149_v46 = vmax.f32 %v1125_v49, 0.0 }
 0x13b   :  { %v1144_v61 = vadd.f32 %v1542_v59, %v1079_v48  ;;  %v1120_v63 = vadd.f32 %v1119_v42, %v1055_v0  ;;  %v1135_v1 = vpop.f32.mrb[35].mxu1  ;;  %v1153_v3 = vmax.f32 %v1141_v52, 0.0  ;;  %v1147_v4 = vmax.f32 %v1117_v53, 0.0 }
 0x13c   :  { %v1150_v44 = vmax.f32 %v1128_v57, 0.0  ;;  %v1136_v2 = vadd.f32 %v1135_v1, %v1071_v12  ;;  %v1151_v7 = vmax.f32 %v1133_v56, 0.0 }
 0x13d   :  { %v1154_v5 = vmax.f32 %v1144_v61, 0.0  ;;  %v1148_v6 = vmax.f32 %v1120_v63, 0.0 }
 0x13e   :  { %v1332_v8 = vpack.c.bf16 %v1150_v44, %v1149_v46  ;;  %v1152_v9 = vmax.f32 %v1136_v2, 0.0 }
 0x13f   :  { %v1342_v62 = vpack.c.bf16 %v1154_v5, %v1153_v3  ;;  %v1327_v58 = vpack.c.bf16 %v1148_v6, %v1147_v4 }
 0x140   :  { %1344 = vst [vmem:[%s2045_s3 + $0x8] sm:$0xff] %v1332_v8   ;;  %v1337_v11 = vpack.c.bf16 %v1152_v9, %v1151_v7 }
 0x141   :  { %1346 = vst [vmem:[%s2045_s3 + $0x18] sm:$0xff] %v1342_v62   ;;  %1328 = vst [vmem:[%s2045_s3] sm:$0xff] %v1327_v58  }
 0x142   :  { %1345 = vst [vmem:[%s2045_s3 + $0x10] sm:$0xff] %v1337_v11  }

// kernel: low_level_feat_net.9
= control target key start
LH: loop header
LB: loop body
LE: loop exit
PB: predicated region body
PF: predicated region fallthrough
CT: control target
= control target key end

     0   :  { %s2737_s1 = inlined_call_operand.vmem [shape: bf16[1152,256], index: 1, kind: input, shape index: {}]   ;;  %s2738_s0 = inlined_call_operand.vmem [shape: bf16[64,1152], index: 0, kind: input, shape index: {}]   ;;  %s2739_s2 = inlined_call_operand.vmem [shape: f32[1,256], index: 2, kind: input, shape index: {}]   ;;  %s2740_s3 = inlined_call_operand.vmem [shape: bf16[64,256], index: 3, kind: output, shape index: {}]  }
   0x1   :  { %v1849_v0 = vld [vmem:[%s2737_s1 + $0x4] ss:$8 sps:$4 sm:$0xff]   ;;  %v1853_v2 = vld [vmem:[%s2737_s1] ss:$8 sps:$4 sm:$0xff]   ;;  %v1855_v4 = vld [vmem:[%s2737_s1 + $0x14] ss:$8 sps:$4 sm:$0xff]  }
   0x2   :  { %v1851_v1 = vld [vmem:[%s2737_s1 + $0x204] ss:$8 sps:$4 sm:$0xff]   ;;  %1115 = vmatprep.subr.bf16.mxu1 %v1849_v0  ;;  %v1854_v3 = vld [vmem:[%s2737_s1 + $0x200] ss:$8 sps:$4 sm:$0xff]   ;;  %v1857_v5 = vld [vmem:[%s2737_s1 + $0x214] ss:$8 sps:$4 sm:$0xff]  }
   0x3   :  { %1261 = vmatprep.subr.bf16.mxu0 %v1851_v1  ;;  %1116 = vmatpush1.bf16.msra.mxu1 %v1853_v2  ;;  %v1859_v6 = vld [vmem:[%s2737_s1 + $0x10] ss:$8 sps:$4 sm:$0xff]   ;;  %v1861_v8 = vld [vmem:[%s2737_s1 + $0x24] ss:$8 sps:$4 sm:$0xff]   ;;  %v1865_v10 = vld [vmem:[%s2737_s1 + $0x20] ss:$8 sps:$4 sm:$0xff]  }
   0x4   :  { %1262 = vmatpush1.bf16.msra.mxu0 %v1854_v3  ;;  %1117 = vmatprep.subr.bf16.mxu1 %v1855_v4  ;;  %v1860_v7 = vld [vmem:[%s2737_s1 + $0x210] ss:$8 sps:$4 sm:$0xff]   ;;  %v1863_v9 = vld [vmem:[%s2737_s1 + $0x224] ss:$8 sps:$4 sm:$0xff]   ;;  %v1866_v11 = vld [vmem:[%s2737_s1 + $0x220] ss:$8 sps:$4 sm:$0xff]  }
   0x5   :  { %1263 = vmatprep.subr.bf16.mxu0 %v1857_v5  ;;  %v1867_v12 = vld [vmem:[%s2737_s1 + $0x34] ss:$8 sps:$4 sm:$0xff]   ;;  %v1871_v14 = vld [vmem:[%s2737_s1 + $0x30] ss:$8 sps:$4 sm:$0xff]   ;;  %v1873_v16 = vld [vmem:[%s2737_s1 + $0x44] ss:$8 sps:$4 sm:$0xff]  }
   0x6   :  { %v1869_v13 = vld [vmem:[%s2737_s1 + $0x234] ss:$8 sps:$4 sm:$0xff]   ;;  %v1872_v15 = vld [vmem:[%s2737_s1 + $0x230] ss:$8 sps:$4 sm:$0xff]   ;;  %v1875_v17 = vld [vmem:[%s2737_s1 + $0x244] ss:$8 sps:$4 sm:$0xff]  }
   0x7   :  { %1118 = vmatpush1.bf16.msra.mxu1 %v1859_v6  ;;  %v1877_v18 = vld [vmem:[%s2737_s1 + $0x40] ss:$8 sps:$4 sm:$0xff]   ;;  %v1879_v20 = vld [vmem:[%s2737_s1 + $0x54] ss:$8 sps:$4 sm:$0xff]   ;;  %v1883_v22 = vld [vmem:[%s2737_s1 + $0x50] ss:$8 sps:$4 sm:$0xff]  }
   0x8   :  { %1264 = vmatpush1.bf16.msra.mxu0 %v1860_v7  ;;  %1119 = vmatprep.subr.bf16.mxu1 %v1861_v8  ;;  %v1878_v19 = vld [vmem:[%s2737_s1 + $0x240] ss:$8 sps:$4 sm:$0xff]   ;;  %v1881_v21 = vld [vmem:[%s2737_s1 + $0x254] ss:$8 sps:$4 sm:$0xff]   ;;  %v1884_v23 = vld [vmem:[%s2737_s1 + $0x250] ss:$8 sps:$4 sm:$0xff]  }
   0x9   :  { %1265 = vmatprep.subr.bf16.mxu0 %v1863_v9  ;;  %v1885_v24 = vld [vmem:[%s2737_s1 + $0x64] ss:$8 sps:$4 sm:$0xff]   ;;  %v1889_v26 = vld [vmem:[%s2737_s1 + $0x60] ss:$8 sps:$4 sm:$0xff]   ;;  %v1891_v28 = vld [vmem:[%s2737_s1 + $0x74] ss:$8 sps:$4 sm:$0xff]  }
   0xa   :  { %v1887_v25 = vld [vmem:[%s2737_s1 + $0x264] ss:$8 sps:$4 sm:$0xff]   ;;  %v1890_v27 = vld [vmem:[%s2737_s1 + $0x260] ss:$8 sps:$4 sm:$0xff]   ;;  %v1893_v29 = vld [vmem:[%s2737_s1 + $0x274] ss:$8 sps:$4 sm:$0xff]  }
   0xb   :  { %1120 = vmatpush1.bf16.msra.mxu1 %v1865_v10  ;;  %v1895_v30 = vld [vmem:[%s2737_s1 + $0x70] ss:$8 sps:$4 sm:$0xff]   ;;  %v1897_v32 = vld [vmem:[%s2737_s1 + $0x84] ss:$8 sps:$4 sm:$0xff]   ;;  %v1901_v34 = vld [vmem:[%s2737_s1 + $0x80] ss:$8 sps:$4 sm:$0xff]  }
   0xc   :  { %1266 = vmatpush1.bf16.msra.mxu0 %v1866_v11  ;;  %1121 = vmatprep.subr.bf16.mxu1 %v1867_v12  ;;  %v1896_v31 = vld [vmem:[%s2737_s1 + $0x270] ss:$8 sps:$4 sm:$0xff]   ;;  %v1899_v33 = vld [vmem:[%s2737_s1 + $0x284] ss:$8 sps:$4 sm:$0xff]   ;;  %v1902_v35 = vld [vmem:[%s2737_s1 + $0x280] ss:$8 sps:$4 sm:$0xff]  }
   0xd   :  { %1267 = vmatprep.subr.bf16.mxu0 %v1869_v13  ;;  %v1903_v36 = vld [vmem:[%s2737_s1 + $0x94] ss:$8 sps:$4 sm:$0xff]   ;;  %v1907_v38 = vld [vmem:[%s2737_s1 + $0x90] ss:$8 sps:$4 sm:$0xff]   ;;  %v1909_v40 = vld [vmem:[%s2737_s1 + $0xa4] ss:$8 sps:$4 sm:$0xff]  }
   0xe   :  { %v1905_v37 = vld [vmem:[%s2737_s1 + $0x294] ss:$8 sps:$4 sm:$0xff]   ;;  %v1908_v39 = vld [vmem:[%s2737_s1 + $0x290] ss:$8 sps:$4 sm:$0xff]   ;;  %v1911_v41 = vld [vmem:[%s2737_s1 + $0x2a4] ss:$8 sps:$4 sm:$0xff]  }
   0xf   :  { %1122 = vmatpush1.bf16.msra.mxu1 %v1871_v14  ;;  %v1913_v42 = vld [vmem:[%s2737_s1 + $0xa0] ss:$8 sps:$4 sm:$0xff]   ;;  %v1915_v44 = vld [vmem:[%s2737_s1 + $0xb4] ss:$8 sps:$4 sm:$0xff]   ;;  %v1919_v46 = vld [vmem:[%s2737_s1 + $0xb0] ss:$8 sps:$4 sm:$0xff]  }
  0x10   :  { %1268 = vmatpush1.bf16.msra.mxu0 %v1872_v15  ;;  %1123 = vmatprep.subr.bf16.mxu1 %v1873_v16  ;;  %v1914_v43 = vld [vmem:[%s2737_s1 + $0x2a0] ss:$8 sps:$4 sm:$0xff]   ;;  %v1917_v45 = vld [vmem:[%s2737_s1 + $0x2b4] ss:$8 sps:$4 sm:$0xff]   ;;  %v1920_v47 = vld [vmem:[%s2737_s1 + $0x2b0] ss:$8 sps:$4 sm:$0xff]  }
  0x11   :  { %1269 = vmatprep.subr.bf16.mxu0 %v1875_v17  ;;  %v1947_v48 = vld [vmem:[%s2738_s0 + $0x4] ss:$36 sps:$4 sm:$0xff]   ;;  %v1953_v51 = vld [vmem:[%s2738_s0 + $0x14] ss:$36 sps:$4 sm:$0xff]  }
  0x12   :  { %v1921_v49 = vld [vmem:[%s2737_s1 + $0xc4] ss:$8 sps:$4 sm:$0xff]   ;;  %1147 = vmatprep.mubr.bf16.mxu1 %v1947_v48  ;;  %v1925_v52 = vld [vmem:[%s2737_s1 + $0xc0] ss:$8 sps:$4 sm:$0xff]   ;;  %v1927_v54 = vld [vmem:[%s2737_s1 + $0xd4] ss:$8 sps:$4 sm:$0xff]   ;;  %1293 = vmatprep.mubr.bf16.mxu0 %v1953_v51 }
  0x13   :  { %1124 = vmatpush1.bf16.msra.mxu1 %v1877_v18  ;;  %v1923_v50 = vld [vmem:[%s2737_s1 + $0x2c4] ss:$8 sps:$4 sm:$0xff]   ;;  %v1926_v53 = vld [vmem:[%s2737_s1 + $0x2c0] ss:$8 sps:$4 sm:$0xff]   ;;  %v1929_v55 = vld [vmem:[%s2737_s1 + $0x2d4] ss:$8 sps:$4 sm:$0xff]  }
  0x14   :  { %1270 = vmatpush1.bf16.msra.mxu0 %v1878_v19  ;;  %1125 = vmatprep.subr.bf16.mxu1 %v1879_v20  ;;  %v1931_v56 = vld [vmem:[%s2737_s1 + $0xd0] ss:$8 sps:$4 sm:$0xff]   ;;  %v1933_v58 = vld [vmem:[%s2737_s1 + $0xe4] ss:$8 sps:$4 sm:$0xff]   ;;  %v1937_v60 = vld [vmem:[%s2737_s1 + $0xe0] ss:$8 sps:$4 sm:$0xff]  }
  0x15   :  { %1271 = vmatprep.subr.bf16.mxu0 %v1881_v21  ;;  %v1932_v57 = vld [vmem:[%s2737_s1 + $0x2d0] ss:$8 sps:$4 sm:$0xff]   ;;  %v1935_v59 = vld [vmem:[%s2737_s1 + $0x2e4] ss:$8 sps:$4 sm:$0xff]   ;;  %v1938_v61 = vld [vmem:[%s2737_s1 + $0x2e0] ss:$8 sps:$4 sm:$0xff]  }
  0x16   :  { %v1939_v62 = vld [vmem:[%s2737_s1 + $0xf4] ss:$8 sps:$4 sm:$0xff]   ;;  %v1943_v0 = vld [vmem:[%s2737_s1 + $0xf0] ss:$8 sps:$4 sm:$0xff]   ;;  %v1950_v2 = vld [vmem:[%s2737_s1 + $0x104] ss:$8 sps:$4 sm:$0xff]  }
  0x17   :  { %1126 = vmatpush1.bf16.msra.mxu1 %v1883_v22  ;;  %v1941_v63 = vld [vmem:[%s2737_s1 + $0x2f4] ss:$8 sps:$4 sm:$0xff]   ;;  %v1944_v1 = vld [vmem:[%s2737_s1 + $0x2f0] ss:$8 sps:$4 sm:$0xff]   ;;  %v1956_v3 = vld [vmem:[%s2737_s1 + $0x304] ss:$8 sps:$4 sm:$0xff]  }
  0x18   :  { %1272 = vmatpush1.bf16.msra.mxu0 %v1884_v23  ;;  %1127 = vmatprep.subr.bf16.mxu1 %v1885_v24  ;;  %v1945_v4 = vld [vmem:[%s2738_s0] ss:$36 sps:$4 sm:$0xff]   ;;  %v1951_v6 = vld [vmem:[%s2738_s0 + $0x10] ss:$36 sps:$4 sm:$0xff]   ;;  %v2015_v20 = vld [vmem:[%s2738_s0 + $0x48] ss:$36 sps:$4 sm:$0xff]  }
  0x19   :  { %1273 = vmatprep.subr.bf16.mxu0 %v1887_v25  ;;  %v1948_v5 = vld [vmem:[%s2737_s1 + $0x100] ss:$8 sps:$4 sm:$0xff]   ;;  %v1959_v8 = vld [vmem:[%s2737_s1 + $0x114] ss:$8 sps:$4 sm:$0xff]   ;;  %v1957_v10 = vld [vmem:[%s2737_s1 + $0x110] ss:$8 sps:$4 sm:$0xff]  }
  0x1a   :  { %v1954_v7 = vld [vmem:[%s2737_s1 + $0x300] ss:$8 sps:$4 sm:$0xff]   ;;  %v1962_v9 = vld [vmem:[%s2737_s1 + $0x314] ss:$8 sps:$4 sm:$0xff]   ;;  %v1960_v11 = vld [vmem:[%s2737_s1 + $0x310] ss:$8 sps:$4 sm:$0xff]  }
  0x1b   :  { %1128 = vmatpush1.bf16.msra.mxu1 %v1889_v26  ;;  %v1965_v12 = vld [vmem:[%s2737_s1 + $0x124] ss:$8 sps:$4 sm:$0xff]   ;;  %v1963_v14 = vld [vmem:[%s2737_s1 + $0x120] ss:$8 sps:$4 sm:$0xff]   ;;  %v1971_v16 = vld [vmem:[%s2737_s1 + $0x134] ss:$8 sps:$4 sm:$0xff]  }
  0x1c   :  { %1274 = vmatpush1.bf16.msra.mxu0 %v1890_v27  ;;  %1129 = vmatprep.subr.bf16.mxu1 %v1891_v28  ;;  %v1968_v13 = vld [vmem:[%s2737_s1 + $0x324] ss:$8 sps:$4 sm:$0xff]   ;;  %v1966_v15 = vld [vmem:[%s2737_s1 + $0x320] ss:$8 sps:$4 sm:$0xff]   ;;  %v1974_v17 = vld [vmem:[%s2737_s1 + $0x334] ss:$8 sps:$4 sm:$0xff]  }
  0x1d   :  { %1275 = vmatprep.subr.bf16.mxu0 %v1893_v29  ;;  %v2011_v18 = vld [vmem:[%s2738_s0 + $0x4c] ss:$36 sps:$4 sm:$0xff]   ;;  %v2013_v19 = vld [vmem:[%s2738_s0 + $0x5c] ss:$36 sps:$4 sm:$0xff]  }
  0x1e   :  { %v1969_v21 = vld [vmem:[%s2737_s1 + $0x130] ss:$8 sps:$4 sm:$0xff]   ;;  %v1977_v24 = vld [vmem:[%s2737_s1 + $0x144] ss:$8 sps:$4 sm:$0xff]   ;;  %v1975_v26 = vld [vmem:[%s2737_s1 + $0x140] ss:$8 sps:$4 sm:$0xff]  }
  0x1f   :  { %1130 = vmatpush1.bf16.msra.mxu1 %v1895_v30  ;;  %v1972_v22 = vld [vmem:[%s2737_s1 + $0x330] ss:$8 sps:$4 sm:$0xff]   ;;  %v1980_v25 = vld [vmem:[%s2737_s1 + $0x344] ss:$8 sps:$4 sm:$0xff]   ;;  %v1978_v27 = vld [vmem:[%s2737_s1 + $0x340] ss:$8 sps:$4 sm:$0xff]  }
  0x20   :  { %1276 = vmatpush1.bf16.msra.mxu0 %v1896_v31  ;;  %1131 = vmatprep.subr.bf16.mxu1 %v1897_v32  ;;  %v2019_v23 = vld [vmem:[%s2738_s0 + $0x58] ss:$36 sps:$4 sm:$0xff]   ;;  %v2031_v31 = vld [vmem:[%s2738_s0 + $0xa4] ss:$36 sps:$4 sm:$0xff]   ;;  %v2033_v32 = vld [vmem:[%s2738_s0 + $0x90] ss:$36 sps:$4 sm:$0xff]  }
  0x21   :  { %1277 = vmatprep.subr.bf16.mxu0 %v1899_v33  ;;  %v1983_v28 = vld [vmem:[%s2737_s1 + $0x154] ss:$8 sps:$4 sm:$0xff]   ;;  %v1981_v33 = vld [vmem:[%s2737_s1 + $0x150] ss:$8 sps:$4 sm:$0xff]   ;;  %v2001_v48 = vld [vmem:[%s2737_s1 + $0x184] ss:$8 sps:$4 sm:$0xff]  }
  0x22   :  { %v1986_v29 = vld [vmem:[%s2737_s1 + $0x354] ss:$8 sps:$4 sm:$0xff]   ;;  %v2002_v51 = vld [vmem:[%s2737_s1 + $0x380] ss:$8 sps:$4 sm:$0xff]  }
  0x23   :  { %1132 = vmatpush1.bf16.msra.mxu1 %v1901_v34  ;;  %v2029_v30 = vld [vmem:[%s2738_s0 + $0x94] ss:$36 sps:$4 sm:$0xff]  }
  0x24   :  { %1278 = vmatpush1.bf16.msra.mxu0 %v1902_v35  ;;  %1133 = vmatprep.subr.bf16.mxu1 %v1903_v36  ;;  %v1984_v34 = vld [vmem:[%s2737_s1 + $0x350] ss:$8 sps:$4 sm:$0xff]   ;;  %v2037_v35 = vld [vmem:[%s2738_s0 + $0xa0] ss:$36 sps:$4 sm:$0xff]  }
  0x25   :  { %1279 = vmatprep.subr.bf16.mxu0 %v1905_v37  ;;  %v1989_v36 = vld [vmem:[%s2737_s1 + $0x164] ss:$8 sps:$4 sm:$0xff]  }
  0x26   :  { %v1992_v37 = vld [vmem:[%s2737_s1 + $0x364] ss:$8 sps:$4 sm:$0xff]  }
  0x27   :  { %1134 = vmatpush1.bf16.msra.mxu1 %v1907_v38  ;;  %v1987_v38 = vld [vmem:[%s2737_s1 + $0x160] ss:$8 sps:$4 sm:$0xff]  }
  0x28   :  { %1280 = vmatpush1.bf16.msra.mxu0 %v1908_v39  ;;  %1135 = vmatprep.subr.bf16.mxu1 %v1909_v40  ;;  %v1990_v39 = vld [vmem:[%s2737_s1 + $0x360] ss:$8 sps:$4 sm:$0xff]   ;;  %v1995_v40 = vld [vmem:[%s2737_s1 + $0x174] ss:$8 sps:$4 sm:$0xff]  }
  0x29   :  { %1281 = vmatprep.subr.bf16.mxu0 %v1911_v41  ;;  %v1998_v41 = vld [vmem:[%s2737_s1 + $0x374] ss:$8 sps:$4 sm:$0xff]  }
  0x2b   :  { %1136 = vmatpush1.bf16.msra.mxu1 %v1913_v42  ;;  %v2047_v42 = vld [vmem:[%s2738_s0 + $0xdc] ss:$36 sps:$4 sm:$0xff]  }
  0x2c   :  { %1282 = vmatpush1.bf16.msra.mxu0 %v1914_v43  ;;  %1137 = vmatprep.subr.bf16.mxu1 %v1915_v44  ;;  %v2049_v43 = vld [vmem:[%s2738_s0 + $0xec] ss:$36 sps:$4 sm:$0xff]   ;;  %v2051_v44 = vld [vmem:[%s2738_s0 + $0xd8] ss:$36 sps:$4 sm:$0xff]  }
  0x2d   :  { %1283 = vmatprep.subr.bf16.mxu0 %v1917_v45  ;;  %v1993_v45 = vld [vmem:[%s2737_s1 + $0x170] ss:$8 sps:$4 sm:$0xff]  }
  0x2f   :  { %1138 = vmatpush1.bf16.msra.mxu1 %v1919_v46  ;;  %v1996_v46 = vld [vmem:[%s2737_s1 + $0x370] ss:$8 sps:$4 sm:$0xff]  }
  0x30   :  { %1284 = vmatpush1.bf16.msra.mxu0 %v1920_v47  ;;  %1139 = vmatprep.subr.bf16.mxu1 %v1921_v49  ;;  %v2055_v47 = vld [vmem:[%s2738_s0 + $0xe8] ss:$36 sps:$4 sm:$0xff]  }
  0x31   :  { %1285 = vmatprep.subr.bf16.mxu0 %v1923_v50  ;;  %v2004_v49 = vld [vmem:[%s2737_s1 + $0x384] ss:$8 sps:$4 sm:$0xff]   ;;  %v1999_v50 = vld [vmem:[%s2737_s1 + $0x180] ss:$8 sps:$4 sm:$0xff]  }
  0x33   :  { %1140 = vmatpush1.bf16.msra.mxu1 %v1925_v52  ;;  %v2007_v52 = vld [vmem:[%s2737_s1 + $0x194] ss:$8 sps:$4 sm:$0xff]  }
  0x34   :  { %1286 = vmatpush1.bf16.msra.mxu0 %v1926_v53  ;;  %1141 = vmatprep.subr.bf16.mxu1 %v1927_v54  ;;  %v2010_v53 = vld [vmem:[%s2737_s1 + $0x394] ss:$8 sps:$4 sm:$0xff]   ;;  %v2067_v54 = vld [vmem:[%s2738_s0 + $0xc] ss:$36 sps:$4 sm:$0xff]  }
  0x35   :  { %1287 = vmatprep.subr.bf16.mxu0 %v1929_v55  ;;  %v2070_v55 = vld [vmem:[%s2738_s0 + $0x1c] ss:$36 sps:$4 sm:$0xff]  }
  0x37   :  { %1142 = vmatpush1.bf16.msra.mxu1 %v1931_v56  ;;  %v2005_v56 = vld [vmem:[%s2737_s1 + $0x190] ss:$8 sps:$4 sm:$0xff]  }
  0x38   :  { %1288 = vmatpush1.bf16.msra.mxu0 %v1932_v57  ;;  %1143 = vmatprep.subr.bf16.mxu1 %v1933_v58  ;;  %v2008_v57 = vld [vmem:[%s2737_s1 + $0x390] ss:$8 sps:$4 sm:$0xff]   ;;  %v2018_v58 = vld [vmem:[%s2737_s1 + $0x1a4] ss:$8 sps:$4 sm:$0xff]  }
  0x39   :  { %1289 = vmatprep.subr.bf16.mxu0 %v1935_v59  ;;  %v2022_v59 = vld [vmem:[%s2737_s1 + $0x3a4] ss:$8 sps:$4 sm:$0xff]  }
  0x3b   :  { %1144 = vmatpush1.bf16.msra.mxu1 %v1937_v60  ;;  %v2016_v60 = vld [vmem:[%s2737_s1 + $0x1a0] ss:$8 sps:$4 sm:$0xff]  }
  0x3c   :  { %1290 = vmatpush1.bf16.msra.mxu0 %v1938_v61  ;;  %1145 = vmatprep.subr.bf16.mxu1 %v1939_v62  ;;  %v2020_v61 = vld [vmem:[%s2737_s1 + $0x3a0] ss:$8 sps:$4 sm:$0xff]   ;;  %v2025_v62 = vld [vmem:[%s2737_s1 + $0x1b4] ss:$8 sps:$4 sm:$0xff]  }
  0x3d   :  { %1291 = vmatprep.subr.bf16.mxu0 %v1941_v63  ;;  %v2028_v63 = vld [vmem:[%s2737_s1 + $0x3b4] ss:$8 sps:$4 sm:$0xff]  }
  0x3f   :  { %1146 = vmatpush1.bf16.msra.mxu1 %v1943_v0  ;;  %v2023_v0 = vld [vmem:[%s2737_s1 + $0x1b0] ss:$8 sps:$4 sm:$0xff]  }
  0x40   :  { %1292 = vmatpush1.bf16.msra.mxu0 %v1944_v1  ;;  %1188 = vmatprep.subr.bf16.mxu1 %v1950_v2  ;;  %v2026_v1 = vld [vmem:[%s2737_s1 + $0x3b0] ss:$8 sps:$4 sm:$0xff]   ;;  %v2036_v2 = vld [vmem:[%s2737_s1 + $0x1c4] ss:$8 sps:$4 sm:$0xff]  }
  0x41   :  { %1334 = vmatprep.subr.bf16.mxu0 %v1956_v3  ;;  %v2040_v3 = vld [vmem:[%s2737_s1 + $0x3c4] ss:$8 sps:$4 sm:$0xff]  }
  0x42   :  { %1148 = vmatmul.mubr.bf16.vlgmr.msra.gmra.mrb[0].mxu1 %v1945_v4  ;;  %v2034_v4 = vld [vmem:[%s2737_s1 + $0x1c0] ss:$8 sps:$4 sm:$0xff]  }
  0x43   :  { %1294 = vmatmul.mubr.bf16.vlgmr.msra.gmra.mrb[0].mxu0 %v1951_v6  ;;  %1189 = vmatpush1.bf16.msra.mxu1 %v1948_v5  ;;  %v2038_v5 = vld [vmem:[%s2737_s1 + $0x3c0] ss:$8 sps:$4 sm:$0xff]   ;;  %v2043_v6 = vld [vmem:[%s2737_s1 + $0x1d4] ss:$8 sps:$4 sm:$0xff]  }
  0x44   :  { %1335 = vmatpush1.bf16.msra.mxu0 %v1954_v7  ;;  %1190 = vmatprep.subr.bf16.mxu1 %v1959_v8  ;;  %v2046_v7 = vld [vmem:[%s2737_s1 + $0x3d4] ss:$8 sps:$4 sm:$0xff]   ;;  %v2041_v8 = vld [vmem:[%s2737_s1 + $0x1d0] ss:$8 sps:$4 sm:$0xff]  }
  0x45   :  { %1336 = vmatprep.subr.bf16.mxu0 %v1962_v9  ;;  %1157 = vmatprep.mubr.bf16.mxu1 %v2011_v18  ;;  %v2044_v9 = vld [vmem:[%s2737_s1 + $0x3d0] ss:$8 sps:$4 sm:$0xff]   ;;  %v2073_v18 = vld [vmem:[%s2737_s1 + $0x404] ss:$8 sps:$4 sm:$0xff]  }
  0x46   :  { %1303 = vmatprep.mubr.bf16.mxu0 %v2013_v19  ;;  %v2065_v19 = vld [vmem:[%s2738_s0 + $0x8] ss:$36 sps:$4 sm:$0xff]  }
  0x47   :  { %1191 = vmatpush1.bf16.msra.mxu1 %v1957_v10  ;;  %v2054_v10 = vld [vmem:[%s2737_s1 + $0x1e4] ss:$8 sps:$4 sm:$0xff]  }
  0x48   :  { %1337 = vmatpush1.bf16.msra.mxu0 %v1960_v11  ;;  %1192 = vmatprep.subr.bf16.mxu1 %v1965_v12  ;;  %v2058_v11 = vld [vmem:[%s2737_s1 + $0x3e4] ss:$8 sps:$4 sm:$0xff]   ;;  %v2052_v12 = vld [vmem:[%s2737_s1 + $0x1e0] ss:$8 sps:$4 sm:$0xff]  }
  0x49   :  { %1338 = vmatprep.subr.bf16.mxu0 %v1968_v13  ;;  %v2056_v13 = vld [vmem:[%s2737_s1 + $0x3e0] ss:$8 sps:$4 sm:$0xff]  }
  0x4a   :  { %1158 = vmatmul.mubr.bf16.gmra.mrb[4].mxu1 %v2015_v20  ;;  %v2068_v20 = vld [vmem:[%s2738_s0 + $0x18] ss:$36 sps:$4 sm:$0xff]  }
  0x4b   :  { %1193 = vmatpush1.bf16.msra.mxu1 %v1963_v14  ;;  %1304 = vmatmul.mubr.bf16.gmra.mrb[4].mxu0 %v2019_v23  ;;  %v2061_v14 = vld [vmem:[%s2737_s1 + $0x1f4] ss:$8 sps:$4 sm:$0xff]  }
  0x4c   :  { %1339 = vmatpush1.bf16.msra.mxu0 %v1966_v15  ;;  %1194 = vmatprep.subr.bf16.mxu1 %v1971_v16  ;;  %v2064_v15 = vld [vmem:[%s2737_s1 + $0x3f4] ss:$8 sps:$4 sm:$0xff]   ;;  %v2059_v16 = vld [vmem:[%s2737_s1 + $0x1f0] ss:$8 sps:$4 sm:$0xff]  }
  0x4d   :  { %1340 = vmatprep.subr.bf16.mxu0 %v1974_v17  ;;  %1167 = vmatprep.mubr.bf16.mxu1 %v2029_v30  ;;  %v2062_v17 = vld [vmem:[%s2737_s1 + $0x3f0] ss:$8 sps:$4 sm:$0xff]   ;;  %v2088_v30 = vld [vmem:[%s2737_s1 + $0x434] ss:$8 sps:$4 sm:$0xff]  }
  0x4e   :  { %1313 = vmatprep.mubr.bf16.mxu0 %v2031_v31  ;;  %v2077_v23 = vld [vmem:[%s2738_s0 + $0x54] ss:$36 sps:$4 sm:$0xff]   ;;  %v2089_v31 = vld [vmem:[%s2738_s0 + $0x9c] ss:$36 sps:$4 sm:$0xff]  }
  0x4f   :  { %1195 = vmatpush1.bf16.msra.mxu1 %v1969_v21  ;;  %v2071_v21 = vld [vmem:[%s2737_s1 + $0x400] ss:$8 sps:$4 sm:$0xff]  }
  0x50   :  { %1341 = vmatpush1.bf16.msra.mxu0 %v1972_v22  ;;  %1196 = vmatprep.subr.bf16.mxu1 %v1977_v24  ;;  %v2076_v22 = vld [vmem:[%s2737_s1 + $0x414] ss:$8 sps:$4 sm:$0xff]   ;;  %v2079_v24 = vld [vmem:[%s2738_s0 + $0x64] ss:$36 sps:$4 sm:$0xff]  }
  0x51   :  { %1342 = vmatprep.subr.bf16.mxu0 %v1980_v25  ;;  %v2074_v25 = vld [vmem:[%s2737_s1 + $0x410] ss:$8 sps:$4 sm:$0xff]  }
  0x52   :  { %1168 = vmatmul.mubr.bf16.gmra.mrb[8].mxu1 %v2033_v32  ;;  %v2091_v32 = vld [vmem:[%s2738_s0 + $0xac] ss:$36 sps:$4 sm:$0xff]  }
  0x53   :  { %1197 = vmatpush1.bf16.msra.mxu1 %v1975_v26  ;;  %1314 = vmatmul.mubr.bf16.gmra.mrb[8].mxu0 %v2037_v35  ;;  %v2085_v26 = vld [vmem:[%s2737_s1 + $0x424] ss:$8 sps:$4 sm:$0xff]   ;;  %v2093_v35 = vld [vmem:[%s2738_s0 + $0x98] ss:$36 sps:$4 sm:$0xff]  }
  0x54   :  { %1343 = vmatpush1.bf16.msra.mxu0 %v1978_v27  ;;  %1198 = vmatprep.subr.bf16.mxu1 %v1983_v28  ;;  %v2081_v27 = vld [vmem:[%s2738_s0 + $0x50] ss:$36 sps:$4 sm:$0xff]   ;;  %v2082_v28 = vld [vmem:[%s2738_s0 + $0x60] ss:$36 sps:$4 sm:$0xff]  }
  0x55   :  { %1344 = vmatprep.subr.bf16.mxu0 %v1986_v29  ;;  %1177 = vmatprep.mubr.bf16.mxu1 %v2047_v42  ;;  %v2083_v29 = vld [vmem:[%s2737_s1 + $0x420] ss:$8 sps:$4 sm:$0xff]   ;;  %v2109_v42 = vld [vmem:[%s2737_s1 + $0x464] ss:$8 sps:$4 sm:$0xff]  }
  0x56   :  { %1323 = vmatprep.mubr.bf16.mxu0 %v2049_v43  ;;  %v2105_v43 = vld [vmem:[%s2738_s0 + $0xe0] ss:$36 sps:$4 sm:$0xff]  }
  0x57   :  { %1199 = vmatpush1.bf16.msra.mxu1 %v1981_v33  ;;  %v2086_v33 = vld [vmem:[%s2737_s1 + $0x430] ss:$8 sps:$4 sm:$0xff]  }
  0x58   :  { %1345 = vmatpush1.bf16.msra.mxu0 %v1984_v34  ;;  %1200 = vmatprep.subr.bf16.mxu1 %v1989_v36  ;;  %v2097_v34 = vld [vmem:[%s2737_s1 + $0x444] ss:$8 sps:$4 sm:$0xff]  }
  0x59   :  { %1346 = vmatprep.subr.bf16.mxu0 %v1992_v37  ;;  %v2094_v36 = vld [vmem:[%s2738_s0 + $0xa8] ss:$36 sps:$4 sm:$0xff]  }
  0x5a   :  { %1178 = vmatmul.mubr.bf16.gmra.mrb[12].mxu1 %v2051_v44  ;;  %v2095_v37 = vld [vmem:[%s2737_s1 + $0x440] ss:$8 sps:$4 sm:$0xff]   ;;  %v2106_v44 = vld [vmem:[%s2738_s0 + $0xf0] ss:$36 sps:$4 sm:$0xff]  }
  0x5b   :  { %1201 = vmatpush1.bf16.msra.mxu1 %v1987_v38  ;;  %1324 = vmatmul.mubr.bf16.gmra.mrb[12].mxu0 %v2055_v47  ;;  %v2100_v38 = vld [vmem:[%s2737_s1 + $0x454] ss:$8 sps:$4 sm:$0xff]   ;;  %v2110_v47 = vld [vmem:[%s2737_s1 + $0x470] ss:$8 sps:$4 sm:$0xff]  }
  0x5c   :  { %1347 = vmatpush1.bf16.msra.mxu0 %v1990_v39  ;;  %1202 = vmatprep.subr.bf16.mxu1 %v1995_v40  ;;  %v2101_v39 = vld [vmem:[%s2738_s0 + $0xe4] ss:$36 sps:$4 sm:$0xff]   ;;  %v2103_v40 = vld [vmem:[%s2738_s0 + $0xf4] ss:$36 sps:$4 sm:$0xff]  }
  0x5d   :  { %1348 = vmatprep.subr.bf16.mxu0 %v1998_v41  ;;  %1220 = vmatprep.mubr.bf16.mxu1 %v2067_v54  ;;  %v2098_v41 = vld [vmem:[%s2737_s1 + $0x450] ss:$8 sps:$4 sm:$0xff]  }
  0x5e   :  { %1366 = vmatprep.mubr.bf16.mxu0 %v2070_v55 }
  0x5f   :  { %1203 = vmatpush1.bf16.msra.mxu1 %v1993_v45  ;;  %v2107_v45 = vld [vmem:[%s2737_s1 + $0x460] ss:$8 sps:$4 sm:$0xff]  }
  0x60   :  { %1349 = vmatpush1.bf16.msra.mxu0 %v1996_v46  ;;  %1204 = vmatprep.subr.bf16.mxu1 %v2001_v48  ;;  %v2112_v46 = vld [vmem:[%s2737_s1 + $0x474] ss:$8 sps:$4 sm:$0xff]   ;;  %v2117_v48 = vmov 0  }
  0x61   :  { %1350 = vmatprep.subr.bf16.mxu0 %v2004_v49  ;;  %v2113_v49 = vld [vmem:[%s2738_s0 + $0x20] ss:$36 sps:$4 sm:$0xff]  }
  0x63   :  { %1205 = vmatpush1.bf16.msra.mxu1 %v1999_v50  ;;  %v2114_v50 = vld [vmem:[%s2738_s0 + $0xb0] ss:$36 sps:$4 sm:$0xff]  }
  0x64   :  { %1351 = vmatpush1.bf16.msra.mxu0 %v2002_v51  ;;  %1206 = vmatprep.subr.bf16.mxu1 %v2007_v52  ;;  %v2115_v51 = vld [vmem:[%s2738_s0 + $0x68] ss:$36 sps:$4 sm:$0xff]   ;;  %v2116_v52 = vld [vmem:[%s2738_s0 + $0xf8] ss:$36 sps:$4 sm:$0xff]  }
  0x65   :  { %1352 = vmatprep.subr.bf16.mxu0 %v2010_v53 }
  0x67   :  { %1207 = vmatpush1.bf16.msra.mxu1 %v2005_v56  ;;  %v201_v56 = vlaneseq }
  0x68   :  { %1353 = vmatpush1.bf16.msra.mxu0 %v2008_v57  ;;  %1208 = vmatprep.subr.bf16.mxu1 %v2018_v58 }
  0x69   :  { %1354 = vmatprep.subr.bf16.mxu0 %v2022_v59  ;;  %v202_v58 = vshrl.u32 %v201_v56, 7 }
  0x6b   :  { %1209 = vmatpush1.bf16.msra.mxu1 %v2016_v60 }
  0x6c   :  { %1355 = vmatpush1.bf16.msra.mxu0 %v2020_v61  ;;  %1210 = vmatprep.subr.bf16.mxu1 %v2025_v62  ;;  %v203_v62 = vsub.s32 0, %v202_v58 }
  0x6d   :  { %1356 = vmatprep.subr.bf16.mxu0 %v2028_v63 }
  0x6f   :  { %1211 = vmatpush1.bf16.msra.mxu1 %v2023_v0  ;;  %v199_v0 = vld [vmem:[%s2739_s2] sm:$0x3] }
  0x70   :  { %1357 = vmatpush1.bf16.msra.mxu0 %v2026_v1  ;;  %1212 = vmatprep.subr.bf16.mxu1 %v2036_v2  ;;  %v207_v1 = vsub.s32 1, %v202_v58  ;;  %v2689_v2 = vrot.slane %v199_v0, %v203_v62 }
  0x71   :  { %1358 = vmatprep.subr.bf16.mxu0 %v2040_v3 }
  0x72   :  { %v2691_v3 = vrot.slane %v199_v0, %v207_v1 }
  0x73   :  { %1213 = vmatpush1.bf16.msra.mxu1 %v2034_v4 }
  0x74   :  { %1359 = vmatpush1.bf16.msra.mxu0 %v2038_v5  ;;  %1214 = vmatprep.subr.bf16.mxu1 %v2043_v6 }
  0x75   :  { %1360 = vmatprep.subr.bf16.mxu0 %v2046_v7 }
  0x77   :  { %1215 = vmatpush1.bf16.msra.mxu1 %v2041_v8 }
  0x78   :  { %1361 = vmatpush1.bf16.msra.mxu0 %v2044_v9  ;;  %1216 = vmatprep.subr.bf16.mxu1 %v2054_v10 }
  0x79   :  { %1362 = vmatprep.subr.bf16.mxu0 %v2058_v11 }
  0x7b   :  { %1217 = vmatpush1.bf16.msra.mxu1 %v2052_v12 }
  0x7c   :  { %1363 = vmatpush1.bf16.msra.mxu0 %v2056_v13  ;;  %1218 = vmatprep.subr.bf16.mxu1 %v2061_v14 }
  0x7d   :  { %1364 = vmatprep.subr.bf16.mxu0 %v2064_v15 }
  0x7f   :  { %1219 = vmatpush1.bf16.msra.mxu1 %v2059_v16 }
  0x80   :  { %1365 = vmatpush1.bf16.msra.mxu0 %v2062_v17  ;;  %1752 = vmatprep.subr.bf16.mxu1 %v2073_v18 }
  0x81   :  { %1407 = vmatprep.subr.bf16.mxu0 %v2073_v18 }
  0x82   :  { %1221 = vmatmul.mubr.bf16.vlgmr.msra.gmra.mrb[0].mxu1 %v2065_v19 }
  0x83   :  { %1367 = vmatmul.mubr.bf16.vlgmr.msra.gmra.mrb[0].mxu0 %v2068_v20  ;;  %1760 = vmatpush1.bf16.msra.mxu1 %v2071_v21 }
  0x84   :  { %1408 = vmatpush1.bf16.msra.mxu0 %v2071_v21  ;;  %1753 = vmatprep.subr.bf16.mxu1 %v2076_v22 }
  0x85   :  { %1409 = vmatprep.subr.bf16.mxu0 %v2076_v22  ;;  %1230 = vmatprep.mubr.bf16.mxu1 %v2077_v23 }
  0x86   :  { %1376 = vmatprep.mubr.bf16.mxu0 %v2079_v24 }
  0x87   :  { %1761 = vmatpush1.bf16.msra.mxu1 %v2074_v25 }
  0x88   :  { %1410 = vmatpush1.bf16.msra.mxu0 %v2074_v25  ;;  %1754 = vmatprep.subr.bf16.mxu1 %v2085_v26 }
  0x89   :  { %1411 = vmatprep.subr.bf16.mxu0 %v2085_v26 }
  0x8a   :  { %1231 = vmatmul.mubr.bf16.gmra.mrb[4].mxu1 %v2081_v27 }
  0x8b   :  { %1377 = vmatmul.mubr.bf16.gmra.mrb[4].mxu0 %v2082_v28  ;;  %1762 = vmatpush1.bf16.msra.mxu1 %v2083_v29 }
  0x8c   :  { %1412 = vmatpush1.bf16.msra.mxu0 %v2083_v29  ;;  %1755 = vmatprep.subr.bf16.mxu1 %v2088_v30 }
  0x8d   :  { %1413 = vmatprep.subr.bf16.mxu0 %v2088_v30  ;;  %1240 = vmatprep.mubr.bf16.mxu1 %v2089_v31 }
  0x8e   :  { %1386 = vmatprep.mubr.bf16.mxu0 %v2091_v32 }
  0x8f   :  { %1763 = vmatpush1.bf16.msra.mxu1 %v2086_v33 }
  0x90   :  { %1414 = vmatpush1.bf16.msra.mxu0 %v2086_v33  ;;  %1756 = vmatprep.subr.bf16.mxu1 %v2097_v34 }
  0x91   :  { %1415 = vmatprep.subr.bf16.mxu0 %v2097_v34 }
  0x92   :  { %1241 = vmatmul.mubr.bf16.gmra.mrb[8].mxu1 %v2093_v35 }
  0x93   :  { %1387 = vmatmul.mubr.bf16.gmra.mrb[8].mxu0 %v2094_v36  ;;  %1764 = vmatpush1.bf16.msra.mxu1 %v2095_v37 }
  0x94   :  { %1416 = vmatpush1.bf16.msra.mxu0 %v2095_v37  ;;  %1757 = vmatprep.subr.bf16.mxu1 %v2100_v38 }
  0x95   :  { %1417 = vmatprep.subr.bf16.mxu0 %v2100_v38  ;;  %1250 = vmatprep.mubr.bf16.mxu1 %v2101_v39 }
  0x96   :  { %1396 = vmatprep.mubr.bf16.mxu0 %v2103_v40 }
  0x97   :  { %1765 = vmatpush1.bf16.msra.mxu1 %v2098_v41 }
  0x98   :  { %1418 = vmatpush1.bf16.msra.mxu0 %v2098_v41  ;;  %1758 = vmatprep.subr.bf16.mxu1 %v2109_v42 }
  0x99   :  { %1419 = vmatprep.subr.bf16.mxu0 %v2109_v42 }
  0x9a   :  { %1251 = vmatmul.mubr.bf16.gmra.mrb[12].mxu1 %v2105_v43 }
  0x9b   :  { %1397 = vmatmul.mubr.bf16.gmra.mrb[12].mxu0 %v2106_v44  ;;  %1766 = vmatpush1.bf16.msra.mxu1 %v2107_v45 }
  0x9c   :  { %1420 = vmatpush1.bf16.msra.mxu0 %v2107_v45  ;;  %1759 = vmatprep.subr.bf16.mxu1 %v2112_v46 }
  0x9d   :  { %1421 = vmatprep.subr.bf16.mxu0 %v2112_v46  ;;  %1439 = vmatprep.mubr.bf16.mxu0 %v2117_v48 }
  0x9e   :  { %1459 = vmatprep.mubr.bf16.mxu1 %v2117_v48 }
  0x9f   :  { %1767 = vmatpush1.bf16.msra.mxu1 %v2110_v47 }
  0xa0   :  { %1422 = vmatpush1.bf16.msra.mxu0 %v2110_v47 }
  0xa2   :  { %1460 = vmatmul.mubr.bf16.vlgmr.msra.gmra.mrb[16].mxu1 %v2114_v50 }
  0xa3   :  { %1440 = vmatmul.mubr.bf16.vlgmr.msra.gmra.mrb[0].mxu0 %v2113_v49  ;;  %1469 = vmatprep.mubr.bf16.mxu1 %v2117_v48 }
  0xa4   :  { %1449 = vmatprep.mubr.bf16.mxu0 %v2117_v48 }
  0xaa   :  { %1470 = vmatmul.mubr.bf16.gmra.mrb[20].mxu1 %v2116_v52 }
  0xab   :  { %1450 = vmatmul.mubr.bf16.gmra.mrb[4].mxu0 %v2115_v51 }
 0x155   :  { %v1222_v53 = vpop.f32.mrb[0].mxu1 }
 0x156   :  { %v1224_v54 = vpop.f32.mrb[1].mxu1  ;;  %v1768_v36 = vadd.f32 %v1222_v53, %v2689_v2 }
 0x157   :  { %v1226_v55 = vpop.f32.mrb[2].mxu1  ;;  %v1770_v37 = vadd.f32 %v1224_v54, %v2691_v3 }
 0x158   :  { %v1228_v57 = vpop.f32.mrb[3].mxu1  ;;  %v1772_v40 = vadd.f32 %v1226_v55, %v2689_v2 }
 0x159   :  { %v1774_v45 = vadd.f32 %v1228_v57, %v2691_v3 }
 0x15d   :  { %v2678_v59 = vpop.f32.mrb[4].mxu1 }
 0x15e   :  { %v2680_v60 = vpop.f32.mrb[5].mxu1 }
 0x15f   :  { %v2682_v61 = vpop.f32.mrb[6].mxu1 }
 0x160   :  { %v2684_v63 = vpop.f32.mrb[7].mxu1 }
 0x165   :  { %v1242_v4 = vpop.f32.mrb[8].mxu1 }
 0x166   :  { %v1388_v5 = vpop.f32.mrb[8].mxu0  ;;  %v1784_v6 = vadd.f32 %v1242_v4, %v2689_v2  ;;  %v1244_v7 = vpop.f32.mrb[9].mxu1 }
 0x167   :  { %v1390_v8 = vpop.f32.mrb[9].mxu0  ;;  %v1787_v9 = vadd.f32 %v1244_v7, %v2691_v3  ;;  %v1246_v10 = vpop.f32.mrb[10].mxu1 }
 0x168   :  { %v1392_v11 = vpop.f32.mrb[10].mxu0  ;;  %v1785_v12 = vadd.f32 %v1784_v6, %v1388_v5  ;;  %v1790_v13 = vadd.f32 %v1246_v10, %v2689_v2  ;;  %v1248_v14 = vpop.f32.mrb[11].mxu1 }
 0x169   :  { %v1394_v15 = vpop.f32.mrb[11].mxu0  ;;  %v1788_v16 = vadd.f32 %v1787_v9, %v1390_v8  ;;  %v1793_v17 = vadd.f32 %v1248_v14, %v2691_v3  ;;  %v1776_v8 = vadd.f32 %v2678_v59, %v2689_v2  ;;  %v1778_v9 = vadd.f32 %v2680_v60, %v2691_v3 }
 0x16a   :  { %v1791_v18 = vadd.f32 %v1790_v13, %v1392_v11  ;;  %v1780_v14 = vadd.f32 %v2682_v61, %v2689_v2  ;;  %v1782_v60 = vadd.f32 %v2684_v63, %v2691_v3 }
 0x16b   :  { %v1794_v19 = vadd.f32 %v1793_v17, %v1394_v15 }
 0x16d   :  { %v1252_v20 = vpop.f32.mrb[12].mxu1 }
 0x16e   :  { %v1398_v21 = vpop.f32.mrb[12].mxu0  ;;  %v1796_v22 = vadd.f32 %v1252_v20, %v2689_v2  ;;  %v1254_v23 = vpop.f32.mrb[13].mxu1 }
 0x16f   :  { %v1400_v24 = vpop.f32.mrb[13].mxu0  ;;  %v1799_v25 = vadd.f32 %v1254_v23, %v2691_v3  ;;  %v1256_v26 = vpop.f32.mrb[14].mxu1 }
 0x170   :  { %v1402_v27 = vpop.f32.mrb[14].mxu0  ;;  %v1797_v28 = vadd.f32 %v1796_v22, %v1398_v21  ;;  %v1802_v29 = vadd.f32 %v1256_v26, %v2689_v2  ;;  %v1258_v30 = vpop.f32.mrb[15].mxu1 }
 0x171   :  { %v1404_v31 = vpop.f32.mrb[15].mxu0  ;;  %v1800_v32 = vadd.f32 %v1799_v25, %v1400_v24  ;;  %v1805_v33 = vadd.f32 %v1258_v30, %v2691_v3 }
 0x172   :  { %v1803_v34 = vadd.f32 %v1802_v29, %v1402_v27 }
 0x173   :  { %v1806_v35 = vadd.f32 %v1805_v33, %v1404_v31 }
 0x175   :  { %v1461_v39 = vpop.f32.mrb[16].mxu1 }
 0x176   :  { %v1441_v38 = vpop.f32.mrb[0].mxu0  ;;  %v1786_v42 = vadd.f32 %v1785_v12, %v1461_v39  ;;  %v1463_v44 = vpop.f32.mrb[17].mxu1 }
 0x177   :  { %v1769_v41 = vadd.f32 %v1768_v36, %v1441_v38  ;;  %v1443_v43 = vpop.f32.mrb[1].mxu0  ;;  %v1789_v47 = vadd.f32 %v1788_v16, %v1463_v44  ;;  %v1465_v49 = vpop.f32.mrb[18].mxu1 }
 0x178   :  { %v1771_v46 = vadd.f32 %v1770_v37, %v1443_v43  ;;  %v1445_v48 = vpop.f32.mrb[2].mxu0  ;;  %v1488_v51 = vmax.f32 %v1786_v42, 0.0  ;;  %v1792_v53 = vadd.f32 %v1791_v18, %v1465_v49  ;;  %v1467_v54 = vpop.f32.mrb[19].mxu1 }
 0x179   :  { %v1480_v50 = vmax.f32 %v1769_v41, 0.0  ;;  %v1773_v52 = vadd.f32 %v1772_v40, %v1445_v48  ;;  %v1447_v56 = vpop.f32.mrb[3].mxu0  ;;  %v1489_v62 = vmax.f32 %v1789_v47, 0.0  ;;  %v1795_v55 = vadd.f32 %v1794_v19, %v1467_v54 }
 0x17a   :  { %v1481_v58 = vmax.f32 %v1771_v46, 0.0  ;;  %v1775_v0 = vadd.f32 %v1774_v45, %v1447_v56  ;;  %v1490_v4 = vmax.f32 %v1792_v53, 0.0 }
 0x17b   :  { %v1482_v1 = vmax.f32 %v1773_v52, 0.0  ;;  %v1748_v6 = vpack.c.bf16 %v1489_v62, %v1488_v51  ;;  %v1491_v57 = vmax.f32 %v1795_v55, 0.0 }
 0x17c   :  { %v1744_v5 = vpack.c.bf16 %v1481_v58, %v1480_v50  ;;  %v1483_v7 = vmax.f32 %v1775_v0, 0.0 }
 0x17d   :  { %1548 = vst [vmem:[%s2740_s3 + $0x20] sm:$0xff] %v1748_v6  ;;  %v1749_v11 = vpack.c.bf16 %v1491_v57, %v1490_v4  ;;  %v1471_v13 = vpop.f32.mrb[20].mxu1 }
 0x17e   :  { %1544 = vst [vmem:[%s2740_s3] sm:$0xff] %v1744_v5  ;;  %v1745_v10 = vpack.c.bf16 %v1483_v7, %v1482_v1  ;;  %v1451_v12 = vpop.f32.mrb[4].mxu0  ;;  %v1798_v59 = vadd.f32 %v1797_v28, %v1471_v13  ;;  %v1473_v17 = vpop.f32.mrb[21].mxu1 }
 0x17f   :  { %v1777_v15 = vadd.f32 %v1776_v8, %v1451_v12  ;;  %v1453_v16 = vpop.f32.mrb[5].mxu0  ;;  %1549 = vst [vmem:[%s2740_s3 + $0x28] sm:$0xff] %v1749_v11  ;;  %v1801_v19 = vadd.f32 %v1800_v32, %v1473_v17  ;;  %v1475_v21 = vpop.f32.mrb[22].mxu1 }
 0x180   :  { %1545 = vst [vmem:[%s2740_s3 + $0x8] sm:$0xff] %v1745_v10  ;;  %v1779_v18 = vadd.f32 %v1778_v9, %v1453_v16  ;;  %v1455_v20 = vpop.f32.mrb[6].mxu0  ;;  %v1492_v2 = vmax.f32 %v1798_v59, 0.0  ;;  %v1804_v23 = vadd.f32 %v1803_v34, %v1475_v21  ;;  %v1477_v25 = vpop.f32.mrb[23].mxu1 }
 0x181   :  { %v1484_v61 = vmax.f32 %v1777_v15, 0.0  ;;  %v1781_v22 = vadd.f32 %v1780_v14, %v1455_v20  ;;  %v1457_v24 = vpop.f32.mrb[7].mxu0  ;;  %v1493_v63 = vmax.f32 %v1801_v19, 0.0  ;;  %v1807_v27 = vadd.f32 %v1806_v35, %v1477_v25 }
 0x182   :  { %v1485_v26 = vmax.f32 %v1779_v18, 0.0  ;;  %v1783_v3 = vadd.f32 %v1782_v60, %v1457_v24  ;;  %v1494_v29 = vmax.f32 %v1804_v23, 0.0 }
 0x183   :  { %v1486_v28 = vmax.f32 %v1781_v22, 0.0  ;;  %v1750_v31 = vpack.c.bf16 %v1493_v63, %v1492_v2  ;;  %v1495_v36 = vmax.f32 %v1807_v27, 0.0 }
 0x184   :  { %v1746_v30 = vpack.c.bf16 %v1485_v26, %v1484_v61  ;;  %v1487_v33 = vmax.f32 %v1783_v3, 0.0 }
 0x185   :  { %1550 = vst [vmem:[%s2740_s3 + $0x30] sm:$0xff] %v1750_v31  ;;  %v1751_v34 = vpack.c.bf16 %v1495_v36, %v1494_v29 }
 0x186   :  { %1546 = vst [vmem:[%s2740_s3 + $0x10] sm:$0xff] %v1746_v30  ;;  %v1747_v32 = vpack.c.bf16 %v1487_v33, %v1486_v28 }
 0x187   :  { %1551 = vst [vmem:[%s2740_s3 + $0x38] sm:$0xff] %v1751_v34 }
 0x188   :  { %1547 = vst [vmem:[%s2740_s3 + $0x18] sm:$0xff] %v1747_v32 }

// kernel: low_level_feat_net.10
= control target key start
LH: loop header
LB: loop body
LE: loop exit
PB: predicated region body
PF: predicated region fallthrough
CT: control target
= control target key end

     0   :  { %s4023_s1 = inlined_call_operand.vmem [shape: bf16[2304,256], index: 1, kind: input, shape index: {}]   ;;  %s4024_s0 = inlined_call_operand.vmem [shape: bf16[16,2304], index: 0, kind: input, shape index: {}]   ;;  %s4025_s2 = inlined_call_operand.vmem [shape: f32[1,256], index: 2, kind: input, shape index: {}]   ;;  %s4026_s3 = inlined_call_operand.vmem [shape: bf16[16,256], index: 3, kind: output, shape index: {}]  }
   0x1   :  { %v2617_v0 = vld [vmem:[%s4023_s1 + $0x4] ss:$8 sps:$4 sm:$0xff]   ;;  %v2621_v2 = vld [vmem:[%s4023_s1] ss:$8 sps:$4 sm:$0xff]   ;;  %v2623_v4 = vld [vmem:[%s4023_s1 + $0x14] ss:$8 sps:$4 sm:$0xff]  }
   0x2   :  { %v2619_v1 = vld [vmem:[%s4023_s1 + $0x404] ss:$8 sps:$4 sm:$0xff]   ;;  %1862 = vmatprep.subr.bf16.mxu1 %v2617_v0  ;;  %v2622_v3 = vld [vmem:[%s4023_s1 + $0x400] ss:$8 sps:$4 sm:$0xff]   ;;  %v2625_v5 = vld [vmem:[%s4023_s1 + $0x414] ss:$8 sps:$4 sm:$0xff]  }
   0x3   :  { %2034 = vmatprep.subr.bf16.mxu0 %v2619_v1  ;;  %1863 = vmatpush1.bf16.msra.mxu1 %v2621_v2  ;;  %v2627_v6 = vld [vmem:[%s4023_s1 + $0x10] ss:$8 sps:$4 sm:$0xff]   ;;  %v2629_v8 = vld [vmem:[%s4023_s1 + $0x24] ss:$8 sps:$4 sm:$0xff]   ;;  %v2633_v10 = vld [vmem:[%s4023_s1 + $0x20] ss:$8 sps:$4 sm:$0xff]  }
   0x4   :  { %2035 = vmatpush1.bf16.msra.mxu0 %v2622_v3  ;;  %1864 = vmatprep.subr.bf16.mxu1 %v2623_v4  ;;  %v2628_v7 = vld [vmem:[%s4023_s1 + $0x410] ss:$8 sps:$4 sm:$0xff]   ;;  %v2631_v9 = vld [vmem:[%s4023_s1 + $0x424] ss:$8 sps:$4 sm:$0xff]   ;;  %v2634_v11 = vld [vmem:[%s4023_s1 + $0x420] ss:$8 sps:$4 sm:$0xff]  }
   0x5   :  { %2036 = vmatprep.subr.bf16.mxu0 %v2625_v5  ;;  %v2635_v12 = vld [vmem:[%s4023_s1 + $0x34] ss:$8 sps:$4 sm:$0xff]   ;;  %v2639_v14 = vld [vmem:[%s4023_s1 + $0x30] ss:$8 sps:$4 sm:$0xff]   ;;  %v2641_v16 = vld [vmem:[%s4023_s1 + $0x44] ss:$8 sps:$4 sm:$0xff]  }
   0x6   :  { %v2637_v13 = vld [vmem:[%s4023_s1 + $0x434] ss:$8 sps:$4 sm:$0xff]   ;;  %v2640_v15 = vld [vmem:[%s4023_s1 + $0x430] ss:$8 sps:$4 sm:$0xff]   ;;  %v2643_v17 = vld [vmem:[%s4023_s1 + $0x444] ss:$8 sps:$4 sm:$0xff]  }
   0x7   :  { %1865 = vmatpush1.bf16.msra.mxu1 %v2627_v6  ;;  %v2645_v18 = vld [vmem:[%s4023_s1 + $0x40] ss:$8 sps:$4 sm:$0xff]   ;;  %v2647_v20 = vld [vmem:[%s4023_s1 + $0x54] ss:$8 sps:$4 sm:$0xff]   ;;  %v2651_v22 = vld [vmem:[%s4023_s1 + $0x50] ss:$8 sps:$4 sm:$0xff]  }
   0x8   :  { %2037 = vmatpush1.bf16.msra.mxu0 %v2628_v7  ;;  %1866 = vmatprep.subr.bf16.mxu1 %v2629_v8  ;;  %v2646_v19 = vld [vmem:[%s4023_s1 + $0x440] ss:$8 sps:$4 sm:$0xff]   ;;  %v2649_v21 = vld [vmem:[%s4023_s1 + $0x454] ss:$8 sps:$4 sm:$0xff]   ;;  %v2652_v23 = vld [vmem:[%s4023_s1 + $0x450] ss:$8 sps:$4 sm:$0xff]  }
   0x9   :  { %2038 = vmatprep.subr.bf16.mxu0 %v2631_v9  ;;  %v2653_v24 = vld [vmem:[%s4023_s1 + $0x64] ss:$8 sps:$4 sm:$0xff]   ;;  %v2657_v26 = vld [vmem:[%s4023_s1 + $0x60] ss:$8 sps:$4 sm:$0xff]   ;;  %v2659_v28 = vld [vmem:[%s4023_s1 + $0x74] ss:$8 sps:$4 sm:$0xff]  }
   0xa   :  { %v2655_v25 = vld [vmem:[%s4023_s1 + $0x464] ss:$8 sps:$4 sm:$0xff]   ;;  %v2658_v27 = vld [vmem:[%s4023_s1 + $0x460] ss:$8 sps:$4 sm:$0xff]   ;;  %v2661_v29 = vld [vmem:[%s4023_s1 + $0x474] ss:$8 sps:$4 sm:$0xff]  }
   0xb   :  { %1867 = vmatpush1.bf16.msra.mxu1 %v2633_v10  ;;  %v2663_v30 = vld [vmem:[%s4023_s1 + $0x70] ss:$8 sps:$4 sm:$0xff]   ;;  %v2665_v32 = vld [vmem:[%s4023_s1 + $0x84] ss:$8 sps:$4 sm:$0xff]   ;;  %v2669_v34 = vld [vmem:[%s4023_s1 + $0x80] ss:$8 sps:$4 sm:$0xff]  }
   0xc   :  { %2039 = vmatpush1.bf16.msra.mxu0 %v2634_v11  ;;  %1868 = vmatprep.subr.bf16.mxu1 %v2635_v12  ;;  %v2664_v31 = vld [vmem:[%s4023_s1 + $0x470] ss:$8 sps:$4 sm:$0xff]   ;;  %v2667_v33 = vld [vmem:[%s4023_s1 + $0x484] ss:$8 sps:$4 sm:$0xff]   ;;  %v2670_v35 = vld [vmem:[%s4023_s1 + $0x480] ss:$8 sps:$4 sm:$0xff]  }
   0xd   :  { %2040 = vmatprep.subr.bf16.mxu0 %v2637_v13  ;;  %v2671_v36 = vld [vmem:[%s4023_s1 + $0x94] ss:$8 sps:$4 sm:$0xff]   ;;  %v2675_v38 = vld [vmem:[%s4023_s1 + $0x90] ss:$8 sps:$4 sm:$0xff]   ;;  %v2677_v40 = vld [vmem:[%s4023_s1 + $0xa4] ss:$8 sps:$4 sm:$0xff]  }
   0xe   :  { %v2673_v37 = vld [vmem:[%s4023_s1 + $0x494] ss:$8 sps:$4 sm:$0xff]   ;;  %v2676_v39 = vld [vmem:[%s4023_s1 + $0x490] ss:$8 sps:$4 sm:$0xff]   ;;  %v2679_v41 = vld [vmem:[%s4023_s1 + $0x4a4] ss:$8 sps:$4 sm:$0xff]  }
   0xf   :  { %1869 = vmatpush1.bf16.msra.mxu1 %v2639_v14  ;;  %v2681_v42 = vld [vmem:[%s4023_s1 + $0xa0] ss:$8 sps:$4 sm:$0xff]   ;;  %v2683_v44 = vld [vmem:[%s4023_s1 + $0xb4] ss:$8 sps:$4 sm:$0xff]   ;;  %v2687_v46 = vld [vmem:[%s4023_s1 + $0xb0] ss:$8 sps:$4 sm:$0xff]  }
  0x10   :  { %2041 = vmatpush1.bf16.msra.mxu0 %v2640_v15  ;;  %1870 = vmatprep.subr.bf16.mxu1 %v2641_v16  ;;  %v2682_v43 = vld [vmem:[%s4023_s1 + $0x4a0] ss:$8 sps:$4 sm:$0xff]   ;;  %v2685_v45 = vld [vmem:[%s4023_s1 + $0x4b4] ss:$8 sps:$4 sm:$0xff]   ;;  %v2688_v47 = vld [vmem:[%s4023_s1 + $0x4b0] ss:$8 sps:$4 sm:$0xff]  }
  0x11   :  { %2042 = vmatprep.subr.bf16.mxu0 %v2643_v17  ;;  %v2715_v48 = vld [vmem:[%s4024_s0 + $0x4] ss:$72 sps:$4 sm:$0xff]   ;;  %v2693_v52 = vld [vmem:[%s4023_s1 + $0xc0] ss:$8 sps:$4 sm:$0xff]   ;;  %v2695_v54 = vld [vmem:[%s4023_s1 + $0xd4] ss:$8 sps:$4 sm:$0xff]  }
  0x12   :  { %v2689_v49 = vld [vmem:[%s4023_s1 + $0xc4] ss:$8 sps:$4 sm:$0xff]   ;;  %1894 = vmatprep.mubr.bf16.mxu1 %v2715_v48  ;;  %v2694_v53 = vld [vmem:[%s4023_s1 + $0x4c0] ss:$8 sps:$4 sm:$0xff]   ;;  %v2697_v55 = vld [vmem:[%s4023_s1 + $0x4d4] ss:$8 sps:$4 sm:$0xff]  }
  0x13   :  { %1871 = vmatpush1.bf16.msra.mxu1 %v2645_v18  ;;  %v2691_v50 = vld [vmem:[%s4023_s1 + $0x4c4] ss:$8 sps:$4 sm:$0xff]   ;;  %v2699_v56 = vld [vmem:[%s4023_s1 + $0xd0] ss:$8 sps:$4 sm:$0xff]   ;;  %v2705_v60 = vld [vmem:[%s4023_s1 + $0xe0] ss:$8 sps:$4 sm:$0xff]  }
  0x14   :  { %2043 = vmatpush1.bf16.msra.mxu0 %v2646_v19  ;;  %1872 = vmatprep.subr.bf16.mxu1 %v2647_v20  ;;  %v2721_v51 = vld [vmem:[%s4024_s0 + $0x24] ss:$72 sps:$4 sm:$0xff]   ;;  %v2700_v57 = vld [vmem:[%s4023_s1 + $0x4d0] ss:$8 sps:$4 sm:$0xff]   ;;  %v2706_v61 = vld [vmem:[%s4023_s1 + $0x4e0] ss:$8 sps:$4 sm:$0xff]  }
  0x15   :  { %2044 = vmatprep.subr.bf16.mxu0 %v2649_v21  ;;  %2066 = vmatprep.mubr.bf16.mxu0 %v2721_v51  ;;  %v2701_v58 = vld [vmem:[%s4023_s1 + $0xe4] ss:$8 sps:$4 sm:$0xff]   ;;  %v2707_v62 = vld [vmem:[%s4023_s1 + $0xf4] ss:$8 sps:$4 sm:$0xff]   ;;  %v2711_v0 = vld [vmem:[%s4023_s1 + $0xf0] ss:$8 sps:$4 sm:$0xff]  }
  0x16   :  { %v2703_v59 = vld [vmem:[%s4023_s1 + $0x4e4] ss:$8 sps:$4 sm:$0xff]   ;;  %v2709_v63 = vld [vmem:[%s4023_s1 + $0x4f4] ss:$8 sps:$4 sm:$0xff]   ;;  %v2712_v1 = vld [vmem:[%s4023_s1 + $0x4f0] ss:$8 sps:$4 sm:$0xff]  }
  0x17   :  { %1873 = vmatpush1.bf16.msra.mxu1 %v2651_v22  ;;  %v2718_v2 = vld [vmem:[%s4023_s1 + $0x104] ss:$8 sps:$4 sm:$0xff]   ;;  %v2713_v4 = vld [vmem:[%s4024_s0] ss:$72 sps:$4 sm:$0xff]   ;;  %v2727_v8 = vld [vmem:[%s4023_s1 + $0x114] ss:$8 sps:$4 sm:$0xff]  }
  0x18   :  { %2045 = vmatpush1.bf16.msra.mxu0 %v2652_v23  ;;  %1874 = vmatprep.subr.bf16.mxu1 %v2653_v24  ;;  %v2724_v3 = vld [vmem:[%s4023_s1 + $0x504] ss:$8 sps:$4 sm:$0xff]   ;;  %v2716_v5 = vld [vmem:[%s4023_s1 + $0x100] ss:$8 sps:$4 sm:$0xff]   ;;  %v2730_v9 = vld [vmem:[%s4023_s1 + $0x514] ss:$8 sps:$4 sm:$0xff]  }
  0x19   :  { %2046 = vmatprep.subr.bf16.mxu0 %v2655_v25  ;;  %v2719_v6 = vld [vmem:[%s4024_s0 + $0x20] ss:$72 sps:$4 sm:$0xff]   ;;  %v2725_v10 = vld [vmem:[%s4023_s1 + $0x110] ss:$8 sps:$4 sm:$0xff]   ;;  %v2733_v12 = vld [vmem:[%s4023_s1 + $0x124] ss:$8 sps:$4 sm:$0xff]  }
  0x1a   :  { %v2722_v7 = vld [vmem:[%s4023_s1 + $0x500] ss:$8 sps:$4 sm:$0xff]   ;;  %v2728_v11 = vld [vmem:[%s4023_s1 + $0x510] ss:$8 sps:$4 sm:$0xff]   ;;  %v2736_v13 = vld [vmem:[%s4023_s1 + $0x524] ss:$8 sps:$4 sm:$0xff]  }
  0x1b   :  { %1875 = vmatpush1.bf16.msra.mxu1 %v2657_v26  ;;  %v2731_v14 = vld [vmem:[%s4023_s1 + $0x120] ss:$8 sps:$4 sm:$0xff]   ;;  %v2739_v16 = vld [vmem:[%s4023_s1 + $0x134] ss:$8 sps:$4 sm:$0xff]   ;;  %v2737_v18 = vld [vmem:[%s4023_s1 + $0x130] ss:$8 sps:$4 sm:$0xff]  }
  0x1c   :  { %2047 = vmatpush1.bf16.msra.mxu0 %v2658_v27  ;;  %1876 = vmatprep.subr.bf16.mxu1 %v2659_v28  ;;  %v2734_v15 = vld [vmem:[%s4023_s1 + $0x520] ss:$8 sps:$4 sm:$0xff]   ;;  %v2742_v17 = vld [vmem:[%s4023_s1 + $0x534] ss:$8 sps:$4 sm:$0xff]   ;;  %v2740_v19 = vld [vmem:[%s4023_s1 + $0x530] ss:$8 sps:$4 sm:$0xff]  }
  0x1d   :  { %2048 = vmatprep.subr.bf16.mxu0 %v2661_v29  ;;  %v2745_v20 = vld [vmem:[%s4023_s1 + $0x144] ss:$8 sps:$4 sm:$0xff]   ;;  %v2743_v22 = vld [vmem:[%s4023_s1 + $0x140] ss:$8 sps:$4 sm:$0xff]   ;;  %v2751_v24 = vld [vmem:[%s4023_s1 + $0x154] ss:$8 sps:$4 sm:$0xff]  }
  0x1e   :  { %v2748_v21 = vld [vmem:[%s4023_s1 + $0x544] ss:$8 sps:$4 sm:$0xff]   ;;  %v2746_v23 = vld [vmem:[%s4023_s1 + $0x540] ss:$8 sps:$4 sm:$0xff]   ;;  %v2754_v25 = vld [vmem:[%s4023_s1 + $0x554] ss:$8 sps:$4 sm:$0xff]  }
  0x1f   :  { %1877 = vmatpush1.bf16.msra.mxu1 %v2663_v30  ;;  %v2749_v26 = vld [vmem:[%s4023_s1 + $0x150] ss:$8 sps:$4 sm:$0xff]   ;;  %v2757_v28 = vld [vmem:[%s4023_s1 + $0x164] ss:$8 sps:$4 sm:$0xff]   ;;  %v2755_v30 = vld [vmem:[%s4023_s1 + $0x160] ss:$8 sps:$4 sm:$0xff]  }
  0x20   :  { %2049 = vmatpush1.bf16.msra.mxu0 %v2664_v31  ;;  %1878 = vmatprep.subr.bf16.mxu1 %v2665_v32  ;;  %v2752_v27 = vld [vmem:[%s4023_s1 + $0x550] ss:$8 sps:$4 sm:$0xff]   ;;  %v2760_v29 = vld [vmem:[%s4023_s1 + $0x564] ss:$8 sps:$4 sm:$0xff]   ;;  %v2758_v31 = vld [vmem:[%s4023_s1 + $0x560] ss:$8 sps:$4 sm:$0xff]  }
  0x21   :  { %2050 = vmatprep.subr.bf16.mxu0 %v2667_v33  ;;  %v2763_v32 = vld [vmem:[%s4023_s1 + $0x174] ss:$8 sps:$4 sm:$0xff]   ;;  %v2779_v48 = vld [vmem:[%s4023_s1 + $0x1a0] ss:$8 sps:$4 sm:$0xff]  }
  0x22   :  { %v2766_v33 = vld [vmem:[%s4023_s1 + $0x574] ss:$8 sps:$4 sm:$0xff]  }
  0x23   :  { %1879 = vmatpush1.bf16.msra.mxu1 %v2669_v34  ;;  %v2817_v34 = vld [vmem:[%s4024_s0 + $0xc] ss:$72 sps:$4 sm:$0xff]  }
  0x24   :  { %2051 = vmatpush1.bf16.msra.mxu0 %v2670_v35  ;;  %1880 = vmatprep.subr.bf16.mxu1 %v2671_v36  ;;  %v2761_v35 = vld [vmem:[%s4023_s1 + $0x170] ss:$8 sps:$4 sm:$0xff]   ;;  %v2790_v51 = vld [vmem:[%s4023_s1 + $0x5b4] ss:$8 sps:$4 sm:$0xff]  }
  0x25   :  { %2052 = vmatprep.subr.bf16.mxu0 %v2673_v37  ;;  %v2764_v36 = vld [vmem:[%s4023_s1 + $0x570] ss:$8 sps:$4 sm:$0xff]   ;;  %v2823_v37 = vld [vmem:[%s4024_s0 + $0x2c] ss:$72 sps:$4 sm:$0xff]  }
  0x27   :  { %1881 = vmatpush1.bf16.msra.mxu1 %v2675_v38  ;;  %v2769_v38 = vld [vmem:[%s4023_s1 + $0x184] ss:$8 sps:$4 sm:$0xff]  }
  0x28   :  { %2053 = vmatpush1.bf16.msra.mxu0 %v2676_v39  ;;  %1882 = vmatprep.subr.bf16.mxu1 %v2677_v40  ;;  %v2772_v39 = vld [vmem:[%s4023_s1 + $0x584] ss:$8 sps:$4 sm:$0xff]   ;;  %v2767_v40 = vld [vmem:[%s4023_s1 + $0x180] ss:$8 sps:$4 sm:$0xff]  }
  0x29   :  { %2054 = vmatprep.subr.bf16.mxu0 %v2679_v41  ;;  %v2770_v41 = vld [vmem:[%s4023_s1 + $0x580] ss:$8 sps:$4 sm:$0xff]  }
  0x2b   :  { %1883 = vmatpush1.bf16.msra.mxu1 %v2681_v42  ;;  %v2775_v42 = vld [vmem:[%s4023_s1 + $0x194] ss:$8 sps:$4 sm:$0xff]  }
  0x2c   :  { %2055 = vmatpush1.bf16.msra.mxu0 %v2682_v43  ;;  %1884 = vmatprep.subr.bf16.mxu1 %v2683_v44  ;;  %v2778_v43 = vld [vmem:[%s4023_s1 + $0x594] ss:$8 sps:$4 sm:$0xff]   ;;  %v2773_v44 = vld [vmem:[%s4023_s1 + $0x190] ss:$8 sps:$4 sm:$0xff]  }
  0x2d   :  { %2056 = vmatprep.subr.bf16.mxu0 %v2685_v45  ;;  %v2776_v45 = vld [vmem:[%s4023_s1 + $0x590] ss:$8 sps:$4 sm:$0xff]  }
  0x2f   :  { %1885 = vmatpush1.bf16.msra.mxu1 %v2687_v46  ;;  %v2781_v46 = vld [vmem:[%s4023_s1 + $0x1a4] ss:$8 sps:$4 sm:$0xff]  }
  0x30   :  { %2057 = vmatpush1.bf16.msra.mxu0 %v2688_v47  ;;  %1886 = vmatprep.subr.bf16.mxu1 %v2689_v49  ;;  %v2784_v47 = vld [vmem:[%s4023_s1 + $0x5a4] ss:$8 sps:$4 sm:$0xff]   ;;  %v2782_v49 = vld [vmem:[%s4023_s1 + $0x5a0] ss:$8 sps:$4 sm:$0xff]  }
  0x31   :  { %2058 = vmatprep.subr.bf16.mxu0 %v2691_v50  ;;  %v2787_v50 = vld [vmem:[%s4023_s1 + $0x1b4] ss:$8 sps:$4 sm:$0xff]  }
  0x33   :  { %1887 = vmatpush1.bf16.msra.mxu1 %v2693_v52  ;;  %v2785_v52 = vld [vmem:[%s4023_s1 + $0x1b0] ss:$8 sps:$4 sm:$0xff]  }
  0x34   :  { %2059 = vmatpush1.bf16.msra.mxu0 %v2694_v53  ;;  %1888 = vmatprep.subr.bf16.mxu1 %v2695_v54  ;;  %v2788_v53 = vld [vmem:[%s4023_s1 + $0x5b0] ss:$8 sps:$4 sm:$0xff]   ;;  %v2793_v54 = vld [vmem:[%s4023_s1 + $0x1c4] ss:$8 sps:$4 sm:$0xff]  }
  0x35   :  { %2060 = vmatprep.subr.bf16.mxu0 %v2697_v55  ;;  %v2796_v55 = vld [vmem:[%s4023_s1 + $0x5c4] ss:$8 sps:$4 sm:$0xff]  }
  0x37   :  { %1889 = vmatpush1.bf16.msra.mxu1 %v2699_v56  ;;  %v2791_v56 = vld [vmem:[%s4023_s1 + $0x1c0] ss:$8 sps:$4 sm:$0xff]  }
  0x38   :  { %2061 = vmatpush1.bf16.msra.mxu0 %v2700_v57  ;;  %1890 = vmatprep.subr.bf16.mxu1 %v2701_v58  ;;  %v2794_v57 = vld [vmem:[%s4023_s1 + $0x5c0] ss:$8 sps:$4 sm:$0xff]   ;;  %v2799_v58 = vld [vmem:[%s4023_s1 + $0x1d4] ss:$8 sps:$4 sm:$0xff]  }
  0x39   :  { %2062 = vmatprep.subr.bf16.mxu0 %v2703_v59  ;;  %v2802_v59 = vld [vmem:[%s4023_s1 + $0x5d4] ss:$8 sps:$4 sm:$0xff]  }
  0x3b   :  { %1891 = vmatpush1.bf16.msra.mxu1 %v2705_v60  ;;  %v2797_v60 = vld [vmem:[%s4023_s1 + $0x1d0] ss:$8 sps:$4 sm:$0xff]  }
  0x3c   :  { %2063 = vmatpush1.bf16.msra.mxu0 %v2706_v61  ;;  %1892 = vmatprep.subr.bf16.mxu1 %v2707_v62  ;;  %v2800_v61 = vld [vmem:[%s4023_s1 + $0x5d0] ss:$8 sps:$4 sm:$0xff]   ;;  %v2805_v62 = vld [vmem:[%s4023_s1 + $0x1e4] ss:$8 sps:$4 sm:$0xff]  }
  0x3d   :  { %2064 = vmatprep.subr.bf16.mxu0 %v2709_v63  ;;  %v2808_v63 = vld [vmem:[%s4023_s1 + $0x5e4] ss:$8 sps:$4 sm:$0xff]  }
  0x3f   :  { %1893 = vmatpush1.bf16.msra.mxu1 %v2711_v0  ;;  %v2803_v0 = vld [vmem:[%s4023_s1 + $0x1e0] ss:$8 sps:$4 sm:$0xff]  }
  0x40   :  { %2065 = vmatpush1.bf16.msra.mxu0 %v2712_v1  ;;  %1905 = vmatprep.subr.bf16.mxu1 %v2718_v2  ;;  %v2806_v1 = vld [vmem:[%s4023_s1 + $0x5e0] ss:$8 sps:$4 sm:$0xff]   ;;  %v2811_v2 = vld [vmem:[%s4023_s1 + $0x1f4] ss:$8 sps:$4 sm:$0xff]  }
  0x41   :  { %2077 = vmatprep.subr.bf16.mxu0 %v2724_v3  ;;  %v2814_v3 = vld [vmem:[%s4023_s1 + $0x5f4] ss:$8 sps:$4 sm:$0xff]  }
  0x42   :  { %1895 = vmatmul.mubr.bf16.vlgmr.msra.gmra.mrb[0].mxu1 %v2713_v4  ;;  %v2809_v4 = vld [vmem:[%s4023_s1 + $0x1f0] ss:$8 sps:$4 sm:$0xff]  }
  0x43   :  { %2067 = vmatmul.mubr.bf16.vlgmr.msra.gmra.mrb[0].mxu0 %v2719_v6  ;;  %1906 = vmatpush1.bf16.msra.mxu1 %v2716_v5  ;;  %v2812_v5 = vld [vmem:[%s4023_s1 + $0x5f0] ss:$8 sps:$4 sm:$0xff]   ;;  %v2820_v6 = vld [vmem:[%s4023_s1 + $0x204] ss:$8 sps:$4 sm:$0xff]  }
  0x44   :  { %2078 = vmatpush1.bf16.msra.mxu0 %v2722_v7  ;;  %1907 = vmatprep.subr.bf16.mxu1 %v2727_v8  ;;  %v2826_v7 = vld [vmem:[%s4023_s1 + $0x604] ss:$8 sps:$4 sm:$0xff]   ;;  %v2815_v8 = vld [vmem:[%s4024_s0 + $0x8] ss:$72 sps:$4 sm:$0xff]  }
  0x45   :  { %2079 = vmatprep.subr.bf16.mxu0 %v2730_v9  ;;  %1937 = vmatprep.mubr.bf16.mxu1 %v2817_v34  ;;  %v2818_v9 = vld [vmem:[%s4023_s1 + $0x200] ss:$8 sps:$4 sm:$0xff]   ;;  %v2859_v34 = vld [vmem:[%s4023_s1 + $0x264] ss:$8 sps:$4 sm:$0xff]  }
  0x46   :  { %2109 = vmatprep.mubr.bf16.mxu0 %v2823_v37  ;;  %v2860_v37 = vld [vmem:[%s4023_s1 + $0x660] ss:$8 sps:$4 sm:$0xff]  }
  0x47   :  { %1908 = vmatpush1.bf16.msra.mxu1 %v2725_v10  ;;  %v2821_v10 = vld [vmem:[%s4024_s0 + $0x28] ss:$72 sps:$4 sm:$0xff]  }
  0x48   :  { %2080 = vmatpush1.bf16.msra.mxu0 %v2728_v11  ;;  %1909 = vmatprep.subr.bf16.mxu1 %v2733_v12  ;;  %v2824_v11 = vld [vmem:[%s4023_s1 + $0x600] ss:$8 sps:$4 sm:$0xff]   ;;  %v2829_v12 = vld [vmem:[%s4023_s1 + $0x214] ss:$8 sps:$4 sm:$0xff]  }
  0x49   :  { %2081 = vmatprep.subr.bf16.mxu0 %v2736_v13  ;;  %v2832_v13 = vld [vmem:[%s4023_s1 + $0x614] ss:$8 sps:$4 sm:$0xff]  }
  0x4b   :  { %1910 = vmatpush1.bf16.msra.mxu1 %v2731_v14  ;;  %v2827_v14 = vld [vmem:[%s4023_s1 + $0x210] ss:$8 sps:$4 sm:$0xff]  }
  0x4c   :  { %2082 = vmatpush1.bf16.msra.mxu0 %v2734_v15  ;;  %1911 = vmatprep.subr.bf16.mxu1 %v2739_v16  ;;  %v2830_v15 = vld [vmem:[%s4023_s1 + $0x610] ss:$8 sps:$4 sm:$0xff]   ;;  %v2835_v16 = vld [vmem:[%s4023_s1 + $0x224] ss:$8 sps:$4 sm:$0xff]  }
  0x4d   :  { %2083 = vmatprep.subr.bf16.mxu0 %v2742_v17  ;;  %v2838_v17 = vld [vmem:[%s4023_s1 + $0x624] ss:$8 sps:$4 sm:$0xff]  }
  0x4f   :  { %1912 = vmatpush1.bf16.msra.mxu1 %v2737_v18  ;;  %v2833_v18 = vld [vmem:[%s4023_s1 + $0x220] ss:$8 sps:$4 sm:$0xff]  }
  0x50   :  { %2084 = vmatpush1.bf16.msra.mxu0 %v2740_v19  ;;  %1913 = vmatprep.subr.bf16.mxu1 %v2745_v20  ;;  %v2919_v19 = vld [vmem:[%s4024_s0 + $0x14] ss:$72 sps:$4 sm:$0xff]   ;;  %v2836_v20 = vld [vmem:[%s4023_s1 + $0x620] ss:$8 sps:$4 sm:$0xff]  }
  0x51   :  { %2085 = vmatprep.subr.bf16.mxu0 %v2748_v21  ;;  %v2841_v21 = vld [vmem:[%s4023_s1 + $0x234] ss:$8 sps:$4 sm:$0xff]  }
  0x53   :  { %1914 = vmatpush1.bf16.msra.mxu1 %v2743_v22  ;;  %v2844_v22 = vld [vmem:[%s4023_s1 + $0x634] ss:$8 sps:$4 sm:$0xff]  }
  0x54   :  { %2086 = vmatpush1.bf16.msra.mxu0 %v2746_v23  ;;  %1915 = vmatprep.subr.bf16.mxu1 %v2751_v24  ;;  %v2925_v23 = vld [vmem:[%s4024_s0 + $0x34] ss:$72 sps:$4 sm:$0xff]   ;;  %v2839_v24 = vld [vmem:[%s4023_s1 + $0x230] ss:$8 sps:$4 sm:$0xff]  }
  0x55   :  { %2087 = vmatprep.subr.bf16.mxu0 %v2754_v25  ;;  %v2842_v25 = vld [vmem:[%s4023_s1 + $0x630] ss:$8 sps:$4 sm:$0xff]  }
  0x57   :  { %1916 = vmatpush1.bf16.msra.mxu1 %v2749_v26  ;;  %v2847_v26 = vld [vmem:[%s4023_s1 + $0x244] ss:$8 sps:$4 sm:$0xff]  }
  0x58   :  { %2088 = vmatpush1.bf16.msra.mxu0 %v2752_v27  ;;  %1917 = vmatprep.subr.bf16.mxu1 %v2757_v28  ;;  %v2850_v27 = vld [vmem:[%s4023_s1 + $0x644] ss:$8 sps:$4 sm:$0xff]   ;;  %v2845_v28 = vld [vmem:[%s4023_s1 + $0x240] ss:$8 sps:$4 sm:$0xff]  }
  0x59   :  { %2089 = vmatprep.subr.bf16.mxu0 %v2760_v29  ;;  %v2848_v29 = vld [vmem:[%s4023_s1 + $0x640] ss:$8 sps:$4 sm:$0xff]  }
  0x5b   :  { %1918 = vmatpush1.bf16.msra.mxu1 %v2755_v30  ;;  %v2853_v30 = vld [vmem:[%s4023_s1 + $0x254] ss:$8 sps:$4 sm:$0xff]  }
  0x5c   :  { %2090 = vmatpush1.bf16.msra.mxu0 %v2758_v31  ;;  %1919 = vmatprep.subr.bf16.mxu1 %v2763_v32  ;;  %v2856_v31 = vld [vmem:[%s4023_s1 + $0x654] ss:$8 sps:$4 sm:$0xff]   ;;  %v2851_v32 = vld [vmem:[%s4023_s1 + $0x250] ss:$8 sps:$4 sm:$0xff]  }
  0x5d   :  { %2091 = vmatprep.subr.bf16.mxu0 %v2766_v33  ;;  %v2854_v33 = vld [vmem:[%s4023_s1 + $0x650] ss:$8 sps:$4 sm:$0xff]  }
  0x5f   :  { %1920 = vmatpush1.bf16.msra.mxu1 %v2761_v35  ;;  %v2862_v35 = vld [vmem:[%s4023_s1 + $0x664] ss:$8 sps:$4 sm:$0xff]  }
  0x60   :  { %2092 = vmatpush1.bf16.msra.mxu0 %v2764_v36  ;;  %1921 = vmatprep.subr.bf16.mxu1 %v2769_v38  ;;  %v2857_v36 = vld [vmem:[%s4023_s1 + $0x260] ss:$8 sps:$4 sm:$0xff]   ;;  %v2865_v38 = vld [vmem:[%s4023_s1 + $0x274] ss:$8 sps:$4 sm:$0xff]  }
  0x61   :  { %2093 = vmatprep.subr.bf16.mxu0 %v2772_v39  ;;  %v2868_v39 = vld [vmem:[%s4023_s1 + $0x674] ss:$8 sps:$4 sm:$0xff]  }
  0x63   :  { %1922 = vmatpush1.bf16.msra.mxu1 %v2767_v40  ;;  %v2863_v40 = vld [vmem:[%s4023_s1 + $0x270] ss:$8 sps:$4 sm:$0xff]  }
  0x64   :  { %2094 = vmatpush1.bf16.msra.mxu0 %v2770_v41  ;;  %1923 = vmatprep.subr.bf16.mxu1 %v2775_v42  ;;  %v2866_v41 = vld [vmem:[%s4023_s1 + $0x670] ss:$8 sps:$4 sm:$0xff]   ;;  %v2871_v42 = vld [vmem:[%s4023_s1 + $0x284] ss:$8 sps:$4 sm:$0xff]  }
  0x65   :  { %2095 = vmatprep.subr.bf16.mxu0 %v2778_v43  ;;  %v2874_v43 = vld [vmem:[%s4023_s1 + $0x684] ss:$8 sps:$4 sm:$0xff]  }
  0x67   :  { %1924 = vmatpush1.bf16.msra.mxu1 %v2773_v44  ;;  %v2869_v44 = vld [vmem:[%s4023_s1 + $0x280] ss:$8 sps:$4 sm:$0xff]  }
  0x68   :  { %2096 = vmatpush1.bf16.msra.mxu0 %v2776_v45  ;;  %1925 = vmatprep.subr.bf16.mxu1 %v2781_v46  ;;  %v2872_v45 = vld [vmem:[%s4023_s1 + $0x680] ss:$8 sps:$4 sm:$0xff]   ;;  %v2877_v46 = vld [vmem:[%s4023_s1 + $0x294] ss:$8 sps:$4 sm:$0xff]  }
  0x69   :  { %2097 = vmatprep.subr.bf16.mxu0 %v2784_v47  ;;  %v2880_v47 = vld [vmem:[%s4023_s1 + $0x694] ss:$8 sps:$4 sm:$0xff]  }
  0x6b   :  { %1926 = vmatpush1.bf16.msra.mxu1 %v2779_v48  ;;  %v2875_v48 = vld [vmem:[%s4023_s1 + $0x290] ss:$8 sps:$4 sm:$0xff]  }
  0x6c   :  { %2098 = vmatpush1.bf16.msra.mxu0 %v2782_v49  ;;  %1927 = vmatprep.subr.bf16.mxu1 %v2787_v50  ;;  %v2878_v49 = vld [vmem:[%s4023_s1 + $0x690] ss:$8 sps:$4 sm:$0xff]   ;;  %v2883_v50 = vld [vmem:[%s4023_s1 + $0x2a4] ss:$8 sps:$4 sm:$0xff]  }
  0x6d   :  { %2099 = vmatprep.subr.bf16.mxu0 %v2790_v51  ;;  %v2886_v51 = vld [vmem:[%s4023_s1 + $0x6a4] ss:$8 sps:$4 sm:$0xff]  }
  0x6f   :  { %1928 = vmatpush1.bf16.msra.mxu1 %v2785_v52  ;;  %v2881_v52 = vld [vmem:[%s4023_s1 + $0x2a0] ss:$8 sps:$4 sm:$0xff]  }
  0x70   :  { %2100 = vmatpush1.bf16.msra.mxu0 %v2788_v53  ;;  %1929 = vmatprep.subr.bf16.mxu1 %v2793_v54  ;;  %v2884_v53 = vld [vmem:[%s4023_s1 + $0x6a0] ss:$8 sps:$4 sm:$0xff]   ;;  %v2889_v54 = vld [vmem:[%s4023_s1 + $0x2b4] ss:$8 sps:$4 sm:$0xff]  }
  0x71   :  { %2101 = vmatprep.subr.bf16.mxu0 %v2796_v55  ;;  %v2892_v55 = vld [vmem:[%s4023_s1 + $0x6b4] ss:$8 sps:$4 sm:$0xff]  }
  0x73   :  { %1930 = vmatpush1.bf16.msra.mxu1 %v2791_v56  ;;  %v2887_v56 = vld [vmem:[%s4023_s1 + $0x2b0] ss:$8 sps:$4 sm:$0xff]  }
  0x74   :  { %2102 = vmatpush1.bf16.msra.mxu0 %v2794_v57  ;;  %1931 = vmatprep.subr.bf16.mxu1 %v2799_v58  ;;  %v2890_v57 = vld [vmem:[%s4023_s1 + $0x6b0] ss:$8 sps:$4 sm:$0xff]   ;;  %v2895_v58 = vld [vmem:[%s4023_s1 + $0x2c4] ss:$8 sps:$4 sm:$0xff]  }
  0x75   :  { %2103 = vmatprep.subr.bf16.mxu0 %v2802_v59  ;;  %v2898_v59 = vld [vmem:[%s4023_s1 + $0x6c4] ss:$8 sps:$4 sm:$0xff]  }
  0x77   :  { %1932 = vmatpush1.bf16.msra.mxu1 %v2797_v60  ;;  %v2893_v60 = vld [vmem:[%s4023_s1 + $0x2c0] ss:$8 sps:$4 sm:$0xff]  }
  0x78   :  { %2104 = vmatpush1.bf16.msra.mxu0 %v2800_v61  ;;  %1933 = vmatprep.subr.bf16.mxu1 %v2805_v62  ;;  %v2896_v61 = vld [vmem:[%s4023_s1 + $0x6c0] ss:$8 sps:$4 sm:$0xff]   ;;  %v2901_v62 = vld [vmem:[%s4023_s1 + $0x2d4] ss:$8 sps:$4 sm:$0xff]  }
  0x79   :  { %2105 = vmatprep.subr.bf16.mxu0 %v2808_v63  ;;  %v2904_v63 = vld [vmem:[%s4023_s1 + $0x6d4] ss:$8 sps:$4 sm:$0xff]  }
  0x7b   :  { %1934 = vmatpush1.bf16.msra.mxu1 %v2803_v0  ;;  %v2899_v0 = vld [vmem:[%s4023_s1 + $0x2d0] ss:$8 sps:$4 sm:$0xff]  }
  0x7c   :  { %2106 = vmatpush1.bf16.msra.mxu0 %v2806_v1  ;;  %1935 = vmatprep.subr.bf16.mxu1 %v2811_v2  ;;  %v2902_v1 = vld [vmem:[%s4023_s1 + $0x6d0] ss:$8 sps:$4 sm:$0xff]   ;;  %v2907_v2 = vld [vmem:[%s4023_s1 + $0x2e4] ss:$8 sps:$4 sm:$0xff]  }
  0x7d   :  { %2107 = vmatprep.subr.bf16.mxu0 %v2814_v3  ;;  %v2910_v3 = vld [vmem:[%s4023_s1 + $0x6e4] ss:$8 sps:$4 sm:$0xff]  }
  0x7f   :  { %1936 = vmatpush1.bf16.msra.mxu1 %v2809_v4  ;;  %v2905_v4 = vld [vmem:[%s4023_s1 + $0x2e0] ss:$8 sps:$4 sm:$0xff]  }
  0x80   :  { %2108 = vmatpush1.bf16.msra.mxu0 %v2812_v5  ;;  %1948 = vmatprep.subr.bf16.mxu1 %v2820_v6  ;;  %v2908_v5 = vld [vmem:[%s4023_s1 + $0x6e0] ss:$8 sps:$4 sm:$0xff]   ;;  %v2913_v6 = vld [vmem:[%s4023_s1 + $0x2f4] ss:$8 sps:$4 sm:$0xff]  }
  0x81   :  { %2120 = vmatprep.subr.bf16.mxu0 %v2826_v7  ;;  %v2916_v7 = vld [vmem:[%s4023_s1 + $0x6f4] ss:$8 sps:$4 sm:$0xff]  }
  0x82   :  { %1938 = vmatmul.mubr.bf16.vlgmr.msra.gmra.mrb[0].mxu1 %v2815_v8  ;;  %v2911_v8 = vld [vmem:[%s4023_s1 + $0x2f0] ss:$8 sps:$4 sm:$0xff]  }
  0x83   :  { %2110 = vmatmul.mubr.bf16.vlgmr.msra.gmra.mrb[0].mxu0 %v2821_v10  ;;  %1949 = vmatpush1.bf16.msra.mxu1 %v2818_v9  ;;  %v2914_v9 = vld [vmem:[%s4023_s1 + $0x6f0] ss:$8 sps:$4 sm:$0xff]   ;;  %v2922_v10 = vld [vmem:[%s4023_s1 + $0x304] ss:$8 sps:$4 sm:$0xff]  }
  0x84   :  { %2121 = vmatpush1.bf16.msra.mxu0 %v2824_v11  ;;  %1950 = vmatprep.subr.bf16.mxu1 %v2829_v12  ;;  %v2928_v11 = vld [vmem:[%s4023_s1 + $0x704] ss:$8 sps:$4 sm:$0xff]   ;;  %v2917_v12 = vld [vmem:[%s4024_s0 + $0x10] ss:$72 sps:$4 sm:$0xff]  }
  0x85   :  { %2122 = vmatprep.subr.bf16.mxu0 %v2832_v13  ;;  %1980 = vmatprep.mubr.bf16.mxu1 %v2919_v19  ;;  %v2920_v13 = vld [vmem:[%s4023_s1 + $0x300] ss:$8 sps:$4 sm:$0xff]   ;;  %v3024_v19 = vld [vmem:[%s4024_s0 + $0x3c] ss:$72 sps:$4 sm:$0xff]  }
  0x86   :  { %2152 = vmatprep.mubr.bf16.mxu0 %v2925_v23  ;;  %v2940_v23 = vld [vmem:[%s4023_s1 + $0x724] ss:$8 sps:$4 sm:$0xff]  }
  0x87   :  { %1951 = vmatpush1.bf16.msra.mxu1 %v2827_v14  ;;  %v2923_v14 = vld [vmem:[%s4024_s0 + $0x30] ss:$72 sps:$4 sm:$0xff]  }
  0x88   :  { %2123 = vmatpush1.bf16.msra.mxu0 %v2830_v15  ;;  %1952 = vmatprep.subr.bf16.mxu1 %v2835_v16  ;;  %v2926_v15 = vld [vmem:[%s4023_s1 + $0x700] ss:$8 sps:$4 sm:$0xff]   ;;  %v2931_v16 = vld [vmem:[%s4023_s1 + $0x314] ss:$8 sps:$4 sm:$0xff]  }
  0x89   :  { %2124 = vmatprep.subr.bf16.mxu0 %v2838_v17  ;;  %v2934_v17 = vld [vmem:[%s4023_s1 + $0x714] ss:$8 sps:$4 sm:$0xff]  }
  0x8b   :  { %1953 = vmatpush1.bf16.msra.mxu1 %v2833_v18  ;;  %v3021_v18 = vld [vmem:[%s4024_s0 + $0x1c] ss:$72 sps:$4 sm:$0xff]  }
  0x8c   :  { %2125 = vmatpush1.bf16.msra.mxu0 %v2836_v20  ;;  %1954 = vmatprep.subr.bf16.mxu1 %v2841_v21  ;;  %v2929_v20 = vld [vmem:[%s4023_s1 + $0x310] ss:$8 sps:$4 sm:$0xff]  }
  0x8d   :  { %2126 = vmatprep.subr.bf16.mxu0 %v2844_v22  ;;  %v2932_v21 = vld [vmem:[%s4023_s1 + $0x710] ss:$8 sps:$4 sm:$0xff]   ;;  %v2937_v22 = vld [vmem:[%s4023_s1 + $0x324] ss:$8 sps:$4 sm:$0xff]  }
  0x8f   :  { %1955 = vmatpush1.bf16.msra.mxu1 %v2839_v24  ;;  %v2935_v24 = vld [vmem:[%s4023_s1 + $0x320] ss:$8 sps:$4 sm:$0xff]  }
  0x90   :  { %2127 = vmatpush1.bf16.msra.mxu0 %v2842_v25  ;;  %1956 = vmatprep.subr.bf16.mxu1 %v2847_v26  ;;  %v2938_v25 = vld [vmem:[%s4023_s1 + $0x720] ss:$8 sps:$4 sm:$0xff]   ;;  %v2943_v26 = vld [vmem:[%s4023_s1 + $0x334] ss:$8 sps:$4 sm:$0xff]  }
  0x91   :  { %2128 = vmatprep.subr.bf16.mxu0 %v2850_v27  ;;  %v2946_v27 = vld [vmem:[%s4023_s1 + $0x734] ss:$8 sps:$4 sm:$0xff]  }
  0x93   :  { %1957 = vmatpush1.bf16.msra.mxu1 %v2845_v28  ;;  %v2941_v28 = vld [vmem:[%s4023_s1 + $0x330] ss:$8 sps:$4 sm:$0xff]  }
  0x94   :  { %2129 = vmatpush1.bf16.msra.mxu0 %v2848_v29  ;;  %1958 = vmatprep.subr.bf16.mxu1 %v2853_v30  ;;  %v2944_v29 = vld [vmem:[%s4023_s1 + $0x730] ss:$8 sps:$4 sm:$0xff]   ;;  %v2949_v30 = vld [vmem:[%s4023_s1 + $0x344] ss:$8 sps:$4 sm:$0xff]  }
  0x95   :  { %2130 = vmatprep.subr.bf16.mxu0 %v2856_v31  ;;  %v2952_v31 = vld [vmem:[%s4023_s1 + $0x744] ss:$8 sps:$4 sm:$0xff]  }
  0x97   :  { %1959 = vmatpush1.bf16.msra.mxu1 %v2851_v32  ;;  %v2947_v32 = vld [vmem:[%s4023_s1 + $0x340] ss:$8 sps:$4 sm:$0xff]  }
  0x98   :  { %2131 = vmatpush1.bf16.msra.mxu0 %v2854_v33  ;;  %1960 = vmatprep.subr.bf16.mxu1 %v2859_v34  ;;  %v2950_v33 = vld [vmem:[%s4023_s1 + $0x740] ss:$8 sps:$4 sm:$0xff]   ;;  %v2955_v34 = vld [vmem:[%s4023_s1 + $0x354] ss:$8 sps:$4 sm:$0xff]  }
  0x99   :  { %2132 = vmatprep.subr.bf16.mxu0 %v2862_v35  ;;  %v2958_v35 = vld [vmem:[%s4023_s1 + $0x754] ss:$8 sps:$4 sm:$0xff]  }
  0x9b   :  { %1961 = vmatpush1.bf16.msra.mxu1 %v2857_v36  ;;  %v2953_v36 = vld [vmem:[%s4023_s1 + $0x350] ss:$8 sps:$4 sm:$0xff]  }
  0x9c   :  { %2133 = vmatpush1.bf16.msra.mxu0 %v2860_v37  ;;  %1962 = vmatprep.subr.bf16.mxu1 %v2865_v38  ;;  %v2956_v37 = vld [vmem:[%s4023_s1 + $0x750] ss:$8 sps:$4 sm:$0xff]   ;;  %v2961_v38 = vld [vmem:[%s4023_s1 + $0x364] ss:$8 sps:$4 sm:$0xff]  }
  0x9d   :  { %2134 = vmatprep.subr.bf16.mxu0 %v2868_v39  ;;  %v2964_v39 = vld [vmem:[%s4023_s1 + $0x764] ss:$8 sps:$4 sm:$0xff]  }
  0x9f   :  { %1963 = vmatpush1.bf16.msra.mxu1 %v2863_v40  ;;  %v2959_v40 = vld [vmem:[%s4023_s1 + $0x360] ss:$8 sps:$4 sm:$0xff]  }
  0xa0   :  { %2135 = vmatpush1.bf16.msra.mxu0 %v2866_v41  ;;  %1964 = vmatprep.subr.bf16.mxu1 %v2871_v42  ;;  %v2962_v41 = vld [vmem:[%s4023_s1 + $0x760] ss:$8 sps:$4 sm:$0xff]   ;;  %v2967_v42 = vld [vmem:[%s4023_s1 + $0x374] ss:$8 sps:$4 sm:$0xff]  }
  0xa1   :  { %2136 = vmatprep.subr.bf16.mxu0 %v2874_v43  ;;  %v2970_v43 = vld [vmem:[%s4023_s1 + $0x774] ss:$8 sps:$4 sm:$0xff]  }
  0xa3   :  { %1965 = vmatpush1.bf16.msra.mxu1 %v2869_v44  ;;  %v2965_v44 = vld [vmem:[%s4023_s1 + $0x370] ss:$8 sps:$4 sm:$0xff]  }
  0xa4   :  { %2137 = vmatpush1.bf16.msra.mxu0 %v2872_v45  ;;  %1966 = vmatprep.subr.bf16.mxu1 %v2877_v46  ;;  %v2968_v45 = vld [vmem:[%s4023_s1 + $0x770] ss:$8 sps:$4 sm:$0xff]   ;;  %v2973_v46 = vld [vmem:[%s4023_s1 + $0x384] ss:$8 sps:$4 sm:$0xff]  }
  0xa5   :  { %2138 = vmatprep.subr.bf16.mxu0 %v2880_v47  ;;  %v2976_v47 = vld [vmem:[%s4023_s1 + $0x784] ss:$8 sps:$4 sm:$0xff]  }
  0xa7   :  { %1967 = vmatpush1.bf16.msra.mxu1 %v2875_v48  ;;  %v2971_v48 = vld [vmem:[%s4023_s1 + $0x380] ss:$8 sps:$4 sm:$0xff]  }
  0xa8   :  { %2139 = vmatpush1.bf16.msra.mxu0 %v2878_v49  ;;  %1968 = vmatprep.subr.bf16.mxu1 %v2883_v50  ;;  %v2974_v49 = vld [vmem:[%s4023_s1 + $0x780] ss:$8 sps:$4 sm:$0xff]   ;;  %v2979_v50 = vld [vmem:[%s4023_s1 + $0x394] ss:$8 sps:$4 sm:$0xff]  }
  0xa9   :  { %2140 = vmatprep.subr.bf16.mxu0 %v2886_v51  ;;  %v2982_v51 = vld [vmem:[%s4023_s1 + $0x794] ss:$8 sps:$4 sm:$0xff]  }
  0xab   :  { %1969 = vmatpush1.bf16.msra.mxu1 %v2881_v52  ;;  %v2977_v52 = vld [vmem:[%s4023_s1 + $0x390] ss:$8 sps:$4 sm:$0xff]  }
  0xac   :  { %2141 = vmatpush1.bf16.msra.mxu0 %v2884_v53  ;;  %1970 = vmatprep.subr.bf16.mxu1 %v2889_v54  ;;  %v2980_v53 = vld [vmem:[%s4023_s1 + $0x790] ss:$8 sps:$4 sm:$0xff]   ;;  %v2985_v54 = vld [vmem:[%s4023_s1 + $0x3a4] ss:$8 sps:$4 sm:$0xff]  }
  0xad   :  { %2142 = vmatprep.subr.bf16.mxu0 %v2892_v55  ;;  %v2988_v55 = vld [vmem:[%s4023_s1 + $0x7a4] ss:$8 sps:$4 sm:$0xff]  }
  0xaf   :  { %1971 = vmatpush1.bf16.msra.mxu1 %v2887_v56  ;;  %v2983_v56 = vld [vmem:[%s4023_s1 + $0x3a0] ss:$8 sps:$4 sm:$0xff]  }
  0xb0   :  { %2143 = vmatpush1.bf16.msra.mxu0 %v2890_v57  ;;  %1972 = vmatprep.subr.bf16.mxu1 %v2895_v58  ;;  %v2986_v57 = vld [vmem:[%s4023_s1 + $0x7a0] ss:$8 sps:$4 sm:$0xff]   ;;  %v2991_v58 = vld [vmem:[%s4023_s1 + $0x3b4] ss:$8 sps:$4 sm:$0xff]  }
  0xb1   :  { %2144 = vmatprep.subr.bf16.mxu0 %v2898_v59  ;;  %v2994_v59 = vld [vmem:[%s4023_s1 + $0x7b4] ss:$8 sps:$4 sm:$0xff]  }
  0xb3   :  { %1973 = vmatpush1.bf16.msra.mxu1 %v2893_v60  ;;  %v2989_v60 = vld [vmem:[%s4023_s1 + $0x3b0] ss:$8 sps:$4 sm:$0xff]  }
  0xb4   :  { %2145 = vmatpush1.bf16.msra.mxu0 %v2896_v61  ;;  %1974 = vmatprep.subr.bf16.mxu1 %v2901_v62  ;;  %v2992_v61 = vld [vmem:[%s4023_s1 + $0x7b0] ss:$8 sps:$4 sm:$0xff]   ;;  %v2997_v62 = vld [vmem:[%s4023_s1 + $0x3c4] ss:$8 sps:$4 sm:$0xff]  }
  0xb5   :  { %2146 = vmatprep.subr.bf16.mxu0 %v2904_v63  ;;  %v3000_v63 = vld [vmem:[%s4023_s1 + $0x7c4] ss:$8 sps:$4 sm:$0xff]  }
  0xb7   :  { %1975 = vmatpush1.bf16.msra.mxu1 %v2899_v0  ;;  %v2995_v0 = vld [vmem:[%s4023_s1 + $0x3c0] ss:$8 sps:$4 sm:$0xff]  }
  0xb8   :  { %2147 = vmatpush1.bf16.msra.mxu0 %v2902_v1  ;;  %1976 = vmatprep.subr.bf16.mxu1 %v2907_v2  ;;  %v2998_v1 = vld [vmem:[%s4023_s1 + $0x7c0] ss:$8 sps:$4 sm:$0xff]   ;;  %v3003_v2 = vld [vmem:[%s4023_s1 + $0x3d4] ss:$8 sps:$4 sm:$0xff]  }
  0xb9   :  { %2148 = vmatprep.subr.bf16.mxu0 %v2910_v3  ;;  %v3006_v3 = vld [vmem:[%s4023_s1 + $0x7d4] ss:$8 sps:$4 sm:$0xff]  }
  0xbb   :  { %1977 = vmatpush1.bf16.msra.mxu1 %v2905_v4  ;;  %v3001_v4 = vld [vmem:[%s4023_s1 + $0x3d0] ss:$8 sps:$4 sm:$0xff]  }
  0xbc   :  { %2149 = vmatpush1.bf16.msra.mxu0 %v2908_v5  ;;  %1978 = vmatprep.subr.bf16.mxu1 %v2913_v6  ;;  %v3004_v5 = vld [vmem:[%s4023_s1 + $0x7d0] ss:$8 sps:$4 sm:$0xff]   ;;  %v3009_v6 = vld [vmem:[%s4023_s1 + $0x3e4] ss:$8 sps:$4 sm:$0xff]  }
  0xbd   :  { %2150 = vmatprep.subr.bf16.mxu0 %v2916_v7  ;;  %v3012_v7 = vld [vmem:[%s4023_s1 + $0x7e4] ss:$8 sps:$4 sm:$0xff]  }
  0xbf   :  { %1979 = vmatpush1.bf16.msra.mxu1 %v2911_v8  ;;  %v3007_v8 = vld [vmem:[%s4023_s1 + $0x3e0] ss:$8 sps:$4 sm:$0xff]  }
  0xc0   :  { %2151 = vmatpush1.bf16.msra.mxu0 %v2914_v9  ;;  %1991 = vmatprep.subr.bf16.mxu1 %v2922_v10  ;;  %v3010_v9 = vld [vmem:[%s4023_s1 + $0x7e0] ss:$8 sps:$4 sm:$0xff]   ;;  %v3015_v10 = vld [vmem:[%s4023_s1 + $0x3f4] ss:$8 sps:$4 sm:$0xff]  }
  0xc1   :  { %2163 = vmatprep.subr.bf16.mxu0 %v2928_v11  ;;  %v3018_v11 = vld [vmem:[%s4023_s1 + $0x7f4] ss:$8 sps:$4 sm:$0xff]  }
  0xc2   :  { %1981 = vmatmul.mubr.bf16.vlgmr.msra.gmra.mrb[0].mxu1 %v2917_v12  ;;  %v3013_v12 = vld [vmem:[%s4023_s1 + $0x3f0] ss:$8 sps:$4 sm:$0xff]  }
  0xc3   :  { %2153 = vmatmul.mubr.bf16.vlgmr.msra.gmra.mrb[0].mxu0 %v2923_v14  ;;  %1992 = vmatpush1.bf16.msra.mxu1 %v2920_v13  ;;  %v3016_v13 = vld [vmem:[%s4023_s1 + $0x7f0] ss:$8 sps:$4 sm:$0xff]   ;;  %v3027_v14 = vld [vmem:[%s4023_s1 + $0x804] ss:$8 sps:$4 sm:$0xff]  }
  0xc4   :  { %2164 = vmatpush1.bf16.msra.mxu0 %v2926_v15  ;;  %1993 = vmatprep.subr.bf16.mxu1 %v2931_v16  ;;  %v3019_v15 = vld [vmem:[%s4024_s0 + $0x18] ss:$72 sps:$4 sm:$0xff]  }
  0xc5   :  { %2165 = vmatprep.subr.bf16.mxu0 %v2934_v17  ;;  %2023 = vmatprep.mubr.bf16.mxu1 %v3021_v18  ;;  %v3022_v16 = vld [vmem:[%s4024_s0 + $0x38] ss:$72 sps:$4 sm:$0xff]   ;;  %v3075_v18 = vld [vmem:[%s4024_s0 + $0x44] ss:$72 sps:$4 sm:$0xff]  }
  0xc6   :  { %2195 = vmatprep.mubr.bf16.mxu0 %v3024_v19  ;;  %v3025_v17 = vld [vmem:[%s4023_s1 + $0x800] ss:$8 sps:$4 sm:$0xff]   ;;  %v3030_v19 = vld [vmem:[%s4023_s1 + $0x814] ss:$8 sps:$4 sm:$0xff]  }
  0xc7   :  { %1994 = vmatpush1.bf16.msra.mxu1 %v2929_v20  ;;  %v3028_v20 = vld [vmem:[%s4023_s1 + $0x810] ss:$8 sps:$4 sm:$0xff]  }
  0xc8   :  { %2166 = vmatpush1.bf16.msra.mxu0 %v2932_v21  ;;  %1995 = vmatprep.subr.bf16.mxu1 %v2937_v22  ;;  %v3033_v21 = vld [vmem:[%s4023_s1 + $0x824] ss:$8 sps:$4 sm:$0xff]   ;;  %v3031_v22 = vld [vmem:[%s4023_s1 + $0x820] ss:$8 sps:$4 sm:$0xff]  }
  0xc9   :  { %2167 = vmatprep.subr.bf16.mxu0 %v2940_v23  ;;  %v3036_v23 = vld [vmem:[%s4023_s1 + $0x834] ss:$8 sps:$4 sm:$0xff]  }
  0xcb   :  { %1996 = vmatpush1.bf16.msra.mxu1 %v2935_v24  ;;  %v3034_v24 = vld [vmem:[%s4023_s1 + $0x830] ss:$8 sps:$4 sm:$0xff]  }
  0xcc   :  { %2168 = vmatpush1.bf16.msra.mxu0 %v2938_v25  ;;  %1997 = vmatprep.subr.bf16.mxu1 %v2943_v26  ;;  %v3039_v25 = vld [vmem:[%s4023_s1 + $0x844] ss:$8 sps:$4 sm:$0xff]   ;;  %v3037_v26 = vld [vmem:[%s4023_s1 + $0x840] ss:$8 sps:$4 sm:$0xff]  }
  0xcd   :  { %2169 = vmatprep.subr.bf16.mxu0 %v2946_v27  ;;  %v3042_v27 = vld [vmem:[%s4023_s1 + $0x854] ss:$8 sps:$4 sm:$0xff]  }
  0xcf   :  { %1998 = vmatpush1.bf16.msra.mxu1 %v2941_v28  ;;  %v3040_v28 = vld [vmem:[%s4023_s1 + $0x850] ss:$8 sps:$4 sm:$0xff]  }
  0xd0   :  { %2170 = vmatpush1.bf16.msra.mxu0 %v2944_v29  ;;  %1999 = vmatprep.subr.bf16.mxu1 %v2949_v30  ;;  %v3045_v29 = vld [vmem:[%s4023_s1 + $0x864] ss:$8 sps:$4 sm:$0xff]   ;;  %v3043_v30 = vld [vmem:[%s4023_s1 + $0x860] ss:$8 sps:$4 sm:$0xff]  }
  0xd1   :  { %2171 = vmatprep.subr.bf16.mxu0 %v2952_v31  ;;  %v3048_v31 = vld [vmem:[%s4023_s1 + $0x874] ss:$8 sps:$4 sm:$0xff]  }
  0xd3   :  { %2000 = vmatpush1.bf16.msra.mxu1 %v2947_v32  ;;  %v3046_v32 = vld [vmem:[%s4023_s1 + $0x870] ss:$8 sps:$4 sm:$0xff]  }
  0xd4   :  { %2172 = vmatpush1.bf16.msra.mxu0 %v2950_v33  ;;  %2001 = vmatprep.subr.bf16.mxu1 %v2955_v34  ;;  %v3051_v33 = vld [vmem:[%s4023_s1 + $0x884] ss:$8 sps:$4 sm:$0xff]   ;;  %v3049_v34 = vld [vmem:[%s4023_s1 + $0x880] ss:$8 sps:$4 sm:$0xff]  }
  0xd5   :  { %2173 = vmatprep.subr.bf16.mxu0 %v2958_v35  ;;  %v3054_v35 = vld [vmem:[%s4023_s1 + $0x894] ss:$8 sps:$4 sm:$0xff]  }
  0xd7   :  { %2002 = vmatpush1.bf16.msra.mxu1 %v2953_v36  ;;  %v3052_v36 = vld [vmem:[%s4023_s1 + $0x890] ss:$8 sps:$4 sm:$0xff]  }
  0xd8   :  { %2174 = vmatpush1.bf16.msra.mxu0 %v2956_v37  ;;  %2003 = vmatprep.subr.bf16.mxu1 %v2961_v38  ;;  %v3057_v37 = vld [vmem:[%s4023_s1 + $0x8a4] ss:$8 sps:$4 sm:$0xff]   ;;  %v3055_v38 = vld [vmem:[%s4023_s1 + $0x8a0] ss:$8 sps:$4 sm:$0xff]  }
  0xd9   :  { %2175 = vmatprep.subr.bf16.mxu0 %v2964_v39  ;;  %v3060_v39 = vld [vmem:[%s4023_s1 + $0x8b4] ss:$8 sps:$4 sm:$0xff]  }
  0xdb   :  { %2004 = vmatpush1.bf16.msra.mxu1 %v2959_v40  ;;  %v3058_v40 = vld [vmem:[%s4023_s1 + $0x8b0] ss:$8 sps:$4 sm:$0xff]  }
  0xdc   :  { %2176 = vmatpush1.bf16.msra.mxu0 %v2962_v41  ;;  %2005 = vmatprep.subr.bf16.mxu1 %v2967_v42  ;;  %v3063_v41 = vld [vmem:[%s4023_s1 + $0x8c4] ss:$8 sps:$4 sm:$0xff]   ;;  %v3061_v42 = vld [vmem:[%s4023_s1 + $0x8c0] ss:$8 sps:$4 sm:$0xff]  }
  0xdd   :  { %2177 = vmatprep.subr.bf16.mxu0 %v2970_v43  ;;  %v3066_v43 = vld [vmem:[%s4023_s1 + $0x8d4] ss:$8 sps:$4 sm:$0xff]  }
  0xdf   :  { %2006 = vmatpush1.bf16.msra.mxu1 %v2965_v44  ;;  %v3064_v44 = vld [vmem:[%s4023_s1 + $0x8d0] ss:$8 sps:$4 sm:$0xff]  }
  0xe0   :  { %2178 = vmatpush1.bf16.msra.mxu0 %v2968_v45  ;;  %2007 = vmatprep.subr.bf16.mxu1 %v2973_v46  ;;  %v3069_v45 = vld [vmem:[%s4023_s1 + $0x8e4] ss:$8 sps:$4 sm:$0xff]   ;;  %v3067_v46 = vld [vmem:[%s4023_s1 + $0x8e0] ss:$8 sps:$4 sm:$0xff]  }
  0xe1   :  { %2179 = vmatprep.subr.bf16.mxu0 %v2976_v47  ;;  %v3072_v47 = vld [vmem:[%s4023_s1 + $0x8f4] ss:$8 sps:$4 sm:$0xff]  }
  0xe3   :  { %2008 = vmatpush1.bf16.msra.mxu1 %v2971_v48  ;;  %v3070_v48 = vld [vmem:[%s4023_s1 + $0x8f0] ss:$8 sps:$4 sm:$0xff]  }
  0xe4   :  { %2180 = vmatpush1.bf16.msra.mxu0 %v2974_v49  ;;  %2009 = vmatprep.subr.bf16.mxu1 %v2979_v50  ;;  %v3073_v49 = vld [vmem:[%s4024_s0 + $0x40] ss:$72 sps:$4 sm:$0xff]  }
  0xe5   :  { %2181 = vmatprep.subr.bf16.mxu0 %v2982_v51 }
  0xe7   :  { %2010 = vmatpush1.bf16.msra.mxu1 %v2977_v52 }
  0xe8   :  { %2182 = vmatpush1.bf16.msra.mxu0 %v2980_v53  ;;  %2011 = vmatprep.subr.bf16.mxu1 %v2985_v54  ;;  %v322_v54 = vlaneseq }
  0xe9   :  { %2183 = vmatprep.subr.bf16.mxu0 %v2988_v55 }
  0xea   :  { %v323_v55 = vshrl.u32 %v322_v54, 7 }
  0xeb   :  { %2012 = vmatpush1.bf16.msra.mxu1 %v2983_v56 }
  0xec   :  { %2184 = vmatpush1.bf16.msra.mxu0 %v2986_v57  ;;  %2013 = vmatprep.subr.bf16.mxu1 %v2991_v58  ;;  %v324_v56 = vsub.s32 0, %v323_v55  ;;  %v320_v57 = vld [vmem:[%s4025_s2] sm:$0x3]  ;;  %v328_v58 = vsub.s32 1, %v323_v55 }
  0xed   :  { %2185 = vmatprep.subr.bf16.mxu0 %v2994_v59 }
  0xee   :  { %v325_v59 = vrot.slane %v320_v57, %v324_v56 }
  0xef   :  { %2014 = vmatpush1.bf16.msra.mxu1 %v2989_v60  ;;  %v329_v60 = vrot.slane %v320_v57, %v328_v58 }
  0xf0   :  { %2186 = vmatpush1.bf16.msra.mxu0 %v2992_v61  ;;  %2015 = vmatprep.subr.bf16.mxu1 %v2997_v62 }
  0xf1   :  { %2187 = vmatprep.subr.bf16.mxu0 %v3000_v63 }
  0xf3   :  { %2016 = vmatpush1.bf16.msra.mxu1 %v2995_v0 }
  0xf4   :  { %2188 = vmatpush1.bf16.msra.mxu0 %v2998_v1  ;;  %2017 = vmatprep.subr.bf16.mxu1 %v3003_v2 }
  0xf5   :  { %2189 = vmatprep.subr.bf16.mxu0 %v3006_v3 }
  0xf7   :  { %2018 = vmatpush1.bf16.msra.mxu1 %v3001_v4 }
  0xf8   :  { %2190 = vmatpush1.bf16.msra.mxu0 %v3004_v5  ;;  %2019 = vmatprep.subr.bf16.mxu1 %v3009_v6 }
  0xf9   :  { %2191 = vmatprep.subr.bf16.mxu0 %v3012_v7 }
  0xfb   :  { %2020 = vmatpush1.bf16.msra.mxu1 %v3007_v8 }
  0xfc   :  { %2192 = vmatpush1.bf16.msra.mxu0 %v3010_v9  ;;  %2021 = vmatprep.subr.bf16.mxu1 %v3015_v10 }
  0xfd   :  { %2193 = vmatprep.subr.bf16.mxu0 %v3018_v11 }
  0xff   :  { %2022 = vmatpush1.bf16.msra.mxu1 %v3013_v12 }
 0x100   :  { %2194 = vmatpush1.bf16.msra.mxu0 %v3016_v13 }
 0x101   :  { %2206 = vmatprep.subr.bf16.mxu0 %v3027_v14 }
 0x102   :  { %2024 = vmatmul.mubr.bf16.vlgmr.msra.gmra.mrb[0].mxu1 %v3019_v15 }
 0x103   :  { %2196 = vmatmul.mubr.bf16.vlgmr.msra.gmra.mrb[0].mxu0 %v3022_v16 }
 0x104   :  { %2207 = vmatpush1.bf16.msra.mxu0 %v3025_v17  ;;  %2238 = vmatprep.mubr.bf16.mxu0 %v3075_v18 }
 0x105   :  { %2208 = vmatprep.subr.bf16.mxu0 %v3030_v19 }
 0x108   :  { %2209 = vmatpush1.bf16.msra.mxu0 %v3028_v20 }
 0x109   :  { %2210 = vmatprep.subr.bf16.mxu0 %v3033_v21 }
 0x10c   :  { %2211 = vmatpush1.bf16.msra.mxu0 %v3031_v22 }
 0x10d   :  { %2212 = vmatprep.subr.bf16.mxu0 %v3036_v23 }
 0x110   :  { %2213 = vmatpush1.bf16.msra.mxu0 %v3034_v24 }
 0x111   :  { %2214 = vmatprep.subr.bf16.mxu0 %v3039_v25 }
 0x114   :  { %2215 = vmatpush1.bf16.msra.mxu0 %v3037_v26 }
 0x115   :  { %2216 = vmatprep.subr.bf16.mxu0 %v3042_v27 }
 0x118   :  { %2217 = vmatpush1.bf16.msra.mxu0 %v3040_v28 }
 0x119   :  { %2218 = vmatprep.subr.bf16.mxu0 %v3045_v29 }
 0x11c   :  { %2219 = vmatpush1.bf16.msra.mxu0 %v3043_v30 }
 0x11d   :  { %2220 = vmatprep.subr.bf16.mxu0 %v3048_v31 }
 0x120   :  { %2221 = vmatpush1.bf16.msra.mxu0 %v3046_v32 }
 0x121   :  { %2222 = vmatprep.subr.bf16.mxu0 %v3051_v33 }
 0x124   :  { %2223 = vmatpush1.bf16.msra.mxu0 %v3049_v34 }
 0x125   :  { %2224 = vmatprep.subr.bf16.mxu0 %v3054_v35 }
 0x128   :  { %2225 = vmatpush1.bf16.msra.mxu0 %v3052_v36 }
 0x129   :  { %2226 = vmatprep.subr.bf16.mxu0 %v3057_v37 }
 0x12c   :  { %2227 = vmatpush1.bf16.msra.mxu0 %v3055_v38 }
 0x12d   :  { %2228 = vmatprep.subr.bf16.mxu0 %v3060_v39 }
 0x130   :  { %2229 = vmatpush1.bf16.msra.mxu0 %v3058_v40 }
 0x131   :  { %2230 = vmatprep.subr.bf16.mxu0 %v3063_v41 }
 0x134   :  { %2231 = vmatpush1.bf16.msra.mxu0 %v3061_v42 }
 0x135   :  { %2232 = vmatprep.subr.bf16.mxu0 %v3066_v43 }
 0x138   :  { %2233 = vmatpush1.bf16.msra.mxu0 %v3064_v44 }
 0x139   :  { %2234 = vmatprep.subr.bf16.mxu0 %v3069_v45 }
 0x13c   :  { %2235 = vmatpush1.bf16.msra.mxu0 %v3067_v46 }
 0x13d   :  { %2236 = vmatprep.subr.bf16.mxu0 %v3072_v47 }
 0x140   :  { %2237 = vmatpush1.bf16.msra.mxu0 %v3070_v48 }
 0x143   :  { %2239 = vmatmul.mubr.bf16.vlgmr.msra.gmra.mrb[0].mxu0 %v3073_v49 }
 0x1d5   :  { %v2025_v50 = vpop.f32.mrb[0].mxu1 }
 0x1d6   :  { %v2027_v51 = vpop.f32.mrb[1].mxu1  ;;  %v2581_v61 = vadd.f32 %v2025_v50, %v325_v59 }
 0x1d7   :  { %v2029_v52 = vpop.f32.mrb[2].mxu1  ;;  %v2583_v62 = vadd.f32 %v2027_v51, %v329_v60 }
 0x1d8   :  { %v2031_v53 = vpop.f32.mrb[3].mxu1  ;;  %v2585_v0 = vadd.f32 %v2029_v52, %v325_v59 }
 0x1d9   :  { %v2587_v3 = vadd.f32 %v2031_v53, %v329_v60 }
 0x216   :  { %v2240_v63 = vpop.f32.mrb[0].mxu0 }
 0x217   :  { %v2582_v1 = vadd.f32 %v2581_v61, %v2240_v63  ;;  %v2242_v2 = vpop.f32.mrb[1].mxu0 }
 0x218   :  { %v2584_v4 = vadd.f32 %v2583_v62, %v2242_v2  ;;  %v2244_v5 = vpop.f32.mrb[2].mxu0 }
 0x219   :  { %v2249_v6 = vmax.f32 %v2582_v1, 0.0  ;;  %v2586_v7 = vadd.f32 %v2585_v0, %v2244_v5  ;;  %v2246_v8 = vpop.f32.mrb[3].mxu0 }
 0x21a   :  { %v2250_v9 = vmax.f32 %v2584_v4, 0.0  ;;  %v2588_v10 = vadd.f32 %v2587_v3, %v2246_v8 }
 0x21b   :  { %v2251_v11 = vmax.f32 %v2586_v7, 0.0 }
 0x21c   :  { %v2579_v12 = vpack.c.bf16 %v2250_v9, %v2249_v6  ;;  %v2252_v13 = vmax.f32 %v2588_v10, 0.0 }
 0x21e   :  { %2265 = vst [vmem:[%s4026_s3] sm:$0xff] %v2579_v12  ;;  %v2580_v14 = vpack.c.bf16 %v2252_v13, %v2251_v11 }
 0x220   :  { %2266 = vst [vmem:[%s4026_s3 + $0x8] sm:$0xff] %v2580_v14 }

// kernel: low_level_feat_net.11
= control target key start
LH: loop header
LB: loop body
LE: loop exit
PB: predicated region body
PF: predicated region fallthrough
CT: control target
= control target key end

     0   :  { %s7796_s1 = inlined_call_operand.vmem [shape: bf16[2304,512], index: 1, kind: input, shape index: {}]   ;;  %s7797_s0 = inlined_call_operand.vmem [shape: bf16[16,2304], index: 0, kind: input, shape index: {}]   ;;  %s7798_s2 = inlined_call_operand.vmem [shape: f32[1,512], index: 2, kind: input, shape index: {}]   ;;  %s7799_s3 = inlined_call_operand.vmem [shape: bf16[16,512], index: 3, kind: output, shape index: {}]  }
   0x1   :  { %v5088_v0 = vld [vmem:[%s7796_s1 + $0x4] ss:$16 sps:$4 sm:$0xff]   ;;  %v5090_v1 = vld [vmem:[%s7796_s1 + $0xc] ss:$16 sps:$4 sm:$0xff]   ;;  %v5092_v2 = vld [vmem:[%s7796_s1] ss:$16 sps:$4 sm:$0xff]  }
   0x2   :  { %3600 = vmatprep.subr.bf16.mxu0 %v5088_v0  ;;  %v5093_v3 = vld [vmem:[%s7796_s1 + $0x8] ss:$16 sps:$4 sm:$0xff]   ;;  %3987 = vmatprep.subr.bf16.mxu1 %v5090_v1  ;;  %v5094_v4 = vld [vmem:[%s7796_s1 + $0x24] ss:$16 sps:$4 sm:$0xff]   ;;  %v5096_v5 = vld [vmem:[%s7796_s1 + $0x2c] ss:$16 sps:$4 sm:$0xff]  }
   0x3   :  { %3601 = vmatpush1.bf16.msra.mxu0 %v5092_v2  ;;  %3988 = vmatpush1.bf16.msra.mxu1 %v5093_v3  ;;  %v5098_v6 = vld [vmem:[%s7796_s1 + $0x20] ss:$16 sps:$4 sm:$0xff]   ;;  %v5099_v7 = vld [vmem:[%s7796_s1 + $0x28] ss:$16 sps:$4 sm:$0xff]   ;;  %v5100_v8 = vld [vmem:[%s7796_s1 + $0x44] ss:$16 sps:$4 sm:$0xff]  }
   0x4   :  { %3602 = vmatprep.subr.bf16.mxu0 %v5094_v4  ;;  %3989 = vmatprep.subr.bf16.mxu1 %v5096_v5  ;;  %v5102_v9 = vld [vmem:[%s7796_s1 + $0x4c] ss:$16 sps:$4 sm:$0xff]   ;;  %v5104_v10 = vld [vmem:[%s7796_s1 + $0x40] ss:$16 sps:$4 sm:$0xff]   ;;  %v5105_v11 = vld [vmem:[%s7796_s1 + $0x48] ss:$16 sps:$4 sm:$0xff]  }
   0x5   :  { %v5106_v12 = vld [vmem:[%s7796_s1 + $0x64] ss:$16 sps:$4 sm:$0xff]   ;;  %v5108_v13 = vld [vmem:[%s7796_s1 + $0x6c] ss:$16 sps:$4 sm:$0xff]   ;;  %v5110_v14 = vld [vmem:[%s7796_s1 + $0x60] ss:$16 sps:$4 sm:$0xff]  }
   0x6   :  { %v5111_v15 = vld [vmem:[%s7796_s1 + $0x68] ss:$16 sps:$4 sm:$0xff]   ;;  %v5112_v16 = vld [vmem:[%s7796_s1 + $0x84] ss:$16 sps:$4 sm:$0xff]   ;;  %v5114_v17 = vld [vmem:[%s7796_s1 + $0x8c] ss:$16 sps:$4 sm:$0xff]  }
   0x7   :  { %3603 = vmatpush1.bf16.msra.mxu0 %v5098_v6  ;;  %3990 = vmatpush1.bf16.msra.mxu1 %v5099_v7  ;;  %v5116_v18 = vld [vmem:[%s7796_s1 + $0x80] ss:$16 sps:$4 sm:$0xff]   ;;  %v5117_v19 = vld [vmem:[%s7796_s1 + $0x88] ss:$16 sps:$4 sm:$0xff]   ;;  %v5118_v20 = vld [vmem:[%s7796_s1 + $0xa4] ss:$16 sps:$4 sm:$0xff]  }
   0x8   :  { %3604 = vmatprep.subr.bf16.mxu0 %v5100_v8  ;;  %3991 = vmatprep.subr.bf16.mxu1 %v5102_v9  ;;  %v5120_v21 = vld [vmem:[%s7796_s1 + $0xac] ss:$16 sps:$4 sm:$0xff]   ;;  %v5122_v22 = vld [vmem:[%s7796_s1 + $0xa0] ss:$16 sps:$4 sm:$0xff]   ;;  %v5123_v23 = vld [vmem:[%s7796_s1 + $0xa8] ss:$16 sps:$4 sm:$0xff]  }
   0x9   :  { %v5124_v24 = vld [vmem:[%s7796_s1 + $0xc4] ss:$16 sps:$4 sm:$0xff]   ;;  %v5126_v25 = vld [vmem:[%s7796_s1 + $0xcc] ss:$16 sps:$4 sm:$0xff]   ;;  %v5128_v26 = vld [vmem:[%s7796_s1 + $0xc0] ss:$16 sps:$4 sm:$0xff]  }
   0xa   :  { %v5129_v27 = vld [vmem:[%s7796_s1 + $0xc8] ss:$16 sps:$4 sm:$0xff]   ;;  %v5130_v28 = vld [vmem:[%s7796_s1 + $0xe4] ss:$16 sps:$4 sm:$0xff]   ;;  %v5132_v29 = vld [vmem:[%s7796_s1 + $0xec] ss:$16 sps:$4 sm:$0xff]  }
   0xb   :  { %3605 = vmatpush1.bf16.msra.mxu0 %v5104_v10  ;;  %3992 = vmatpush1.bf16.msra.mxu1 %v5105_v11  ;;  %v5134_v30 = vld [vmem:[%s7796_s1 + $0xe0] ss:$16 sps:$4 sm:$0xff]   ;;  %v5135_v31 = vld [vmem:[%s7796_s1 + $0xe8] ss:$16 sps:$4 sm:$0xff]   ;;  %v5136_v32 = vld [vmem:[%s7796_s1 + $0x104] ss:$16 sps:$4 sm:$0xff]  }
   0xc   :  { %3606 = vmatprep.subr.bf16.mxu0 %v5106_v12  ;;  %3993 = vmatprep.subr.bf16.mxu1 %v5108_v13  ;;  %v5138_v33 = vld [vmem:[%s7796_s1 + $0x10c] ss:$16 sps:$4 sm:$0xff]   ;;  %v5140_v34 = vld [vmem:[%s7796_s1 + $0x100] ss:$16 sps:$4 sm:$0xff]   ;;  %v5141_v35 = vld [vmem:[%s7796_s1 + $0x108] ss:$16 sps:$4 sm:$0xff]  }
   0xd   :  { %v5142_v36 = vld [vmem:[%s7796_s1 + $0x124] ss:$16 sps:$4 sm:$0xff]   ;;  %v5144_v37 = vld [vmem:[%s7796_s1 + $0x12c] ss:$16 sps:$4 sm:$0xff]   ;;  %v5146_v38 = vld [vmem:[%s7796_s1 + $0x120] ss:$16 sps:$4 sm:$0xff]  }
   0xe   :  { %v5147_v39 = vld [vmem:[%s7796_s1 + $0x128] ss:$16 sps:$4 sm:$0xff]   ;;  %v5148_v40 = vld [vmem:[%s7796_s1 + $0x144] ss:$16 sps:$4 sm:$0xff]   ;;  %v5150_v41 = vld [vmem:[%s7796_s1 + $0x14c] ss:$16 sps:$4 sm:$0xff]  }
   0xf   :  { %3607 = vmatpush1.bf16.msra.mxu0 %v5110_v14  ;;  %3994 = vmatpush1.bf16.msra.mxu1 %v5111_v15  ;;  %v5152_v42 = vld [vmem:[%s7796_s1 + $0x140] ss:$16 sps:$4 sm:$0xff]   ;;  %v5153_v43 = vld [vmem:[%s7796_s1 + $0x148] ss:$16 sps:$4 sm:$0xff]   ;;  %v5154_v44 = vld [vmem:[%s7796_s1 + $0x164] ss:$16 sps:$4 sm:$0xff]  }
  0x10   :  { %3608 = vmatprep.subr.bf16.mxu0 %v5112_v16  ;;  %3995 = vmatprep.subr.bf16.mxu1 %v5114_v17  ;;  %v5156_v45 = vld [vmem:[%s7796_s1 + $0x16c] ss:$16 sps:$4 sm:$0xff]   ;;  %v5158_v46 = vld [vmem:[%s7796_s1 + $0x160] ss:$16 sps:$4 sm:$0xff]   ;;  %v5159_v47 = vld [vmem:[%s7796_s1 + $0x168] ss:$16 sps:$4 sm:$0xff]  }
  0x11   :  { %v5186_v48 = vld [vmem:[%s7797_s0 + $0x4] ss:$72 sps:$4 sm:$0xff]   ;;  %v5164_v51 = vld [vmem:[%s7796_s1 + $0x180] ss:$16 sps:$4 sm:$0xff]   ;;  %v5165_v52 = vld [vmem:[%s7796_s1 + $0x188] ss:$16 sps:$4 sm:$0xff]  }
  0x12   :  { %v5160_v49 = vld [vmem:[%s7796_s1 + $0x184] ss:$16 sps:$4 sm:$0xff]   ;;  %v5162_v50 = vld [vmem:[%s7796_s1 + $0x18c] ss:$16 sps:$4 sm:$0xff]   ;;  %3632 = vmatprep.mubr.bf16.mxu0 %v5186_v48  ;;  %4019 = vmatprep.mubr.bf16.mxu1 %v5186_v48  ;;  %v5170_v55 = vld [vmem:[%s7796_s1 + $0x1a0] ss:$16 sps:$4 sm:$0xff]  }
  0x13   :  { %3609 = vmatpush1.bf16.msra.mxu0 %v5116_v18  ;;  %3996 = vmatpush1.bf16.msra.mxu1 %v5117_v19  ;;  %v5166_v53 = vld [vmem:[%s7796_s1 + $0x1a4] ss:$16 sps:$4 sm:$0xff]   ;;  %v5168_v54 = vld [vmem:[%s7796_s1 + $0x1ac] ss:$16 sps:$4 sm:$0xff]   ;;  %v5171_v56 = vld [vmem:[%s7796_s1 + $0x1a8] ss:$16 sps:$4 sm:$0xff]  }
  0x14   :  { %3610 = vmatprep.subr.bf16.mxu0 %v5118_v20  ;;  %3997 = vmatprep.subr.bf16.mxu1 %v5120_v21  ;;  %v5172_v57 = vld [vmem:[%s7796_s1 + $0x1c4] ss:$16 sps:$4 sm:$0xff]   ;;  %v5174_v58 = vld [vmem:[%s7796_s1 + $0x1cc] ss:$16 sps:$4 sm:$0xff]   ;;  %v5176_v59 = vld [vmem:[%s7796_s1 + $0x1c0] ss:$16 sps:$4 sm:$0xff]  }
  0x15   :  { %v5177_v60 = vld [vmem:[%s7796_s1 + $0x1c8] ss:$16 sps:$4 sm:$0xff]   ;;  %v5178_v61 = vld [vmem:[%s7796_s1 + $0x1e4] ss:$16 sps:$4 sm:$0xff]   ;;  %v5180_v62 = vld [vmem:[%s7796_s1 + $0x1ec] ss:$16 sps:$4 sm:$0xff]  }
  0x16   :  { %v5182_v63 = vld [vmem:[%s7796_s1 + $0x1e0] ss:$16 sps:$4 sm:$0xff]   ;;  %v5183_v0 = vld [vmem:[%s7796_s1 + $0x1e8] ss:$16 sps:$4 sm:$0xff]   ;;  %v5189_v1 = vld [vmem:[%s7796_s1 + $0x204] ss:$16 sps:$4 sm:$0xff]  }
  0x17   :  { %3611 = vmatpush1.bf16.msra.mxu0 %v5122_v22  ;;  %3998 = vmatpush1.bf16.msra.mxu1 %v5123_v23  ;;  %v5192_v2 = vld [vmem:[%s7796_s1 + $0x20c] ss:$16 sps:$4 sm:$0xff]   ;;  %v5184_v3 = vld [vmem:[%s7797_s0] ss:$72 sps:$4 sm:$0xff]   ;;  %v5195_v6 = vld [vmem:[%s7796_s1 + $0x224] ss:$16 sps:$4 sm:$0xff]  }
  0x18   :  { %3612 = vmatprep.subr.bf16.mxu0 %v5124_v24  ;;  %3999 = vmatprep.subr.bf16.mxu1 %v5126_v25  ;;  %v5187_v4 = vld [vmem:[%s7796_s1 + $0x200] ss:$16 sps:$4 sm:$0xff]   ;;  %v5190_v5 = vld [vmem:[%s7796_s1 + $0x208] ss:$16 sps:$4 sm:$0xff]   ;;  %v5198_v7 = vld [vmem:[%s7796_s1 + $0x22c] ss:$16 sps:$4 sm:$0xff]  }
  0x19   :  { %v5193_v8 = vld [vmem:[%s7796_s1 + $0x220] ss:$16 sps:$4 sm:$0xff]   ;;  %v5196_v9 = vld [vmem:[%s7796_s1 + $0x228] ss:$16 sps:$4 sm:$0xff]   ;;  %v5201_v10 = vld [vmem:[%s7796_s1 + $0x244] ss:$16 sps:$4 sm:$0xff]  }
  0x1a   :  { %v5204_v11 = vld [vmem:[%s7796_s1 + $0x24c] ss:$16 sps:$4 sm:$0xff]   ;;  %v5199_v12 = vld [vmem:[%s7796_s1 + $0x240] ss:$16 sps:$4 sm:$0xff]   ;;  %v5202_v13 = vld [vmem:[%s7796_s1 + $0x248] ss:$16 sps:$4 sm:$0xff]  }
  0x1b   :  { %3613 = vmatpush1.bf16.msra.mxu0 %v5128_v26  ;;  %4000 = vmatpush1.bf16.msra.mxu1 %v5129_v27  ;;  %v5207_v14 = vld [vmem:[%s7796_s1 + $0x264] ss:$16 sps:$4 sm:$0xff]   ;;  %v5210_v15 = vld [vmem:[%s7796_s1 + $0x26c] ss:$16 sps:$4 sm:$0xff]   ;;  %v5205_v16 = vld [vmem:[%s7796_s1 + $0x260] ss:$16 sps:$4 sm:$0xff]  }
  0x1c   :  { %3614 = vmatprep.subr.bf16.mxu0 %v5130_v28  ;;  %4001 = vmatprep.subr.bf16.mxu1 %v5132_v29  ;;  %v5208_v17 = vld [vmem:[%s7796_s1 + $0x268] ss:$16 sps:$4 sm:$0xff]   ;;  %v5213_v18 = vld [vmem:[%s7796_s1 + $0x284] ss:$16 sps:$4 sm:$0xff]   ;;  %v5216_v19 = vld [vmem:[%s7796_s1 + $0x28c] ss:$16 sps:$4 sm:$0xff]  }
  0x1d   :  { %v5211_v20 = vld [vmem:[%s7796_s1 + $0x280] ss:$16 sps:$4 sm:$0xff]   ;;  %v5214_v21 = vld [vmem:[%s7796_s1 + $0x288] ss:$16 sps:$4 sm:$0xff]   ;;  %v5219_v22 = vld [vmem:[%s7796_s1 + $0x2a4] ss:$16 sps:$4 sm:$0xff]  }
  0x1e   :  { %v5222_v23 = vld [vmem:[%s7796_s1 + $0x2ac] ss:$16 sps:$4 sm:$0xff]   ;;  %v5217_v24 = vld [vmem:[%s7796_s1 + $0x2a0] ss:$16 sps:$4 sm:$0xff]   ;;  %v5220_v25 = vld [vmem:[%s7796_s1 + $0x2a8] ss:$16 sps:$4 sm:$0xff]  }
  0x1f   :  { %3615 = vmatpush1.bf16.msra.mxu0 %v5134_v30  ;;  %4002 = vmatpush1.bf16.msra.mxu1 %v5135_v31  ;;  %v5225_v26 = vld [vmem:[%s7796_s1 + $0x2c4] ss:$16 sps:$4 sm:$0xff]   ;;  %v5228_v27 = vld [vmem:[%s7796_s1 + $0x2cc] ss:$16 sps:$4 sm:$0xff]   ;;  %v5223_v28 = vld [vmem:[%s7796_s1 + $0x2c0] ss:$16 sps:$4 sm:$0xff]  }
  0x20   :  { %3616 = vmatprep.subr.bf16.mxu0 %v5136_v32  ;;  %4003 = vmatprep.subr.bf16.mxu1 %v5138_v33  ;;  %v5226_v29 = vld [vmem:[%s7796_s1 + $0x2c8] ss:$16 sps:$4 sm:$0xff]   ;;  %v5285_v30 = vld [vmem:[%s7797_s0 + $0xc] ss:$72 sps:$4 sm:$0xff]   ;;  %v5229_v33 = vld [vmem:[%s7796_s1 + $0x2e0] ss:$16 sps:$4 sm:$0xff]  }
  0x21   :  { %v5231_v31 = vld [vmem:[%s7796_s1 + $0x2e4] ss:$16 sps:$4 sm:$0xff]   ;;  %v5234_v32 = vld [vmem:[%s7796_s1 + $0x2ec] ss:$16 sps:$4 sm:$0xff]  }
  0x22   :  { %v5258_v48 = vld [vmem:[%s7796_s1 + $0x36c] ss:$16 sps:$4 sm:$0xff]  }
  0x23   :  { %3617 = vmatpush1.bf16.msra.mxu0 %v5140_v34  ;;  %4004 = vmatpush1.bf16.msra.mxu1 %v5141_v35  ;;  %v5232_v34 = vld [vmem:[%s7796_s1 + $0x2e8] ss:$16 sps:$4 sm:$0xff]   ;;  %v5237_v35 = vld [vmem:[%s7796_s1 + $0x304] ss:$16 sps:$4 sm:$0xff]  }
  0x24   :  { %3618 = vmatprep.subr.bf16.mxu0 %v5142_v36  ;;  %4005 = vmatprep.subr.bf16.mxu1 %v5144_v37  ;;  %v5240_v36 = vld [vmem:[%s7796_s1 + $0x30c] ss:$16 sps:$4 sm:$0xff]   ;;  %v5235_v37 = vld [vmem:[%s7796_s1 + $0x300] ss:$16 sps:$4 sm:$0xff]  }
  0x27   :  { %3619 = vmatpush1.bf16.msra.mxu0 %v5146_v38  ;;  %4006 = vmatpush1.bf16.msra.mxu1 %v5147_v39  ;;  %v5238_v38 = vld [vmem:[%s7796_s1 + $0x308] ss:$16 sps:$4 sm:$0xff]   ;;  %v5243_v39 = vld [vmem:[%s7796_s1 + $0x324] ss:$16 sps:$4 sm:$0xff]  }
  0x28   :  { %3620 = vmatprep.subr.bf16.mxu0 %v5148_v40  ;;  %4007 = vmatprep.subr.bf16.mxu1 %v5150_v41  ;;  %v5246_v40 = vld [vmem:[%s7796_s1 + $0x32c] ss:$16 sps:$4 sm:$0xff]   ;;  %v5241_v41 = vld [vmem:[%s7796_s1 + $0x320] ss:$16 sps:$4 sm:$0xff]  }
  0x2b   :  { %3621 = vmatpush1.bf16.msra.mxu0 %v5152_v42  ;;  %4008 = vmatpush1.bf16.msra.mxu1 %v5153_v43  ;;  %v5244_v42 = vld [vmem:[%s7796_s1 + $0x328] ss:$16 sps:$4 sm:$0xff]   ;;  %v5249_v43 = vld [vmem:[%s7796_s1 + $0x344] ss:$16 sps:$4 sm:$0xff]  }
  0x2c   :  { %3622 = vmatprep.subr.bf16.mxu0 %v5154_v44  ;;  %4009 = vmatprep.subr.bf16.mxu1 %v5156_v45  ;;  %v5252_v44 = vld [vmem:[%s7796_s1 + $0x34c] ss:$16 sps:$4 sm:$0xff]   ;;  %v5247_v45 = vld [vmem:[%s7796_s1 + $0x340] ss:$16 sps:$4 sm:$0xff]  }
  0x2f   :  { %3623 = vmatpush1.bf16.msra.mxu0 %v5158_v46  ;;  %4010 = vmatpush1.bf16.msra.mxu1 %v5159_v47  ;;  %v5250_v46 = vld [vmem:[%s7796_s1 + $0x348] ss:$16 sps:$4 sm:$0xff]   ;;  %v5255_v47 = vld [vmem:[%s7796_s1 + $0x364] ss:$16 sps:$4 sm:$0xff]  }
  0x30   :  { %3624 = vmatprep.subr.bf16.mxu0 %v5160_v49  ;;  %4011 = vmatprep.subr.bf16.mxu1 %v5162_v50  ;;  %v5253_v49 = vld [vmem:[%s7796_s1 + $0x360] ss:$16 sps:$4 sm:$0xff]   ;;  %v5256_v50 = vld [vmem:[%s7796_s1 + $0x368] ss:$16 sps:$4 sm:$0xff]  }
  0x33   :  { %3625 = vmatpush1.bf16.msra.mxu0 %v5164_v51  ;;  %4012 = vmatpush1.bf16.msra.mxu1 %v5165_v52  ;;  %v5261_v51 = vld [vmem:[%s7796_s1 + $0x384] ss:$16 sps:$4 sm:$0xff]   ;;  %v5264_v52 = vld [vmem:[%s7796_s1 + $0x38c] ss:$16 sps:$4 sm:$0xff]  }
  0x34   :  { %3626 = vmatprep.subr.bf16.mxu0 %v5166_v53  ;;  %4013 = vmatprep.subr.bf16.mxu1 %v5168_v54  ;;  %v5259_v53 = vld [vmem:[%s7796_s1 + $0x380] ss:$16 sps:$4 sm:$0xff]   ;;  %v5262_v54 = vld [vmem:[%s7796_s1 + $0x388] ss:$16 sps:$4 sm:$0xff]  }
  0x37   :  { %3627 = vmatpush1.bf16.msra.mxu0 %v5170_v55  ;;  %4014 = vmatpush1.bf16.msra.mxu1 %v5171_v56  ;;  %v5267_v55 = vld [vmem:[%s7796_s1 + $0x3a4] ss:$16 sps:$4 sm:$0xff]   ;;  %v5270_v56 = vld [vmem:[%s7796_s1 + $0x3ac] ss:$16 sps:$4 sm:$0xff]  }
  0x38   :  { %3628 = vmatprep.subr.bf16.mxu0 %v5172_v57  ;;  %4015 = vmatprep.subr.bf16.mxu1 %v5174_v58  ;;  %v5265_v57 = vld [vmem:[%s7796_s1 + $0x3a0] ss:$16 sps:$4 sm:$0xff]   ;;  %v5268_v58 = vld [vmem:[%s7796_s1 + $0x3a8] ss:$16 sps:$4 sm:$0xff]  }
  0x3b   :  { %3629 = vmatpush1.bf16.msra.mxu0 %v5176_v59  ;;  %4016 = vmatpush1.bf16.msra.mxu1 %v5177_v60  ;;  %v5273_v59 = vld [vmem:[%s7796_s1 + $0x3c4] ss:$16 sps:$4 sm:$0xff]   ;;  %v5276_v60 = vld [vmem:[%s7796_s1 + $0x3cc] ss:$16 sps:$4 sm:$0xff]  }
  0x3c   :  { %3630 = vmatprep.subr.bf16.mxu0 %v5178_v61  ;;  %4017 = vmatprep.subr.bf16.mxu1 %v5180_v62  ;;  %v5271_v61 = vld [vmem:[%s7796_s1 + $0x3c0] ss:$16 sps:$4 sm:$0xff]   ;;  %v5274_v62 = vld [vmem:[%s7796_s1 + $0x3c8] ss:$16 sps:$4 sm:$0xff]  }
  0x3f   :  { %3631 = vmatpush1.bf16.msra.mxu0 %v5182_v63  ;;  %4018 = vmatpush1.bf16.msra.mxu1 %v5183_v0  ;;  %v5279_v63 = vld [vmem:[%s7796_s1 + $0x3e4] ss:$16 sps:$4 sm:$0xff]   ;;  %v5282_v0 = vld [vmem:[%s7796_s1 + $0x3ec] ss:$16 sps:$4 sm:$0xff]  }
  0x40   :  { %3643 = vmatprep.subr.bf16.mxu0 %v5189_v1  ;;  %4030 = vmatprep.subr.bf16.mxu1 %v5192_v2  ;;  %v5277_v1 = vld [vmem:[%s7796_s1 + $0x3e0] ss:$16 sps:$4 sm:$0xff]   ;;  %v5280_v2 = vld [vmem:[%s7796_s1 + $0x3e8] ss:$16 sps:$4 sm:$0xff]  }
  0x42   :  { %3633 = vmatmul.mubr.bf16.vlgmr.msra.gmra.mrb[0].mxu0 %v5184_v3  ;;  %4020 = vmatmul.mubr.bf16.vlgmr.msra.gmra.mrb[0].mxu1 %v5184_v3  ;;  %v5288_v3 = vld [vmem:[%s7796_s1 + $0x404] ss:$16 sps:$4 sm:$0xff]  }
  0x43   :  { %3644 = vmatpush1.bf16.msra.mxu0 %v5187_v4  ;;  %4031 = vmatpush1.bf16.msra.mxu1 %v5190_v5  ;;  %v5291_v4 = vld [vmem:[%s7796_s1 + $0x40c] ss:$16 sps:$4 sm:$0xff]   ;;  %v5283_v5 = vld [vmem:[%s7797_s0 + $0x8] ss:$72 sps:$4 sm:$0xff]  }
  0x44   :  { %3645 = vmatprep.subr.bf16.mxu0 %v5195_v6  ;;  %4032 = vmatprep.subr.bf16.mxu1 %v5198_v7  ;;  %v5286_v6 = vld [vmem:[%s7796_s1 + $0x400] ss:$16 sps:$4 sm:$0xff]   ;;  %v5289_v7 = vld [vmem:[%s7796_s1 + $0x408] ss:$16 sps:$4 sm:$0xff]  }
  0x45   :  { %3675 = vmatprep.mubr.bf16.mxu0 %v5285_v30  ;;  %4062 = vmatprep.mubr.bf16.mxu1 %v5285_v30  ;;  %v5327_v30 = vld [vmem:[%s7796_s1 + $0x4cc] ss:$16 sps:$4 sm:$0xff]  }
  0x47   :  { %3646 = vmatpush1.bf16.msra.mxu0 %v5193_v8  ;;  %4033 = vmatpush1.bf16.msra.mxu1 %v5196_v9  ;;  %v5294_v8 = vld [vmem:[%s7796_s1 + $0x424] ss:$16 sps:$4 sm:$0xff]   ;;  %v5297_v9 = vld [vmem:[%s7796_s1 + $0x42c] ss:$16 sps:$4 sm:$0xff]  }
  0x48   :  { %3647 = vmatprep.subr.bf16.mxu0 %v5201_v10  ;;  %4034 = vmatprep.subr.bf16.mxu1 %v5204_v11  ;;  %v5292_v10 = vld [vmem:[%s7796_s1 + $0x420] ss:$16 sps:$4 sm:$0xff]   ;;  %v5295_v11 = vld [vmem:[%s7796_s1 + $0x428] ss:$16 sps:$4 sm:$0xff]  }
  0x4b   :  { %3648 = vmatpush1.bf16.msra.mxu0 %v5199_v12  ;;  %4035 = vmatpush1.bf16.msra.mxu1 %v5202_v13  ;;  %v5384_v12 = vld [vmem:[%s7797_s0 + $0x14] ss:$72 sps:$4 sm:$0xff]  }
  0x4c   :  { %3649 = vmatprep.subr.bf16.mxu0 %v5207_v14  ;;  %4036 = vmatprep.subr.bf16.mxu1 %v5210_v15  ;;  %v5300_v13 = vld [vmem:[%s7796_s1 + $0x444] ss:$16 sps:$4 sm:$0xff]   ;;  %v5303_v14 = vld [vmem:[%s7796_s1 + $0x44c] ss:$16 sps:$4 sm:$0xff]   ;;  %v5298_v15 = vld [vmem:[%s7796_s1 + $0x440] ss:$16 sps:$4 sm:$0xff]  }
  0x4f   :  { %3650 = vmatpush1.bf16.msra.mxu0 %v5205_v16  ;;  %4037 = vmatpush1.bf16.msra.mxu1 %v5208_v17  ;;  %v5301_v16 = vld [vmem:[%s7796_s1 + $0x448] ss:$16 sps:$4 sm:$0xff]   ;;  %v5306_v17 = vld [vmem:[%s7796_s1 + $0x464] ss:$16 sps:$4 sm:$0xff]  }
  0x50   :  { %3651 = vmatprep.subr.bf16.mxu0 %v5213_v18  ;;  %4038 = vmatprep.subr.bf16.mxu1 %v5216_v19  ;;  %v5309_v18 = vld [vmem:[%s7796_s1 + $0x46c] ss:$16 sps:$4 sm:$0xff]   ;;  %v5304_v19 = vld [vmem:[%s7796_s1 + $0x460] ss:$16 sps:$4 sm:$0xff]  }
  0x53   :  { %3652 = vmatpush1.bf16.msra.mxu0 %v5211_v20  ;;  %4039 = vmatpush1.bf16.msra.mxu1 %v5214_v21  ;;  %v5307_v20 = vld [vmem:[%s7796_s1 + $0x468] ss:$16 sps:$4 sm:$0xff]   ;;  %v5312_v21 = vld [vmem:[%s7796_s1 + $0x484] ss:$16 sps:$4 sm:$0xff]  }
  0x54   :  { %3653 = vmatprep.subr.bf16.mxu0 %v5219_v22  ;;  %4040 = vmatprep.subr.bf16.mxu1 %v5222_v23  ;;  %v5315_v22 = vld [vmem:[%s7796_s1 + $0x48c] ss:$16 sps:$4 sm:$0xff]   ;;  %v5310_v23 = vld [vmem:[%s7796_s1 + $0x480] ss:$16 sps:$4 sm:$0xff]  }
  0x57   :  { %3654 = vmatpush1.bf16.msra.mxu0 %v5217_v24  ;;  %4041 = vmatpush1.bf16.msra.mxu1 %v5220_v25  ;;  %v5313_v24 = vld [vmem:[%s7796_s1 + $0x488] ss:$16 sps:$4 sm:$0xff]   ;;  %v5318_v25 = vld [vmem:[%s7796_s1 + $0x4a4] ss:$16 sps:$4 sm:$0xff]  }
  0x58   :  { %3655 = vmatprep.subr.bf16.mxu0 %v5225_v26  ;;  %4042 = vmatprep.subr.bf16.mxu1 %v5228_v27  ;;  %v5321_v26 = vld [vmem:[%s7796_s1 + $0x4ac] ss:$16 sps:$4 sm:$0xff]   ;;  %v5316_v27 = vld [vmem:[%s7796_s1 + $0x4a0] ss:$16 sps:$4 sm:$0xff]  }
  0x5b   :  { %3656 = vmatpush1.bf16.msra.mxu0 %v5223_v28  ;;  %4043 = vmatpush1.bf16.msra.mxu1 %v5226_v29  ;;  %v5319_v28 = vld [vmem:[%s7796_s1 + $0x4a8] ss:$16 sps:$4 sm:$0xff]   ;;  %v5324_v29 = vld [vmem:[%s7796_s1 + $0x4c4] ss:$16 sps:$4 sm:$0xff]  }
  0x5c   :  { %3657 = vmatprep.subr.bf16.mxu0 %v5231_v31  ;;  %4044 = vmatprep.subr.bf16.mxu1 %v5234_v32  ;;  %v5322_v31 = vld [vmem:[%s7796_s1 + $0x4c0] ss:$16 sps:$4 sm:$0xff]   ;;  %v5325_v32 = vld [vmem:[%s7796_s1 + $0x4c8] ss:$16 sps:$4 sm:$0xff]  }
  0x5f   :  { %3658 = vmatpush1.bf16.msra.mxu0 %v5229_v33  ;;  %4045 = vmatpush1.bf16.msra.mxu1 %v5232_v34  ;;  %v5330_v33 = vld [vmem:[%s7796_s1 + $0x4e4] ss:$16 sps:$4 sm:$0xff]   ;;  %v5333_v34 = vld [vmem:[%s7796_s1 + $0x4ec] ss:$16 sps:$4 sm:$0xff]  }
  0x60   :  { %3659 = vmatprep.subr.bf16.mxu0 %v5237_v35  ;;  %4046 = vmatprep.subr.bf16.mxu1 %v5240_v36  ;;  %v5328_v35 = vld [vmem:[%s7796_s1 + $0x4e0] ss:$16 sps:$4 sm:$0xff]   ;;  %v5331_v36 = vld [vmem:[%s7796_s1 + $0x4e8] ss:$16 sps:$4 sm:$0xff]  }
  0x63   :  { %3660 = vmatpush1.bf16.msra.mxu0 %v5235_v37  ;;  %4047 = vmatpush1.bf16.msra.mxu1 %v5238_v38  ;;  %v5336_v37 = vld [vmem:[%s7796_s1 + $0x504] ss:$16 sps:$4 sm:$0xff]   ;;  %v5339_v38 = vld [vmem:[%s7796_s1 + $0x50c] ss:$16 sps:$4 sm:$0xff]  }
  0x64   :  { %3661 = vmatprep.subr.bf16.mxu0 %v5243_v39  ;;  %4048 = vmatprep.subr.bf16.mxu1 %v5246_v40  ;;  %v5334_v39 = vld [vmem:[%s7796_s1 + $0x500] ss:$16 sps:$4 sm:$0xff]   ;;  %v5337_v40 = vld [vmem:[%s7796_s1 + $0x508] ss:$16 sps:$4 sm:$0xff]  }
  0x67   :  { %3662 = vmatpush1.bf16.msra.mxu0 %v5241_v41  ;;  %4049 = vmatpush1.bf16.msra.mxu1 %v5244_v42  ;;  %v5342_v41 = vld [vmem:[%s7796_s1 + $0x524] ss:$16 sps:$4 sm:$0xff]   ;;  %v5345_v42 = vld [vmem:[%s7796_s1 + $0x52c] ss:$16 sps:$4 sm:$0xff]  }
  0x68   :  { %3663 = vmatprep.subr.bf16.mxu0 %v5249_v43  ;;  %4050 = vmatprep.subr.bf16.mxu1 %v5252_v44  ;;  %v5340_v43 = vld [vmem:[%s7796_s1 + $0x520] ss:$16 sps:$4 sm:$0xff]   ;;  %v5343_v44 = vld [vmem:[%s7796_s1 + $0x528] ss:$16 sps:$4 sm:$0xff]  }
  0x6b   :  { %3664 = vmatpush1.bf16.msra.mxu0 %v5247_v45  ;;  %4051 = vmatpush1.bf16.msra.mxu1 %v5250_v46  ;;  %v5348_v45 = vld [vmem:[%s7796_s1 + $0x544] ss:$16 sps:$4 sm:$0xff]   ;;  %v5351_v46 = vld [vmem:[%s7796_s1 + $0x54c] ss:$16 sps:$4 sm:$0xff]  }
  0x6c   :  { %3665 = vmatprep.subr.bf16.mxu0 %v5255_v47  ;;  %4052 = vmatprep.subr.bf16.mxu1 %v5258_v48  ;;  %v5346_v47 = vld [vmem:[%s7796_s1 + $0x540] ss:$16 sps:$4 sm:$0xff]   ;;  %v5349_v48 = vld [vmem:[%s7796_s1 + $0x548] ss:$16 sps:$4 sm:$0xff]  }
  0x6f   :  { %3666 = vmatpush1.bf16.msra.mxu0 %v5253_v49  ;;  %4053 = vmatpush1.bf16.msra.mxu1 %v5256_v50  ;;  %v5354_v49 = vld [vmem:[%s7796_s1 + $0x564] ss:$16 sps:$4 sm:$0xff]   ;;  %v5357_v50 = vld [vmem:[%s7796_s1 + $0x56c] ss:$16 sps:$4 sm:$0xff]  }
  0x70   :  { %3667 = vmatprep.subr.bf16.mxu0 %v5261_v51  ;;  %4054 = vmatprep.subr.bf16.mxu1 %v5264_v52  ;;  %v5352_v51 = vld [vmem:[%s7796_s1 + $0x560] ss:$16 sps:$4 sm:$0xff]   ;;  %v5355_v52 = vld [vmem:[%s7796_s1 + $0x568] ss:$16 sps:$4 sm:$0xff]  }
  0x73   :  { %3668 = vmatpush1.bf16.msra.mxu0 %v5259_v53  ;;  %4055 = vmatpush1.bf16.msra.mxu1 %v5262_v54  ;;  %v5360_v53 = vld [vmem:[%s7796_s1 + $0x584] ss:$16 sps:$4 sm:$0xff]   ;;  %v5363_v54 = vld [vmem:[%s7796_s1 + $0x58c] ss:$16 sps:$4 sm:$0xff]  }
  0x74   :  { %3669 = vmatprep.subr.bf16.mxu0 %v5267_v55  ;;  %4056 = vmatprep.subr.bf16.mxu1 %v5270_v56  ;;  %v5358_v55 = vld [vmem:[%s7796_s1 + $0x580] ss:$16 sps:$4 sm:$0xff]   ;;  %v5361_v56 = vld [vmem:[%s7796_s1 + $0x588] ss:$16 sps:$4 sm:$0xff]  }
  0x77   :  { %3670 = vmatpush1.bf16.msra.mxu0 %v5265_v57  ;;  %4057 = vmatpush1.bf16.msra.mxu1 %v5268_v58  ;;  %v5366_v57 = vld [vmem:[%s7796_s1 + $0x5a4] ss:$16 sps:$4 sm:$0xff]   ;;  %v5369_v58 = vld [vmem:[%s7796_s1 + $0x5ac] ss:$16 sps:$4 sm:$0xff]  }
  0x78   :  { %3671 = vmatprep.subr.bf16.mxu0 %v5273_v59  ;;  %4058 = vmatprep.subr.bf16.mxu1 %v5276_v60  ;;  %v5364_v59 = vld [vmem:[%s7796_s1 + $0x5a0] ss:$16 sps:$4 sm:$0xff]   ;;  %v5367_v60 = vld [vmem:[%s7796_s1 + $0x5a8] ss:$16 sps:$4 sm:$0xff]  }
  0x7b   :  { %3672 = vmatpush1.bf16.msra.mxu0 %v5271_v61  ;;  %4059 = vmatpush1.bf16.msra.mxu1 %v5274_v62  ;;  %v5372_v61 = vld [vmem:[%s7796_s1 + $0x5c4] ss:$16 sps:$4 sm:$0xff]   ;;  %v5375_v62 = vld [vmem:[%s7796_s1 + $0x5cc] ss:$16 sps:$4 sm:$0xff]  }
  0x7c   :  { %3673 = vmatprep.subr.bf16.mxu0 %v5279_v63  ;;  %4060 = vmatprep.subr.bf16.mxu1 %v5282_v0  ;;  %v5370_v63 = vld [vmem:[%s7796_s1 + $0x5c0] ss:$16 sps:$4 sm:$0xff]   ;;  %v5373_v0 = vld [vmem:[%s7796_s1 + $0x5c8] ss:$16 sps:$4 sm:$0xff]  }
  0x7f   :  { %3674 = vmatpush1.bf16.msra.mxu0 %v5277_v1  ;;  %4061 = vmatpush1.bf16.msra.mxu1 %v5280_v2  ;;  %v5378_v1 = vld [vmem:[%s7796_s1 + $0x5e4] ss:$16 sps:$4 sm:$0xff]   ;;  %v5381_v2 = vld [vmem:[%s7796_s1 + $0x5ec] ss:$16 sps:$4 sm:$0xff]  }
  0x80   :  { %3686 = vmatprep.subr.bf16.mxu0 %v5288_v3  ;;  %4073 = vmatprep.subr.bf16.mxu1 %v5291_v4  ;;  %v5376_v3 = vld [vmem:[%s7796_s1 + $0x5e0] ss:$16 sps:$4 sm:$0xff]   ;;  %v5379_v4 = vld [vmem:[%s7796_s1 + $0x5e8] ss:$16 sps:$4 sm:$0xff]  }
  0x82   :  { %3676 = vmatmul.mubr.bf16.vlgmr.msra.gmra.mrb[0].mxu0 %v5283_v5  ;;  %4063 = vmatmul.mubr.bf16.vlgmr.msra.gmra.mrb[0].mxu1 %v5283_v5  ;;  %v5387_v5 = vld [vmem:[%s7796_s1 + $0x604] ss:$16 sps:$4 sm:$0xff]  }
  0x83   :  { %3687 = vmatpush1.bf16.msra.mxu0 %v5286_v6  ;;  %4074 = vmatpush1.bf16.msra.mxu1 %v5289_v7  ;;  %v5390_v6 = vld [vmem:[%s7796_s1 + $0x60c] ss:$16 sps:$4 sm:$0xff]   ;;  %v5382_v7 = vld [vmem:[%s7797_s0 + $0x10] ss:$72 sps:$4 sm:$0xff]  }
  0x84   :  { %3688 = vmatprep.subr.bf16.mxu0 %v5294_v8  ;;  %4075 = vmatprep.subr.bf16.mxu1 %v5297_v9  ;;  %v5385_v8 = vld [vmem:[%s7796_s1 + $0x600] ss:$16 sps:$4 sm:$0xff]   ;;  %v5388_v9 = vld [vmem:[%s7796_s1 + $0x608] ss:$16 sps:$4 sm:$0xff]  }
  0x85   :  { %3718 = vmatprep.mubr.bf16.mxu0 %v5384_v12  ;;  %4105 = vmatprep.mubr.bf16.mxu1 %v5384_v12  ;;  %v5483_v12 = vld [vmem:[%s7797_s0 + $0x1c] ss:$72 sps:$4 sm:$0xff]  }
  0x87   :  { %3689 = vmatpush1.bf16.msra.mxu0 %v5292_v10  ;;  %4076 = vmatpush1.bf16.msra.mxu1 %v5295_v11  ;;  %v5393_v10 = vld [vmem:[%s7796_s1 + $0x624] ss:$16 sps:$4 sm:$0xff]   ;;  %v5396_v11 = vld [vmem:[%s7796_s1 + $0x62c] ss:$16 sps:$4 sm:$0xff]  }
  0x88   :  { %3690 = vmatprep.subr.bf16.mxu0 %v5300_v13  ;;  %4077 = vmatprep.subr.bf16.mxu1 %v5303_v14  ;;  %v5391_v13 = vld [vmem:[%s7796_s1 + $0x620] ss:$16 sps:$4 sm:$0xff]   ;;  %v5394_v14 = vld [vmem:[%s7796_s1 + $0x628] ss:$16 sps:$4 sm:$0xff]  }
  0x8b   :  { %3691 = vmatpush1.bf16.msra.mxu0 %v5298_v15  ;;  %4078 = vmatpush1.bf16.msra.mxu1 %v5301_v16  ;;  %v5399_v15 = vld [vmem:[%s7796_s1 + $0x644] ss:$16 sps:$4 sm:$0xff]   ;;  %v5402_v16 = vld [vmem:[%s7796_s1 + $0x64c] ss:$16 sps:$4 sm:$0xff]  }
  0x8c   :  { %3692 = vmatprep.subr.bf16.mxu0 %v5306_v17  ;;  %4079 = vmatprep.subr.bf16.mxu1 %v5309_v18  ;;  %v5397_v17 = vld [vmem:[%s7796_s1 + $0x640] ss:$16 sps:$4 sm:$0xff]   ;;  %v5400_v18 = vld [vmem:[%s7796_s1 + $0x648] ss:$16 sps:$4 sm:$0xff]  }
  0x8f   :  { %3693 = vmatpush1.bf16.msra.mxu0 %v5304_v19  ;;  %4080 = vmatpush1.bf16.msra.mxu1 %v5307_v20  ;;  %v5405_v19 = vld [vmem:[%s7796_s1 + $0x664] ss:$16 sps:$4 sm:$0xff]   ;;  %v5408_v20 = vld [vmem:[%s7796_s1 + $0x66c] ss:$16 sps:$4 sm:$0xff]  }
  0x90   :  { %3694 = vmatprep.subr.bf16.mxu0 %v5312_v21  ;;  %4081 = vmatprep.subr.bf16.mxu1 %v5315_v22  ;;  %v5403_v21 = vld [vmem:[%s7796_s1 + $0x660] ss:$16 sps:$4 sm:$0xff]   ;;  %v5406_v22 = vld [vmem:[%s7796_s1 + $0x668] ss:$16 sps:$4 sm:$0xff]  }
  0x93   :  { %3695 = vmatpush1.bf16.msra.mxu0 %v5310_v23  ;;  %4082 = vmatpush1.bf16.msra.mxu1 %v5313_v24  ;;  %v5411_v23 = vld [vmem:[%s7796_s1 + $0x684] ss:$16 sps:$4 sm:$0xff]   ;;  %v5414_v24 = vld [vmem:[%s7796_s1 + $0x68c] ss:$16 sps:$4 sm:$0xff]  }
  0x94   :  { %3696 = vmatprep.subr.bf16.mxu0 %v5318_v25  ;;  %4083 = vmatprep.subr.bf16.mxu1 %v5321_v26  ;;  %v5409_v25 = vld [vmem:[%s7796_s1 + $0x680] ss:$16 sps:$4 sm:$0xff]   ;;  %v5412_v26 = vld [vmem:[%s7796_s1 + $0x688] ss:$16 sps:$4 sm:$0xff]  }
  0x97   :  { %3697 = vmatpush1.bf16.msra.mxu0 %v5316_v27  ;;  %4084 = vmatpush1.bf16.msra.mxu1 %v5319_v28  ;;  %v5417_v27 = vld [vmem:[%s7796_s1 + $0x6a4] ss:$16 sps:$4 sm:$0xff]   ;;  %v5420_v28 = vld [vmem:[%s7796_s1 + $0x6ac] ss:$16 sps:$4 sm:$0xff]  }
  0x98   :  { %3698 = vmatprep.subr.bf16.mxu0 %v5324_v29  ;;  %4085 = vmatprep.subr.bf16.mxu1 %v5327_v30  ;;  %v5415_v29 = vld [vmem:[%s7796_s1 + $0x6a0] ss:$16 sps:$4 sm:$0xff]   ;;  %v5418_v30 = vld [vmem:[%s7796_s1 + $0x6a8] ss:$16 sps:$4 sm:$0xff]  }
  0x9b   :  { %3699 = vmatpush1.bf16.msra.mxu0 %v5322_v31  ;;  %4086 = vmatpush1.bf16.msra.mxu1 %v5325_v32  ;;  %v5423_v31 = vld [vmem:[%s7796_s1 + $0x6c4] ss:$16 sps:$4 sm:$0xff]   ;;  %v5426_v32 = vld [vmem:[%s7796_s1 + $0x6cc] ss:$16 sps:$4 sm:$0xff]  }
  0x9c   :  { %3700 = vmatprep.subr.bf16.mxu0 %v5330_v33  ;;  %4087 = vmatprep.subr.bf16.mxu1 %v5333_v34  ;;  %v5421_v33 = vld [vmem:[%s7796_s1 + $0x6c0] ss:$16 sps:$4 sm:$0xff]   ;;  %v5424_v34 = vld [vmem:[%s7796_s1 + $0x6c8] ss:$16 sps:$4 sm:$0xff]  }
  0x9f   :  { %3701 = vmatpush1.bf16.msra.mxu0 %v5328_v35  ;;  %4088 = vmatpush1.bf16.msra.mxu1 %v5331_v36  ;;  %v5429_v35 = vld [vmem:[%s7796_s1 + $0x6e4] ss:$16 sps:$4 sm:$0xff]   ;;  %v5432_v36 = vld [vmem:[%s7796_s1 + $0x6ec] ss:$16 sps:$4 sm:$0xff]  }
  0xa0   :  { %3702 = vmatprep.subr.bf16.mxu0 %v5336_v37  ;;  %4089 = vmatprep.subr.bf16.mxu1 %v5339_v38  ;;  %v5427_v37 = vld [vmem:[%s7796_s1 + $0x6e0] ss:$16 sps:$4 sm:$0xff]   ;;  %v5430_v38 = vld [vmem:[%s7796_s1 + $0x6e8] ss:$16 sps:$4 sm:$0xff]  }
  0xa3   :  { %3703 = vmatpush1.bf16.msra.mxu0 %v5334_v39  ;;  %4090 = vmatpush1.bf16.msra.mxu1 %v5337_v40  ;;  %v5435_v39 = vld [vmem:[%s7796_s1 + $0x704] ss:$16 sps:$4 sm:$0xff]   ;;  %v5438_v40 = vld [vmem:[%s7796_s1 + $0x70c] ss:$16 sps:$4 sm:$0xff]  }
  0xa4   :  { %3704 = vmatprep.subr.bf16.mxu0 %v5342_v41  ;;  %4091 = vmatprep.subr.bf16.mxu1 %v5345_v42  ;;  %v5433_v41 = vld [vmem:[%s7796_s1 + $0x700] ss:$16 sps:$4 sm:$0xff]   ;;  %v5436_v42 = vld [vmem:[%s7796_s1 + $0x708] ss:$16 sps:$4 sm:$0xff]  }
  0xa7   :  { %3705 = vmatpush1.bf16.msra.mxu0 %v5340_v43  ;;  %4092 = vmatpush1.bf16.msra.mxu1 %v5343_v44  ;;  %v5441_v43 = vld [vmem:[%s7796_s1 + $0x724] ss:$16 sps:$4 sm:$0xff]   ;;  %v5444_v44 = vld [vmem:[%s7796_s1 + $0x72c] ss:$16 sps:$4 sm:$0xff]  }
  0xa8   :  { %3706 = vmatprep.subr.bf16.mxu0 %v5348_v45  ;;  %4093 = vmatprep.subr.bf16.mxu1 %v5351_v46  ;;  %v5439_v45 = vld [vmem:[%s7796_s1 + $0x720] ss:$16 sps:$4 sm:$0xff]   ;;  %v5442_v46 = vld [vmem:[%s7796_s1 + $0x728] ss:$16 sps:$4 sm:$0xff]  }
  0xab   :  { %3707 = vmatpush1.bf16.msra.mxu0 %v5346_v47  ;;  %4094 = vmatpush1.bf16.msra.mxu1 %v5349_v48  ;;  %v5447_v47 = vld [vmem:[%s7796_s1 + $0x744] ss:$16 sps:$4 sm:$0xff]   ;;  %v5450_v48 = vld [vmem:[%s7796_s1 + $0x74c] ss:$16 sps:$4 sm:$0xff]  }
  0xac   :  { %3708 = vmatprep.subr.bf16.mxu0 %v5354_v49  ;;  %4095 = vmatprep.subr.bf16.mxu1 %v5357_v50  ;;  %v5445_v49 = vld [vmem:[%s7796_s1 + $0x740] ss:$16 sps:$4 sm:$0xff]   ;;  %v5448_v50 = vld [vmem:[%s7796_s1 + $0x748] ss:$16 sps:$4 sm:$0xff]  }
  0xaf   :  { %3709 = vmatpush1.bf16.msra.mxu0 %v5352_v51  ;;  %4096 = vmatpush1.bf16.msra.mxu1 %v5355_v52  ;;  %v5453_v51 = vld [vmem:[%s7796_s1 + $0x764] ss:$16 sps:$4 sm:$0xff]   ;;  %v5456_v52 = vld [vmem:[%s7796_s1 + $0x76c] ss:$16 sps:$4 sm:$0xff]  }
  0xb0   :  { %3710 = vmatprep.subr.bf16.mxu0 %v5360_v53  ;;  %4097 = vmatprep.subr.bf16.mxu1 %v5363_v54  ;;  %v5451_v53 = vld [vmem:[%s7796_s1 + $0x760] ss:$16 sps:$4 sm:$0xff]   ;;  %v5454_v54 = vld [vmem:[%s7796_s1 + $0x768] ss:$16 sps:$4 sm:$0xff]  }
  0xb3   :  { %3711 = vmatpush1.bf16.msra.mxu0 %v5358_v55  ;;  %4098 = vmatpush1.bf16.msra.mxu1 %v5361_v56  ;;  %v5459_v55 = vld [vmem:[%s7796_s1 + $0x784] ss:$16 sps:$4 sm:$0xff]   ;;  %v5462_v56 = vld [vmem:[%s7796_s1 + $0x78c] ss:$16 sps:$4 sm:$0xff]  }
  0xb4   :  { %3712 = vmatprep.subr.bf16.mxu0 %v5366_v57  ;;  %4099 = vmatprep.subr.bf16.mxu1 %v5369_v58  ;;  %v5457_v57 = vld [vmem:[%s7796_s1 + $0x780] ss:$16 sps:$4 sm:$0xff]   ;;  %v5460_v58 = vld [vmem:[%s7796_s1 + $0x788] ss:$16 sps:$4 sm:$0xff]  }
  0xb7   :  { %3713 = vmatpush1.bf16.msra.mxu0 %v5364_v59  ;;  %4100 = vmatpush1.bf16.msra.mxu1 %v5367_v60  ;;  %v5465_v59 = vld [vmem:[%s7796_s1 + $0x7a4] ss:$16 sps:$4 sm:$0xff]   ;;  %v5468_v60 = vld [vmem:[%s7796_s1 + $0x7ac] ss:$16 sps:$4 sm:$0xff]  }
  0xb8   :  { %3714 = vmatprep.subr.bf16.mxu0 %v5372_v61  ;;  %4101 = vmatprep.subr.bf16.mxu1 %v5375_v62  ;;  %v5463_v61 = vld [vmem:[%s7796_s1 + $0x7a0] ss:$16 sps:$4 sm:$0xff]   ;;  %v5466_v62 = vld [vmem:[%s7796_s1 + $0x7a8] ss:$16 sps:$4 sm:$0xff]  }
  0xbb   :  { %3715 = vmatpush1.bf16.msra.mxu0 %v5370_v63  ;;  %4102 = vmatpush1.bf16.msra.mxu1 %v5373_v0  ;;  %v5471_v63 = vld [vmem:[%s7796_s1 + $0x7c4] ss:$16 sps:$4 sm:$0xff]   ;;  %v5474_v0 = vld [vmem:[%s7796_s1 + $0x7cc] ss:$16 sps:$4 sm:$0xff]  }
  0xbc   :  { %3716 = vmatprep.subr.bf16.mxu0 %v5378_v1  ;;  %4103 = vmatprep.subr.bf16.mxu1 %v5381_v2  ;;  %v5469_v1 = vld [vmem:[%s7796_s1 + $0x7c0] ss:$16 sps:$4 sm:$0xff]   ;;  %v5472_v2 = vld [vmem:[%s7796_s1 + $0x7c8] ss:$16 sps:$4 sm:$0xff]  }
  0xbf   :  { %3717 = vmatpush1.bf16.msra.mxu0 %v5376_v3  ;;  %4104 = vmatpush1.bf16.msra.mxu1 %v5379_v4  ;;  %v5477_v3 = vld [vmem:[%s7796_s1 + $0x7e4] ss:$16 sps:$4 sm:$0xff]   ;;  %v5480_v4 = vld [vmem:[%s7796_s1 + $0x7ec] ss:$16 sps:$4 sm:$0xff]  }
  0xc0   :  { %3729 = vmatprep.subr.bf16.mxu0 %v5387_v5  ;;  %4116 = vmatprep.subr.bf16.mxu1 %v5390_v6  ;;  %v5475_v5 = vld [vmem:[%s7796_s1 + $0x7e0] ss:$16 sps:$4 sm:$0xff]   ;;  %v5478_v6 = vld [vmem:[%s7796_s1 + $0x7e8] ss:$16 sps:$4 sm:$0xff]  }
  0xc2   :  { %3719 = vmatmul.mubr.bf16.vlgmr.msra.gmra.mrb[0].mxu0 %v5382_v7  ;;  %4106 = vmatmul.mubr.bf16.vlgmr.msra.gmra.mrb[0].mxu1 %v5382_v7  ;;  %v5486_v7 = vld [vmem:[%s7796_s1 + $0x804] ss:$16 sps:$4 sm:$0xff]  }
  0xc3   :  { %3730 = vmatpush1.bf16.msra.mxu0 %v5385_v8  ;;  %4117 = vmatpush1.bf16.msra.mxu1 %v5388_v9  ;;  %v5489_v8 = vld [vmem:[%s7796_s1 + $0x80c] ss:$16 sps:$4 sm:$0xff]   ;;  %v5481_v9 = vld [vmem:[%s7797_s0 + $0x18] ss:$72 sps:$4 sm:$0xff]  }
  0xc4   :  { %3731 = vmatprep.subr.bf16.mxu0 %v5393_v10  ;;  %4118 = vmatprep.subr.bf16.mxu1 %v5396_v11  ;;  %v5484_v10 = vld [vmem:[%s7796_s1 + $0x800] ss:$16 sps:$4 sm:$0xff]   ;;  %v5487_v11 = vld [vmem:[%s7796_s1 + $0x808] ss:$16 sps:$4 sm:$0xff]  }
  0xc5   :  { %3761 = vmatprep.mubr.bf16.mxu0 %v5483_v12  ;;  %4148 = vmatprep.mubr.bf16.mxu1 %v5483_v12  ;;  %v5492_v12 = vld [vmem:[%s7796_s1 + $0x824] ss:$16 sps:$4 sm:$0xff]  }
  0xc7   :  { %3732 = vmatpush1.bf16.msra.mxu0 %v5391_v13  ;;  %4119 = vmatpush1.bf16.msra.mxu1 %v5394_v14  ;;  %v5495_v13 = vld [vmem:[%s7796_s1 + $0x82c] ss:$16 sps:$4 sm:$0xff]  }
  0xc8   :  { %3733 = vmatprep.subr.bf16.mxu0 %v5399_v15  ;;  %4120 = vmatprep.subr.bf16.mxu1 %v5402_v16  ;;  %v5582_v14 = vld [vmem:[%s7797_s0 + $0x24] ss:$72 sps:$4 sm:$0xff]   ;;  %v5490_v15 = vld [vmem:[%s7796_s1 + $0x820] ss:$16 sps:$4 sm:$0xff]   ;;  %v5493_v16 = vld [vmem:[%s7796_s1 + $0x828] ss:$16 sps:$4 sm:$0xff]  }
  0xcb   :  { %3734 = vmatpush1.bf16.msra.mxu0 %v5397_v17  ;;  %4121 = vmatpush1.bf16.msra.mxu1 %v5400_v18  ;;  %v5498_v17 = vld [vmem:[%s7796_s1 + $0x844] ss:$16 sps:$4 sm:$0xff]   ;;  %v5501_v18 = vld [vmem:[%s7796_s1 + $0x84c] ss:$16 sps:$4 sm:$0xff]  }
  0xcc   :  { %3735 = vmatprep.subr.bf16.mxu0 %v5405_v19  ;;  %4122 = vmatprep.subr.bf16.mxu1 %v5408_v20  ;;  %v5496_v19 = vld [vmem:[%s7796_s1 + $0x840] ss:$16 sps:$4 sm:$0xff]   ;;  %v5499_v20 = vld [vmem:[%s7796_s1 + $0x848] ss:$16 sps:$4 sm:$0xff]  }
  0xcf   :  { %3736 = vmatpush1.bf16.msra.mxu0 %v5403_v21  ;;  %4123 = vmatpush1.bf16.msra.mxu1 %v5406_v22  ;;  %v5504_v21 = vld [vmem:[%s7796_s1 + $0x864] ss:$16 sps:$4 sm:$0xff]   ;;  %v5507_v22 = vld [vmem:[%s7796_s1 + $0x86c] ss:$16 sps:$4 sm:$0xff]  }
  0xd0   :  { %3737 = vmatprep.subr.bf16.mxu0 %v5411_v23  ;;  %4124 = vmatprep.subr.bf16.mxu1 %v5414_v24  ;;  %v5502_v23 = vld [vmem:[%s7796_s1 + $0x860] ss:$16 sps:$4 sm:$0xff]   ;;  %v5505_v24 = vld [vmem:[%s7796_s1 + $0x868] ss:$16 sps:$4 sm:$0xff]  }
  0xd3   :  { %3738 = vmatpush1.bf16.msra.mxu0 %v5409_v25  ;;  %4125 = vmatpush1.bf16.msra.mxu1 %v5412_v26  ;;  %v5510_v25 = vld [vmem:[%s7796_s1 + $0x884] ss:$16 sps:$4 sm:$0xff]   ;;  %v5513_v26 = vld [vmem:[%s7796_s1 + $0x88c] ss:$16 sps:$4 sm:$0xff]  }
  0xd4   :  { %3739 = vmatprep.subr.bf16.mxu0 %v5417_v27  ;;  %4126 = vmatprep.subr.bf16.mxu1 %v5420_v28  ;;  %v5508_v27 = vld [vmem:[%s7796_s1 + $0x880] ss:$16 sps:$4 sm:$0xff]   ;;  %v5511_v28 = vld [vmem:[%s7796_s1 + $0x888] ss:$16 sps:$4 sm:$0xff]  }
  0xd7   :  { %3740 = vmatpush1.bf16.msra.mxu0 %v5415_v29  ;;  %4127 = vmatpush1.bf16.msra.mxu1 %v5418_v30  ;;  %v5516_v29 = vld [vmem:[%s7796_s1 + $0x8a4] ss:$16 sps:$4 sm:$0xff]   ;;  %v5519_v30 = vld [vmem:[%s7796_s1 + $0x8ac] ss:$16 sps:$4 sm:$0xff]  }
  0xd8   :  { %3741 = vmatprep.subr.bf16.mxu0 %v5423_v31  ;;  %4128 = vmatprep.subr.bf16.mxu1 %v5426_v32  ;;  %v5514_v31 = vld [vmem:[%s7796_s1 + $0x8a0] ss:$16 sps:$4 sm:$0xff]   ;;  %v5517_v32 = vld [vmem:[%s7796_s1 + $0x8a8] ss:$16 sps:$4 sm:$0xff]  }
  0xdb   :  { %3742 = vmatpush1.bf16.msra.mxu0 %v5421_v33  ;;  %4129 = vmatpush1.bf16.msra.mxu1 %v5424_v34  ;;  %v5522_v33 = vld [vmem:[%s7796_s1 + $0x8c4] ss:$16 sps:$4 sm:$0xff]   ;;  %v5525_v34 = vld [vmem:[%s7796_s1 + $0x8cc] ss:$16 sps:$4 sm:$0xff]  }
  0xdc   :  { %3743 = vmatprep.subr.bf16.mxu0 %v5429_v35  ;;  %4130 = vmatprep.subr.bf16.mxu1 %v5432_v36  ;;  %v5520_v35 = vld [vmem:[%s7796_s1 + $0x8c0] ss:$16 sps:$4 sm:$0xff]   ;;  %v5523_v36 = vld [vmem:[%s7796_s1 + $0x8c8] ss:$16 sps:$4 sm:$0xff]  }
  0xdf   :  { %3744 = vmatpush1.bf16.msra.mxu0 %v5427_v37  ;;  %4131 = vmatpush1.bf16.msra.mxu1 %v5430_v38  ;;  %v5528_v37 = vld [vmem:[%s7796_s1 + $0x8e4] ss:$16 sps:$4 sm:$0xff]   ;;  %v5531_v38 = vld [vmem:[%s7796_s1 + $0x8ec] ss:$16 sps:$4 sm:$0xff]  }
  0xe0   :  { %3745 = vmatprep.subr.bf16.mxu0 %v5435_v39  ;;  %4132 = vmatprep.subr.bf16.mxu1 %v5438_v40  ;;  %v5526_v39 = vld [vmem:[%s7796_s1 + $0x8e0] ss:$16 sps:$4 sm:$0xff]   ;;  %v5529_v40 = vld [vmem:[%s7796_s1 + $0x8e8] ss:$16 sps:$4 sm:$0xff]  }
  0xe3   :  { %3746 = vmatpush1.bf16.msra.mxu0 %v5433_v41  ;;  %4133 = vmatpush1.bf16.msra.mxu1 %v5436_v42  ;;  %v5534_v41 = vld [vmem:[%s7796_s1 + $0x904] ss:$16 sps:$4 sm:$0xff]   ;;  %v5537_v42 = vld [vmem:[%s7796_s1 + $0x90c] ss:$16 sps:$4 sm:$0xff]  }
  0xe4   :  { %3747 = vmatprep.subr.bf16.mxu0 %v5441_v43  ;;  %4134 = vmatprep.subr.bf16.mxu1 %v5444_v44  ;;  %v5532_v43 = vld [vmem:[%s7796_s1 + $0x900] ss:$16 sps:$4 sm:$0xff]   ;;  %v5535_v44 = vld [vmem:[%s7796_s1 + $0x908] ss:$16 sps:$4 sm:$0xff]  }
  0xe7   :  { %3748 = vmatpush1.bf16.msra.mxu0 %v5439_v45  ;;  %4135 = vmatpush1.bf16.msra.mxu1 %v5442_v46  ;;  %v5540_v45 = vld [vmem:[%s7796_s1 + $0x924] ss:$16 sps:$4 sm:$0xff]   ;;  %v5543_v46 = vld [vmem:[%s7796_s1 + $0x92c] ss:$16 sps:$4 sm:$0xff]  }
  0xe8   :  { %3749 = vmatprep.subr.bf16.mxu0 %v5447_v47  ;;  %4136 = vmatprep.subr.bf16.mxu1 %v5450_v48  ;;  %v5538_v47 = vld [vmem:[%s7796_s1 + $0x920] ss:$16 sps:$4 sm:$0xff]   ;;  %v5541_v48 = vld [vmem:[%s7796_s1 + $0x928] ss:$16 sps:$4 sm:$0xff]  }
  0xeb   :  { %3750 = vmatpush1.bf16.msra.mxu0 %v5445_v49  ;;  %4137 = vmatpush1.bf16.msra.mxu1 %v5448_v50  ;;  %v5546_v49 = vld [vmem:[%s7796_s1 + $0x944] ss:$16 sps:$4 sm:$0xff]   ;;  %v5549_v50 = vld [vmem:[%s7796_s1 + $0x94c] ss:$16 sps:$4 sm:$0xff]  }
  0xec   :  { %3751 = vmatprep.subr.bf16.mxu0 %v5453_v51  ;;  %4138 = vmatprep.subr.bf16.mxu1 %v5456_v52  ;;  %v5544_v51 = vld [vmem:[%s7796_s1 + $0x940] ss:$16 sps:$4 sm:$0xff]   ;;  %v5547_v52 = vld [vmem:[%s7796_s1 + $0x948] ss:$16 sps:$4 sm:$0xff]  }
  0xef   :  { %3752 = vmatpush1.bf16.msra.mxu0 %v5451_v53  ;;  %4139 = vmatpush1.bf16.msra.mxu1 %v5454_v54  ;;  %v5552_v53 = vld [vmem:[%s7796_s1 + $0x964] ss:$16 sps:$4 sm:$0xff]   ;;  %v5555_v54 = vld [vmem:[%s7796_s1 + $0x96c] ss:$16 sps:$4 sm:$0xff]  }
  0xf0   :  { %3753 = vmatprep.subr.bf16.mxu0 %v5459_v55  ;;  %4140 = vmatprep.subr.bf16.mxu1 %v5462_v56  ;;  %v5550_v55 = vld [vmem:[%s7796_s1 + $0x960] ss:$16 sps:$4 sm:$0xff]   ;;  %v5553_v56 = vld [vmem:[%s7796_s1 + $0x968] ss:$16 sps:$4 sm:$0xff]  }
  0xf3   :  { %3754 = vmatpush1.bf16.msra.mxu0 %v5457_v57  ;;  %4141 = vmatpush1.bf16.msra.mxu1 %v5460_v58  ;;  %v5558_v57 = vld [vmem:[%s7796_s1 + $0x984] ss:$16 sps:$4 sm:$0xff]   ;;  %v5561_v58 = vld [vmem:[%s7796_s1 + $0x98c] ss:$16 sps:$4 sm:$0xff]  }
  0xf4   :  { %3755 = vmatprep.subr.bf16.mxu0 %v5465_v59  ;;  %4142 = vmatprep.subr.bf16.mxu1 %v5468_v60  ;;  %v5556_v59 = vld [vmem:[%s7796_s1 + $0x980] ss:$16 sps:$4 sm:$0xff]   ;;  %v5559_v60 = vld [vmem:[%s7796_s1 + $0x988] ss:$16 sps:$4 sm:$0xff]  }
  0xf7   :  { %3756 = vmatpush1.bf16.msra.mxu0 %v5463_v61  ;;  %4143 = vmatpush1.bf16.msra.mxu1 %v5466_v62  ;;  %v5564_v61 = vld [vmem:[%s7796_s1 + $0x9a4] ss:$16 sps:$4 sm:$0xff]   ;;  %v5567_v62 = vld [vmem:[%s7796_s1 + $0x9ac] ss:$16 sps:$4 sm:$0xff]  }
  0xf8   :  { %3757 = vmatprep.subr.bf16.mxu0 %v5471_v63  ;;  %4144 = vmatprep.subr.bf16.mxu1 %v5474_v0  ;;  %v5562_v63 = vld [vmem:[%s7796_s1 + $0x9a0] ss:$16 sps:$4 sm:$0xff]   ;;  %v5565_v0 = vld [vmem:[%s7796_s1 + $0x9a8] ss:$16 sps:$4 sm:$0xff]  }
  0xfb   :  { %3758 = vmatpush1.bf16.msra.mxu0 %v5469_v1  ;;  %4145 = vmatpush1.bf16.msra.mxu1 %v5472_v2  ;;  %v5570_v1 = vld [vmem:[%s7796_s1 + $0x9c4] ss:$16 sps:$4 sm:$0xff]   ;;  %v5573_v2 = vld [vmem:[%s7796_s1 + $0x9cc] ss:$16 sps:$4 sm:$0xff]  }
  0xfc   :  { %3759 = vmatprep.subr.bf16.mxu0 %v5477_v3  ;;  %4146 = vmatprep.subr.bf16.mxu1 %v5480_v4  ;;  %v5568_v3 = vld [vmem:[%s7796_s1 + $0x9c0] ss:$16 sps:$4 sm:$0xff]   ;;  %v5571_v4 = vld [vmem:[%s7796_s1 + $0x9c8] ss:$16 sps:$4 sm:$0xff]  }
  0xff   :  { %3760 = vmatpush1.bf16.msra.mxu0 %v5475_v5  ;;  %4147 = vmatpush1.bf16.msra.mxu1 %v5478_v6  ;;  %v5576_v5 = vld [vmem:[%s7796_s1 + $0x9e4] ss:$16 sps:$4 sm:$0xff]   ;;  %v5579_v6 = vld [vmem:[%s7796_s1 + $0x9ec] ss:$16 sps:$4 sm:$0xff]  }
 0x100   :  { %3772 = vmatprep.subr.bf16.mxu0 %v5486_v7  ;;  %4159 = vmatprep.subr.bf16.mxu1 %v5489_v8  ;;  %v5574_v7 = vld [vmem:[%s7796_s1 + $0x9e0] ss:$16 sps:$4 sm:$0xff]   ;;  %v5577_v8 = vld [vmem:[%s7796_s1 + $0x9e8] ss:$16 sps:$4 sm:$0xff]  }
 0x102   :  { %3762 = vmatmul.mubr.bf16.vlgmr.msra.gmra.mrb[0].mxu0 %v5481_v9  ;;  %4149 = vmatmul.mubr.bf16.vlgmr.msra.gmra.mrb[0].mxu1 %v5481_v9  ;;  %v5580_v9 = vld [vmem:[%s7797_s0 + $0x20] ss:$72 sps:$4 sm:$0xff]  }
 0x103   :  { %3773 = vmatpush1.bf16.msra.mxu0 %v5484_v10  ;;  %4160 = vmatpush1.bf16.msra.mxu1 %v5487_v11  ;;  %v5585_v10 = vld [vmem:[%s7796_s1 + $0xa04] ss:$16 sps:$4 sm:$0xff]   ;;  %v5588_v11 = vld [vmem:[%s7796_s1 + $0xa0c] ss:$16 sps:$4 sm:$0xff]  }
 0x104   :  { %3774 = vmatprep.subr.bf16.mxu0 %v5492_v12  ;;  %4161 = vmatprep.subr.bf16.mxu1 %v5495_v13  ;;  %v5583_v12 = vld [vmem:[%s7796_s1 + $0xa00] ss:$16 sps:$4 sm:$0xff]   ;;  %v5586_v13 = vld [vmem:[%s7796_s1 + $0xa08] ss:$16 sps:$4 sm:$0xff]  }
 0x105   :  { %3804 = vmatprep.mubr.bf16.mxu0 %v5582_v14  ;;  %4191 = vmatprep.mubr.bf16.mxu1 %v5582_v14  ;;  %v5591_v14 = vld [vmem:[%s7796_s1 + $0xa24] ss:$16 sps:$4 sm:$0xff]  }
 0x107   :  { %3775 = vmatpush1.bf16.msra.mxu0 %v5490_v15  ;;  %4162 = vmatpush1.bf16.msra.mxu1 %v5493_v16  ;;  %v5594_v15 = vld [vmem:[%s7796_s1 + $0xa2c] ss:$16 sps:$4 sm:$0xff]  }
 0x108   :  { %3776 = vmatprep.subr.bf16.mxu0 %v5498_v17  ;;  %4163 = vmatprep.subr.bf16.mxu1 %v5501_v18  ;;  %v5681_v16 = vld [vmem:[%s7797_s0 + $0x2c] ss:$72 sps:$4 sm:$0xff]   ;;  %v5589_v17 = vld [vmem:[%s7796_s1 + $0xa20] ss:$16 sps:$4 sm:$0xff]   ;;  %v5592_v18 = vld [vmem:[%s7796_s1 + $0xa28] ss:$16 sps:$4 sm:$0xff]  }
 0x10b   :  { %3777 = vmatpush1.bf16.msra.mxu0 %v5496_v19  ;;  %4164 = vmatpush1.bf16.msra.mxu1 %v5499_v20  ;;  %v5597_v19 = vld [vmem:[%s7796_s1 + $0xa44] ss:$16 sps:$4 sm:$0xff]   ;;  %v5600_v20 = vld [vmem:[%s7796_s1 + $0xa4c] ss:$16 sps:$4 sm:$0xff]  }
 0x10c   :  { %3778 = vmatprep.subr.bf16.mxu0 %v5504_v21  ;;  %4165 = vmatprep.subr.bf16.mxu1 %v5507_v22  ;;  %v5595_v21 = vld [vmem:[%s7796_s1 + $0xa40] ss:$16 sps:$4 sm:$0xff]   ;;  %v5598_v22 = vld [vmem:[%s7796_s1 + $0xa48] ss:$16 sps:$4 sm:$0xff]  }
 0x10f   :  { %3779 = vmatpush1.bf16.msra.mxu0 %v5502_v23  ;;  %4166 = vmatpush1.bf16.msra.mxu1 %v5505_v24  ;;  %v5603_v23 = vld [vmem:[%s7796_s1 + $0xa64] ss:$16 sps:$4 sm:$0xff]   ;;  %v5606_v24 = vld [vmem:[%s7796_s1 + $0xa6c] ss:$16 sps:$4 sm:$0xff]  }
 0x110   :  { %3780 = vmatprep.subr.bf16.mxu0 %v5510_v25  ;;  %4167 = vmatprep.subr.bf16.mxu1 %v5513_v26  ;;  %v5601_v25 = vld [vmem:[%s7796_s1 + $0xa60] ss:$16 sps:$4 sm:$0xff]   ;;  %v5604_v26 = vld [vmem:[%s7796_s1 + $0xa68] ss:$16 sps:$4 sm:$0xff]  }
 0x113   :  { %3781 = vmatpush1.bf16.msra.mxu0 %v5508_v27  ;;  %4168 = vmatpush1.bf16.msra.mxu1 %v5511_v28  ;;  %v5609_v27 = vld [vmem:[%s7796_s1 + $0xa84] ss:$16 sps:$4 sm:$0xff]   ;;  %v5612_v28 = vld [vmem:[%s7796_s1 + $0xa8c] ss:$16 sps:$4 sm:$0xff]  }
 0x114   :  { %3782 = vmatprep.subr.bf16.mxu0 %v5516_v29  ;;  %4169 = vmatprep.subr.bf16.mxu1 %v5519_v30  ;;  %v5607_v29 = vld [vmem:[%s7796_s1 + $0xa80] ss:$16 sps:$4 sm:$0xff]   ;;  %v5610_v30 = vld [vmem:[%s7796_s1 + $0xa88] ss:$16 sps:$4 sm:$0xff]  }
 0x117   :  { %3783 = vmatpush1.bf16.msra.mxu0 %v5514_v31  ;;  %4170 = vmatpush1.bf16.msra.mxu1 %v5517_v32  ;;  %v5615_v31 = vld [vmem:[%s7796_s1 + $0xaa4] ss:$16 sps:$4 sm:$0xff]   ;;  %v5618_v32 = vld [vmem:[%s7796_s1 + $0xaac] ss:$16 sps:$4 sm:$0xff]  }
 0x118   :  { %3784 = vmatprep.subr.bf16.mxu0 %v5522_v33  ;;  %4171 = vmatprep.subr.bf16.mxu1 %v5525_v34  ;;  %v5613_v33 = vld [vmem:[%s7796_s1 + $0xaa0] ss:$16 sps:$4 sm:$0xff]   ;;  %v5616_v34 = vld [vmem:[%s7796_s1 + $0xaa8] ss:$16 sps:$4 sm:$0xff]  }
 0x11b   :  { %3785 = vmatpush1.bf16.msra.mxu0 %v5520_v35  ;;  %4172 = vmatpush1.bf16.msra.mxu1 %v5523_v36  ;;  %v5621_v35 = vld [vmem:[%s7796_s1 + $0xac4] ss:$16 sps:$4 sm:$0xff]   ;;  %v5624_v36 = vld [vmem:[%s7796_s1 + $0xacc] ss:$16 sps:$4 sm:$0xff]  }
 0x11c   :  { %3786 = vmatprep.subr.bf16.mxu0 %v5528_v37  ;;  %4173 = vmatprep.subr.bf16.mxu1 %v5531_v38  ;;  %v5619_v37 = vld [vmem:[%s7796_s1 + $0xac0] ss:$16 sps:$4 sm:$0xff]   ;;  %v5622_v38 = vld [vmem:[%s7796_s1 + $0xac8] ss:$16 sps:$4 sm:$0xff]  }
 0x11f   :  { %3787 = vmatpush1.bf16.msra.mxu0 %v5526_v39  ;;  %4174 = vmatpush1.bf16.msra.mxu1 %v5529_v40  ;;  %v5627_v39 = vld [vmem:[%s7796_s1 + $0xae4] ss:$16 sps:$4 sm:$0xff]   ;;  %v5630_v40 = vld [vmem:[%s7796_s1 + $0xaec] ss:$16 sps:$4 sm:$0xff]  }
 0x120   :  { %3788 = vmatprep.subr.bf16.mxu0 %v5534_v41  ;;  %4175 = vmatprep.subr.bf16.mxu1 %v5537_v42  ;;  %v5625_v41 = vld [vmem:[%s7796_s1 + $0xae0] ss:$16 sps:$4 sm:$0xff]   ;;  %v5628_v42 = vld [vmem:[%s7796_s1 + $0xae8] ss:$16 sps:$4 sm:$0xff]  }
 0x123   :  { %3789 = vmatpush1.bf16.msra.mxu0 %v5532_v43  ;;  %4176 = vmatpush1.bf16.msra.mxu1 %v5535_v44  ;;  %v5633_v43 = vld [vmem:[%s7796_s1 + $0xb04] ss:$16 sps:$4 sm:$0xff]   ;;  %v5636_v44 = vld [vmem:[%s7796_s1 + $0xb0c] ss:$16 sps:$4 sm:$0xff]  }
 0x124   :  { %3790 = vmatprep.subr.bf16.mxu0 %v5540_v45  ;;  %4177 = vmatprep.subr.bf16.mxu1 %v5543_v46  ;;  %v5631_v45 = vld [vmem:[%s7796_s1 + $0xb00] ss:$16 sps:$4 sm:$0xff]   ;;  %v5634_v46 = vld [vmem:[%s7796_s1 + $0xb08] ss:$16 sps:$4 sm:$0xff]  }
 0x127   :  { %3791 = vmatpush1.bf16.msra.mxu0 %v5538_v47  ;;  %4178 = vmatpush1.bf16.msra.mxu1 %v5541_v48  ;;  %v5639_v47 = vld [vmem:[%s7796_s1 + $0xb24] ss:$16 sps:$4 sm:$0xff]   ;;  %v5642_v48 = vld [vmem:[%s7796_s1 + $0xb2c] ss:$16 sps:$4 sm:$0xff]  }
 0x128   :  { %3792 = vmatprep.subr.bf16.mxu0 %v5546_v49  ;;  %4179 = vmatprep.subr.bf16.mxu1 %v5549_v50  ;;  %v5637_v49 = vld [vmem:[%s7796_s1 + $0xb20] ss:$16 sps:$4 sm:$0xff]   ;;  %v5640_v50 = vld [vmem:[%s7796_s1 + $0xb28] ss:$16 sps:$4 sm:$0xff]  }
 0x12b   :  { %3793 = vmatpush1.bf16.msra.mxu0 %v5544_v51  ;;  %4180 = vmatpush1.bf16.msra.mxu1 %v5547_v52  ;;  %v5645_v51 = vld [vmem:[%s7796_s1 + $0xb44] ss:$16 sps:$4 sm:$0xff]   ;;  %v5648_v52 = vld [vmem:[%s7796_s1 + $0xb4c] ss:$16 sps:$4 sm:$0xff]  }
 0x12c   :  { %3794 = vmatprep.subr.bf16.mxu0 %v5552_v53  ;;  %4181 = vmatprep.subr.bf16.mxu1 %v5555_v54  ;;  %v5643_v53 = vld [vmem:[%s7796_s1 + $0xb40] ss:$16 sps:$4 sm:$0xff]   ;;  %v5646_v54 = vld [vmem:[%s7796_s1 + $0xb48] ss:$16 sps:$4 sm:$0xff]  }
 0x12f   :  { %3795 = vmatpush1.bf16.msra.mxu0 %v5550_v55  ;;  %4182 = vmatpush1.bf16.msra.mxu1 %v5553_v56  ;;  %v5651_v55 = vld [vmem:[%s7796_s1 + $0xb64] ss:$16 sps:$4 sm:$0xff]   ;;  %v5654_v56 = vld [vmem:[%s7796_s1 + $0xb6c] ss:$16 sps:$4 sm:$0xff]  }
 0x130   :  { %3796 = vmatprep.subr.bf16.mxu0 %v5558_v57  ;;  %4183 = vmatprep.subr.bf16.mxu1 %v5561_v58  ;;  %v5649_v57 = vld [vmem:[%s7796_s1 + $0xb60] ss:$16 sps:$4 sm:$0xff]   ;;  %v5652_v58 = vld [vmem:[%s7796_s1 + $0xb68] ss:$16 sps:$4 sm:$0xff]  }
 0x133   :  { %3797 = vmatpush1.bf16.msra.mxu0 %v5556_v59  ;;  %4184 = vmatpush1.bf16.msra.mxu1 %v5559_v60  ;;  %v5657_v59 = vld [vmem:[%s7796_s1 + $0xb84] ss:$16 sps:$4 sm:$0xff]   ;;  %v5660_v60 = vld [vmem:[%s7796_s1 + $0xb8c] ss:$16 sps:$4 sm:$0xff]  }
 0x134   :  { %3798 = vmatprep.subr.bf16.mxu0 %v5564_v61  ;;  %4185 = vmatprep.subr.bf16.mxu1 %v5567_v62  ;;  %v5655_v61 = vld [vmem:[%s7796_s1 + $0xb80] ss:$16 sps:$4 sm:$0xff]   ;;  %v5658_v62 = vld [vmem:[%s7796_s1 + $0xb88] ss:$16 sps:$4 sm:$0xff]  }
 0x137   :  { %3799 = vmatpush1.bf16.msra.mxu0 %v5562_v63  ;;  %4186 = vmatpush1.bf16.msra.mxu1 %v5565_v0  ;;  %v5663_v63 = vld [vmem:[%s7796_s1 + $0xba4] ss:$16 sps:$4 sm:$0xff]   ;;  %v5666_v0 = vld [vmem:[%s7796_s1 + $0xbac] ss:$16 sps:$4 sm:$0xff]  }
 0x138   :  { %3800 = vmatprep.subr.bf16.mxu0 %v5570_v1  ;;  %4187 = vmatprep.subr.bf16.mxu1 %v5573_v2  ;;  %v5661_v1 = vld [vmem:[%s7796_s1 + $0xba0] ss:$16 sps:$4 sm:$0xff]   ;;  %v5664_v2 = vld [vmem:[%s7796_s1 + $0xba8] ss:$16 sps:$4 sm:$0xff]  }
 0x13b   :  { %3801 = vmatpush1.bf16.msra.mxu0 %v5568_v3  ;;  %4188 = vmatpush1.bf16.msra.mxu1 %v5571_v4  ;;  %v5669_v3 = vld [vmem:[%s7796_s1 + $0xbc4] ss:$16 sps:$4 sm:$0xff]   ;;  %v5672_v4 = vld [vmem:[%s7796_s1 + $0xbcc] ss:$16 sps:$4 sm:$0xff]  }
 0x13c   :  { %3802 = vmatprep.subr.bf16.mxu0 %v5576_v5  ;;  %4189 = vmatprep.subr.bf16.mxu1 %v5579_v6  ;;  %v5667_v5 = vld [vmem:[%s7796_s1 + $0xbc0] ss:$16 sps:$4 sm:$0xff]   ;;  %v5670_v6 = vld [vmem:[%s7796_s1 + $0xbc8] ss:$16 sps:$4 sm:$0xff]  }
 0x13f   :  { %3803 = vmatpush1.bf16.msra.mxu0 %v5574_v7  ;;  %4190 = vmatpush1.bf16.msra.mxu1 %v5577_v8  ;;  %v5675_v7 = vld [vmem:[%s7796_s1 + $0xbe4] ss:$16 sps:$4 sm:$0xff]   ;;  %v5678_v8 = vld [vmem:[%s7796_s1 + $0xbec] ss:$16 sps:$4 sm:$0xff]  }
 0x140   :  { %3815 = vmatprep.subr.bf16.mxu0 %v5585_v10  ;;  %4202 = vmatprep.subr.bf16.mxu1 %v5588_v11  ;;  %v5676_v10 = vld [vmem:[%s7796_s1 + $0xbe8] ss:$16 sps:$4 sm:$0xff]   ;;  %v5684_v11 = vld [vmem:[%s7796_s1 + $0xc04] ss:$16 sps:$4 sm:$0xff]  }
 0x142   :  { %3805 = vmatmul.mubr.bf16.vlgmr.msra.gmra.mrb[0].mxu0 %v5580_v9  ;;  %4192 = vmatmul.mubr.bf16.vlgmr.msra.gmra.mrb[0].mxu1 %v5580_v9  ;;  %v5673_v9 = vld [vmem:[%s7796_s1 + $0xbe0] ss:$16 sps:$4 sm:$0xff]  }
 0x143   :  { %3816 = vmatpush1.bf16.msra.mxu0 %v5583_v12  ;;  %4203 = vmatpush1.bf16.msra.mxu1 %v5586_v13  ;;  %v5687_v12 = vld [vmem:[%s7796_s1 + $0xc0c] ss:$16 sps:$4 sm:$0xff]   ;;  %v5679_v13 = vld [vmem:[%s7797_s0 + $0x28] ss:$72 sps:$4 sm:$0xff]  }
 0x144   :  { %3817 = vmatprep.subr.bf16.mxu0 %v5591_v14  ;;  %4204 = vmatprep.subr.bf16.mxu1 %v5594_v15  ;;  %v5682_v14 = vld [vmem:[%s7796_s1 + $0xc00] ss:$16 sps:$4 sm:$0xff]   ;;  %v5685_v15 = vld [vmem:[%s7796_s1 + $0xc08] ss:$16 sps:$4 sm:$0xff]  }
 0x145   :  { %3847 = vmatprep.mubr.bf16.mxu0 %v5681_v16  ;;  %4234 = vmatprep.mubr.bf16.mxu1 %v5681_v16  ;;  %v5690_v16 = vld [vmem:[%s7796_s1 + $0xc24] ss:$16 sps:$4 sm:$0xff]  }
 0x147   :  { %3818 = vmatpush1.bf16.msra.mxu0 %v5589_v17  ;;  %4205 = vmatpush1.bf16.msra.mxu1 %v5592_v18  ;;  %v5693_v17 = vld [vmem:[%s7796_s1 + $0xc2c] ss:$16 sps:$4 sm:$0xff]  }
 0x148   :  { %3819 = vmatprep.subr.bf16.mxu0 %v5597_v19  ;;  %4206 = vmatprep.subr.bf16.mxu1 %v5600_v20  ;;  %v5780_v18 = vld [vmem:[%s7797_s0 + $0x34] ss:$72 sps:$4 sm:$0xff]   ;;  %v5688_v19 = vld [vmem:[%s7796_s1 + $0xc20] ss:$16 sps:$4 sm:$0xff]   ;;  %v5691_v20 = vld [vmem:[%s7796_s1 + $0xc28] ss:$16 sps:$4 sm:$0xff]  }
 0x14b   :  { %3820 = vmatpush1.bf16.msra.mxu0 %v5595_v21  ;;  %4207 = vmatpush1.bf16.msra.mxu1 %v5598_v22  ;;  %v5696_v21 = vld [vmem:[%s7796_s1 + $0xc44] ss:$16 sps:$4 sm:$0xff]   ;;  %v5699_v22 = vld [vmem:[%s7796_s1 + $0xc4c] ss:$16 sps:$4 sm:$0xff]  }
 0x14c   :  { %3821 = vmatprep.subr.bf16.mxu0 %v5603_v23  ;;  %4208 = vmatprep.subr.bf16.mxu1 %v5606_v24  ;;  %v5694_v23 = vld [vmem:[%s7796_s1 + $0xc40] ss:$16 sps:$4 sm:$0xff]   ;;  %v5697_v24 = vld [vmem:[%s7796_s1 + $0xc48] ss:$16 sps:$4 sm:$0xff]  }
 0x14f   :  { %3822 = vmatpush1.bf16.msra.mxu0 %v5601_v25  ;;  %4209 = vmatpush1.bf16.msra.mxu1 %v5604_v26  ;;  %v5702_v25 = vld [vmem:[%s7796_s1 + $0xc64] ss:$16 sps:$4 sm:$0xff]   ;;  %v5705_v26 = vld [vmem:[%s7796_s1 + $0xc6c] ss:$16 sps:$4 sm:$0xff]  }
 0x150   :  { %3823 = vmatprep.subr.bf16.mxu0 %v5609_v27  ;;  %4210 = vmatprep.subr.bf16.mxu1 %v5612_v28  ;;  %v5700_v27 = vld [vmem:[%s7796_s1 + $0xc60] ss:$16 sps:$4 sm:$0xff]   ;;  %v5703_v28 = vld [vmem:[%s7796_s1 + $0xc68] ss:$16 sps:$4 sm:$0xff]  }
 0x153   :  { %3824 = vmatpush1.bf16.msra.mxu0 %v5607_v29  ;;  %4211 = vmatpush1.bf16.msra.mxu1 %v5610_v30  ;;  %v5708_v29 = vld [vmem:[%s7796_s1 + $0xc84] ss:$16 sps:$4 sm:$0xff]   ;;  %v5711_v30 = vld [vmem:[%s7796_s1 + $0xc8c] ss:$16 sps:$4 sm:$0xff]  }
 0x154   :  { %3825 = vmatprep.subr.bf16.mxu0 %v5615_v31  ;;  %4212 = vmatprep.subr.bf16.mxu1 %v5618_v32  ;;  %v5706_v31 = vld [vmem:[%s7796_s1 + $0xc80] ss:$16 sps:$4 sm:$0xff]   ;;  %v5709_v32 = vld [vmem:[%s7796_s1 + $0xc88] ss:$16 sps:$4 sm:$0xff]  }
 0x157   :  { %3826 = vmatpush1.bf16.msra.mxu0 %v5613_v33  ;;  %4213 = vmatpush1.bf16.msra.mxu1 %v5616_v34  ;;  %v5714_v33 = vld [vmem:[%s7796_s1 + $0xca4] ss:$16 sps:$4 sm:$0xff]   ;;  %v5717_v34 = vld [vmem:[%s7796_s1 + $0xcac] ss:$16 sps:$4 sm:$0xff]  }
 0x158   :  { %3827 = vmatprep.subr.bf16.mxu0 %v5621_v35  ;;  %4214 = vmatprep.subr.bf16.mxu1 %v5624_v36  ;;  %v5712_v35 = vld [vmem:[%s7796_s1 + $0xca0] ss:$16 sps:$4 sm:$0xff]   ;;  %v5715_v36 = vld [vmem:[%s7796_s1 + $0xca8] ss:$16 sps:$4 sm:$0xff]  }
 0x15b   :  { %3828 = vmatpush1.bf16.msra.mxu0 %v5619_v37  ;;  %4215 = vmatpush1.bf16.msra.mxu1 %v5622_v38  ;;  %v5720_v37 = vld [vmem:[%s7796_s1 + $0xcc4] ss:$16 sps:$4 sm:$0xff]   ;;  %v5723_v38 = vld [vmem:[%s7796_s1 + $0xccc] ss:$16 sps:$4 sm:$0xff]  }
 0x15c   :  { %3829 = vmatprep.subr.bf16.mxu0 %v5627_v39  ;;  %4216 = vmatprep.subr.bf16.mxu1 %v5630_v40  ;;  %v5718_v39 = vld [vmem:[%s7796_s1 + $0xcc0] ss:$16 sps:$4 sm:$0xff]   ;;  %v5721_v40 = vld [vmem:[%s7796_s1 + $0xcc8] ss:$16 sps:$4 sm:$0xff]  }
 0x15f   :  { %3830 = vmatpush1.bf16.msra.mxu0 %v5625_v41  ;;  %4217 = vmatpush1.bf16.msra.mxu1 %v5628_v42  ;;  %v5726_v41 = vld [vmem:[%s7796_s1 + $0xce4] ss:$16 sps:$4 sm:$0xff]   ;;  %v5729_v42 = vld [vmem:[%s7796_s1 + $0xcec] ss:$16 sps:$4 sm:$0xff]  }
 0x160   :  { %3831 = vmatprep.subr.bf16.mxu0 %v5633_v43  ;;  %4218 = vmatprep.subr.bf16.mxu1 %v5636_v44  ;;  %v5724_v43 = vld [vmem:[%s7796_s1 + $0xce0] ss:$16 sps:$4 sm:$0xff]   ;;  %v5727_v44 = vld [vmem:[%s7796_s1 + $0xce8] ss:$16 sps:$4 sm:$0xff]  }
 0x163   :  { %3832 = vmatpush1.bf16.msra.mxu0 %v5631_v45  ;;  %4219 = vmatpush1.bf16.msra.mxu1 %v5634_v46  ;;  %v5732_v45 = vld [vmem:[%s7796_s1 + $0xd04] ss:$16 sps:$4 sm:$0xff]   ;;  %v5735_v46 = vld [vmem:[%s7796_s1 + $0xd0c] ss:$16 sps:$4 sm:$0xff]  }
 0x164   :  { %3833 = vmatprep.subr.bf16.mxu0 %v5639_v47  ;;  %4220 = vmatprep.subr.bf16.mxu1 %v5642_v48  ;;  %v5730_v47 = vld [vmem:[%s7796_s1 + $0xd00] ss:$16 sps:$4 sm:$0xff]   ;;  %v5733_v48 = vld [vmem:[%s7796_s1 + $0xd08] ss:$16 sps:$4 sm:$0xff]  }
 0x167   :  { %3834 = vmatpush1.bf16.msra.mxu0 %v5637_v49  ;;  %4221 = vmatpush1.bf16.msra.mxu1 %v5640_v50  ;;  %v5738_v49 = vld [vmem:[%s7796_s1 + $0xd24] ss:$16 sps:$4 sm:$0xff]   ;;  %v5741_v50 = vld [vmem:[%s7796_s1 + $0xd2c] ss:$16 sps:$4 sm:$0xff]  }
 0x168   :  { %3835 = vmatprep.subr.bf16.mxu0 %v5645_v51  ;;  %4222 = vmatprep.subr.bf16.mxu1 %v5648_v52  ;;  %v5736_v51 = vld [vmem:[%s7796_s1 + $0xd20] ss:$16 sps:$4 sm:$0xff]   ;;  %v5739_v52 = vld [vmem:[%s7796_s1 + $0xd28] ss:$16 sps:$4 sm:$0xff]  }
 0x16b   :  { %3836 = vmatpush1.bf16.msra.mxu0 %v5643_v53  ;;  %4223 = vmatpush1.bf16.msra.mxu1 %v5646_v54  ;;  %v5744_v53 = vld [vmem:[%s7796_s1 + $0xd44] ss:$16 sps:$4 sm:$0xff]   ;;  %v5747_v54 = vld [vmem:[%s7796_s1 + $0xd4c] ss:$16 sps:$4 sm:$0xff]  }
 0x16c   :  { %3837 = vmatprep.subr.bf16.mxu0 %v5651_v55  ;;  %4224 = vmatprep.subr.bf16.mxu1 %v5654_v56  ;;  %v5742_v55 = vld [vmem:[%s7796_s1 + $0xd40] ss:$16 sps:$4 sm:$0xff]   ;;  %v5745_v56 = vld [vmem:[%s7796_s1 + $0xd48] ss:$16 sps:$4 sm:$0xff]  }
 0x16f   :  { %3838 = vmatpush1.bf16.msra.mxu0 %v5649_v57  ;;  %4225 = vmatpush1.bf16.msra.mxu1 %v5652_v58  ;;  %v5750_v57 = vld [vmem:[%s7796_s1 + $0xd64] ss:$16 sps:$4 sm:$0xff]   ;;  %v5753_v58 = vld [vmem:[%s7796_s1 + $0xd6c] ss:$16 sps:$4 sm:$0xff]  }
 0x170   :  { %3839 = vmatprep.subr.bf16.mxu0 %v5657_v59  ;;  %4226 = vmatprep.subr.bf16.mxu1 %v5660_v60  ;;  %v5748_v59 = vld [vmem:[%s7796_s1 + $0xd60] ss:$16 sps:$4 sm:$0xff]   ;;  %v5751_v60 = vld [vmem:[%s7796_s1 + $0xd68] ss:$16 sps:$4 sm:$0xff]  }
 0x173   :  { %3840 = vmatpush1.bf16.msra.mxu0 %v5655_v61  ;;  %4227 = vmatpush1.bf16.msra.mxu1 %v5658_v62  ;;  %v5756_v61 = vld [vmem:[%s7796_s1 + $0xd84] ss:$16 sps:$4 sm:$0xff]   ;;  %v5759_v62 = vld [vmem:[%s7796_s1 + $0xd8c] ss:$16 sps:$4 sm:$0xff]  }
 0x174   :  { %3841 = vmatprep.subr.bf16.mxu0 %v5663_v63  ;;  %4228 = vmatprep.subr.bf16.mxu1 %v5666_v0  ;;  %v5754_v63 = vld [vmem:[%s7796_s1 + $0xd80] ss:$16 sps:$4 sm:$0xff]   ;;  %v5757_v0 = vld [vmem:[%s7796_s1 + $0xd88] ss:$16 sps:$4 sm:$0xff]  }
 0x177   :  { %3842 = vmatpush1.bf16.msra.mxu0 %v5661_v1  ;;  %4229 = vmatpush1.bf16.msra.mxu1 %v5664_v2  ;;  %v5762_v1 = vld [vmem:[%s7796_s1 + $0xda4] ss:$16 sps:$4 sm:$0xff]   ;;  %v5765_v2 = vld [vmem:[%s7796_s1 + $0xdac] ss:$16 sps:$4 sm:$0xff]  }
 0x178   :  { %3843 = vmatprep.subr.bf16.mxu0 %v5669_v3  ;;  %4230 = vmatprep.subr.bf16.mxu1 %v5672_v4  ;;  %v5760_v3 = vld [vmem:[%s7796_s1 + $0xda0] ss:$16 sps:$4 sm:$0xff]   ;;  %v5763_v4 = vld [vmem:[%s7796_s1 + $0xda8] ss:$16 sps:$4 sm:$0xff]  }
 0x17b   :  { %3844 = vmatpush1.bf16.msra.mxu0 %v5667_v5  ;;  %4231 = vmatpush1.bf16.msra.mxu1 %v5670_v6  ;;  %v5768_v5 = vld [vmem:[%s7796_s1 + $0xdc4] ss:$16 sps:$4 sm:$0xff]   ;;  %v5771_v6 = vld [vmem:[%s7796_s1 + $0xdcc] ss:$16 sps:$4 sm:$0xff]  }
 0x17c   :  { %3845 = vmatprep.subr.bf16.mxu0 %v5675_v7  ;;  %4232 = vmatprep.subr.bf16.mxu1 %v5678_v8  ;;  %v5766_v7 = vld [vmem:[%s7796_s1 + $0xdc0] ss:$16 sps:$4 sm:$0xff]   ;;  %v5769_v8 = vld [vmem:[%s7796_s1 + $0xdc8] ss:$16 sps:$4 sm:$0xff]  }
 0x17f   :  { %3846 = vmatpush1.bf16.msra.mxu0 %v5673_v9  ;;  %4233 = vmatpush1.bf16.msra.mxu1 %v5676_v10  ;;  %v5774_v9 = vld [vmem:[%s7796_s1 + $0xde4] ss:$16 sps:$4 sm:$0xff]   ;;  %v5777_v10 = vld [vmem:[%s7796_s1 + $0xdec] ss:$16 sps:$4 sm:$0xff]  }
 0x180   :  { %3858 = vmatprep.subr.bf16.mxu0 %v5684_v11  ;;  %4245 = vmatprep.subr.bf16.mxu1 %v5687_v12  ;;  %v5772_v11 = vld [vmem:[%s7796_s1 + $0xde0] ss:$16 sps:$4 sm:$0xff]   ;;  %v5775_v12 = vld [vmem:[%s7796_s1 + $0xde8] ss:$16 sps:$4 sm:$0xff]  }
 0x182   :  { %3848 = vmatmul.mubr.bf16.vlgmr.msra.gmra.mrb[0].mxu0 %v5679_v13  ;;  %4235 = vmatmul.mubr.bf16.vlgmr.msra.gmra.mrb[0].mxu1 %v5679_v13  ;;  %v5783_v13 = vld [vmem:[%s7796_s1 + $0xe04] ss:$16 sps:$4 sm:$0xff]  }
 0x183   :  { %3859 = vmatpush1.bf16.msra.mxu0 %v5682_v14  ;;  %4246 = vmatpush1.bf16.msra.mxu1 %v5685_v15  ;;  %v5786_v14 = vld [vmem:[%s7796_s1 + $0xe0c] ss:$16 sps:$4 sm:$0xff]   ;;  %v5778_v15 = vld [vmem:[%s7797_s0 + $0x30] ss:$72 sps:$4 sm:$0xff]  }
 0x184   :  { %3860 = vmatprep.subr.bf16.mxu0 %v5690_v16  ;;  %4247 = vmatprep.subr.bf16.mxu1 %v5693_v17  ;;  %v5781_v16 = vld [vmem:[%s7796_s1 + $0xe00] ss:$16 sps:$4 sm:$0xff]   ;;  %v5784_v17 = vld [vmem:[%s7796_s1 + $0xe08] ss:$16 sps:$4 sm:$0xff]  }
 0x185   :  { %3890 = vmatprep.mubr.bf16.mxu0 %v5780_v18  ;;  %4277 = vmatprep.mubr.bf16.mxu1 %v5780_v18  ;;  %v5789_v18 = vld [vmem:[%s7796_s1 + $0xe24] ss:$16 sps:$4 sm:$0xff]  }
 0x187   :  { %3861 = vmatpush1.bf16.msra.mxu0 %v5688_v19  ;;  %4248 = vmatpush1.bf16.msra.mxu1 %v5691_v20  ;;  %v5792_v19 = vld [vmem:[%s7796_s1 + $0xe2c] ss:$16 sps:$4 sm:$0xff]  }
 0x188   :  { %3862 = vmatprep.subr.bf16.mxu0 %v5696_v21  ;;  %4249 = vmatprep.subr.bf16.mxu1 %v5699_v22  ;;  %v5879_v20 = vld [vmem:[%s7797_s0 + $0x3c] ss:$72 sps:$4 sm:$0xff]   ;;  %v5787_v21 = vld [vmem:[%s7796_s1 + $0xe20] ss:$16 sps:$4 sm:$0xff]   ;;  %v5790_v22 = vld [vmem:[%s7796_s1 + $0xe28] ss:$16 sps:$4 sm:$0xff]  }
 0x18b   :  { %3863 = vmatpush1.bf16.msra.mxu0 %v5694_v23  ;;  %4250 = vmatpush1.bf16.msra.mxu1 %v5697_v24  ;;  %v5795_v23 = vld [vmem:[%s7796_s1 + $0xe44] ss:$16 sps:$4 sm:$0xff]   ;;  %v5798_v24 = vld [vmem:[%s7796_s1 + $0xe4c] ss:$16 sps:$4 sm:$0xff]  }
 0x18c   :  { %3864 = vmatprep.subr.bf16.mxu0 %v5702_v25  ;;  %4251 = vmatprep.subr.bf16.mxu1 %v5705_v26  ;;  %v5793_v25 = vld [vmem:[%s7796_s1 + $0xe40] ss:$16 sps:$4 sm:$0xff]   ;;  %v5796_v26 = vld [vmem:[%s7796_s1 + $0xe48] ss:$16 sps:$4 sm:$0xff]  }
 0x18f   :  { %3865 = vmatpush1.bf16.msra.mxu0 %v5700_v27  ;;  %4252 = vmatpush1.bf16.msra.mxu1 %v5703_v28  ;;  %v5801_v27 = vld [vmem:[%s7796_s1 + $0xe64] ss:$16 sps:$4 sm:$0xff]   ;;  %v5804_v28 = vld [vmem:[%s7796_s1 + $0xe6c] ss:$16 sps:$4 sm:$0xff]  }
 0x190   :  { %3866 = vmatprep.subr.bf16.mxu0 %v5708_v29  ;;  %4253 = vmatprep.subr.bf16.mxu1 %v5711_v30  ;;  %v5799_v29 = vld [vmem:[%s7796_s1 + $0xe60] ss:$16 sps:$4 sm:$0xff]   ;;  %v5802_v30 = vld [vmem:[%s7796_s1 + $0xe68] ss:$16 sps:$4 sm:$0xff]  }
 0x193   :  { %3867 = vmatpush1.bf16.msra.mxu0 %v5706_v31  ;;  %4254 = vmatpush1.bf16.msra.mxu1 %v5709_v32  ;;  %v5807_v31 = vld [vmem:[%s7796_s1 + $0xe84] ss:$16 sps:$4 sm:$0xff]   ;;  %v5810_v32 = vld [vmem:[%s7796_s1 + $0xe8c] ss:$16 sps:$4 sm:$0xff]  }
 0x194   :  { %3868 = vmatprep.subr.bf16.mxu0 %v5714_v33  ;;  %4255 = vmatprep.subr.bf16.mxu1 %v5717_v34  ;;  %v5805_v33 = vld [vmem:[%s7796_s1 + $0xe80] ss:$16 sps:$4 sm:$0xff]   ;;  %v5808_v34 = vld [vmem:[%s7796_s1 + $0xe88] ss:$16 sps:$4 sm:$0xff]  }
 0x197   :  { %3869 = vmatpush1.bf16.msra.mxu0 %v5712_v35  ;;  %4256 = vmatpush1.bf16.msra.mxu1 %v5715_v36  ;;  %v5813_v35 = vld [vmem:[%s7796_s1 + $0xea4] ss:$16 sps:$4 sm:$0xff]   ;;  %v5816_v36 = vld [vmem:[%s7796_s1 + $0xeac] ss:$16 sps:$4 sm:$0xff]  }
 0x198   :  { %3870 = vmatprep.subr.bf16.mxu0 %v5720_v37  ;;  %4257 = vmatprep.subr.bf16.mxu1 %v5723_v38  ;;  %v5811_v37 = vld [vmem:[%s7796_s1 + $0xea0] ss:$16 sps:$4 sm:$0xff]   ;;  %v5814_v38 = vld [vmem:[%s7796_s1 + $0xea8] ss:$16 sps:$4 sm:$0xff]  }
 0x19b   :  { %3871 = vmatpush1.bf16.msra.mxu0 %v5718_v39  ;;  %4258 = vmatpush1.bf16.msra.mxu1 %v5721_v40  ;;  %v5819_v39 = vld [vmem:[%s7796_s1 + $0xec4] ss:$16 sps:$4 sm:$0xff]   ;;  %v5822_v40 = vld [vmem:[%s7796_s1 + $0xecc] ss:$16 sps:$4 sm:$0xff]  }
 0x19c   :  { %3872 = vmatprep.subr.bf16.mxu0 %v5726_v41  ;;  %4259 = vmatprep.subr.bf16.mxu1 %v5729_v42  ;;  %v5817_v41 = vld [vmem:[%s7796_s1 + $0xec0] ss:$16 sps:$4 sm:$0xff]   ;;  %v5820_v42 = vld [vmem:[%s7796_s1 + $0xec8] ss:$16 sps:$4 sm:$0xff]  }
 0x19f   :  { %3873 = vmatpush1.bf16.msra.mxu0 %v5724_v43  ;;  %4260 = vmatpush1.bf16.msra.mxu1 %v5727_v44  ;;  %v5825_v43 = vld [vmem:[%s7796_s1 + $0xee4] ss:$16 sps:$4 sm:$0xff]   ;;  %v5828_v44 = vld [vmem:[%s7796_s1 + $0xeec] ss:$16 sps:$4 sm:$0xff]  }
 0x1a0   :  { %3874 = vmatprep.subr.bf16.mxu0 %v5732_v45  ;;  %4261 = vmatprep.subr.bf16.mxu1 %v5735_v46  ;;  %v5823_v45 = vld [vmem:[%s7796_s1 + $0xee0] ss:$16 sps:$4 sm:$0xff]   ;;  %v5826_v46 = vld [vmem:[%s7796_s1 + $0xee8] ss:$16 sps:$4 sm:$0xff]  }
 0x1a3   :  { %3875 = vmatpush1.bf16.msra.mxu0 %v5730_v47  ;;  %4262 = vmatpush1.bf16.msra.mxu1 %v5733_v48  ;;  %v5831_v47 = vld [vmem:[%s7796_s1 + $0xf04] ss:$16 sps:$4 sm:$0xff]   ;;  %v5834_v48 = vld [vmem:[%s7796_s1 + $0xf0c] ss:$16 sps:$4 sm:$0xff]  }
 0x1a4   :  { %3876 = vmatprep.subr.bf16.mxu0 %v5738_v49  ;;  %4263 = vmatprep.subr.bf16.mxu1 %v5741_v50  ;;  %v5829_v49 = vld [vmem:[%s7796_s1 + $0xf00] ss:$16 sps:$4 sm:$0xff]   ;;  %v5832_v50 = vld [vmem:[%s7796_s1 + $0xf08] ss:$16 sps:$4 sm:$0xff]  }
 0x1a7   :  { %3877 = vmatpush1.bf16.msra.mxu0 %v5736_v51  ;;  %4264 = vmatpush1.bf16.msra.mxu1 %v5739_v52  ;;  %v5837_v51 = vld [vmem:[%s7796_s1 + $0xf24] ss:$16 sps:$4 sm:$0xff]   ;;  %v5840_v52 = vld [vmem:[%s7796_s1 + $0xf2c] ss:$16 sps:$4 sm:$0xff]  }
 0x1a8   :  { %3878 = vmatprep.subr.bf16.mxu0 %v5744_v53  ;;  %4265 = vmatprep.subr.bf16.mxu1 %v5747_v54  ;;  %v5835_v53 = vld [vmem:[%s7796_s1 + $0xf20] ss:$16 sps:$4 sm:$0xff]   ;;  %v5838_v54 = vld [vmem:[%s7796_s1 + $0xf28] ss:$16 sps:$4 sm:$0xff]  }
 0x1ab   :  { %3879 = vmatpush1.bf16.msra.mxu0 %v5742_v55  ;;  %4266 = vmatpush1.bf16.msra.mxu1 %v5745_v56  ;;  %v5843_v55 = vld [vmem:[%s7796_s1 + $0xf44] ss:$16 sps:$4 sm:$0xff]   ;;  %v5846_v56 = vld [vmem:[%s7796_s1 + $0xf4c] ss:$16 sps:$4 sm:$0xff]  }
 0x1ac   :  { %3880 = vmatprep.subr.bf16.mxu0 %v5750_v57  ;;  %4267 = vmatprep.subr.bf16.mxu1 %v5753_v58  ;;  %v5841_v57 = vld [vmem:[%s7796_s1 + $0xf40] ss:$16 sps:$4 sm:$0xff]   ;;  %v5844_v58 = vld [vmem:[%s7796_s1 + $0xf48] ss:$16 sps:$4 sm:$0xff]  }
 0x1af   :  { %3881 = vmatpush1.bf16.msra.mxu0 %v5748_v59  ;;  %4268 = vmatpush1.bf16.msra.mxu1 %v5751_v60  ;;  %v5849_v59 = vld [vmem:[%s7796_s1 + $0xf64] ss:$16 sps:$4 sm:$0xff]   ;;  %v5852_v60 = vld [vmem:[%s7796_s1 + $0xf6c] ss:$16 sps:$4 sm:$0xff]  }
 0x1b0   :  { %3882 = vmatprep.subr.bf16.mxu0 %v5756_v61  ;;  %4269 = vmatprep.subr.bf16.mxu1 %v5759_v62  ;;  %v5847_v61 = vld [vmem:[%s7796_s1 + $0xf60] ss:$16 sps:$4 sm:$0xff]   ;;  %v5850_v62 = vld [vmem:[%s7796_s1 + $0xf68] ss:$16 sps:$4 sm:$0xff]  }
 0x1b3   :  { %3883 = vmatpush1.bf16.msra.mxu0 %v5754_v63  ;;  %4270 = vmatpush1.bf16.msra.mxu1 %v5757_v0  ;;  %v5855_v63 = vld [vmem:[%s7796_s1 + $0xf84] ss:$16 sps:$4 sm:$0xff]   ;;  %v5858_v0 = vld [vmem:[%s7796_s1 + $0xf8c] ss:$16 sps:$4 sm:$0xff]  }
 0x1b4   :  { %3884 = vmatprep.subr.bf16.mxu0 %v5762_v1  ;;  %4271 = vmatprep.subr.bf16.mxu1 %v5765_v2  ;;  %v5853_v1 = vld [vmem:[%s7796_s1 + $0xf80] ss:$16 sps:$4 sm:$0xff]   ;;  %v5856_v2 = vld [vmem:[%s7796_s1 + $0xf88] ss:$16 sps:$4 sm:$0xff]  }
 0x1b7   :  { %3885 = vmatpush1.bf16.msra.mxu0 %v5760_v3  ;;  %4272 = vmatpush1.bf16.msra.mxu1 %v5763_v4  ;;  %v5861_v3 = vld [vmem:[%s7796_s1 + $0xfa4] ss:$16 sps:$4 sm:$0xff]   ;;  %v5864_v4 = vld [vmem:[%s7796_s1 + $0xfac] ss:$16 sps:$4 sm:$0xff]  }
 0x1b8   :  { %3886 = vmatprep.subr.bf16.mxu0 %v5768_v5  ;;  %4273 = vmatprep.subr.bf16.mxu1 %v5771_v6  ;;  %v5859_v5 = vld [vmem:[%s7796_s1 + $0xfa0] ss:$16 sps:$4 sm:$0xff]   ;;  %v5862_v6 = vld [vmem:[%s7796_s1 + $0xfa8] ss:$16 sps:$4 sm:$0xff]  }
 0x1bb   :  { %3887 = vmatpush1.bf16.msra.mxu0 %v5766_v7  ;;  %4274 = vmatpush1.bf16.msra.mxu1 %v5769_v8  ;;  %v5867_v7 = vld [vmem:[%s7796_s1 + $0xfc4] ss:$16 sps:$4 sm:$0xff]   ;;  %v5870_v8 = vld [vmem:[%s7796_s1 + $0xfcc] ss:$16 sps:$4 sm:$0xff]  }
 0x1bc   :  { %3888 = vmatprep.subr.bf16.mxu0 %v5774_v9  ;;  %4275 = vmatprep.subr.bf16.mxu1 %v5777_v10  ;;  %v5865_v9 = vld [vmem:[%s7796_s1 + $0xfc0] ss:$16 sps:$4 sm:$0xff]   ;;  %v5868_v10 = vld [vmem:[%s7796_s1 + $0xfc8] ss:$16 sps:$4 sm:$0xff]  }
 0x1bf   :  { %3889 = vmatpush1.bf16.msra.mxu0 %v5772_v11  ;;  %4276 = vmatpush1.bf16.msra.mxu1 %v5775_v12  ;;  %v5873_v11 = vld [vmem:[%s7796_s1 + $0xfe4] ss:$16 sps:$4 sm:$0xff]   ;;  %v5876_v12 = vld [vmem:[%s7796_s1 + $0xfec] ss:$16 sps:$4 sm:$0xff]  }
 0x1c0   :  { %3901 = vmatprep.subr.bf16.mxu0 %v5783_v13  ;;  %4288 = vmatprep.subr.bf16.mxu1 %v5786_v14  ;;  %v5871_v13 = vld [vmem:[%s7796_s1 + $0xfe0] ss:$16 sps:$4 sm:$0xff]   ;;  %v5874_v14 = vld [vmem:[%s7796_s1 + $0xfe8] ss:$16 sps:$4 sm:$0xff]  }
 0x1c2   :  { %3891 = vmatmul.mubr.bf16.vlgmr.msra.gmra.mrb[0].mxu0 %v5778_v15  ;;  %4278 = vmatmul.mubr.bf16.vlgmr.msra.gmra.mrb[0].mxu1 %v5778_v15  ;;  %v5882_v15 = vld [vmem:[%s7796_s1 + $0x1004] ss:$16 sps:$4 sm:$0xff]  }
 0x1c3   :  { %3902 = vmatpush1.bf16.msra.mxu0 %v5781_v16  ;;  %4289 = vmatpush1.bf16.msra.mxu1 %v5784_v17  ;;  %v5885_v16 = vld [vmem:[%s7796_s1 + $0x100c] ss:$16 sps:$4 sm:$0xff]   ;;  %v5877_v17 = vld [vmem:[%s7797_s0 + $0x38] ss:$72 sps:$4 sm:$0xff]  }
 0x1c4   :  { %3903 = vmatprep.subr.bf16.mxu0 %v5789_v18  ;;  %4290 = vmatprep.subr.bf16.mxu1 %v5792_v19  ;;  %v5880_v18 = vld [vmem:[%s7796_s1 + $0x1000] ss:$16 sps:$4 sm:$0xff]   ;;  %v5883_v19 = vld [vmem:[%s7796_s1 + $0x1008] ss:$16 sps:$4 sm:$0xff]  }
 0x1c5   :  { %3933 = vmatprep.mubr.bf16.mxu0 %v5879_v20  ;;  %4320 = vmatprep.mubr.bf16.mxu1 %v5879_v20  ;;  %v5888_v20 = vld [vmem:[%s7796_s1 + $0x1024] ss:$16 sps:$4 sm:$0xff]  }
 0x1c7   :  { %3904 = vmatpush1.bf16.msra.mxu0 %v5787_v21  ;;  %4291 = vmatpush1.bf16.msra.mxu1 %v5790_v22  ;;  %v5891_v21 = vld [vmem:[%s7796_s1 + $0x102c] ss:$16 sps:$4 sm:$0xff]  }
 0x1c8   :  { %3905 = vmatprep.subr.bf16.mxu0 %v5795_v23  ;;  %4292 = vmatprep.subr.bf16.mxu1 %v5798_v24  ;;  %v5978_v22 = vld [vmem:[%s7797_s0 + $0x44] ss:$72 sps:$4 sm:$0xff]   ;;  %v5886_v23 = vld [vmem:[%s7796_s1 + $0x1020] ss:$16 sps:$4 sm:$0xff]   ;;  %v5889_v24 = vld [vmem:[%s7796_s1 + $0x1028] ss:$16 sps:$4 sm:$0xff]  }
 0x1cb   :  { %3906 = vmatpush1.bf16.msra.mxu0 %v5793_v25  ;;  %4293 = vmatpush1.bf16.msra.mxu1 %v5796_v26  ;;  %v5894_v25 = vld [vmem:[%s7796_s1 + $0x1044] ss:$16 sps:$4 sm:$0xff]   ;;  %v5897_v26 = vld [vmem:[%s7796_s1 + $0x104c] ss:$16 sps:$4 sm:$0xff]  }
 0x1cc   :  { %3907 = vmatprep.subr.bf16.mxu0 %v5801_v27  ;;  %4294 = vmatprep.subr.bf16.mxu1 %v5804_v28  ;;  %v5892_v27 = vld [vmem:[%s7796_s1 + $0x1040] ss:$16 sps:$4 sm:$0xff]   ;;  %v5895_v28 = vld [vmem:[%s7796_s1 + $0x1048] ss:$16 sps:$4 sm:$0xff]  }
 0x1cf   :  { %3908 = vmatpush1.bf16.msra.mxu0 %v5799_v29  ;;  %4295 = vmatpush1.bf16.msra.mxu1 %v5802_v30  ;;  %v5900_v29 = vld [vmem:[%s7796_s1 + $0x1064] ss:$16 sps:$4 sm:$0xff]   ;;  %v5903_v30 = vld [vmem:[%s7796_s1 + $0x106c] ss:$16 sps:$4 sm:$0xff]  }
 0x1d0   :  { %3909 = vmatprep.subr.bf16.mxu0 %v5807_v31  ;;  %4296 = vmatprep.subr.bf16.mxu1 %v5810_v32  ;;  %v5898_v31 = vld [vmem:[%s7796_s1 + $0x1060] ss:$16 sps:$4 sm:$0xff]   ;;  %v5901_v32 = vld [vmem:[%s7796_s1 + $0x1068] ss:$16 sps:$4 sm:$0xff]  }
 0x1d3   :  { %3910 = vmatpush1.bf16.msra.mxu0 %v5805_v33  ;;  %4297 = vmatpush1.bf16.msra.mxu1 %v5808_v34  ;;  %v5906_v33 = vld [vmem:[%s7796_s1 + $0x1084] ss:$16 sps:$4 sm:$0xff]   ;;  %v5909_v34 = vld [vmem:[%s7796_s1 + $0x108c] ss:$16 sps:$4 sm:$0xff]  }
 0x1d4   :  { %3911 = vmatprep.subr.bf16.mxu0 %v5813_v35  ;;  %4298 = vmatprep.subr.bf16.mxu1 %v5816_v36  ;;  %v5904_v35 = vld [vmem:[%s7796_s1 + $0x1080] ss:$16 sps:$4 sm:$0xff]   ;;  %v5907_v36 = vld [vmem:[%s7796_s1 + $0x1088] ss:$16 sps:$4 sm:$0xff]  }
 0x1d7   :  { %3912 = vmatpush1.bf16.msra.mxu0 %v5811_v37  ;;  %4299 = vmatpush1.bf16.msra.mxu1 %v5814_v38  ;;  %v5912_v37 = vld [vmem:[%s7796_s1 + $0x10a4] ss:$16 sps:$4 sm:$0xff]   ;;  %v5915_v38 = vld [vmem:[%s7796_s1 + $0x10ac] ss:$16 sps:$4 sm:$0xff]  }
 0x1d8   :  { %3913 = vmatprep.subr.bf16.mxu0 %v5819_v39  ;;  %4300 = vmatprep.subr.bf16.mxu1 %v5822_v40  ;;  %v5910_v39 = vld [vmem:[%s7796_s1 + $0x10a0] ss:$16 sps:$4 sm:$0xff]   ;;  %v5913_v40 = vld [vmem:[%s7796_s1 + $0x10a8] ss:$16 sps:$4 sm:$0xff]  }
 0x1db   :  { %3914 = vmatpush1.bf16.msra.mxu0 %v5817_v41  ;;  %4301 = vmatpush1.bf16.msra.mxu1 %v5820_v42  ;;  %v5918_v41 = vld [vmem:[%s7796_s1 + $0x10c4] ss:$16 sps:$4 sm:$0xff]   ;;  %v5921_v42 = vld [vmem:[%s7796_s1 + $0x10cc] ss:$16 sps:$4 sm:$0xff]  }
 0x1dc   :  { %3915 = vmatprep.subr.bf16.mxu0 %v5825_v43  ;;  %4302 = vmatprep.subr.bf16.mxu1 %v5828_v44  ;;  %v5916_v43 = vld [vmem:[%s7796_s1 + $0x10c0] ss:$16 sps:$4 sm:$0xff]   ;;  %v5919_v44 = vld [vmem:[%s7796_s1 + $0x10c8] ss:$16 sps:$4 sm:$0xff]  }
 0x1df   :  { %3916 = vmatpush1.bf16.msra.mxu0 %v5823_v45  ;;  %4303 = vmatpush1.bf16.msra.mxu1 %v5826_v46  ;;  %v5924_v45 = vld [vmem:[%s7796_s1 + $0x10e4] ss:$16 sps:$4 sm:$0xff]   ;;  %v5927_v46 = vld [vmem:[%s7796_s1 + $0x10ec] ss:$16 sps:$4 sm:$0xff]  }
 0x1e0   :  { %3917 = vmatprep.subr.bf16.mxu0 %v5831_v47  ;;  %4304 = vmatprep.subr.bf16.mxu1 %v5834_v48  ;;  %v5922_v47 = vld [vmem:[%s7796_s1 + $0x10e0] ss:$16 sps:$4 sm:$0xff]   ;;  %v5925_v48 = vld [vmem:[%s7796_s1 + $0x10e8] ss:$16 sps:$4 sm:$0xff]  }
 0x1e3   :  { %3918 = vmatpush1.bf16.msra.mxu0 %v5829_v49  ;;  %4305 = vmatpush1.bf16.msra.mxu1 %v5832_v50  ;;  %v5930_v49 = vld [vmem:[%s7796_s1 + $0x1104] ss:$16 sps:$4 sm:$0xff]   ;;  %v5933_v50 = vld [vmem:[%s7796_s1 + $0x110c] ss:$16 sps:$4 sm:$0xff]  }
 0x1e4   :  { %3919 = vmatprep.subr.bf16.mxu0 %v5837_v51  ;;  %4306 = vmatprep.subr.bf16.mxu1 %v5840_v52  ;;  %v5928_v51 = vld [vmem:[%s7796_s1 + $0x1100] ss:$16 sps:$4 sm:$0xff]   ;;  %v5931_v52 = vld [vmem:[%s7796_s1 + $0x1108] ss:$16 sps:$4 sm:$0xff]  }
 0x1e7   :  { %3920 = vmatpush1.bf16.msra.mxu0 %v5835_v53  ;;  %4307 = vmatpush1.bf16.msra.mxu1 %v5838_v54  ;;  %v5936_v53 = vld [vmem:[%s7796_s1 + $0x1124] ss:$16 sps:$4 sm:$0xff]   ;;  %v5939_v54 = vld [vmem:[%s7796_s1 + $0x112c] ss:$16 sps:$4 sm:$0xff]  }
 0x1e8   :  { %3921 = vmatprep.subr.bf16.mxu0 %v5843_v55  ;;  %4308 = vmatprep.subr.bf16.mxu1 %v5846_v56  ;;  %v5934_v55 = vld [vmem:[%s7796_s1 + $0x1120] ss:$16 sps:$4 sm:$0xff]   ;;  %v5937_v56 = vld [vmem:[%s7796_s1 + $0x1128] ss:$16 sps:$4 sm:$0xff]  }
 0x1eb   :  { %3922 = vmatpush1.bf16.msra.mxu0 %v5841_v57  ;;  %4309 = vmatpush1.bf16.msra.mxu1 %v5844_v58  ;;  %v5942_v57 = vld [vmem:[%s7796_s1 + $0x1144] ss:$16 sps:$4 sm:$0xff]   ;;  %v5945_v58 = vld [vmem:[%s7796_s1 + $0x114c] ss:$16 sps:$4 sm:$0xff]  }
 0x1ec   :  { %3923 = vmatprep.subr.bf16.mxu0 %v5849_v59  ;;  %4310 = vmatprep.subr.bf16.mxu1 %v5852_v60  ;;  %v5940_v59 = vld [vmem:[%s7796_s1 + $0x1140] ss:$16 sps:$4 sm:$0xff]   ;;  %v5943_v60 = vld [vmem:[%s7796_s1 + $0x1148] ss:$16 sps:$4 sm:$0xff]  }
 0x1ef   :  { %3924 = vmatpush1.bf16.msra.mxu0 %v5847_v61  ;;  %4311 = vmatpush1.bf16.msra.mxu1 %v5850_v62  ;;  %v5948_v61 = vld [vmem:[%s7796_s1 + $0x1164] ss:$16 sps:$4 sm:$0xff]   ;;  %v5951_v62 = vld [vmem:[%s7796_s1 + $0x116c] ss:$16 sps:$4 sm:$0xff]  }
 0x1f0   :  { %3925 = vmatprep.subr.bf16.mxu0 %v5855_v63  ;;  %4312 = vmatprep.subr.bf16.mxu1 %v5858_v0  ;;  %v5946_v63 = vld [vmem:[%s7796_s1 + $0x1160] ss:$16 sps:$4 sm:$0xff]   ;;  %v5949_v0 = vld [vmem:[%s7796_s1 + $0x1168] ss:$16 sps:$4 sm:$0xff]  }
 0x1f3   :  { %3926 = vmatpush1.bf16.msra.mxu0 %v5853_v1  ;;  %4313 = vmatpush1.bf16.msra.mxu1 %v5856_v2  ;;  %v5954_v1 = vld [vmem:[%s7796_s1 + $0x1184] ss:$16 sps:$4 sm:$0xff]   ;;  %v5957_v2 = vld [vmem:[%s7796_s1 + $0x118c] ss:$16 sps:$4 sm:$0xff]  }
 0x1f4   :  { %3927 = vmatprep.subr.bf16.mxu0 %v5861_v3  ;;  %4314 = vmatprep.subr.bf16.mxu1 %v5864_v4  ;;  %v5952_v3 = vld [vmem:[%s7796_s1 + $0x1180] ss:$16 sps:$4 sm:$0xff]   ;;  %v5955_v4 = vld [vmem:[%s7796_s1 + $0x1188] ss:$16 sps:$4 sm:$0xff]  }
 0x1f7   :  { %3928 = vmatpush1.bf16.msra.mxu0 %v5859_v5  ;;  %4315 = vmatpush1.bf16.msra.mxu1 %v5862_v6  ;;  %v5960_v5 = vld [vmem:[%s7796_s1 + $0x11a4] ss:$16 sps:$4 sm:$0xff]   ;;  %v5963_v6 = vld [vmem:[%s7796_s1 + $0x11ac] ss:$16 sps:$4 sm:$0xff]  }
 0x1f8   :  { %3929 = vmatprep.subr.bf16.mxu0 %v5867_v7  ;;  %4316 = vmatprep.subr.bf16.mxu1 %v5870_v8  ;;  %v5958_v7 = vld [vmem:[%s7796_s1 + $0x11a0] ss:$16 sps:$4 sm:$0xff]   ;;  %v5961_v8 = vld [vmem:[%s7796_s1 + $0x11a8] ss:$16 sps:$4 sm:$0xff]  }
 0x1fb   :  { %3930 = vmatpush1.bf16.msra.mxu0 %v5865_v9  ;;  %4317 = vmatpush1.bf16.msra.mxu1 %v5868_v10  ;;  %v5966_v9 = vld [vmem:[%s7796_s1 + $0x11c4] ss:$16 sps:$4 sm:$0xff]   ;;  %v5969_v10 = vld [vmem:[%s7796_s1 + $0x11cc] ss:$16 sps:$4 sm:$0xff]  }
 0x1fc   :  { %3931 = vmatprep.subr.bf16.mxu0 %v5873_v11  ;;  %4318 = vmatprep.subr.bf16.mxu1 %v5876_v12  ;;  %v5964_v11 = vld [vmem:[%s7796_s1 + $0x11c0] ss:$16 sps:$4 sm:$0xff]   ;;  %v5967_v12 = vld [vmem:[%s7796_s1 + $0x11c8] ss:$16 sps:$4 sm:$0xff]  }
 0x1ff   :  { %3932 = vmatpush1.bf16.msra.mxu0 %v5871_v13  ;;  %4319 = vmatpush1.bf16.msra.mxu1 %v5874_v14  ;;  %v5972_v13 = vld [vmem:[%s7796_s1 + $0x11e4] ss:$16 sps:$4 sm:$0xff]   ;;  %v5975_v14 = vld [vmem:[%s7796_s1 + $0x11ec] ss:$16 sps:$4 sm:$0xff]  }
 0x200   :  { %3944 = vmatprep.subr.bf16.mxu0 %v5882_v15  ;;  %4331 = vmatprep.subr.bf16.mxu1 %v5885_v16  ;;  %v5970_v15 = vld [vmem:[%s7796_s1 + $0x11e0] ss:$16 sps:$4 sm:$0xff]   ;;  %v5973_v16 = vld [vmem:[%s7796_s1 + $0x11e8] ss:$16 sps:$4 sm:$0xff]  }
 0x202   :  { %3934 = vmatmul.mubr.bf16.vlgmr.msra.gmra.mrb[0].mxu0 %v5877_v17  ;;  %4321 = vmatmul.mubr.bf16.vlgmr.msra.gmra.mrb[0].mxu1 %v5877_v17  ;;  %v5976_v17 = vld [vmem:[%s7797_s0 + $0x40] ss:$72 sps:$4 sm:$0xff]  }
 0x203   :  { %3945 = vmatpush1.bf16.msra.mxu0 %v5880_v18  ;;  %4332 = vmatpush1.bf16.msra.mxu1 %v5883_v19  ;;  %v610_v18 = vlaneseq }
 0x204   :  { %3946 = vmatprep.subr.bf16.mxu0 %v5888_v20  ;;  %4333 = vmatprep.subr.bf16.mxu1 %v5891_v21 }
 0x205   :  { %3976 = vmatprep.mubr.bf16.mxu0 %v5978_v22  ;;  %4363 = vmatprep.mubr.bf16.mxu1 %v5978_v22  ;;  %v611_v19 = vshrl.u32 %v610_v18, 7  ;;  %v608_v22 = vld [vmem:[%s7798_s2] sm:$0xf] }
 0x207   :  { %3947 = vmatpush1.bf16.msra.mxu0 %v5886_v23  ;;  %4334 = vmatpush1.bf16.msra.mxu1 %v5889_v24  ;;  %v612_v20 = vsub.s32 0, %v611_v19  ;;  %v620_v21 = vsub.s32 2, %v611_v19  ;;  %v616_v23 = vsub.s32 1, %v611_v19  ;;  %v624_v24 = vsub.s32 3, %v611_v19 }
 0x208   :  { %3948 = vmatprep.subr.bf16.mxu0 %v5894_v25  ;;  %4335 = vmatprep.subr.bf16.mxu1 %v5897_v26 }
 0x209   :  { %v613_v25 = vrot.slane %v608_v22, %v612_v20  ;;  %v621_v26 = vrot.slane %v608_v22, %v620_v21 }
 0x20b   :  { %3949 = vmatpush1.bf16.msra.mxu0 %v5892_v27  ;;  %4336 = vmatpush1.bf16.msra.mxu1 %v5895_v28  ;;  %v617_v27 = vrot.slane %v608_v22, %v616_v23  ;;  %v625_v28 = vrot.slane %v608_v22, %v624_v24 }
 0x20c   :  { %3950 = vmatprep.subr.bf16.mxu0 %v5900_v29  ;;  %4337 = vmatprep.subr.bf16.mxu1 %v5903_v30 }
 0x20f   :  { %3951 = vmatpush1.bf16.msra.mxu0 %v5898_v31  ;;  %4338 = vmatpush1.bf16.msra.mxu1 %v5901_v32 }
 0x210   :  { %3952 = vmatprep.subr.bf16.mxu0 %v5906_v33  ;;  %4339 = vmatprep.subr.bf16.mxu1 %v5909_v34 }
 0x213   :  { %3953 = vmatpush1.bf16.msra.mxu0 %v5904_v35  ;;  %4340 = vmatpush1.bf16.msra.mxu1 %v5907_v36 }
 0x214   :  { %3954 = vmatprep.subr.bf16.mxu0 %v5912_v37  ;;  %4341 = vmatprep.subr.bf16.mxu1 %v5915_v38 }
 0x217   :  { %3955 = vmatpush1.bf16.msra.mxu0 %v5910_v39  ;;  %4342 = vmatpush1.bf16.msra.mxu1 %v5913_v40 }
 0x218   :  { %3956 = vmatprep.subr.bf16.mxu0 %v5918_v41  ;;  %4343 = vmatprep.subr.bf16.mxu1 %v5921_v42 }
 0x21b   :  { %3957 = vmatpush1.bf16.msra.mxu0 %v5916_v43  ;;  %4344 = vmatpush1.bf16.msra.mxu1 %v5919_v44 }
 0x21c   :  { %3958 = vmatprep.subr.bf16.mxu0 %v5924_v45  ;;  %4345 = vmatprep.subr.bf16.mxu1 %v5927_v46 }
 0x21f   :  { %3959 = vmatpush1.bf16.msra.mxu0 %v5922_v47  ;;  %4346 = vmatpush1.bf16.msra.mxu1 %v5925_v48 }
 0x220   :  { %3960 = vmatprep.subr.bf16.mxu0 %v5930_v49  ;;  %4347 = vmatprep.subr.bf16.mxu1 %v5933_v50 }
 0x223   :  { %3961 = vmatpush1.bf16.msra.mxu0 %v5928_v51  ;;  %4348 = vmatpush1.bf16.msra.mxu1 %v5931_v52 }
 0x224   :  { %3962 = vmatprep.subr.bf16.mxu0 %v5936_v53  ;;  %4349 = vmatprep.subr.bf16.mxu1 %v5939_v54 }
 0x227   :  { %3963 = vmatpush1.bf16.msra.mxu0 %v5934_v55  ;;  %4350 = vmatpush1.bf16.msra.mxu1 %v5937_v56 }
 0x228   :  { %3964 = vmatprep.subr.bf16.mxu0 %v5942_v57  ;;  %4351 = vmatprep.subr.bf16.mxu1 %v5945_v58 }
 0x22b   :  { %3965 = vmatpush1.bf16.msra.mxu0 %v5940_v59  ;;  %4352 = vmatpush1.bf16.msra.mxu1 %v5943_v60 }
 0x22c   :  { %3966 = vmatprep.subr.bf16.mxu0 %v5948_v61  ;;  %4353 = vmatprep.subr.bf16.mxu1 %v5951_v62 }
 0x22f   :  { %3967 = vmatpush1.bf16.msra.mxu0 %v5946_v63  ;;  %4354 = vmatpush1.bf16.msra.mxu1 %v5949_v0 }
 0x230   :  { %3968 = vmatprep.subr.bf16.mxu0 %v5954_v1  ;;  %4355 = vmatprep.subr.bf16.mxu1 %v5957_v2 }
 0x233   :  { %3969 = vmatpush1.bf16.msra.mxu0 %v5952_v3  ;;  %4356 = vmatpush1.bf16.msra.mxu1 %v5955_v4 }
 0x234   :  { %3970 = vmatprep.subr.bf16.mxu0 %v5960_v5  ;;  %4357 = vmatprep.subr.bf16.mxu1 %v5963_v6 }
 0x237   :  { %3971 = vmatpush1.bf16.msra.mxu0 %v5958_v7  ;;  %4358 = vmatpush1.bf16.msra.mxu1 %v5961_v8 }
 0x238   :  { %3972 = vmatprep.subr.bf16.mxu0 %v5966_v9  ;;  %4359 = vmatprep.subr.bf16.mxu1 %v5969_v10 }
 0x23b   :  { %3973 = vmatpush1.bf16.msra.mxu0 %v5964_v11  ;;  %4360 = vmatpush1.bf16.msra.mxu1 %v5967_v12 }
 0x23c   :  { %3974 = vmatprep.subr.bf16.mxu0 %v5972_v13  ;;  %4361 = vmatprep.subr.bf16.mxu1 %v5975_v14 }
 0x23f   :  { %3975 = vmatpush1.bf16.msra.mxu0 %v5970_v15  ;;  %4362 = vmatpush1.bf16.msra.mxu1 %v5973_v16 }
 0x242   :  { %3977 = vmatmul.mubr.bf16.vlgmr.msra.gmra.mrb[0].mxu0 %v5976_v17  ;;  %4364 = vmatmul.mubr.bf16.vlgmr.msra.gmra.mrb[0].mxu1 %v5976_v17 }
 0x315   :  { %v3978_v29 = vpop.f32.mrb[0].mxu0  ;;  %v4365_v30 = vpop.f32.mrb[0].mxu1 }
 0x316   :  { %v5016_v31 = vadd.f32 %v3978_v29, %v613_v25  ;;  %v5020_v32 = vadd.f32 %v4365_v30, %v621_v26  ;;  %v3980_v33 = vpop.f32.mrb[1].mxu0  ;;  %v4367_v34 = vpop.f32.mrb[1].mxu1 }
 0x317   :  { %v5017_v35 = vadd.f32 %v3980_v33, %v617_v27  ;;  %v5021_v36 = vadd.f32 %v4367_v34, %v625_v28  ;;  %v3982_v37 = vpop.f32.mrb[2].mxu0  ;;  %v4369_v38 = vpop.f32.mrb[2].mxu1 }
 0x318   :  { %v4374_v39 = vmax.f32 %v5016_v31, 0.0  ;;  %v4376_v40 = vmax.f32 %v5020_v32, 0.0  ;;  %v5018_v41 = vadd.f32 %v3982_v37, %v613_v25  ;;  %v5022_v42 = vadd.f32 %v4369_v38, %v621_v26  ;;  %v3984_v43 = vpop.f32.mrb[3].mxu0  ;;  %v4371_v44 = vpop.f32.mrb[3].mxu1 }
 0x319   :  { %v4375_v45 = vmax.f32 %v5017_v35, 0.0  ;;  %v4377_v46 = vmax.f32 %v5021_v36, 0.0  ;;  %v5019_v47 = vadd.f32 %v3984_v43, %v617_v27  ;;  %v5023_v48 = vadd.f32 %v4371_v44, %v625_v28 }
 0x31a   :  { %v4378_v49 = vmax.f32 %v5018_v41, 0.0  ;;  %v4380_v50 = vmax.f32 %v5022_v42, 0.0 }
 0x31b   :  { %v5012_v51 = vpack.c.bf16 %v4375_v45, %v4374_v39  ;;  %v5013_v52 = vpack.c.bf16 %v4377_v46, %v4376_v40  ;;  %v4379_v53 = vmax.f32 %v5019_v47, 0.0  ;;  %v4381_v54 = vmax.f32 %v5023_v48, 0.0 }
 0x31d   :  { %4406 = vst [vmem:[%s7799_s3] sm:$0xff] %v5012_v51  ;;  %4407 = vst [vmem:[%s7799_s3 + $0x8] sm:$0xff] %v5013_v52  ;;  %v5014_v55 = vpack.c.bf16 %v4379_v53, %v4378_v49  ;;  %v5015_v56 = vpack.c.bf16 %v4381_v54, %v4380_v50 }
 0x31f   :  { %4408 = vst [vmem:[%s7799_s3 + $0x10] sm:$0xff] %v5014_v55  ;;  %4409 = vst [vmem:[%s7799_s3 + $0x18] sm:$0xff] %v5015_v56 }

</bundles_post_ra>
